<compile_context>
chip_gen: v7x
topology: tpu7x:2x2x1
jax: 0.10.0
libtpu: 0.0.40
codegen_flags: <defaults>
</compile_context>

<pallas_src>
import jax
import jax.numpy as jnp
from jax import lax
from jax.experimental import pallas as pl
from jax.experimental.pallas import tpu as pltpu


def _round_up(n, m):
    return ((n + m - 1) // m) * m


# ----------------------------------------------------------------------------
# Fused whole-model kernel factory.
#   inputs : tids (S*Bp, 1) int32, emb (Vp, Ep) f32,
#            per layer: wih (D_in_pad, 8*Hp) bf16, whh_f (Hp, 4*Hp) bf16,
#                       whh_b (Hp, 4*Hp) bf16, bias (1, 8*Hp) f32,
#            fc_w_t (2*Hp, Cp) bf16, fc_b (1, Cp) f32
#   output : logits (Bp, Cp) f32
#   scratch: gx_sc (S, Bp, 8*Hp) f32 (hoisted gates, both directions),
#            hseq_sc (S, Bp, 2*Hp) f32 (per-layer bidirectional h sequence)
# Gate order matches PyTorch: [i, f, g, o]; each gate occupies a 128-lane block.
# ----------------------------------------------------------------------------
def _make_model_kernel(num_layers):
    def kernel(*refs):
        tids_ref, emb_ref = refs[0], refs[1]
        layer_refs = refs[2:2 + 4 * num_layers]
        fcw_ref = refs[2 + 4 * num_layers]
        fcb_ref = refs[3 + 4 * num_layers]
        out_ref = refs[4 + 4 * num_layers]
        gx_sc = refs[5 + 4 * num_layers]
        hseq_sc = refs[6 + 4 * num_layers]

        S, Bp, H2 = hseq_sc.shape
        Hp = H2 // 2
        SB = S * Bp
        Vp = emb_ref.shape[0]

        # ---- Embedding as one-hot MXU matmul (f32: exact row selection) ------
        lane_ids = lax.broadcasted_iota(jnp.int32, (SB, Vp), 1)
        onehot = jnp.where(tids_ref[...] == lane_ids, 1.0, 0.0)
        x0 = jnp.dot(onehot, emb_ref[...], preferred_element_type=jnp.float32)

        def _cell(gates, c_prev):
            # Lane-aligned gate slices (Hp is a multiple of 128); f32 math.
            i_g = jax.nn.sigmoid(gates[:, 0 * Hp:1 * Hp])
            f_g = jax.nn.sigmoid(gates[:, 1 * Hp:2 * Hp])
            g_g = jnp.tanh(gates[:, 2 * Hp:3 * Hp])
            o_g = jax.nn.sigmoid(gates[:, 3 * Hp:4 * Hp])
            c_new = f_g * c_prev + i_g * g_g
            h_new = o_g * jnp.tanh(c_new)
            return h_new, c_new

        def run_layer(x2d, wih_ref, whhf_ref, whhb_ref, b_ref):
            # Hoisted input projection: BOTH directions in one bf16 MXU matmul.
            gx_sc[...] = (
                jnp.dot(x2d.astype(jnp.bfloat16), wih_ref[...],
                        preferred_element_type=jnp.float32)
                + b_ref[...]
            ).reshape(S, Bp, 8 * Hp)

            zeros = jnp.zeros((Bp, Hp), jnp.float32)

            def step(k, carry):
                h_f, c_f, h_b, c_b = carry           # live in vregs (unrolled)
                kr = S - 1 - k                       # backward dir, no flips
                gf = gx_sc[k, :, 0:4 * Hp] + jnp.dot(
                    h_f.astype(jnp.bfloat16), whhf_ref[...],
                    preferred_element_type=jnp.float32)
                gb = gx_sc[kr, :, 4 * Hp:8 * Hp] + jnp.dot(
                    h_b.astype(jnp.bfloat16), whhb_ref[...],
                    preferred_element_type=jnp.float32)
                h_f, c_f = _cell(gf, c_f)
                h_b, c_b = _cell(gb, c_b)
                hseq_sc[k, :, 0:Hp] = h_f
                hseq_sc[kr, :, Hp:2 * Hp] = h_b
                return (h_f, c_f, h_b, c_b)

            lax.fori_loop(0, S, step, (zeros, zeros, zeros, zeros), unroll=True)

        x2d = x0
        for l in range(num_layers):
            wih_ref, whhf_ref, whhb_ref, b_ref = layer_refs[4 * l:4 * l + 4]
            run_layer(x2d, wih_ref, whhf_ref, whhb_ref, b_ref)
            if l + 1 < num_layers:
                # Layer output (written above) becomes next layer's input.
                x2d = hseq_sc[...].reshape(SB, 2 * Hp)

        # ---- Final Linear on the last time step of the final layer ----------
        out_ref[...] = (
            jnp.dot(hseq_sc[S - 1].astype(jnp.bfloat16), fcw_ref[...],
                    preferred_element_type=jnp.float32)
            + fcb_ref[...]
        )

    return kernel


# ----------------------------------------------------------------------------
# Parameter initialization (deterministic, synthetic) + packing to padded,
# pre-transposed, bf16 kernel layout.  Zero padding of weights/biases keeps the
# padded gate lanes identically 0 through the recurrence (exact).
# ----------------------------------------------------------------------------
def _pack_bilstm_layer(fwd, bwd, H, Hp, row_map, d_in_pad):
    wih = jnp.zeros((d_in_pad, 8 * Hp), jnp.float32)
    bias = jnp.zeros((1, 8 * Hp), jnp.float32)
    whh_out = []
    for d, (w_ih, w_hh, b_ih, b_hh) in enumerate((fwd, bwd)):
        off = d * 4 * Hp
        whh = jnp.zeros((Hp, 4 * Hp), jnp.float32)
        for g in range(4):
            wih = wih.at[row_map, off + g * Hp: off + g * Hp + H].set(
                jnp.transpose(w_ih[g * H:(g + 1) * H, :]))
            whh = whh.at[:H, g * Hp:g * Hp + H].set(
                jnp.transpose(w_hh[g * H:(g + 1) * H, :]))
            bias = bias.at[0, off + g * Hp: off + g * Hp + H].set(
                b_ih[g * H:(g + 1) * H] + b_hh[g * H:(g + 1) * H])
        whh_out.append(whh.astype(jnp.bfloat16))
    return wih.astype(jnp.bfloat16), whh_out[0], whh_out[1], bias


def init_params(key, vocab, emb_dim, hidden, layers, classes):
    H = hidden
    Hp = _round_up(H, 128)
    Ep = _round_up(emb_dim, 128)
    Cp = _round_up(classes, 128)
    Vp = _round_up(vocab, 128)

    keys = jax.random.split(key, 3 + 8 * layers)
    k_iter = iter(keys)

    embedding = 0.1 * jax.random.normal(next(k_iter), (vocab, emb_dim), jnp.float32)
    embedding = embedding.at[vocab - 1].set(0.0)  # padding_idx = vocab - 1

    scale = 1.0 / jnp.sqrt(jnp.float32(H))

    def uni(k, shape):
        return jax.random.uniform(k, shape, jnp.float32, -scale, scale)

    raw_layers = []
    for l in range(layers):
        d_in = emb_dim if l == 0 else 2 * H
        lyr = {}
        for direction in ("fwd", "bwd"):
            lyr[direction] = (
                uni(next(k_iter), (4 * H, d_in)),   # w_ih (PyTorch shape)
                uni(next(k_iter), (4 * H, H)),      # w_hh
                uni(next(k_iter), (4 * H,)),        # b_ih
                uni(next(k_iter), (4 * H,)),        # b_hh
            )
        raw_layers.append(lyr)

    fc_w = uni(next(k_iter), (classes, 2 * H))
    fc_b = uni(next(k_iter), (classes,))

    raw = {"embedding": embedding, "lstm": raw_layers, "fc_w": fc_w, "fc_b": fc_b}

    # ---- kernel-layout (padded, pre-transposed, bf16 matmul operands) --------
    emb_pad = jnp.zeros((Vp, Ep), jnp.float32).at[:vocab, :emb_dim].set(embedding)

    hidden_row_map = jnp.concatenate([jnp.arange(H), Hp + jnp.arange(H)])
    kern_layers = []
    for l in range(layers):
        if l == 0:
            d_in_pad = Ep
            row_map = jnp.arange(emb_dim)
        else:
            d_in_pad = 2 * Hp
            row_map = hidden_row_map
        kern_layers.append(
            _pack_bilstm_layer(raw_layers[l]["fwd"], raw_layers[l]["bwd"],
                               H, Hp, row_map, d_in_pad))

    fc_w_t = jnp.zeros((2 * Hp, Cp), jnp.float32).at[
        hidden_row_map, :classes].set(jnp.transpose(fc_w)).astype(jnp.bfloat16)
    fc_b_pad = jnp.zeros((1, Cp), jnp.float32).at[0, :classes].set(fc_b)

    kern = {
        "embedding": emb_pad,
        "lstm": kern_layers,
        "fc_w_t": fc_w_t,
        "fc_b": fc_b_pad,
        "num_classes": classes,
        "pad_id": vocab - 1,
    }
    return raw, kern


# ----------------------------------------------------------------------------
# Full forward pass (mirrors 神经网络模型.forward) — single pallas_call.
# ----------------------------------------------------------------------------
def model_forward(x_tuple, params, batch_pad=8):
    token_ids, _ = x_tuple                                   # forward(): x, _ = x
    B, S = token_ids.shape
    Bp = _round_up(B, batch_pad)

    # Time-major token ids, batch padded with the padding_idx (zero embedding row).
    tids = jnp.transpose(token_ids).astype(jnp.int32)        # (S, B)
    if Bp > B:
        tids = jnp.pad(tids, ((0, 0), (0, Bp - B)),
                       constant_values=params["pad_id"])
    tids = tids.reshape(S * Bp, 1)

    layers = params["lstm"]
    num_layers = len(layers)
    Hp = layers[0][1].shape[0]
    Cp = params["fc_w_t"].shape[1]
    flat_layer_args = [a for lyr in layers for a in lyr]

    out = pl.pallas_call(
        _make_model_kernel(num_layers),
        out_shape=jax.ShapeDtypeStruct((Bp, Cp), jnp.float32),
        in_specs=[pl.BlockSpec(memory_space=pltpu.MemorySpace.VMEM)]
                 * (4 + 4 * num_layers),
        out_specs=pl.BlockSpec(memory_space=pltpu.MemorySpace.VMEM),
        scratch_shapes=[
            pltpu.VMEM((S, Bp, 8 * Hp), jnp.float32),   # hoisted gates, both dirs
            pltpu.VMEM((S, Bp, 2 * Hp), jnp.float32),   # bidirectional h sequence
        ],
    )(tids, params["embedding"], *flat_layer_args,
      params["fc_w_t"], params["fc_b"])
    return out[:B, :params["num_classes"]]


# ----------------------------------------------------------------------------
# Pure-JAX f32 reference (PyTorch bidirectional nn.LSTM semantics) for validation.
# ----------------------------------------------------------------------------
def _ref_lstm_dir(x, w_ih, w_hh, b_ih, b_hh):
    H = w_hh.shape[1]
    Bz = x.shape[1]

    def step(carry, x_t):
        h, c = carry
        gates = x_t @ w_ih.T + h @ w_hh.T + b_ih + b_hh
        i_g, f_g, g_g, o_g = jnp.split(gates, 4, axis=-1)
        i_g = jax.nn.sigmoid(i_g)
        f_g = jax.nn.sigmoid(f_g)
        g_g = jnp.tanh(g_g)
        o_g = jax.nn.sigmoid(o_g)
        c = f_g * c + i_g * g_g
        h = o_g * jnp.tanh(c)
        return (h, c), h

    init = (jnp.zeros((Bz, H), jnp.float32), jnp.zeros((Bz, H), jnp.float32))
    _, hs = lax.scan(step, init, x)
    return hs


def reference_forward(x_tuple, raw):
    token_ids, _ = x_tuple
    x = raw["embedding"][token_ids]                          # (B, S, E)
    x = jnp.transpose(x, (1, 0, 2))                          # (S, B, E)
    for lyr in raw["lstm"]:
        f = _ref_lstm_dir(x, *lyr["fwd"])
        b = jnp.flip(_ref_lstm_dir(jnp.flip(x, 0), *lyr["bwd"]), 0)
        x = jnp.concatenate([f, b], axis=-1)
    return x[-1] @ raw["fc_w"].T + raw["fc_b"]


if __name__ == "__main__":
    # Small config consistent with the module's __init__:
    #   文字编码字典行数=20, 字向量长度=32, 单隐层的长度=32, 字关联的深度=2, 类别数=4
    VOCAB, EMB, HIDDEN, LAYERS, CLASSES = 20, 32, 32, 2, 4
    BATCH, SEQ = 2, 8

    key = jax.random.PRNGKey(0)
    k_param, k_ids = jax.random.split(key)

    raw, kern = init_params(k_param, VOCAB, EMB, HIDDEN, LAYERS, CLASSES)

    token_ids = jax.random.randint(k_ids, (BATCH, SEQ), 0, VOCAB, dtype=jnp.int32)
    seq_lens = jnp.full((BATCH,), SEQ, dtype=jnp.int32)      # the unused `_` in (x, _)

    logits = model_forward((token_ids, seq_lens), kern)
    logits = jax.block_until_ready(logits)

    assert logits.shape == (BATCH, CLASSES), logits.shape
    assert bool(jnp.all(jnp.isfinite(logits)))

    # bf16 MXU operands with f32 accumulation -> relaxed tolerance vs. f32 reference.
    ref = reference_forward((token_ids, seq_lens), raw)
    assert bool(jnp.allclose(logits, ref, atol=5e-2, rtol=5e-2)), float(
        jnp.max(jnp.abs(logits - ref)))

    print("KERNEL_OK")
</pallas_src>

<mosaic_0001>
module attributes {stable_mosaic.version = 11 : i64} {
  func.func @kernel(%arg0: memref<64x1xi32, #tpu.memory_space<vmem>>, %arg1: memref<128x128xf32, #tpu.memory_space<vmem>>, %arg2: memref<128x1024xbf16, #tpu.memory_space<vmem>>, %arg3: memref<128x512xbf16, #tpu.memory_space<vmem>>, %arg4: memref<128x512xbf16, #tpu.memory_space<vmem>>, %arg5: memref<1x1024xf32, #tpu.memory_space<vmem>>, %arg6: memref<256x1024xbf16, #tpu.memory_space<vmem>>, %arg7: memref<128x512xbf16, #tpu.memory_space<vmem>>, %arg8: memref<128x512xbf16, #tpu.memory_space<vmem>>, %arg9: memref<1x1024xf32, #tpu.memory_space<vmem>>, %arg10: memref<256x128xbf16, #tpu.memory_space<vmem>>, %arg11: memref<1x128xf32, #tpu.memory_space<vmem>>, %arg12: memref<8x128xf32, #tpu.memory_space<vmem>>, %arg13: memref<8x8x1024xf32, #tpu.memory_space<vmem>>, %arg14: memref<8x8x256xf32, #tpu.memory_space<vmem>>) attributes {dimension_semantics = [], scalar_prefetch = 0 : i64, scratch_operands = 2 : i64, tpu.core_type = #tpu.core_type<tc>} {
    %0 = tpu.iota {dimensions = array<i32: 1>} : vector<64x128xi32>
    %c0 = arith.constant 0 : index
    %c0_0 = arith.constant 0 : index
    %1 = vector.load %arg0[%c0, %c0_0] : memref<64x1xi32, #tpu.memory_space<vmem>>, vector<64x1xi32>
    %2 = vector.broadcast %1 : vector<64x1xi32> to vector<64x128xi32>
    %3 = arith.cmpi eq, %2, %0 : vector<64x128xi32>
    %cst = arith.constant 1.000000e+00 : f32
    %cst_1 = arith.constant 0.000000e+00 : f32
    %4 = vector.broadcast %cst : f32 to vector<64x128xf32>
    %5 = vector.broadcast %cst_1 : f32 to vector<64x128xf32>
    %6 = arith.select %3, %4, %5 : vector<64x128xi1>, vector<64x128xf32>
    %c0_2 = arith.constant 0 : index
    %c0_3 = arith.constant 0 : index
    %7 = vector.load %arg1[%c0_2, %c0_3] : memref<128x128xf32, #tpu.memory_space<vmem>>, vector<128x128xf32>
    %cst_4 = arith.constant dense<0.000000e+00> : vector<64x128xf32>
    %8 = tpu.matmul %6, %7, %cst_4 {dimension_numbers = #tpu.dot_dimension_numbers<[1], [0], [0], [1], [0, 0, 1, 1], [], []>} : vector<64x128xf32>, vector<128x128xf32>, vector<64x128xf32> -> vector<64x128xf32>
    %9 = arith.truncf %8 : vector<64x128xf32> to vector<64x128xbf16>
    %c0_5 = arith.constant 0 : index
    %c0_6 = arith.constant 0 : index
    %10 = vector.load %arg2[%c0_5, %c0_6] : memref<128x1024xbf16, #tpu.memory_space<vmem>>, vector<128x1024xbf16>
    %cst_7 = arith.constant dense<0.000000e+00> : vector<64x1024xf32>
    %11 = tpu.matmul %9, %10, %cst_7 {dimension_numbers = #tpu.dot_dimension_numbers<[1], [0], [0], [1], [0, 0, 1, 1], [], []>} : vector<64x128xbf16>, vector<128x1024xbf16>, vector<64x1024xf32> -> vector<64x1024xf32>
    %c0_8 = arith.constant 0 : index
    %c0_9 = arith.constant 0 : index
    %12 = vector.load %arg5[%c0_8, %c0_9] : memref<1x1024xf32, #tpu.memory_space<vmem>>, vector<1x1024xf32>
    %13 = vector.broadcast %12 : vector<1x1024xf32> to vector<64x1024xf32>
    %14 = arith.addf %11, %13 : vector<64x1024xf32>
    %15 = vector.shape_cast %14 : vector<64x1024xf32> to vector<8x8x1024xf32>
    %c0_10 = arith.constant 0 : index
    %c0_11 = arith.constant 0 : index
    %c0_12 = arith.constant 0 : index
    %16 = vector.load %arg13[%c0_10, %c0_11, %c0_12] : memref<8x8x1024xf32, #tpu.memory_space<vmem>>, vector<8x8x1024xf32>
    tpu.vector_store %arg13[%c0_10, %c0_11, %c0_12], %15 {strides = array<i32>} : memref<8x8x1024xf32, #tpu.memory_space<vmem>>, vector<8x8x1024xf32>,
    %cst_13 = arith.constant 0.000000e+00 : f32
    %17 = vector.broadcast %cst_13 : f32 to vector<8x128xf32>
    %c0_i32 = arith.constant 0 : i32
    %c7_i32 = arith.constant 7 : i32
    %18 = arith.subi %c7_i32, %c0_i32 : i32
    %19 = arith.index_cast %c0_i32 : i32 to index
    %c0_14 = arith.constant 0 : index
    %c0_15 = arith.constant 0 : index
    %20 = vector.load %arg13[%19, %c0_14, %c0_15] : memref<8x8x1024xf32, #tpu.memory_space<vmem>>, vector<1x8x512xf32>
    %21 = vector.shape_cast %20 : vector<1x8x512xf32> to vector<8x512xf32>
    %22 = arith.truncf %17 : vector<8x128xf32> to vector<8x128xbf16>
    %c0_16 = arith.constant 0 : index
    %c0_17 = arith.constant 0 : index
    %23 = vector.load %arg3[%c0_16, %c0_17] : memref<128x512xbf16, #tpu.memory_space<vmem>>, vector<128x512xbf16>
    %cst_18 = arith.constant dense<0.000000e+00> : vector<8x512xf32>
    %24 = tpu.matmul %22, %23, %cst_18 {dimension_numbers = #tpu.dot_dimension_numbers<[1], [0], [0], [1], [0, 0, 1, 1], [], []>} : vector<8x128xbf16>, vector<128x512xbf16>, vector<8x512xf32> -> vector<8x512xf32>
    %25 = arith.addf %21, %24 : vector<8x512xf32>
    %26 = arith.index_cast %18 : i32 to index
    %c0_19 = arith.constant 0 : index
    %c512 = arith.constant 512 : index
    %27 = vector.load %arg13[%26, %c0_19, %c512] : memref<8x8x1024xf32, #tpu.memory_space<vmem>>, vector<1x8x512xf32>
    %28 = vector.shape_cast %27 : vector<1x8x512xf32> to vector<8x512xf32>
    %29 = arith.truncf %17 : vector<8x128xf32> to vector<8x128xbf16>
    %c0_20 = arith.constant 0 : index
    %c0_21 = arith.constant 0 : index
    %30 = vector.load %arg4[%c0_20, %c0_21] : memref<128x512xbf16, #tpu.memory_space<vmem>>, vector<128x512xbf16>
    %cst_22 = arith.constant dense<0.000000e+00> : vector<8x512xf32>
    %31 = tpu.matmul %29, %30, %cst_22 {dimension_numbers = #tpu.dot_dimension_numbers<[1], [0], [0], [1], [0, 0, 1, 1], [], []>} : vector<8x128xbf16>, vector<128x512xbf16>, vector<8x512xf32> -> vector<8x512xf32>
    %32 = arith.addf %28, %31 : vector<8x512xf32>
    %33 = vector.extract_strided_slice %25 {offsets = [0, 0], sizes = [8, 128], strides = [1, 1]} : vector<8x512xf32> to vector<8x128xf32>
    %34 = arith.negf %33 : vector<8x128xf32>
    %35 = math.exp %34 : vector<8x128xf32>
    %cst_23 = arith.constant 1.000000e+00 : f32
    %36 = vector.broadcast %cst_23 : f32 to vector<8x128xf32>
    %37 = arith.addf %36, %35 : vector<8x128xf32>
    %38 = arith.divf %36, %37 : vector<8x128xf32>
    %39 = vector.extract_strided_slice %25 {offsets = [0, 128], sizes = [8, 128], strides = [1, 1]} : vector<8x512xf32> to vector<8x128xf32>
    %40 = arith.negf %39 : vector<8x128xf32>
    %41 = math.exp %40 : vector<8x128xf32>
    %cst_24 = arith.constant 1.000000e+00 : f32
    %42 = vector.broadcast %cst_24 : f32 to vector<8x128xf32>
    %43 = arith.addf %42, %41 : vector<8x128xf32>
    %44 = arith.divf %42, %43 : vector<8x128xf32>
    %45 = vector.extract_strided_slice %25 {offsets = [0, 256], sizes = [8, 128], strides = [1, 1]} : vector<8x512xf32> to vector<8x128xf32>
    %46 = math.tanh %45 : vector<8x128xf32>
    %47 = vector.extract_strided_slice %25 {offsets = [0, 384], sizes = [8, 128], strides = [1, 1]} : vector<8x512xf32> to vector<8x128xf32>
    %48 = arith.negf %47 : vector<8x128xf32>
    %49 = math.exp %48 : vector<8x128xf32>
    %cst_25 = arith.constant 1.000000e+00 : f32
    %50 = vector.broadcast %cst_25 : f32 to vector<8x128xf32>
    %51 = arith.addf %50, %49 : vector<8x128xf32>
    %52 = arith.divf %50, %51 : vector<8x128xf32>
    %53 = arith.mulf %44, %17 : vector<8x128xf32>
    %54 = arith.mulf %38, %46 : vector<8x128xf32>
    %55 = arith.addf %53, %54 : vector<8x128xf32>
    %56 = math.tanh %55 : vector<8x128xf32>
    %57 = arith.mulf %52, %56 : vector<8x128xf32>
    %58 = vector.extract_strided_slice %32 {offsets = [0, 0], sizes = [8, 128], strides = [1, 1]} : vector<8x512xf32> to vector<8x128xf32>
    %59 = arith.negf %58 : vector<8x128xf32>
    %60 = math.exp %59 : vector<8x128xf32>
    %cst_26 = arith.constant 1.000000e+00 : f32
    %61 = vector.broadcast %cst_26 : f32 to vector<8x128xf32>
    %62 = arith.addf %61, %60 : vector<8x128xf32>
    %63 = arith.divf %61, %62 : vector<8x128xf32>
    %64 = vector.extract_strided_slice %32 {offsets = [0, 128], sizes = [8, 128], strides = [1, 1]} : vector<8x512xf32> to vector<8x128xf32>
    %65 = arith.negf %64 : vector<8x128xf32>
    %66 = math.exp %65 : vector<8x128xf32>
    %cst_27 = arith.constant 1.000000e+00 : f32
    %67 = vector.broadcast %cst_27 : f32 to vector<8x128xf32>
    %68 = arith.addf %67, %66 : vector<8x128xf32>
    %69 = arith.divf %67, %68 : vector<8x128xf32>
    %70 = vector.extract_strided_slice %32 {offsets = [0, 256], sizes = [8, 128], strides = [1, 1]} : vector<8x512xf32> to vector<8x128xf32>
    %71 = math.tanh %70 : vector<8x128xf32>
    %72 = vector.extract_strided_slice %32 {offsets = [0, 384], sizes = [8, 128], strides = [1, 1]} : vector<8x512xf32> to vector<8x128xf32>
    %73 = arith.negf %72 : vector<8x128xf32>
    %74 = math.exp %73 : vector<8x128xf32>
    %cst_28 = arith.constant 1.000000e+00 : f32
    %75 = vector.broadcast %cst_28 : f32 to vector<8x128xf32>
    %76 = arith.addf %75, %74 : vector<8x128xf32>
    %77 = arith.divf %75, %76 : vector<8x128xf32>
    %78 = arith.mulf %69, %17 : vector<8x128xf32>
    %79 = arith.mulf %63, %71 : vector<8x128xf32>
    %80 = arith.addf %78, %79 : vector<8x128xf32>
    %81 = math.tanh %80 : vector<8x128xf32>
    %82 = arith.mulf %77, %81 : vector<8x128xf32>
    %83 = arith.index_cast %c0_i32 : i32 to index
    %c0_29 = arith.constant 0 : index
    %c0_30 = arith.constant 0 : index
    %84 = vector.load %arg14[%83, %c0_29, %c0_30] : memref<8x8x256xf32, #tpu.memory_space<vmem>>, vector<1x8x128xf32>
    %85 = vector.shape_cast %84 : vector<1x8x128xf32> to vector<8x128xf32>
    %86 = vector.shape_cast %57 : vector<8x128xf32> to vector<1x8x128xf32>
    tpu.vector_store %arg14[%83, %c0_29, %c0_30], %86 {strides = array<i32>} : memref<8x8x256xf32, #tpu.memory_space<vmem>>, vector<1x8x128xf32>,
    %87 = arith.index_cast %18 : i32 to index
    %c0_31 = arith.constant 0 : index
    %c128 = arith.constant 128 : index
    %88 = vector.load %arg14[%87, %c0_31, %c128] : memref<8x8x256xf32, #tpu.memory_space<vmem>>, vector<1x8x128xf32>
    %89 = vector.shape_cast %88 : vector<1x8x128xf32> to vector<8x128xf32>
    %90 = vector.shape_cast %82 : vector<8x128xf32> to vector<1x8x128xf32>
    tpu.vector_store %arg14[%87, %c0_31, %c128], %90 {strides = array<i32>} : memref<8x8x256xf32, #tpu.memory_space<vmem>>, vector<1x8x128xf32>,
    %c1_i32 = arith.constant 1 : i32
    %c7_i32_32 = arith.constant 7 : i32
    %91 = arith.subi %c7_i32_32, %c1_i32 : i32
    %92 = arith.index_cast %c1_i32 : i32 to index
    %c0_33 = arith.constant 0 : index
    %c0_34 = arith.constant 0 : index
    %93 = vector.load %arg13[%92, %c0_33, %c0_34] : memref<8x8x1024xf32, #tpu.memory_space<vmem>>, vector<1x8x512xf32>
    %94 = vector.shape_cast %93 : vector<1x8x512xf32> to vector<8x512xf32>
    %95 = arith.truncf %57 : vector<8x128xf32> to vector<8x128xbf16>
    %c0_35 = arith.constant 0 : index
    %c0_36 = arith.constant 0 : index
    %96 = vector.load %arg3[%c0_35, %c0_36] : memref<128x512xbf16, #tpu.memory_space<vmem>>, vector<128x512xbf16>
    %cst_37 = arith.constant dense<0.000000e+00> : vector<8x512xf32>
    %97 = tpu.matmul %95, %96, %cst_37 {dimension_numbers = #tpu.dot_dimension_numbers<[1], [0], [0], [1], [0, 0, 1, 1], [], []>} : vector<8x128xbf16>, vector<128x512xbf16>, vector<8x512xf32> -> vector<8x512xf32>
    %98 = arith.addf %94, %97 : vector<8x512xf32>
    %99 = arith.index_cast %91 : i32 to index
    %c0_38 = arith.constant 0 : index
    %c512_39 = arith.constant 512 : index
    %100 = vector.load %arg13[%99, %c0_38, %c512_39] : memref<8x8x1024xf32, #tpu.memory_space<vmem>>, vector<1x8x512xf32>
    %101 = vector.shape_cast %100 : vector<1x8x512xf32> to vector<8x512xf32>
    %102 = arith.truncf %82 : vector<8x128xf32> to vector<8x128xbf16>
    %c0_40 = arith.constant 0 : index
    %c0_41 = arith.constant 0 : index
    %103 = vector.load %arg4[%c0_40, %c0_41] : memref<128x512xbf16, #tpu.memory_space<vmem>>, vector<128x512xbf16>
    %cst_42 = arith.constant dense<0.000000e+00> : vector<8x512xf32>
    %104 = tpu.matmul %102, %103, %cst_42 {dimension_numbers = #tpu.dot_dimension_numbers<[1], [0], [0], [1], [0, 0, 1, 1], [], []>} : vector<8x128xbf16>, vector<128x512xbf16>, vector<8x512xf32> -> vector<8x512xf32>
    %105 = arith.addf %101, %104 : vector<8x512xf32>
    %106 = vector.extract_strided_slice %98 {offsets = [0, 0], sizes = [8, 128], strides = [1, 1]} : vector<8x512xf32> to vector<8x128xf32>
    %107 = arith.negf %106 : vector<8x128xf32>
    %108 = math.exp %107 : vector<8x128xf32>
    %cst_43 = arith.constant 1.000000e+00 : f32
    %109 = vector.broadcast %cst_43 : f32 to vector<8x128xf32>
    %110 = arith.addf %109, %108 : vector<8x128xf32>
    %111 = arith.divf %109, %110 : vector<8x128xf32>
    %112 = vector.extract_strided_slice %98 {offsets = [0, 128], sizes = [8, 128], strides = [1, 1]} : vector<8x512xf32> to vector<8x128xf32>
    %113 = arith.negf %112 : vector<8x128xf32>
    %114 = math.exp %113 : vector<8x128xf32>
    %cst_44 = arith.constant 1.000000e+00 : f32
    %115 = vector.broadcast %cst_44 : f32 to vector<8x128xf32>
    %116 = arith.addf %115, %114 : vector<8x128xf32>
    %117 = arith.divf %115, %116 : vector<8x128xf32>
    %118 = vector.extract_strided_slice %98 {offsets = [0, 256], sizes = [8, 128], strides = [1, 1]} : vector<8x512xf32> to vector<8x128xf32>
    %119 = math.tanh %118 : vector<8x128xf32>
    %120 = vector.extract_strided_slice %98 {offsets = [0, 384], sizes = [8, 128], strides = [1, 1]} : vector<8x512xf32> to vector<8x128xf32>
    %121 = arith.negf %120 : vector<8x128xf32>
    %122 = math.exp %121 : vector<8x128xf32>
    %cst_45 = arith.constant 1.000000e+00 : f32
    %123 = vector.broadcast %cst_45 : f32 to vector<8x128xf32>
    %124 = arith.addf %123, %122 : vector<8x128xf32>
    %125 = arith.divf %123, %124 : vector<8x128xf32>
    %126 = arith.mulf %117, %55 : vector<8x128xf32>
    %127 = arith.mulf %111, %119 : vector<8x128xf32>
    %128 = arith.addf %126, %127 : vector<8x128xf32>
    %129 = math.tanh %128 : vector<8x128xf32>
    %130 = arith.mulf %125, %129 : vector<8x128xf32>
    %131 = vector.extract_strided_slice %105 {offsets = [0, 0], sizes = [8, 128], strides = [1, 1]} : vector<8x512xf32> to vector<8x128xf32>
    %132 = arith.negf %131 : vector<8x128xf32>
    %133 = math.exp %132 : vector<8x128xf32>
    %cst_46 = arith.constant 1.000000e+00 : f32
    %134 = vector.broadcast %cst_46 : f32 to vector<8x128xf32>
    %135 = arith.addf %134, %133 : vector<8x128xf32>
    %136 = arith.divf %134, %135 : vector<8x128xf32>
    %137 = vector.extract_strided_slice %105 {offsets = [0, 128], sizes = [8, 128], strides = [1, 1]} : vector<8x512xf32> to vector<8x128xf32>
    %138 = arith.negf %137 : vector<8x128xf32>
    %139 = math.exp %138 : vector<8x128xf32>
    %cst_47 = arith.constant 1.000000e+00 : f32
    %140 = vector.broadcast %cst_47 : f32 to vector<8x128xf32>
    %141 = arith.addf %140, %139 : vector<8x128xf32>
    %142 = arith.divf %140, %141 : vector<8x128xf32>
    %143 = vector.extract_strided_slice %105 {offsets = [0, 256], sizes = [8, 128], strides = [1, 1]} : vector<8x512xf32> to vector<8x128xf32>
    %144 = math.tanh %143 : vector<8x128xf32>
    %145 = vector.extract_strided_slice %105 {offsets = [0, 384], sizes = [8, 128], strides = [1, 1]} : vector<8x512xf32> to vector<8x128xf32>
    %146 = arith.negf %145 : vector<8x128xf32>
    %147 = math.exp %146 : vector<8x128xf32>
    %cst_48 = arith.constant 1.000000e+00 : f32
    %148 = vector.broadcast %cst_48 : f32 to vector<8x128xf32>
    %149 = arith.addf %148, %147 : vector<8x128xf32>
    %150 = arith.divf %148, %149 : vector<8x128xf32>
    %151 = arith.mulf %142, %80 : vector<8x128xf32>
    %152 = arith.mulf %136, %144 : vector<8x128xf32>
    %153 = arith.addf %151, %152 : vector<8x128xf32>
    %154 = math.tanh %153 : vector<8x128xf32>
    %155 = arith.mulf %150, %154 : vector<8x128xf32>
    %156 = arith.index_cast %c1_i32 : i32 to index
    %c0_49 = arith.constant 0 : index
    %c0_50 = arith.constant 0 : index
    %157 = vector.load %arg14[%156, %c0_49, %c0_50] : memref<8x8x256xf32, #tpu.memory_space<vmem>>, vector<1x8x128xf32>
    %158 = vector.shape_cast %157 : vector<1x8x128xf32> to vector<8x128xf32>
    %159 = vector.shape_cast %130 : vector<8x128xf32> to vector<1x8x128xf32>
    tpu.vector_store %arg14[%156, %c0_49, %c0_50], %159 {strides = array<i32>} : memref<8x8x256xf32, #tpu.memory_space<vmem>>, vector<1x8x128xf32>,
    %160 = arith.index_cast %91 : i32 to index
    %c0_51 = arith.constant 0 : index
    %c128_52 = arith.constant 128 : index
    %161 = vector.load %arg14[%160, %c0_51, %c128_52] : memref<8x8x256xf32, #tpu.memory_space<vmem>>, vector<1x8x128xf32>
    %162 = vector.shape_cast %161 : vector<1x8x128xf32> to vector<8x128xf32>
    %163 = vector.shape_cast %155 : vector<8x128xf32> to vector<1x8x128xf32>
    tpu.vector_store %arg14[%160, %c0_51, %c128_52], %163 {strides = array<i32>} : memref<8x8x256xf32, #tpu.memory_space<vmem>>, vector<1x8x128xf32>,
    %c2_i32 = arith.constant 2 : i32
    %c7_i32_53 = arith.constant 7 : i32
    %164 = arith.subi %c7_i32_53, %c2_i32 : i32
    %165 = arith.index_cast %c2_i32 : i32 to index
    %c0_54 = arith.constant 0 : index
    %c0_55 = arith.constant 0 : index
    %166 = vector.load %arg13[%165, %c0_54, %c0_55] : memref<8x8x1024xf32, #tpu.memory_space<vmem>>, vector<1x8x512xf32>
    %167 = vector.shape_cast %166 : vector<1x8x512xf32> to vector<8x512xf32>
    %168 = arith.truncf %130 : vector<8x128xf32> to vector<8x128xbf16>
    %c0_56 = arith.constant 0 : index
    %c0_57 = arith.constant 0 : index
    %169 = vector.load %arg3[%c0_56, %c0_57] : memref<128x512xbf16, #tpu.memory_space<vmem>>, vector<128x512xbf16>
    %cst_58 = arith.constant dense<0.000000e+00> : vector<8x512xf32>
    %170 = tpu.matmul %168, %169, %cst_58 {dimension_numbers = #tpu.dot_dimension_numbers<[1], [0], [0], [1], [0, 0, 1, 1], [], []>} : vector<8x128xbf16>, vector<128x512xbf16>, vector<8x512xf32> -> vector<8x512xf32>
    %171 = arith.addf %167, %170 : vector<8x512xf32>
    %172 = arith.index_cast %164 : i32 to index
    %c0_59 = arith.constant 0 : index
    %c512_60 = arith.constant 512 : index
    %173 = vector.load %arg13[%172, %c0_59, %c512_60] : memref<8x8x1024xf32, #tpu.memory_space<vmem>>, vector<1x8x512xf32>
    %174 = vector.shape_cast %173 : vector<1x8x512xf32> to vector<8x512xf32>
    %175 = arith.truncf %155 : vector<8x128xf32> to vector<8x128xbf16>
    %c0_61 = arith.constant 0 : index
    %c0_62 = arith.constant 0 : index
    %176 = vector.load %arg4[%c0_61, %c0_62] : memref<128x512xbf16, #tpu.memory_space<vmem>>, vector<128x512xbf16>
    %cst_63 = arith.constant dense<0.000000e+00> : vector<8x512xf32>
    %177 = tpu.matmul %175, %176, %cst_63 {dimension_numbers = #tpu.dot_dimension_numbers<[1], [0], [0], [1], [0, 0, 1, 1], [], []>} : vector<8x128xbf16>, vector<128x512xbf16>, vector<8x512xf32> -> vector<8x512xf32>
    %178 = arith.addf %174, %177 : vector<8x512xf32>
    %179 = vector.extract_strided_slice %171 {offsets = [0, 0], sizes = [8, 128], strides = [1, 1]} : vector<8x512xf32> to vector<8x128xf32>
    %180 = arith.negf %179 : vector<8x128xf32>
    %181 = math.exp %180 : vector<8x128xf32>
    %cst_64 = arith.constant 1.000000e+00 : f32
    %182 = vector.broadcast %cst_64 : f32 to vector<8x128xf32>
    %183 = arith.addf %182, %181 : vector<8x128xf32>
    %184 = arith.divf %182, %183 : vector<8x128xf32>
    %185 = vector.extract_strided_slice %171 {offsets = [0, 128], sizes = [8, 128], strides = [1, 1]} : vector<8x512xf32> to vector<8x128xf32>
    %186 = arith.negf %185 : vector<8x128xf32>
    %187 = math.exp %186 : vector<8x128xf32>
    %cst_65 = arith.constant 1.000000e+00 : f32
    %188 = vector.broadcast %cst_65 : f32 to vector<8x128xf32>
    %189 = arith.addf %188, %187 : vector<8x128xf32>
    %190 = arith.divf %188, %189 : vector<8x128xf32>
    %191 = vector.extract_strided_slice %171 {offsets = [0, 256], sizes = [8, 128], strides = [1, 1]} : vector<8x512xf32> to vector<8x128xf32>
    %192 = math.tanh %191 : vector<8x128xf32>
    %193 = vector.extract_strided_slice %171 {offsets = [0, 384], sizes = [8, 128], strides = [1, 1]} : vector<8x512xf32> to vector<8x128xf32>
    %194 = arith.negf %193 : vector<8x128xf32>
    %195 = math.exp %194 : vector<8x128xf32>
    %cst_66 = arith.constant 1.000000e+00 : f32
    %196 = vector.broadcast %cst_66 : f32 to vector<8x128xf32>
    %197 = arith.addf %196, %195 : vector<8x128xf32>
    %198 = arith.divf %196, %197 : vector<8x128xf32>
    %199 = arith.mulf %190, %128 : vector<8x128xf32>
    %200 = arith.mulf %184, %192 : vector<8x128xf32>
    %201 = arith.addf %199, %200 : vector<8x128xf32>
    %202 = math.tanh %201 : vector<8x128xf32>
    %203 = arith.mulf %198, %202 : vector<8x128xf32>
    %204 = vector.extract_strided_slice %178 {offsets = [0, 0], sizes = [8, 128], strides = [1, 1]} : vector<8x512xf32> to vector<8x128xf32>
    %205 = arith.negf %204 : vector<8x128xf32>
    %206 = math.exp %205 : vector<8x128xf32>
    %cst_67 = arith.constant 1.000000e+00 : f32
    %207 = vector.broadcast %cst_67 : f32 to vector<8x128xf32>
    %208 = arith.addf %207, %206 : vector<8x128xf32>
    %209 = arith.divf %207, %208 : vector<8x128xf32>
    %210 = vector.extract_strided_slice %178 {offsets = [0, 128], sizes = [8, 128], strides = [1, 1]} : vector<8x512xf32> to vector<8x128xf32>
    %211 = arith.negf %210 : vector<8x128xf32>
    %212 = math.exp %211 : vector<8x128xf32>
    %cst_68 = arith.constant 1.000000e+00 : f32
    %213 = vector.broadcast %cst_68 : f32 to vector<8x128xf32>
    %214 = arith.addf %213, %212 : vector<8x128xf32>
    %215 = arith.divf %213, %214 : vector<8x128xf32>
    %216 = vector.extract_strided_slice %178 {offsets = [0, 256], sizes = [8, 128], strides = [1, 1]} : vector<8x512xf32> to vector<8x128xf32>
    %217 = math.tanh %216 : vector<8x128xf32>
    %218 = vector.extract_strided_slice %178 {offsets = [0, 384], sizes = [8, 128], strides = [1, 1]} : vector<8x512xf32> to vector<8x128xf32>
    %219 = arith.negf %218 : vector<8x128xf32>
    %220 = math.exp %219 : vector<8x128xf32>
    %cst_69 = arith.constant 1.000000e+00 : f32
    %221 = vector.broadcast %cst_69 : f32 to vector<8x128xf32>
    %222 = arith.addf %221, %220 : vector<8x128xf32>
    %223 = arith.divf %221, %222 : vector<8x128xf32>
    %224 = arith.mulf %215, %153 : vector<8x128xf32>
    %225 = arith.mulf %209, %217 : vector<8x128xf32>
    %226 = arith.addf %224, %225 : vector<8x128xf32>
    %227 = math.tanh %226 : vector<8x128xf32>
    %228 = arith.mulf %223, %227 : vector<8x128xf32>
    %229 = arith.index_cast %c2_i32 : i32 to index
    %c0_70 = arith.constant 0 : index
    %c0_71 = arith.constant 0 : index
    %230 = vector.load %arg14[%229, %c0_70, %c0_71] : memref<8x8x256xf32, #tpu.memory_space<vmem>>, vector<1x8x128xf32>
    %231 = vector.shape_cast %230 : vector<1x8x128xf32> to vector<8x128xf32>
    %232 = vector.shape_cast %203 : vector<8x128xf32> to vector<1x8x128xf32>
    tpu.vector_store %arg14[%229, %c0_70, %c0_71], %232 {strides = array<i32>} : memref<8x8x256xf32, #tpu.memory_space<vmem>>, vector<1x8x128xf32>,
    %233 = arith.index_cast %164 : i32 to index
    %c0_72 = arith.constant 0 : index
    %c128_73 = arith.constant 128 : index
    %234 = vector.load %arg14[%233, %c0_72, %c128_73] : memref<8x8x256xf32, #tpu.memory_space<vmem>>, vector<1x8x128xf32>
    %235 = vector.shape_cast %234 : vector<1x8x128xf32> to vector<8x128xf32>
    %236 = vector.shape_cast %228 : vector<8x128xf32> to vector<1x8x128xf32>
    tpu.vector_store %arg14[%233, %c0_72, %c128_73], %236 {strides = array<i32>} : memref<8x8x256xf32, #tpu.memory_space<vmem>>, vector<1x8x128xf32>,
    %c3_i32 = arith.constant 3 : i32
    %c7_i32_74 = arith.constant 7 : i32
    %237 = arith.subi %c7_i32_74, %c3_i32 : i32
    %238 = arith.index_cast %c3_i32 : i32 to index
    %c0_75 = arith.constant 0 : index
    %c0_76 = arith.constant 0 : index
    %239 = vector.load %arg13[%238, %c0_75, %c0_76] : memref<8x8x1024xf32, #tpu.memory_space<vmem>>, vector<1x8x512xf32>
    %240 = vector.shape_cast %239 : vector<1x8x512xf32> to vector<8x512xf32>
    %241 = arith.truncf %203 : vector<8x128xf32> to vector<8x128xbf16>
    %c0_77 = arith.constant 0 : index
    %c0_78 = arith.constant 0 : index
    %242 = vector.load %arg3[%c0_77, %c0_78] : memref<128x512xbf16, #tpu.memory_space<vmem>>, vector<128x512xbf16>
    %cst_79 = arith.constant dense<0.000000e+00> : vector<8x512xf32>
    %243 = tpu.matmul %241, %242, %cst_79 {dimension_numbers = #tpu.dot_dimension_numbers<[1], [0], [0], [1], [0, 0, 1, 1], [], []>} : vector<8x128xbf16>, vector<128x512xbf16>, vector<8x512xf32> -> vector<8x512xf32>
    %244 = arith.addf %240, %243 : vector<8x512xf32>
    %245 = arith.index_cast %237 : i32 to index
    %c0_80 = arith.constant 0 : index
    %c512_81 = arith.constant 512 : index
    %246 = vector.load %arg13[%245, %c0_80, %c512_81] : memref<8x8x1024xf32, #tpu.memory_space<vmem>>, vector<1x8x512xf32>
    %247 = vector.shape_cast %246 : vector<1x8x512xf32> to vector<8x512xf32>
    %248 = arith.truncf %228 : vector<8x128xf32> to vector<8x128xbf16>
    %c0_82 = arith.constant 0 : index
    %c0_83 = arith.constant 0 : index
    %249 = vector.load %arg4[%c0_82, %c0_83] : memref<128x512xbf16, #tpu.memory_space<vmem>>, vector<128x512xbf16>
    %cst_84 = arith.constant dense<0.000000e+00> : vector<8x512xf32>
    %250 = tpu.matmul %248, %249, %cst_84 {dimension_numbers = #tpu.dot_dimension_numbers<[1], [0], [0], [1], [0, 0, 1, 1], [], []>} : vector<8x128xbf16>, vector<128x512xbf16>, vector<8x512xf32> -> vector<8x512xf32>
    %251 = arith.addf %247, %250 : vector<8x512xf32>
    %252 = vector.extract_strided_slice %244 {offsets = [0, 0], sizes = [8, 128], strides = [1, 1]} : vector<8x512xf32> to vector<8x128xf32>
    %253 = arith.negf %252 : vector<8x128xf32>
    %254 = math.exp %253 : vector<8x128xf32>
    %cst_85 = arith.constant 1.000000e+00 : f32
    %255 = vector.broadcast %cst_85 : f32 to vector<8x128xf32>
    %256 = arith.addf %255, %254 : vector<8x128xf32>
    %257 = arith.divf %255, %256 : vector<8x128xf32>
    %258 = vector.extract_strided_slice %244 {offsets = [0, 128], sizes = [8, 128], strides = [1, 1]} : vector<8x512xf32> to vector<8x128xf32>
    %259 = arith.negf %258 : vector<8x128xf32>
    %260 = math.exp %259 : vector<8x128xf32>
    %cst_86 = arith.constant 1.000000e+00 : f32
    %261 = vector.broadcast %cst_86 : f32 to vector<8x128xf32>
    %262 = arith.addf %261, %260 : vector<8x128xf32>
    %263 = arith.divf %261, %262 : vector<8x128xf32>
    %264 = vector.extract_strided_slice %244 {offsets = [0, 256], sizes = [8, 128], strides = [1, 1]} : vector<8x512xf32> to vector<8x128xf32>
    %265 = math.tanh %264 : vector<8x128xf32>
    %266 = vector.extract_strided_slice %244 {offsets = [0, 384], sizes = [8, 128], strides = [1, 1]} : vector<8x512xf32> to vector<8x128xf32>
    %267 = arith.negf %266 : vector<8x128xf32>
    %268 = math.exp %267 : vector<8x128xf32>
    %cst_87 = arith.constant 1.000000e+00 : f32
    %269 = vector.broadcast %cst_87 : f32 to vector<8x128xf32>
    %270 = arith.addf %269, %268 : vector<8x128xf32>
    %271 = arith.divf %269, %270 : vector<8x128xf32>
    %272 = arith.mulf %263, %201 : vector<8x128xf32>
    %273 = arith.mulf %257, %265 : vector<8x128xf32>
    %274 = arith.addf %272, %273 : vector<8x128xf32>
    %275 = math.tanh %274 : vector<8x128xf32>
    %276 = arith.mulf %271, %275 : vector<8x128xf32>
    %277 = vector.extract_strided_slice %251 {offsets = [0, 0], sizes = [8, 128], strides = [1, 1]} : vector<8x512xf32> to vector<8x128xf32>
    %278 = arith.negf %277 : vector<8x128xf32>
    %279 = math.exp %278 : vector<8x128xf32>
    %cst_88 = arith.constant 1.000000e+00 : f32
    %280 = vector.broadcast %cst_88 : f32 to vector<8x128xf32>
    %281 = arith.addf %280, %279 : vector<8x128xf32>
    %282 = arith.divf %280, %281 : vector<8x128xf32>
    %283 = vector.extract_strided_slice %251 {offsets = [0, 128], sizes = [8, 128], strides = [1, 1]} : vector<8x512xf32> to vector<8x128xf32>
    %284 = arith.negf %283 : vector<8x128xf32>
    %285 = math.exp %284 : vector<8x128xf32>
    %cst_89 = arith.constant 1.000000e+00 : f32
    %286 = vector.broadcast %cst_89 : f32 to vector<8x128xf32>
    %287 = arith.addf %286, %285 : vector<8x128xf32>
    %288 = arith.divf %286, %287 : vector<8x128xf32>
    %289 = vector.extract_strided_slice %251 {offsets = [0, 256], sizes = [8, 128], strides = [1, 1]} : vector<8x512xf32> to vector<8x128xf32>
    %290 = math.tanh %289 : vector<8x128xf32>
    %291 = vector.extract_strided_slice %251 {offsets = [0, 384], sizes = [8, 128], strides = [1, 1]} : vector<8x512xf32> to vector<8x128xf32>
    %292 = arith.negf %291 : vector<8x128xf32>
    %293 = math.exp %292 : vector<8x128xf32>
    %cst_90 = arith.constant 1.000000e+00 : f32
    %294 = vector.broadcast %cst_90 : f32 to vector<8x128xf32>
    %295 = arith.addf %294, %293 : vector<8x128xf32>
    %296 = arith.divf %294, %295 : vector<8x128xf32>
    %297 = arith.mulf %288, %226 : vector<8x128xf32>
    %298 = arith.mulf %282, %290 : vector<8x128xf32>
    %299 = arith.addf %297, %298 : vector<8x128xf32>
    %300 = math.tanh %299 : vector<8x128xf32>
    %301 = arith.mulf %296, %300 : vector<8x128xf32>
    %302 = arith.index_cast %c3_i32 : i32 to index
    %c0_91 = arith.constant 0 : index
    %c0_92 = arith.constant 0 : index
    %303 = vector.load %arg14[%302, %c0_91, %c0_92] : memref<8x8x256xf32, #tpu.memory_space<vmem>>, vector<1x8x128xf32>
    %304 = vector.shape_cast %303 : vector<1x8x128xf32> to vector<8x128xf32>
    %305 = vector.shape_cast %276 : vector<8x128xf32> to vector<1x8x128xf32>
    tpu.vector_store %arg14[%302, %c0_91, %c0_92], %305 {strides = array<i32>} : memref<8x8x256xf32, #tpu.memory_space<vmem>>, vector<1x8x128xf32>,
    %306 = arith.index_cast %237 : i32 to index
    %c0_93 = arith.constant 0 : index
    %c128_94 = arith.constant 128 : index
    %307 = vector.load %arg14[%306, %c0_93, %c128_94] : memref<8x8x256xf32, #tpu.memory_space<vmem>>, vector<1x8x128xf32>
    %308 = vector.shape_cast %307 : vector<1x8x128xf32> to vector<8x128xf32>
    %309 = vector.shape_cast %301 : vector<8x128xf32> to vector<1x8x128xf32>
    tpu.vector_store %arg14[%306, %c0_93, %c128_94], %309 {strides = array<i32>} : memref<8x8x256xf32, #tpu.memory_space<vmem>>, vector<1x8x128xf32>,
    %c4_i32 = arith.constant 4 : i32
    %c7_i32_95 = arith.constant 7 : i32
    %310 = arith.subi %c7_i32_95, %c4_i32 : i32
    %311 = arith.index_cast %c4_i32 : i32 to index
    %c0_96 = arith.constant 0 : index
    %c0_97 = arith.constant 0 : index
    %312 = vector.load %arg13[%311, %c0_96, %c0_97] : memref<8x8x1024xf32, #tpu.memory_space<vmem>>, vector<1x8x512xf32>
    %313 = vector.shape_cast %312 : vector<1x8x512xf32> to vector<8x512xf32>
    %314 = arith.truncf %276 : vector<8x128xf32> to vector<8x128xbf16>
    %c0_98 = arith.constant 0 : index
    %c0_99 = arith.constant 0 : index
    %315 = vector.load %arg3[%c0_98, %c0_99] : memref<128x512xbf16, #tpu.memory_space<vmem>>, vector<128x512xbf16>
    %cst_100 = arith.constant dense<0.000000e+00> : vector<8x512xf32>
    %316 = tpu.matmul %314, %315, %cst_100 {dimension_numbers = #tpu.dot_dimension_numbers<[1], [0], [0], [1], [0, 0, 1, 1], [], []>} : vector<8x128xbf16>, vector<128x512xbf16>, vector<8x512xf32> -> vector<8x512xf32>
    %317 = arith.addf %313, %316 : vector<8x512xf32>
    %318 = arith.index_cast %310 : i32 to index
    %c0_101 = arith.constant 0 : index
    %c512_102 = arith.constant 512 : index
    %319 = vector.load %arg13[%318, %c0_101, %c512_102] : memref<8x8x1024xf32, #tpu.memory_space<vmem>>, vector<1x8x512xf32>
    %320 = vector.shape_cast %319 : vector<1x8x512xf32> to vector<8x512xf32>
    %321 = arith.truncf %301 : vector<8x128xf32> to vector<8x128xbf16>
    %c0_103 = arith.constant 0 : index
    %c0_104 = arith.constant 0 : index
    %322 = vector.load %arg4[%c0_103, %c0_104] : memref<128x512xbf16, #tpu.memory_space<vmem>>, vector<128x512xbf16>
    %cst_105 = arith.constant dense<0.000000e+00> : vector<8x512xf32>
    %323 = tpu.matmul %321, %322, %cst_105 {dimension_numbers = #tpu.dot_dimension_numbers<[1], [0], [0], [1], [0, 0, 1, 1], [], []>} : vector<8x128xbf16>, vector<128x512xbf16>, vector<8x512xf32> -> vector<8x512xf32>
    %324 = arith.addf %320, %323 : vector<8x512xf32>
    %325 = vector.extract_strided_slice %317 {offsets = [0, 0], sizes = [8, 128], strides = [1, 1]} : vector<8x512xf32> to vector<8x128xf32>
    %326 = arith.negf %325 : vector<8x128xf32>
    %327 = math.exp %326 : vector<8x128xf32>
    %cst_106 = arith.constant 1.000000e+00 : f32
    %328 = vector.broadcast %cst_106 : f32 to vector<8x128xf32>
    %329 = arith.addf %328, %327 : vector<8x128xf32>
    %330 = arith.divf %328, %329 : vector<8x128xf32>
    %331 = vector.extract_strided_slice %317 {offsets = [0, 128], sizes = [8, 128], strides = [1, 1]} : vector<8x512xf32> to vector<8x128xf32>
    %332 = arith.negf %331 : vector<8x128xf32>
    %333 = math.exp %332 : vector<8x128xf32>
    %cst_107 = arith.constant 1.000000e+00 : f32
    %334 = vector.broadcast %cst_107 : f32 to vector<8x128xf32>
    %335 = arith.addf %334, %333 : vector<8x128xf32>
    %336 = arith.divf %334, %335 : vector<8x128xf32>
    %337 = vector.extract_strided_slice %317 {offsets = [0, 256], sizes = [8, 128], strides = [1, 1]} : vector<8x512xf32> to vector<8x128xf32>
    %338 = math.tanh %337 : vector<8x128xf32>
    %339 = vector.extract_strided_slice %317 {offsets = [0, 384], sizes = [8, 128], strides = [1, 1]} : vector<8x512xf32> to vector<8x128xf32>
    %340 = arith.negf %339 : vector<8x128xf32>
    %341 = math.exp %340 : vector<8x128xf32>
    %cst_108 = arith.constant 1.000000e+00 : f32
    %342 = vector.broadcast %cst_108 : f32 to vector<8x128xf32>
    %343 = arith.addf %342, %341 : vector<8x128xf32>
    %344 = arith.divf %342, %343 : vector<8x128xf32>
    %345 = arith.mulf %336, %274 : vector<8x128xf32>
    %346 = arith.mulf %330, %338 : vector<8x128xf32>
    %347 = arith.addf %345, %346 : vector<8x128xf32>
    %348 = math.tanh %347 : vector<8x128xf32>
    %349 = arith.mulf %344, %348 : vector<8x128xf32>
    %350 = vector.extract_strided_slice %324 {offsets = [0, 0], sizes = [8, 128], strides = [1, 1]} : vector<8x512xf32> to vector<8x128xf32>
    %351 = arith.negf %350 : vector<8x128xf32>
    %352 = math.exp %351 : vector<8x128xf32>
    %cst_109 = arith.constant 1.000000e+00 : f32
    %353 = vector.broadcast %cst_109 : f32 to vector<8x128xf32>
    %354 = arith.addf %353, %352 : vector<8x128xf32>
    %355 = arith.divf %353, %354 : vector<8x128xf32>
    %356 = vector.extract_strided_slice %324 {offsets = [0, 128], sizes = [8, 128], strides = [1, 1]} : vector<8x512xf32> to vector<8x128xf32>
    %357 = arith.negf %356 : vector<8x128xf32>
    %358 = math.exp %357 : vector<8x128xf32>
    %cst_110 = arith.constant 1.000000e+00 : f32
    %359 = vector.broadcast %cst_110 : f32 to vector<8x128xf32>
    %360 = arith.addf %359, %358 : vector<8x128xf32>
    %361 = arith.divf %359, %360 : vector<8x128xf32>
    %362 = vector.extract_strided_slice %324 {offsets = [0, 256], sizes = [8, 128], strides = [1, 1]} : vector<8x512xf32> to vector<8x128xf32>
    %363 = math.tanh %362 : vector<8x128xf32>
    %364 = vector.extract_strided_slice %324 {offsets = [0, 384], sizes = [8, 128], strides = [1, 1]} : vector<8x512xf32> to vector<8x128xf32>
    %365 = arith.negf %364 : vector<8x128xf32>
    %366 = math.exp %365 : vector<8x128xf32>
    %cst_111 = arith.constant 1.000000e+00 : f32
    %367 = vector.broadcast %cst_111 : f32 to vector<8x128xf32>
    %368 = arith.addf %367, %366 : vector<8x128xf32>
    %369 = arith.divf %367, %368 : vector<8x128xf32>
    %370 = arith.mulf %361, %299 : vector<8x128xf32>
    %371 = arith.mulf %355, %363 : vector<8x128xf32>
    %372 = arith.addf %370, %371 : vector<8x128xf32>
    %373 = math.tanh %372 : vector<8x128xf32>
    %374 = arith.mulf %369, %373 : vector<8x128xf32>
    %375 = arith.index_cast %c4_i32 : i32 to index
    %c0_112 = arith.constant 0 : index
    %c0_113 = arith.constant 0 : index
    %376 = vector.load %arg14[%375, %c0_112, %c0_113] : memref<8x8x256xf32, #tpu.memory_space<vmem>>, vector<1x8x128xf32>
    %377 = vector.shape_cast %376 : vector<1x8x128xf32> to vector<8x128xf32>
    %378 = vector.shape_cast %349 : vector<8x128xf32> to vector<1x8x128xf32>
    tpu.vector_store %arg14[%375, %c0_112, %c0_113], %378 {strides = array<i32>} : memref<8x8x256xf32, #tpu.memory_space<vmem>>, vector<1x8x128xf32>,
    %379 = arith.index_cast %310 : i32 to index
    %c0_114 = arith.constant 0 : index
    %c128_115 = arith.constant 128 : index
    %380 = vector.load %arg14[%379, %c0_114, %c128_115] : memref<8x8x256xf32, #tpu.memory_space<vmem>>, vector<1x8x128xf32>
    %381 = vector.shape_cast %380 : vector<1x8x128xf32> to vector<8x128xf32>
    %382 = vector.shape_cast %374 : vector<8x128xf32> to vector<1x8x128xf32>
    tpu.vector_store %arg14[%379, %c0_114, %c128_115], %382 {strides = array<i32>} : memref<8x8x256xf32, #tpu.memory_space<vmem>>, vector<1x8x128xf32>,
    %c5_i32 = arith.constant 5 : i32
    %c7_i32_116 = arith.constant 7 : i32
    %383 = arith.subi %c7_i32_116, %c5_i32 : i32
    %384 = arith.index_cast %c5_i32 : i32 to index
    %c0_117 = arith.constant 0 : index
    %c0_118 = arith.constant 0 : index
    %385 = vector.load %arg13[%384, %c0_117, %c0_118] : memref<8x8x1024xf32, #tpu.memory_space<vmem>>, vector<1x8x512xf32>
    %386 = vector.shape_cast %385 : vector<1x8x512xf32> to vector<8x512xf32>
    %387 = arith.truncf %349 : vector<8x128xf32> to vector<8x128xbf16>
    %c0_119 = arith.constant 0 : index
    %c0_120 = arith.constant 0 : index
    %388 = vector.load %arg3[%c0_119, %c0_120] : memref<128x512xbf16, #tpu.memory_space<vmem>>, vector<128x512xbf16>
    %cst_121 = arith.constant dense<0.000000e+00> : vector<8x512xf32>
    %389 = tpu.matmul %387, %388, %cst_121 {dimension_numbers = #tpu.dot_dimension_numbers<[1], [0], [0], [1], [0, 0, 1, 1], [], []>} : vector<8x128xbf16>, vector<128x512xbf16>, vector<8x512xf32> -> vector<8x512xf32>
    %390 = arith.addf %386, %389 : vector<8x512xf32>
    %391 = arith.index_cast %383 : i32 to index
    %c0_122 = arith.constant 0 : index
    %c512_123 = arith.constant 512 : index
    %392 = vector.load %arg13[%391, %c0_122, %c512_123] : memref<8x8x1024xf32, #tpu.memory_space<vmem>>, vector<1x8x512xf32>
    %393 = vector.shape_cast %392 : vector<1x8x512xf32> to vector<8x512xf32>
    %394 = arith.truncf %374 : vector<8x128xf32> to vector<8x128xbf16>
    %c0_124 = arith.constant 0 : index
    %c0_125 = arith.constant 0 : index
    %395 = vector.load %arg4[%c0_124, %c0_125] : memref<128x512xbf16, #tpu.memory_space<vmem>>, vector<128x512xbf16>
    %cst_126 = arith.constant dense<0.000000e+00> : vector<8x512xf32>
    %396 = tpu.matmul %394, %395, %cst_126 {dimension_numbers = #tpu.dot_dimension_numbers<[1], [0], [0], [1], [0, 0, 1, 1], [], []>} : vector<8x128xbf16>, vector<128x512xbf16>, vector<8x512xf32> -> vector<8x512xf32>
    %397 = arith.addf %393, %396 : vector<8x512xf32>
    %398 = vector.extract_strided_slice %390 {offsets = [0, 0], sizes = [8, 128], strides = [1, 1]} : vector<8x512xf32> to vector<8x128xf32>
    %399 = arith.negf %398 : vector<8x128xf32>
    %400 = math.exp %399 : vector<8x128xf32>
    %cst_127 = arith.constant 1.000000e+00 : f32
    %401 = vector.broadcast %cst_127 : f32 to vector<8x128xf32>
    %402 = arith.addf %401, %400 : vector<8x128xf32>
    %403 = arith.divf %401, %402 : vector<8x128xf32>
    %404 = vector.extract_strided_slice %390 {offsets = [0, 128], sizes = [8, 128], strides = [1, 1]} : vector<8x512xf32> to vector<8x128xf32>
    %405 = arith.negf %404 : vector<8x128xf32>
    %406 = math.exp %405 : vector<8x128xf32>
    %cst_128 = arith.constant 1.000000e+00 : f32
    %407 = vector.broadcast %cst_128 : f32 to vector<8x128xf32>
    %408 = arith.addf %407, %406 : vector<8x128xf32>
    %409 = arith.divf %407, %408 : vector<8x128xf32>
    %410 = vector.extract_strided_slice %390 {offsets = [0, 256], sizes = [8, 128], strides = [1, 1]} : vector<8x512xf32> to vector<8x128xf32>
    %411 = math.tanh %410 : vector<8x128xf32>
    %412 = vector.extract_strided_slice %390 {offsets = [0, 384], sizes = [8, 128], strides = [1, 1]} : vector<8x512xf32> to vector<8x128xf32>
    %413 = arith.negf %412 : vector<8x128xf32>
    %414 = math.exp %413 : vector<8x128xf32>
    %cst_129 = arith.constant 1.000000e+00 : f32
    %415 = vector.broadcast %cst_129 : f32 to vector<8x128xf32>
    %416 = arith.addf %415, %414 : vector<8x128xf32>
    %417 = arith.divf %415, %416 : vector<8x128xf32>
    %418 = arith.mulf %409, %347 : vector<8x128xf32>
    %419 = arith.mulf %403, %411 : vector<8x128xf32>
    %420 = arith.addf %418, %419 : vector<8x128xf32>
    %421 = math.tanh %420 : vector<8x128xf32>
    %422 = arith.mulf %417, %421 : vector<8x128xf32>
    %423 = vector.extract_strided_slice %397 {offsets = [0, 0], sizes = [8, 128], strides = [1, 1]} : vector<8x512xf32> to vector<8x128xf32>
    %424 = arith.negf %423 : vector<8x128xf32>
    %425 = math.exp %424 : vector<8x128xf32>
    %cst_130 = arith.constant 1.000000e+00 : f32
    %426 = vector.broadcast %cst_130 : f32 to vector<8x128xf32>
    %427 = arith.addf %426, %425 : vector<8x128xf32>
    %428 = arith.divf %426, %427 : vector<8x128xf32>
    %429 = vector.extract_strided_slice %397 {offsets = [0, 128], sizes = [8, 128], strides = [1, 1]} : vector<8x512xf32> to vector<8x128xf32>
    %430 = arith.negf %429 : vector<8x128xf32>
    %431 = math.exp %430 : vector<8x128xf32>
    %cst_131 = arith.constant 1.000000e+00 : f32
    %432 = vector.broadcast %cst_131 : f32 to vector<8x128xf32>
    %433 = arith.addf %432, %431 : vector<8x128xf32>
    %434 = arith.divf %432, %433 : vector<8x128xf32>
    %435 = vector.extract_strided_slice %397 {offsets = [0, 256], sizes = [8, 128], strides = [1, 1]} : vector<8x512xf32> to vector<8x128xf32>
    %436 = math.tanh %435 : vector<8x128xf32>
    %437 = vector.extract_strided_slice %397 {offsets = [0, 384], sizes = [8, 128], strides = [1, 1]} : vector<8x512xf32> to vector<8x128xf32>
    %438 = arith.negf %437 : vector<8x128xf32>
    %439 = math.exp %438 : vector<8x128xf32>
    %cst_132 = arith.constant 1.000000e+00 : f32
    %440 = vector.broadcast %cst_132 : f32 to vector<8x128xf32>
    %441 = arith.addf %440, %439 : vector<8x128xf32>
    %442 = arith.divf %440, %441 : vector<8x128xf32>
    %443 = arith.mulf %434, %372 : vector<8x128xf32>
    %444 = arith.mulf %428, %436 : vector<8x128xf32>
    %445 = arith.addf %443, %444 : vector<8x128xf32>
    %446 = math.tanh %445 : vector<8x128xf32>
    %447 = arith.mulf %442, %446 : vector<8x128xf32>
    %448 = arith.index_cast %c5_i32 : i32 to index
    %c0_133 = arith.constant 0 : index
    %c0_134 = arith.constant 0 : index
    %449 = vector.load %arg14[%448, %c0_133, %c0_134] : memref<8x8x256xf32, #tpu.memory_space<vmem>>, vector<1x8x128xf32>
    %450 = vector.shape_cast %449 : vector<1x8x128xf32> to vector<8x128xf32>
    %451 = vector.shape_cast %422 : vector<8x128xf32> to vector<1x8x128xf32>
    tpu.vector_store %arg14[%448, %c0_133, %c0_134], %451 {strides = array<i32>} : memref<8x8x256xf32, #tpu.memory_space<vmem>>, vector<1x8x128xf32>,
    %452 = arith.index_cast %383 : i32 to index
    %c0_135 = arith.constant 0 : index
    %c128_136 = arith.constant 128 : index
    %453 = vector.load %arg14[%452, %c0_135, %c128_136] : memref<8x8x256xf32, #tpu.memory_space<vmem>>, vector<1x8x128xf32>
    %454 = vector.shape_cast %453 : vector<1x8x128xf32> to vector<8x128xf32>
    %455 = vector.shape_cast %447 : vector<8x128xf32> to vector<1x8x128xf32>
    tpu.vector_store %arg14[%452, %c0_135, %c128_136], %455 {strides = array<i32>} : memref<8x8x256xf32, #tpu.memory_space<vmem>>, vector<1x8x128xf32>,
    %c6_i32 = arith.constant 6 : i32
    %c7_i32_137 = arith.constant 7 : i32
    %456 = arith.subi %c7_i32_137, %c6_i32 : i32
    %457 = arith.index_cast %c6_i32 : i32 to index
    %c0_138 = arith.constant 0 : index
    %c0_139 = arith.constant 0 : index
    %458 = vector.load %arg13[%457, %c0_138, %c0_139] : memref<8x8x1024xf32, #tpu.memory_space<vmem>>, vector<1x8x512xf32>
    %459 = vector.shape_cast %458 : vector<1x8x512xf32> to vector<8x512xf32>
    %460 = arith.truncf %422 : vector<8x128xf32> to vector<8x128xbf16>
    %c0_140 = arith.constant 0 : index
    %c0_141 = arith.constant 0 : index
    %461 = vector.load %arg3[%c0_140, %c0_141] : memref<128x512xbf16, #tpu.memory_space<vmem>>, vector<128x512xbf16>
    %cst_142 = arith.constant dense<0.000000e+00> : vector<8x512xf32>
    %462 = tpu.matmul %460, %461, %cst_142 {dimension_numbers = #tpu.dot_dimension_numbers<[1], [0], [0], [1], [0, 0, 1, 1], [], []>} : vector<8x128xbf16>, vector<128x512xbf16>, vector<8x512xf32> -> vector<8x512xf32>
    %463 = arith.addf %459, %462 : vector<8x512xf32>
    %464 = arith.index_cast %456 : i32 to index
    %c0_143 = arith.constant 0 : index
    %c512_144 = arith.constant 512 : index
    %465 = vector.load %arg13[%464, %c0_143, %c512_144] : memref<8x8x1024xf32, #tpu.memory_space<vmem>>, vector<1x8x512xf32>
    %466 = vector.shape_cast %465 : vector<1x8x512xf32> to vector<8x512xf32>
    %467 = arith.truncf %447 : vector<8x128xf32> to vector<8x128xbf16>
    %c0_145 = arith.constant 0 : index
    %c0_146 = arith.constant 0 : index
    %468 = vector.load %arg4[%c0_145, %c0_146] : memref<128x512xbf16, #tpu.memory_space<vmem>>, vector<128x512xbf16>
    %cst_147 = arith.constant dense<0.000000e+00> : vector<8x512xf32>
    %469 = tpu.matmul %467, %468, %cst_147 {dimension_numbers = #tpu.dot_dimension_numbers<[1], [0], [0], [1], [0, 0, 1, 1], [], []>} : vector<8x128xbf16>, vector<128x512xbf16>, vector<8x512xf32> -> vector<8x512xf32>
    %470 = arith.addf %466, %469 : vector<8x512xf32>
    %471 = vector.extract_strided_slice %463 {offsets = [0, 0], sizes = [8, 128], strides = [1, 1]} : vector<8x512xf32> to vector<8x128xf32>
    %472 = arith.negf %471 : vector<8x128xf32>
    %473 = math.exp %472 : vector<8x128xf32>
    %cst_148 = arith.constant 1.000000e+00 : f32
    %474 = vector.broadcast %cst_148 : f32 to vector<8x128xf32>
    %475 = arith.addf %474, %473 : vector<8x128xf32>
    %476 = arith.divf %474, %475 : vector<8x128xf32>
    %477 = vector.extract_strided_slice %463 {offsets = [0, 128], sizes = [8, 128], strides = [1, 1]} : vector<8x512xf32> to vector<8x128xf32>
    %478 = arith.negf %477 : vector<8x128xf32>
    %479 = math.exp %478 : vector<8x128xf32>
    %cst_149 = arith.constant 1.000000e+00 : f32
    %480 = vector.broadcast %cst_149 : f32 to vector<8x128xf32>
    %481 = arith.addf %480, %479 : vector<8x128xf32>
    %482 = arith.divf %480, %481 : vector<8x128xf32>
    %483 = vector.extract_strided_slice %463 {offsets = [0, 256], sizes = [8, 128], strides = [1, 1]} : vector<8x512xf32> to vector<8x128xf32>
    %484 = math.tanh %483 : vector<8x128xf32>
    %485 = vector.extract_strided_slice %463 {offsets = [0, 384], sizes = [8, 128], strides = [1, 1]} : vector<8x512xf32> to vector<8x128xf32>
    %486 = arith.negf %485 : vector<8x128xf32>
    %487 = math.exp %486 : vector<8x128xf32>
    %cst_150 = arith.constant 1.000000e+00 : f32
    %488 = vector.broadcast %cst_150 : f32 to vector<8x128xf32>
    %489 = arith.addf %488, %487 : vector<8x128xf32>
    %490 = arith.divf %488, %489 : vector<8x128xf32>
    %491 = arith.mulf %482, %420 : vector<8x128xf32>
    %492 = arith.mulf %476, %484 : vector<8x128xf32>
    %493 = arith.addf %491, %492 : vector<8x128xf32>
    %494 = math.tanh %493 : vector<8x128xf32>
    %495 = arith.mulf %490, %494 : vector<8x128xf32>
    %496 = vector.extract_strided_slice %470 {offsets = [0, 0], sizes = [8, 128], strides = [1, 1]} : vector<8x512xf32> to vector<8x128xf32>
    %497 = arith.negf %496 : vector<8x128xf32>
    %498 = math.exp %497 : vector<8x128xf32>
    %cst_151 = arith.constant 1.000000e+00 : f32
    %499 = vector.broadcast %cst_151 : f32 to vector<8x128xf32>
    %500 = arith.addf %499, %498 : vector<8x128xf32>
    %501 = arith.divf %499, %500 : vector<8x128xf32>
    %502 = vector.extract_strided_slice %470 {offsets = [0, 128], sizes = [8, 128], strides = [1, 1]} : vector<8x512xf32> to vector<8x128xf32>
    %503 = arith.negf %502 : vector<8x128xf32>
    %504 = math.exp %503 : vector<8x128xf32>
    %cst_152 = arith.constant 1.000000e+00 : f32
    %505 = vector.broadcast %cst_152 : f32 to vector<8x128xf32>
    %506 = arith.addf %505, %504 : vector<8x128xf32>
    %507 = arith.divf %505, %506 : vector<8x128xf32>
    %508 = vector.extract_strided_slice %470 {offsets = [0, 256], sizes = [8, 128], strides = [1, 1]} : vector<8x512xf32> to vector<8x128xf32>
    %509 = math.tanh %508 : vector<8x128xf32>
    %510 = vector.extract_strided_slice %470 {offsets = [0, 384], sizes = [8, 128], strides = [1, 1]} : vector<8x512xf32> to vector<8x128xf32>
    %511 = arith.negf %510 : vector<8x128xf32>
    %512 = math.exp %511 : vector<8x128xf32>
    %cst_153 = arith.constant 1.000000e+00 : f32
    %513 = vector.broadcast %cst_153 : f32 to vector<8x128xf32>
    %514 = arith.addf %513, %512 : vector<8x128xf32>
    %515 = arith.divf %513, %514 : vector<8x128xf32>
    %516 = arith.mulf %507, %445 : vector<8x128xf32>
    %517 = arith.mulf %501, %509 : vector<8x128xf32>
    %518 = arith.addf %516, %517 : vector<8x128xf32>
    %519 = math.tanh %518 : vector<8x128xf32>
    %520 = arith.mulf %515, %519 : vector<8x128xf32>
    %521 = arith.index_cast %c6_i32 : i32 to index
    %c0_154 = arith.constant 0 : index
    %c0_155 = arith.constant 0 : index
    %522 = vector.load %arg14[%521, %c0_154, %c0_155] : memref<8x8x256xf32, #tpu.memory_space<vmem>>, vector<1x8x128xf32>
    %523 = vector.shape_cast %522 : vector<1x8x128xf32> to vector<8x128xf32>
    %524 = vector.shape_cast %495 : vector<8x128xf32> to vector<1x8x128xf32>
    tpu.vector_store %arg14[%521, %c0_154, %c0_155], %524 {strides = array<i32>} : memref<8x8x256xf32, #tpu.memory_space<vmem>>, vector<1x8x128xf32>,
    %525 = arith.index_cast %456 : i32 to index
    %c0_156 = arith.constant 0 : index
    %c128_157 = arith.constant 128 : index
    %526 = vector.load %arg14[%525, %c0_156, %c128_157] : memref<8x8x256xf32, #tpu.memory_space<vmem>>, vector<1x8x128xf32>
    %527 = vector.shape_cast %526 : vector<1x8x128xf32> to vector<8x128xf32>
    %528 = vector.shape_cast %520 : vector<8x128xf32> to vector<1x8x128xf32>
    tpu.vector_store %arg14[%525, %c0_156, %c128_157], %528 {strides = array<i32>} : memref<8x8x256xf32, #tpu.memory_space<vmem>>, vector<1x8x128xf32>,
    %c7_i32_158 = arith.constant 7 : i32
    %c7_i32_159 = arith.constant 7 : i32
    %529 = arith.subi %c7_i32_159, %c7_i32_158 : i32
    %530 = arith.index_cast %c7_i32_158 : i32 to index
    %c0_160 = arith.constant 0 : index
    %c0_161 = arith.constant 0 : index
    %531 = vector.load %arg13[%530, %c0_160, %c0_161] : memref<8x8x1024xf32, #tpu.memory_space<vmem>>, vector<1x8x512xf32>
    %532 = vector.shape_cast %531 : vector<1x8x512xf32> to vector<8x512xf32>
    %533 = arith.truncf %495 : vector<8x128xf32> to vector<8x128xbf16>
    %c0_162 = arith.constant 0 : index
    %c0_163 = arith.constant 0 : index
    %534 = vector.load %arg3[%c0_162, %c0_163] : memref<128x512xbf16, #tpu.memory_space<vmem>>, vector<128x512xbf16>
    %cst_164 = arith.constant dense<0.000000e+00> : vector<8x512xf32>
    %535 = tpu.matmul %533, %534, %cst_164 {dimension_numbers = #tpu.dot_dimension_numbers<[1], [0], [0], [1], [0, 0, 1, 1], [], []>} : vector<8x128xbf16>, vector<128x512xbf16>, vector<8x512xf32> -> vector<8x512xf32>
    %536 = arith.addf %532, %535 : vector<8x512xf32>
    %537 = arith.index_cast %529 : i32 to index
    %c0_165 = arith.constant 0 : index
    %c512_166 = arith.constant 512 : index
    %538 = vector.load %arg13[%537, %c0_165, %c512_166] : memref<8x8x1024xf32, #tpu.memory_space<vmem>>, vector<1x8x512xf32>
    %539 = vector.shape_cast %538 : vector<1x8x512xf32> to vector<8x512xf32>
    %540 = arith.truncf %520 : vector<8x128xf32> to vector<8x128xbf16>
    %c0_167 = arith.constant 0 : index
    %c0_168 = arith.constant 0 : index
    %541 = vector.load %arg4[%c0_167, %c0_168] : memref<128x512xbf16, #tpu.memory_space<vmem>>, vector<128x512xbf16>
    %cst_169 = arith.constant dense<0.000000e+00> : vector<8x512xf32>
    %542 = tpu.matmul %540, %541, %cst_169 {dimension_numbers = #tpu.dot_dimension_numbers<[1], [0], [0], [1], [0, 0, 1, 1], [], []>} : vector<8x128xbf16>, vector<128x512xbf16>, vector<8x512xf32> -> vector<8x512xf32>
    %543 = arith.addf %539, %542 : vector<8x512xf32>
    %544 = vector.extract_strided_slice %536 {offsets = [0, 0], sizes = [8, 128], strides = [1, 1]} : vector<8x512xf32> to vector<8x128xf32>
    %545 = arith.negf %544 : vector<8x128xf32>
    %546 = math.exp %545 : vector<8x128xf32>
    %cst_170 = arith.constant 1.000000e+00 : f32
    %547 = vector.broadcast %cst_170 : f32 to vector<8x128xf32>
    %548 = arith.addf %547, %546 : vector<8x128xf32>
    %549 = arith.divf %547, %548 : vector<8x128xf32>
    %550 = vector.extract_strided_slice %536 {offsets = [0, 128], sizes = [8, 128], strides = [1, 1]} : vector<8x512xf32> to vector<8x128xf32>
    %551 = arith.negf %550 : vector<8x128xf32>
    %552 = math.exp %551 : vector<8x128xf32>
    %cst_171 = arith.constant 1.000000e+00 : f32
    %553 = vector.broadcast %cst_171 : f32 to vector<8x128xf32>
    %554 = arith.addf %553, %552 : vector<8x128xf32>
    %555 = arith.divf %553, %554 : vector<8x128xf32>
    %556 = vector.extract_strided_slice %536 {offsets = [0, 256], sizes = [8, 128], strides = [1, 1]} : vector<8x512xf32> to vector<8x128xf32>
    %557 = math.tanh %556 : vector<8x128xf32>
    %558 = vector.extract_strided_slice %536 {offsets = [0, 384], sizes = [8, 128], strides = [1, 1]} : vector<8x512xf32> to vector<8x128xf32>
    %559 = arith.negf %558 : vector<8x128xf32>
    %560 = math.exp %559 : vector<8x128xf32>
    %cst_172 = arith.constant 1.000000e+00 : f32
    %561 = vector.broadcast %cst_172 : f32 to vector<8x128xf32>
    %562 = arith.addf %561, %560 : vector<8x128xf32>
    %563 = arith.divf %561, %562 : vector<8x128xf32>
    %564 = arith.mulf %555, %493 : vector<8x128xf32>
    %565 = arith.mulf %549, %557 : vector<8x128xf32>
    %566 = arith.addf %564, %565 : vector<8x128xf32>
    %567 = math.tanh %566 : vector<8x128xf32>
    %568 = arith.mulf %563, %567 : vector<8x128xf32>
    %569 = vector.extract_strided_slice %543 {offsets = [0, 0], sizes = [8, 128], strides = [1, 1]} : vector<8x512xf32> to vector<8x128xf32>
    %570 = arith.negf %569 : vector<8x128xf32>
    %571 = math.exp %570 : vector<8x128xf32>
    %cst_173 = arith.constant 1.000000e+00 : f32
    %572 = vector.broadcast %cst_173 : f32 to vector<8x128xf32>
    %573 = arith.addf %572, %571 : vector<8x128xf32>
    %574 = arith.divf %572, %573 : vector<8x128xf32>
    %575 = vector.extract_strided_slice %543 {offsets = [0, 128], sizes = [8, 128], strides = [1, 1]} : vector<8x512xf32> to vector<8x128xf32>
    %576 = arith.negf %575 : vector<8x128xf32>
    %577 = math.exp %576 : vector<8x128xf32>
    %cst_174 = arith.constant 1.000000e+00 : f32
    %578 = vector.broadcast %cst_174 : f32 to vector<8x128xf32>
    %579 = arith.addf %578, %577 : vector<8x128xf32>
    %580 = arith.divf %578, %579 : vector<8x128xf32>
    %581 = vector.extract_strided_slice %543 {offsets = [0, 256], sizes = [8, 128], strides = [1, 1]} : vector<8x512xf32> to vector<8x128xf32>
    %582 = math.tanh %581 : vector<8x128xf32>
    %583 = vector.extract_strided_slice %543 {offsets = [0, 384], sizes = [8, 128], strides = [1, 1]} : vector<8x512xf32> to vector<8x128xf32>
    %584 = arith.negf %583 : vector<8x128xf32>
    %585 = math.exp %584 : vector<8x128xf32>
    %cst_175 = arith.constant 1.000000e+00 : f32
    %586 = vector.broadcast %cst_175 : f32 to vector<8x128xf32>
    %587 = arith.addf %586, %585 : vector<8x128xf32>
    %588 = arith.divf %586, %587 : vector<8x128xf32>
    %589 = arith.mulf %580, %518 : vector<8x128xf32>
    %590 = arith.mulf %574, %582 : vector<8x128xf32>
    %591 = arith.addf %589, %590 : vector<8x128xf32>
    %592 = math.tanh %591 : vector<8x128xf32>
    %593 = arith.mulf %588, %592 : vector<8x128xf32>
    %594 = arith.index_cast %c7_i32_158 : i32 to index
    %c0_176 = arith.constant 0 : index
    %c0_177 = arith.constant 0 : index
    %595 = vector.load %arg14[%594, %c0_176, %c0_177] : memref<8x8x256xf32, #tpu.memory_space<vmem>>, vector<1x8x128xf32>
    %596 = vector.shape_cast %595 : vector<1x8x128xf32> to vector<8x128xf32>
    %597 = vector.shape_cast %568 : vector<8x128xf32> to vector<1x8x128xf32>
    tpu.vector_store %arg14[%594, %c0_176, %c0_177], %597 {strides = array<i32>} : memref<8x8x256xf32, #tpu.memory_space<vmem>>, vector<1x8x128xf32>,
    %598 = arith.index_cast %529 : i32 to index
    %c0_178 = arith.constant 0 : index
    %c128_179 = arith.constant 128 : index
    %599 = vector.load %arg14[%598, %c0_178, %c128_179] : memref<8x8x256xf32, #tpu.memory_space<vmem>>, vector<1x8x128xf32>
    %600 = vector.shape_cast %599 : vector<1x8x128xf32> to vector<8x128xf32>
    %601 = vector.shape_cast %593 : vector<8x128xf32> to vector<1x8x128xf32>
    tpu.vector_store %arg14[%598, %c0_178, %c128_179], %601 {strides = array<i32>} : memref<8x8x256xf32, #tpu.memory_space<vmem>>, vector<1x8x128xf32>,
    %c8_i32 = arith.constant 8 : i32
    %c0_180 = arith.constant 0 : index
    %c0_181 = arith.constant 0 : index
    %c0_182 = arith.constant 0 : index
    %602 = vector.load %arg14[%c0_180, %c0_181, %c0_182] : memref<8x8x256xf32, #tpu.memory_space<vmem>>, vector<8x8x256xf32>
    %603 = vector.shape_cast %602 : vector<8x8x256xf32> to vector<64x256xf32>
    %604 = arith.truncf %603 : vector<64x256xf32> to vector<64x256xbf16>
    %c0_183 = arith.constant 0 : index
    %c0_184 = arith.constant 0 : index
    %605 = vector.load %arg6[%c0_183, %c0_184] : memref<256x1024xbf16, #tpu.memory_space<vmem>>, vector<256x1024xbf16>
    %cst_185 = arith.constant dense<0.000000e+00> : vector<64x1024xf32>
    %606 = tpu.matmul %604, %605, %cst_185 {dimension_numbers = #tpu.dot_dimension_numbers<[1], [0], [0], [1], [0, 0, 1, 1], [], []>} : vector<64x256xbf16>, vector<256x1024xbf16>, vector<64x1024xf32> -> vector<64x1024xf32>
    %c0_186 = arith.constant 0 : index
    %c0_187 = arith.constant 0 : index
    %607 = vector.load %arg9[%c0_186, %c0_187] : memref<1x1024xf32, #tpu.memory_space<vmem>>, vector<1x1024xf32>
    %608 = vector.broadcast %607 : vector<1x1024xf32> to vector<64x1024xf32>
    %609 = arith.addf %606, %608 : vector<64x1024xf32>
    %610 = vector.shape_cast %609 : vector<64x1024xf32> to vector<8x8x1024xf32>
    %c0_188 = arith.constant 0 : index
    %c0_189 = arith.constant 0 : index
    %c0_190 = arith.constant 0 : index
    %611 = vector.load %arg13[%c0_188, %c0_189, %c0_190] : memref<8x8x1024xf32, #tpu.memory_space<vmem>>, vector<8x8x1024xf32>
    tpu.vector_store %arg13[%c0_188, %c0_189, %c0_190], %610 {strides = array<i32>} : memref<8x8x1024xf32, #tpu.memory_space<vmem>>, vector<8x8x1024xf32>,
    %cst_191 = arith.constant 0.000000e+00 : f32
    %612 = vector.broadcast %cst_191 : f32 to vector<8x128xf32>
    %c0_i32_192 = arith.constant 0 : i32
    %c7_i32_193 = arith.constant 7 : i32
    %613 = arith.subi %c7_i32_193, %c0_i32_192 : i32
    %614 = arith.index_cast %c0_i32_192 : i32 to index
    %c0_194 = arith.constant 0 : index
    %c0_195 = arith.constant 0 : index
    %615 = vector.load %arg13[%614, %c0_194, %c0_195] : memref<8x8x1024xf32, #tpu.memory_space<vmem>>, vector<1x8x512xf32>
    %616 = vector.shape_cast %615 : vector<1x8x512xf32> to vector<8x512xf32>
    %617 = arith.truncf %612 : vector<8x128xf32> to vector<8x128xbf16>
    %c0_196 = arith.constant 0 : index
    %c0_197 = arith.constant 0 : index
    %618 = vector.load %arg7[%c0_196, %c0_197] : memref<128x512xbf16, #tpu.memory_space<vmem>>, vector<128x512xbf16>
    %cst_198 = arith.constant dense<0.000000e+00> : vector<8x512xf32>
    %619 = tpu.matmul %617, %618, %cst_198 {dimension_numbers = #tpu.dot_dimension_numbers<[1], [0], [0], [1], [0, 0, 1, 1], [], []>} : vector<8x128xbf16>, vector<128x512xbf16>, vector<8x512xf32> -> vector<8x512xf32>
    %620 = arith.addf %616, %619 : vector<8x512xf32>
    %621 = arith.index_cast %613 : i32 to index
    %c0_199 = arith.constant 0 : index
    %c512_200 = arith.constant 512 : index
    %622 = vector.load %arg13[%621, %c0_199, %c512_200] : memref<8x8x1024xf32, #tpu.memory_space<vmem>>, vector<1x8x512xf32>
    %623 = vector.shape_cast %622 : vector<1x8x512xf32> to vector<8x512xf32>
    %624 = arith.truncf %612 : vector<8x128xf32> to vector<8x128xbf16>
    %c0_201 = arith.constant 0 : index
    %c0_202 = arith.constant 0 : index
    %625 = vector.load %arg8[%c0_201, %c0_202] : memref<128x512xbf16, #tpu.memory_space<vmem>>, vector<128x512xbf16>
    %cst_203 = arith.constant dense<0.000000e+00> : vector<8x512xf32>
    %626 = tpu.matmul %624, %625, %cst_203 {dimension_numbers = #tpu.dot_dimension_numbers<[1], [0], [0], [1], [0, 0, 1, 1], [], []>} : vector<8x128xbf16>, vector<128x512xbf16>, vector<8x512xf32> -> vector<8x512xf32>
    %627 = arith.addf %623, %626 : vector<8x512xf32>
    %628 = vector.extract_strided_slice %620 {offsets = [0, 0], sizes = [8, 128], strides = [1, 1]} : vector<8x512xf32> to vector<8x128xf32>
    %629 = arith.negf %628 : vector<8x128xf32>
    %630 = math.exp %629 : vector<8x128xf32>
    %cst_204 = arith.constant 1.000000e+00 : f32
    %631 = vector.broadcast %cst_204 : f32 to vector<8x128xf32>
    %632 = arith.addf %631, %630 : vector<8x128xf32>
    %633 = arith.divf %631, %632 : vector<8x128xf32>
    %634 = vector.extract_strided_slice %620 {offsets = [0, 128], sizes = [8, 128], strides = [1, 1]} : vector<8x512xf32> to vector<8x128xf32>
    %635 = arith.negf %634 : vector<8x128xf32>
    %636 = math.exp %635 : vector<8x128xf32>
    %cst_205 = arith.constant 1.000000e+00 : f32
    %637 = vector.broadcast %cst_205 : f32 to vector<8x128xf32>
    %638 = arith.addf %637, %636 : vector<8x128xf32>
    %639 = arith.divf %637, %638 : vector<8x128xf32>
    %640 = vector.extract_strided_slice %620 {offsets = [0, 256], sizes = [8, 128], strides = [1, 1]} : vector<8x512xf32> to vector<8x128xf32>
    %641 = math.tanh %640 : vector<8x128xf32>
    %642 = vector.extract_strided_slice %620 {offsets = [0, 384], sizes = [8, 128], strides = [1, 1]} : vector<8x512xf32> to vector<8x128xf32>
    %643 = arith.negf %642 : vector<8x128xf32>
    %644 = math.exp %643 : vector<8x128xf32>
    %cst_206 = arith.constant 1.000000e+00 : f32
    %645 = vector.broadcast %cst_206 : f32 to vector<8x128xf32>
    %646 = arith.addf %645, %644 : vector<8x128xf32>
    %647 = arith.divf %645, %646 : vector<8x128xf32>
    %648 = arith.mulf %639, %612 : vector<8x128xf32>
    %649 = arith.mulf %633, %641 : vector<8x128xf32>
    %650 = arith.addf %648, %649 : vector<8x128xf32>
    %651 = math.tanh %650 : vector<8x128xf32>
    %652 = arith.mulf %647, %651 : vector<8x128xf32>
    %653 = vector.extract_strided_slice %627 {offsets = [0, 0], sizes = [8, 128], strides = [1, 1]} : vector<8x512xf32> to vector<8x128xf32>
    %654 = arith.negf %653 : vector<8x128xf32>
    %655 = math.exp %654 : vector<8x128xf32>
    %cst_207 = arith.constant 1.000000e+00 : f32
    %656 = vector.broadcast %cst_207 : f32 to vector<8x128xf32>
    %657 = arith.addf %656, %655 : vector<8x128xf32>
    %658 = arith.divf %656, %657 : vector<8x128xf32>
    %659 = vector.extract_strided_slice %627 {offsets = [0, 128], sizes = [8, 128], strides = [1, 1]} : vector<8x512xf32> to vector<8x128xf32>
    %660 = arith.negf %659 : vector<8x128xf32>
    %661 = math.exp %660 : vector<8x128xf32>
    %cst_208 = arith.constant 1.000000e+00 : f32
    %662 = vector.broadcast %cst_208 : f32 to vector<8x128xf32>
    %663 = arith.addf %662, %661 : vector<8x128xf32>
    %664 = arith.divf %662, %663 : vector<8x128xf32>
    %665 = vector.extract_strided_slice %627 {offsets = [0, 256], sizes = [8, 128], strides = [1, 1]} : vector<8x512xf32> to vector<8x128xf32>
    %666 = math.tanh %665 : vector<8x128xf32>
    %667 = vector.extract_strided_slice %627 {offsets = [0, 384], sizes = [8, 128], strides = [1, 1]} : vector<8x512xf32> to vector<8x128xf32>
    %668 = arith.negf %667 : vector<8x128xf32>
    %669 = math.exp %668 : vector<8x128xf32>
    %cst_209 = arith.constant 1.000000e+00 : f32
    %670 = vector.broadcast %cst_209 : f32 to vector<8x128xf32>
    %671 = arith.addf %670, %669 : vector<8x128xf32>
    %672 = arith.divf %670, %671 : vector<8x128xf32>
    %673 = arith.mulf %664, %612 : vector<8x128xf32>
    %674 = arith.mulf %658, %666 : vector<8x128xf32>
    %675 = arith.addf %673, %674 : vector<8x128xf32>
    %676 = math.tanh %675 : vector<8x128xf32>
    %677 = arith.mulf %672, %676 : vector<8x128xf32>
    %678 = arith.index_cast %c0_i32_192 : i32 to index
    %c0_210 = arith.constant 0 : index
    %c0_211 = arith.constant 0 : index
    %679 = vector.load %arg14[%678, %c0_210, %c0_211] : memref<8x8x256xf32, #tpu.memory_space<vmem>>, vector<1x8x128xf32>
    %680 = vector.shape_cast %679 : vector<1x8x128xf32> to vector<8x128xf32>
    %681 = vector.shape_cast %652 : vector<8x128xf32> to vector<1x8x128xf32>
    tpu.vector_store %arg14[%678, %c0_210, %c0_211], %681 {strides = array<i32>} : memref<8x8x256xf32, #tpu.memory_space<vmem>>, vector<1x8x128xf32>,
    %682 = arith.index_cast %613 : i32 to index
    %c0_212 = arith.constant 0 : index
    %c128_213 = arith.constant 128 : index
    %683 = vector.load %arg14[%682, %c0_212, %c128_213] : memref<8x8x256xf32, #tpu.memory_space<vmem>>, vector<1x8x128xf32>
    %684 = vector.shape_cast %683 : vector<1x8x128xf32> to vector<8x128xf32>
    %685 = vector.shape_cast %677 : vector<8x128xf32> to vector<1x8x128xf32>
    tpu.vector_store %arg14[%682, %c0_212, %c128_213], %685 {strides = array<i32>} : memref<8x8x256xf32, #tpu.memory_space<vmem>>, vector<1x8x128xf32>,
    %c1_i32_214 = arith.constant 1 : i32
    %c7_i32_215 = arith.constant 7 : i32
    %686 = arith.subi %c7_i32_215, %c1_i32_214 : i32
    %687 = arith.index_cast %c1_i32_214 : i32 to index
    %c0_216 = arith.constant 0 : index
    %c0_217 = arith.constant 0 : index
    %688 = vector.load %arg13[%687, %c0_216, %c0_217] : memref<8x8x1024xf32, #tpu.memory_space<vmem>>, vector<1x8x512xf32>
    %689 = vector.shape_cast %688 : vector<1x8x512xf32> to vector<8x512xf32>
    %690 = arith.truncf %652 : vector<8x128xf32> to vector<8x128xbf16>
    %c0_218 = arith.constant 0 : index
    %c0_219 = arith.constant 0 : index
    %691 = vector.load %arg7[%c0_218, %c0_219] : memref<128x512xbf16, #tpu.memory_space<vmem>>, vector<128x512xbf16>
    %cst_220 = arith.constant dense<0.000000e+00> : vector<8x512xf32>
    %692 = tpu.matmul %690, %691, %cst_220 {dimension_numbers = #tpu.dot_dimension_numbers<[1], [0], [0], [1], [0, 0, 1, 1], [], []>} : vector<8x128xbf16>, vector<128x512xbf16>, vector<8x512xf32> -> vector<8x512xf32>
    %693 = arith.addf %689, %692 : vector<8x512xf32>
    %694 = arith.index_cast %686 : i32 to index
    %c0_221 = arith.constant 0 : index
    %c512_222 = arith.constant 512 : index
    %695 = vector.load %arg13[%694, %c0_221, %c512_222] : memref<8x8x1024xf32, #tpu.memory_space<vmem>>, vector<1x8x512xf32>
    %696 = vector.shape_cast %695 : vector<1x8x512xf32> to vector<8x512xf32>
    %697 = arith.truncf %677 : vector<8x128xf32> to vector<8x128xbf16>
    %c0_223 = arith.constant 0 : index
    %c0_224 = arith.constant 0 : index
    %698 = vector.load %arg8[%c0_223, %c0_224] : memref<128x512xbf16, #tpu.memory_space<vmem>>, vector<128x512xbf16>
    %cst_225 = arith.constant dense<0.000000e+00> : vector<8x512xf32>
    %699 = tpu.matmul %697, %698, %cst_225 {dimension_numbers = #tpu.dot_dimension_numbers<[1], [0], [0], [1], [0, 0, 1, 1], [], []>} : vector<8x128xbf16>, vector<128x512xbf16>, vector<8x512xf32> -> vector<8x512xf32>
    %700 = arith.addf %696, %699 : vector<8x512xf32>
    %701 = vector.extract_strided_slice %693 {offsets = [0, 0], sizes = [8, 128], strides = [1, 1]} : vector<8x512xf32> to vector<8x128xf32>
    %702 = arith.negf %701 : vector<8x128xf32>
    %703 = math.exp %702 : vector<8x128xf32>
    %cst_226 = arith.constant 1.000000e+00 : f32
    %704 = vector.broadcast %cst_226 : f32 to vector<8x128xf32>
    %705 = arith.addf %704, %703 : vector<8x128xf32>
    %706 = arith.divf %704, %705 : vector<8x128xf32>
    %707 = vector.extract_strided_slice %693 {offsets = [0, 128], sizes = [8, 128], strides = [1, 1]} : vector<8x512xf32> to vector<8x128xf32>
    %708 = arith.negf %707 : vector<8x128xf32>
    %709 = math.exp %708 : vector<8x128xf32>
    %cst_227 = arith.constant 1.000000e+00 : f32
    %710 = vector.broadcast %cst_227 : f32 to vector<8x128xf32>
    %711 = arith.addf %710, %709 : vector<8x128xf32>
    %712 = arith.divf %710, %711 : vector<8x128xf32>
    %713 = vector.extract_strided_slice %693 {offsets = [0, 256], sizes = [8, 128], strides = [1, 1]} : vector<8x512xf32> to vector<8x128xf32>
    %714 = math.tanh %713 : vector<8x128xf32>
    %715 = vector.extract_strided_slice %693 {offsets = [0, 384], sizes = [8, 128], strides = [1, 1]} : vector<8x512xf32> to vector<8x128xf32>
    %716 = arith.negf %715 : vector<8x128xf32>
    %717 = math.exp %716 : vector<8x128xf32>
    %cst_228 = arith.constant 1.000000e+00 : f32
    %718 = vector.broadcast %cst_228 : f32 to vector<8x128xf32>
    %719 = arith.addf %718, %717 : vector<8x128xf32>
    %720 = arith.divf %718, %719 : vector<8x128xf32>
    %721 = arith.mulf %712, %650 : vector<8x128xf32>
    %722 = arith.mulf %706, %714 : vector<8x128xf32>
    %723 = arith.addf %721, %722 : vector<8x128xf32>
    %724 = math.tanh %723 : vector<8x128xf32>
    %725 = arith.mulf %720, %724 : vector<8x128xf32>
    %726 = vector.extract_strided_slice %700 {offsets = [0, 0], sizes = [8, 128], strides = [1, 1]} : vector<8x512xf32> to vector<8x128xf32>
    %727 = arith.negf %726 : vector<8x128xf32>
    %728 = math.exp %727 : vector<8x128xf32>
    %cst_229 = arith.constant 1.000000e+00 : f32
    %729 = vector.broadcast %cst_229 : f32 to vector<8x128xf32>
    %730 = arith.addf %729, %728 : vector<8x128xf32>
    %731 = arith.divf %729, %730 : vector<8x128xf32>
    %732 = vector.extract_strided_slice %700 {offsets = [0, 128], sizes = [8, 128], strides = [1, 1]} : vector<8x512xf32> to vector<8x128xf32>
    %733 = arith.negf %732 : vector<8x128xf32>
    %734 = math.exp %733 : vector<8x128xf32>
    %cst_230 = arith.constant 1.000000e+00 : f32
    %735 = vector.broadcast %cst_230 : f32 to vector<8x128xf32>
    %736 = arith.addf %735, %734 : vector<8x128xf32>
    %737 = arith.divf %735, %736 : vector<8x128xf32>
    %738 = vector.extract_strided_slice %700 {offsets = [0, 256], sizes = [8, 128], strides = [1, 1]} : vector<8x512xf32> to vector<8x128xf32>
    %739 = math.tanh %738 : vector<8x128xf32>
    %740 = vector.extract_strided_slice %700 {offsets = [0, 384], sizes = [8, 128], strides = [1, 1]} : vector<8x512xf32> to vector<8x128xf32>
    %741 = arith.negf %740 : vector<8x128xf32>
    %742 = math.exp %741 : vector<8x128xf32>
    %cst_231 = arith.constant 1.000000e+00 : f32
    %743 = vector.broadcast %cst_231 : f32 to vector<8x128xf32>
    %744 = arith.addf %743, %742 : vector<8x128xf32>
    %745 = arith.divf %743, %744 : vector<8x128xf32>
    %746 = arith.mulf %737, %675 : vector<8x128xf32>
    %747 = arith.mulf %731, %739 : vector<8x128xf32>
    %748 = arith.addf %746, %747 : vector<8x128xf32>
    %749 = math.tanh %748 : vector<8x128xf32>
    %750 = arith.mulf %745, %749 : vector<8x128xf32>
    %751 = arith.index_cast %c1_i32_214 : i32 to index
    %c0_232 = arith.constant 0 : index
    %c0_233 = arith.constant 0 : index
    %752 = vector.load %arg14[%751, %c0_232, %c0_233] : memref<8x8x256xf32, #tpu.memory_space<vmem>>, vector<1x8x128xf32>
    %753 = vector.shape_cast %752 : vector<1x8x128xf32> to vector<8x128xf32>
    %754 = vector.shape_cast %725 : vector<8x128xf32> to vector<1x8x128xf32>
    tpu.vector_store %arg14[%751, %c0_232, %c0_233], %754 {strides = array<i32>} : memref<8x8x256xf32, #tpu.memory_space<vmem>>, vector<1x8x128xf32>,
    %755 = arith.index_cast %686 : i32 to index
    %c0_234 = arith.constant 0 : index
    %c128_235 = arith.constant 128 : index
    %756 = vector.load %arg14[%755, %c0_234, %c128_235] : memref<8x8x256xf32, #tpu.memory_space<vmem>>, vector<1x8x128xf32>
    %757 = vector.shape_cast %756 : vector<1x8x128xf32> to vector<8x128xf32>
    %758 = vector.shape_cast %750 : vector<8x128xf32> to vector<1x8x128xf32>
    tpu.vector_store %arg14[%755, %c0_234, %c128_235], %758 {strides = array<i32>} : memref<8x8x256xf32, #tpu.memory_space<vmem>>, vector<1x8x128xf32>,
    %c2_i32_236 = arith.constant 2 : i32
    %c7_i32_237 = arith.constant 7 : i32
    %759 = arith.subi %c7_i32_237, %c2_i32_236 : i32
    %760 = arith.index_cast %c2_i32_236 : i32 to index
    %c0_238 = arith.constant 0 : index
    %c0_239 = arith.constant 0 : index
    %761 = vector.load %arg13[%760, %c0_238, %c0_239] : memref<8x8x1024xf32, #tpu.memory_space<vmem>>, vector<1x8x512xf32>
    %762 = vector.shape_cast %761 : vector<1x8x512xf32> to vector<8x512xf32>
    %763 = arith.truncf %725 : vector<8x128xf32> to vector<8x128xbf16>
    %c0_240 = arith.constant 0 : index
    %c0_241 = arith.constant 0 : index
    %764 = vector.load %arg7[%c0_240, %c0_241] : memref<128x512xbf16, #tpu.memory_space<vmem>>, vector<128x512xbf16>
    %cst_242 = arith.constant dense<0.000000e+00> : vector<8x512xf32>
    %765 = tpu.matmul %763, %764, %cst_242 {dimension_numbers = #tpu.dot_dimension_numbers<[1], [0], [0], [1], [0, 0, 1, 1], [], []>} : vector<8x128xbf16>, vector<128x512xbf16>, vector<8x512xf32> -> vector<8x512xf32>
    %766 = arith.addf %762, %765 : vector<8x512xf32>
    %767 = arith.index_cast %759 : i32 to index
    %c0_243 = arith.constant 0 : index
    %c512_244 = arith.constant 512 : index
    %768 = vector.load %arg13[%767, %c0_243, %c512_244] : memref<8x8x1024xf32, #tpu.memory_space<vmem>>, vector<1x8x512xf32>
    %769 = vector.shape_cast %768 : vector<1x8x512xf32> to vector<8x512xf32>
    %770 = arith.truncf %750 : vector<8x128xf32> to vector<8x128xbf16>
    %c0_245 = arith.constant 0 : index
    %c0_246 = arith.constant 0 : index
    %771 = vector.load %arg8[%c0_245, %c0_246] : memref<128x512xbf16, #tpu.memory_space<vmem>>, vector<128x512xbf16>
    %cst_247 = arith.constant dense<0.000000e+00> : vector<8x512xf32>
    %772 = tpu.matmul %770, %771, %cst_247 {dimension_numbers = #tpu.dot_dimension_numbers<[1], [0], [0], [1], [0, 0, 1, 1], [], []>} : vector<8x128xbf16>, vector<128x512xbf16>, vector<8x512xf32> -> vector<8x512xf32>
    %773 = arith.addf %769, %772 : vector<8x512xf32>
    %774 = vector.extract_strided_slice %766 {offsets = [0, 0], sizes = [8, 128], strides = [1, 1]} : vector<8x512xf32> to vector<8x128xf32>
    %775 = arith.negf %774 : vector<8x128xf32>
    %776 = math.exp %775 : vector<8x128xf32>
    %cst_248 = arith.constant 1.000000e+00 : f32
    %777 = vector.broadcast %cst_248 : f32 to vector<8x128xf32>
    %778 = arith.addf %777, %776 : vector<8x128xf32>
    %779 = arith.divf %777, %778 : vector<8x128xf32>
    %780 = vector.extract_strided_slice %766 {offsets = [0, 128], sizes = [8, 128], strides = [1, 1]} : vector<8x512xf32> to vector<8x128xf32>
    %781 = arith.negf %780 : vector<8x128xf32>
    %782 = math.exp %781 : vector<8x128xf32>
    %cst_249 = arith.constant 1.000000e+00 : f32
    %783 = vector.broadcast %cst_249 : f32 to vector<8x128xf32>
    %784 = arith.addf %783, %782 : vector<8x128xf32>
    %785 = arith.divf %783, %784 : vector<8x128xf32>
    %786 = vector.extract_strided_slice %766 {offsets = [0, 256], sizes = [8, 128], strides = [1, 1]} : vector<8x512xf32> to vector<8x128xf32>
    %787 = math.tanh %786 : vector<8x128xf32>
    %788 = vector.extract_strided_slice %766 {offsets = [0, 384], sizes = [8, 128], strides = [1, 1]} : vector<8x512xf32> to vector<8x128xf32>
    %789 = arith.negf %788 : vector<8x128xf32>
    %790 = math.exp %789 : vector<8x128xf32>
    %cst_250 = arith.constant 1.000000e+00 : f32
    %791 = vector.broadcast %cst_250 : f32 to vector<8x128xf32>
    %792 = arith.addf %791, %790 : vector<8x128xf32>
    %793 = arith.divf %791, %792 : vector<8x128xf32>
    %794 = arith.mulf %785, %723 : vector<8x128xf32>
    %795 = arith.mulf %779, %787 : vector<8x128xf32>
    %796 = arith.addf %794, %795 : vector<8x128xf32>
    %797 = math.tanh %796 : vector<8x128xf32>
    %798 = arith.mulf %793, %797 : vector<8x128xf32>
    %799 = vector.extract_strided_slice %773 {offsets = [0, 0], sizes = [8, 128], strides = [1, 1]} : vector<8x512xf32> to vector<8x128xf32>
    %800 = arith.negf %799 : vector<8x128xf32>
    %801 = math.exp %800 : vector<8x128xf32>
    %cst_251 = arith.constant 1.000000e+00 : f32
    %802 = vector.broadcast %cst_251 : f32 to vector<8x128xf32>
    %803 = arith.addf %802, %801 : vector<8x128xf32>
    %804 = arith.divf %802, %803 : vector<8x128xf32>
    %805 = vector.extract_strided_slice %773 {offsets = [0, 128], sizes = [8, 128], strides = [1, 1]} : vector<8x512xf32> to vector<8x128xf32>
    %806 = arith.negf %805 : vector<8x128xf32>
    %807 = math.exp %806 : vector<8x128xf32>
    %cst_252 = arith.constant 1.000000e+00 : f32
    %808 = vector.broadcast %cst_252 : f32 to vector<8x128xf32>
    %809 = arith.addf %808, %807 : vector<8x128xf32>
    %810 = arith.divf %808, %809 : vector<8x128xf32>
    %811 = vector.extract_strided_slice %773 {offsets = [0, 256], sizes = [8, 128], strides = [1, 1]} : vector<8x512xf32> to vector<8x128xf32>
    %812 = math.tanh %811 : vector<8x128xf32>
    %813 = vector.extract_strided_slice %773 {offsets = [0, 384], sizes = [8, 128], strides = [1, 1]} : vector<8x512xf32> to vector<8x128xf32>
    %814 = arith.negf %813 : vector<8x128xf32>
    %815 = math.exp %814 : vector<8x128xf32>
    %cst_253 = arith.constant 1.000000e+00 : f32
    %816 = vector.broadcast %cst_253 : f32 to vector<8x128xf32>
    %817 = arith.addf %816, %815 : vector<8x128xf32>
    %818 = arith.divf %816, %817 : vector<8x128xf32>
    %819 = arith.mulf %810, %748 : vector<8x128xf32>
    %820 = arith.mulf %804, %812 : vector<8x128xf32>
    %821 = arith.addf %819, %820 : vector<8x128xf32>
    %822 = math.tanh %821 : vector<8x128xf32>
    %823 = arith.mulf %818, %822 : vector<8x128xf32>
    %824 = arith.index_cast %c2_i32_236 : i32 to index
    %c0_254 = arith.constant 0 : index
    %c0_255 = arith.constant 0 : index
    %825 = vector.load %arg14[%824, %c0_254, %c0_255] : memref<8x8x256xf32, #tpu.memory_space<vmem>>, vector<1x8x128xf32>
    %826 = vector.shape_cast %825 : vector<1x8x128xf32> to vector<8x128xf32>
    %827 = vector.shape_cast %798 : vector<8x128xf32> to vector<1x8x128xf32>
    tpu.vector_store %arg14[%824, %c0_254, %c0_255], %827 {strides = array<i32>} : memref<8x8x256xf32, #tpu.memory_space<vmem>>, vector<1x8x128xf32>,
    %828 = arith.index_cast %759 : i32 to index
    %c0_256 = arith.constant 0 : index
    %c128_257 = arith.constant 128 : index
    %829 = vector.load %arg14[%828, %c0_256, %c128_257] : memref<8x8x256xf32, #tpu.memory_space<vmem>>, vector<1x8x128xf32>
    %830 = vector.shape_cast %829 : vector<1x8x128xf32> to vector<8x128xf32>
    %831 = vector.shape_cast %823 : vector<8x128xf32> to vector<1x8x128xf32>
    tpu.vector_store %arg14[%828, %c0_256, %c128_257], %831 {strides = array<i32>} : memref<8x8x256xf32, #tpu.memory_space<vmem>>, vector<1x8x128xf32>,
    %c3_i32_258 = arith.constant 3 : i32
    %c7_i32_259 = arith.constant 7 : i32
    %832 = arith.subi %c7_i32_259, %c3_i32_258 : i32
    %833 = arith.index_cast %c3_i32_258 : i32 to index
    %c0_260 = arith.constant 0 : index
    %c0_261 = arith.constant 0 : index
    %834 = vector.load %arg13[%833, %c0_260, %c0_261] : memref<8x8x1024xf32, #tpu.memory_space<vmem>>, vector<1x8x512xf32>
    %835 = vector.shape_cast %834 : vector<1x8x512xf32> to vector<8x512xf32>
    %836 = arith.truncf %798 : vector<8x128xf32> to vector<8x128xbf16>
    %c0_262 = arith.constant 0 : index
    %c0_263 = arith.constant 0 : index
    %837 = vector.load %arg7[%c0_262, %c0_263] : memref<128x512xbf16, #tpu.memory_space<vmem>>, vector<128x512xbf16>
    %cst_264 = arith.constant dense<0.000000e+00> : vector<8x512xf32>
    %838 = tpu.matmul %836, %837, %cst_264 {dimension_numbers = #tpu.dot_dimension_numbers<[1], [0], [0], [1], [0, 0, 1, 1], [], []>} : vector<8x128xbf16>, vector<128x512xbf16>, vector<8x512xf32> -> vector<8x512xf32>
    %839 = arith.addf %835, %838 : vector<8x512xf32>
    %840 = arith.index_cast %832 : i32 to index
    %c0_265 = arith.constant 0 : index
    %c512_266 = arith.constant 512 : index
    %841 = vector.load %arg13[%840, %c0_265, %c512_266] : memref<8x8x1024xf32, #tpu.memory_space<vmem>>, vector<1x8x512xf32>
    %842 = vector.shape_cast %841 : vector<1x8x512xf32> to vector<8x512xf32>
    %843 = arith.truncf %823 : vector<8x128xf32> to vector<8x128xbf16>
    %c0_267 = arith.constant 0 : index
    %c0_268 = arith.constant 0 : index
    %844 = vector.load %arg8[%c0_267, %c0_268] : memref<128x512xbf16, #tpu.memory_space<vmem>>, vector<128x512xbf16>
    %cst_269 = arith.constant dense<0.000000e+00> : vector<8x512xf32>
    %845 = tpu.matmul %843, %844, %cst_269 {dimension_numbers = #tpu.dot_dimension_numbers<[1], [0], [0], [1], [0, 0, 1, 1], [], []>} : vector<8x128xbf16>, vector<128x512xbf16>, vector<8x512xf32> -> vector<8x512xf32>
    %846 = arith.addf %842, %845 : vector<8x512xf32>
    %847 = vector.extract_strided_slice %839 {offsets = [0, 0], sizes = [8, 128], strides = [1, 1]} : vector<8x512xf32> to vector<8x128xf32>
    %848 = arith.negf %847 : vector<8x128xf32>
    %849 = math.exp %848 : vector<8x128xf32>
    %cst_270 = arith.constant 1.000000e+00 : f32
    %850 = vector.broadcast %cst_270 : f32 to vector<8x128xf32>
    %851 = arith.addf %850, %849 : vector<8x128xf32>
    %852 = arith.divf %850, %851 : vector<8x128xf32>
    %853 = vector.extract_strided_slice %839 {offsets = [0, 128], sizes = [8, 128], strides = [1, 1]} : vector<8x512xf32> to vector<8x128xf32>
    %854 = arith.negf %853 : vector<8x128xf32>
    %855 = math.exp %854 : vector<8x128xf32>
    %cst_271 = arith.constant 1.000000e+00 : f32
    %856 = vector.broadcast %cst_271 : f32 to vector<8x128xf32>
    %857 = arith.addf %856, %855 : vector<8x128xf32>
    %858 = arith.divf %856, %857 : vector<8x128xf32>
    %859 = vector.extract_strided_slice %839 {offsets = [0, 256], sizes = [8, 128], strides = [1, 1]} : vector<8x512xf32> to vector<8x128xf32>
    %860 = math.tanh %859 : vector<8x128xf32>
    %861 = vector.extract_strided_slice %839 {offsets = [0, 384], sizes = [8, 128], strides = [1, 1]} : vector<8x512xf32> to vector<8x128xf32>
    %862 = arith.negf %861 : vector<8x128xf32>
    %863 = math.exp %862 : vector<8x128xf32>
    %cst_272 = arith.constant 1.000000e+00 : f32
    %864 = vector.broadcast %cst_272 : f32 to vector<8x128xf32>
    %865 = arith.addf %864, %863 : vector<8x128xf32>
    %866 = arith.divf %864, %865 : vector<8x128xf32>
    %867 = arith.mulf %858, %796 : vector<8x128xf32>
    %868 = arith.mulf %852, %860 : vector<8x128xf32>
    %869 = arith.addf %867, %868 : vector<8x128xf32>
    %870 = math.tanh %869 : vector<8x128xf32>
    %871 = arith.mulf %866, %870 : vector<8x128xf32>
    %872 = vector.extract_strided_slice %846 {offsets = [0, 0], sizes = [8, 128], strides = [1, 1]} : vector<8x512xf32> to vector<8x128xf32>
    %873 = arith.negf %872 : vector<8x128xf32>
    %874 = math.exp %873 : vector<8x128xf32>
    %cst_273 = arith.constant 1.000000e+00 : f32
    %875 = vector.broadcast %cst_273 : f32 to vector<8x128xf32>
    %876 = arith.addf %875, %874 : vector<8x128xf32>
    %877 = arith.divf %875, %876 : vector<8x128xf32>
    %878 = vector.extract_strided_slice %846 {offsets = [0, 128], sizes = [8, 128], strides = [1, 1]} : vector<8x512xf32> to vector<8x128xf32>
    %879 = arith.negf %878 : vector<8x128xf32>
    %880 = math.exp %879 : vector<8x128xf32>
    %cst_274 = arith.constant 1.000000e+00 : f32
    %881 = vector.broadcast %cst_274 : f32 to vector<8x128xf32>
    %882 = arith.addf %881, %880 : vector<8x128xf32>
    %883 = arith.divf %881, %882 : vector<8x128xf32>
    %884 = vector.extract_strided_slice %846 {offsets = [0, 256], sizes = [8, 128], strides = [1, 1]} : vector<8x512xf32> to vector<8x128xf32>
    %885 = math.tanh %884 : vector<8x128xf32>
    %886 = vector.extract_strided_slice %846 {offsets = [0, 384], sizes = [8, 128], strides = [1, 1]} : vector<8x512xf32> to vector<8x128xf32>
    %887 = arith.negf %886 : vector<8x128xf32>
    %888 = math.exp %887 : vector<8x128xf32>
    %cst_275 = arith.constant 1.000000e+00 : f32
    %889 = vector.broadcast %cst_275 : f32 to vector<8x128xf32>
    %890 = arith.addf %889, %888 : vector<8x128xf32>
    %891 = arith.divf %889, %890 : vector<8x128xf32>
    %892 = arith.mulf %883, %821 : vector<8x128xf32>
    %893 = arith.mulf %877, %885 : vector<8x128xf32>
    %894 = arith.addf %892, %893 : vector<8x128xf32>
    %895 = math.tanh %894 : vector<8x128xf32>
    %896 = arith.mulf %891, %895 : vector<8x128xf32>
    %897 = arith.index_cast %c3_i32_258 : i32 to index
    %c0_276 = arith.constant 0 : index
    %c0_277 = arith.constant 0 : index
    %898 = vector.load %arg14[%897, %c0_276, %c0_277] : memref<8x8x256xf32, #tpu.memory_space<vmem>>, vector<1x8x128xf32>
    %899 = vector.shape_cast %898 : vector<1x8x128xf32> to vector<8x128xf32>
    %900 = vector.shape_cast %871 : vector<8x128xf32> to vector<1x8x128xf32>
    tpu.vector_store %arg14[%897, %c0_276, %c0_277], %900 {strides = array<i32>} : memref<8x8x256xf32, #tpu.memory_space<vmem>>, vector<1x8x128xf32>,
    %901 = arith.index_cast %832 : i32 to index
    %c0_278 = arith.constant 0 : index
    %c128_279 = arith.constant 128 : index
    %902 = vector.load %arg14[%901, %c0_278, %c128_279] : memref<8x8x256xf32, #tpu.memory_space<vmem>>, vector<1x8x128xf32>
    %903 = vector.shape_cast %902 : vector<1x8x128xf32> to vector<8x128xf32>
    %904 = vector.shape_cast %896 : vector<8x128xf32> to vector<1x8x128xf32>
    tpu.vector_store %arg14[%901, %c0_278, %c128_279], %904 {strides = array<i32>} : memref<8x8x256xf32, #tpu.memory_space<vmem>>, vector<1x8x128xf32>,
    %c4_i32_280 = arith.constant 4 : i32
    %c7_i32_281 = arith.constant 7 : i32
    %905 = arith.subi %c7_i32_281, %c4_i32_280 : i32
    %906 = arith.index_cast %c4_i32_280 : i32 to index
    %c0_282 = arith.constant 0 : index
    %c0_283 = arith.constant 0 : index
    %907 = vector.load %arg13[%906, %c0_282, %c0_283] : memref<8x8x1024xf32, #tpu.memory_space<vmem>>, vector<1x8x512xf32>
    %908 = vector.shape_cast %907 : vector<1x8x512xf32> to vector<8x512xf32>
    %909 = arith.truncf %871 : vector<8x128xf32> to vector<8x128xbf16>
    %c0_284 = arith.constant 0 : index
    %c0_285 = arith.constant 0 : index
    %910 = vector.load %arg7[%c0_284, %c0_285] : memref<128x512xbf16, #tpu.memory_space<vmem>>, vector<128x512xbf16>
    %cst_286 = arith.constant dense<0.000000e+00> : vector<8x512xf32>
    %911 = tpu.matmul %909, %910, %cst_286 {dimension_numbers = #tpu.dot_dimension_numbers<[1], [0], [0], [1], [0, 0, 1, 1], [], []>} : vector<8x128xbf16>, vector<128x512xbf16>, vector<8x512xf32> -> vector<8x512xf32>
    %912 = arith.addf %908, %911 : vector<8x512xf32>
    %913 = arith.index_cast %905 : i32 to index
    %c0_287 = arith.constant 0 : index
    %c512_288 = arith.constant 512 : index
    %914 = vector.load %arg13[%913, %c0_287, %c512_288] : memref<8x8x1024xf32, #tpu.memory_space<vmem>>, vector<1x8x512xf32>
    %915 = vector.shape_cast %914 : vector<1x8x512xf32> to vector<8x512xf32>
    %916 = arith.truncf %896 : vector<8x128xf32> to vector<8x128xbf16>
    %c0_289 = arith.constant 0 : index
    %c0_290 = arith.constant 0 : index
    %917 = vector.load %arg8[%c0_289, %c0_290] : memref<128x512xbf16, #tpu.memory_space<vmem>>, vector<128x512xbf16>
    %cst_291 = arith.constant dense<0.000000e+00> : vector<8x512xf32>
    %918 = tpu.matmul %916, %917, %cst_291 {dimension_numbers = #tpu.dot_dimension_numbers<[1], [0], [0], [1], [0, 0, 1, 1], [], []>} : vector<8x128xbf16>, vector<128x512xbf16>, vector<8x512xf32> -> vector<8x512xf32>
    %919 = arith.addf %915, %918 : vector<8x512xf32>
    %920 = vector.extract_strided_slice %912 {offsets = [0, 0], sizes = [8, 128], strides = [1, 1]} : vector<8x512xf32> to vector<8x128xf32>
    %921 = arith.negf %920 : vector<8x128xf32>
    %922 = math.exp %921 : vector<8x128xf32>
    %cst_292 = arith.constant 1.000000e+00 : f32
    %923 = vector.broadcast %cst_292 : f32 to vector<8x128xf32>
    %924 = arith.addf %923, %922 : vector<8x128xf32>
    %925 = arith.divf %923, %924 : vector<8x128xf32>
    %926 = vector.extract_strided_slice %912 {offsets = [0, 128], sizes = [8, 128], strides = [1, 1]} : vector<8x512xf32> to vector<8x128xf32>
    %927 = arith.negf %926 : vector<8x128xf32>
    %928 = math.exp %927 : vector<8x128xf32>
    %cst_293 = arith.constant 1.000000e+00 : f32
    %929 = vector.broadcast %cst_293 : f32 to vector<8x128xf32>
    %930 = arith.addf %929, %928 : vector<8x128xf32>
    %931 = arith.divf %929, %930 : vector<8x128xf32>
    %932 = vector.extract_strided_slice %912 {offsets = [0, 256], sizes = [8, 128], strides = [1, 1]} : vector<8x512xf32> to vector<8x128xf32>
    %933 = math.tanh %932 : vector<8x128xf32>
    %934 = vector.extract_strided_slice %912 {offsets = [0, 384], sizes = [8, 128], strides = [1, 1]} : vector<8x512xf32> to vector<8x128xf32>
    %935 = arith.negf %934 : vector<8x128xf32>
    %936 = math.exp %935 : vector<8x128xf32>
    %cst_294 = arith.constant 1.000000e+00 : f32
    %937 = vector.broadcast %cst_294 : f32 to vector<8x128xf32>
    %938 = arith.addf %937, %936 : vector<8x128xf32>
    %939 = arith.divf %937, %938 : vector<8x128xf32>
    %940 = arith.mulf %931, %869 : vector<8x128xf32>
    %941 = arith.mulf %925, %933 : vector<8x128xf32>
    %942 = arith.addf %940, %941 : vector<8x128xf32>
    %943 = math.tanh %942 : vector<8x128xf32>
    %944 = arith.mulf %939, %943 : vector<8x128xf32>
    %945 = vector.extract_strided_slice %919 {offsets = [0, 0], sizes = [8, 128], strides = [1, 1]} : vector<8x512xf32> to vector<8x128xf32>
    %946 = arith.negf %945 : vector<8x128xf32>
    %947 = math.exp %946 : vector<8x128xf32>
    %cst_295 = arith.constant 1.000000e+00 : f32
    %948 = vector.broadcast %cst_295 : f32 to vector<8x128xf32>
    %949 = arith.addf %948, %947 : vector<8x128xf32>
    %950 = arith.divf %948, %949 : vector<8x128xf32>
    %951 = vector.extract_strided_slice %919 {offsets = [0, 128], sizes = [8, 128], strides = [1, 1]} : vector<8x512xf32> to vector<8x128xf32>
    %952 = arith.negf %951 : vector<8x128xf32>
    %953 = math.exp %952 : vector<8x128xf32>
    %cst_296 = arith.constant 1.000000e+00 : f32
    %954 = vector.broadcast %cst_296 : f32 to vector<8x128xf32>
    %955 = arith.addf %954, %953 : vector<8x128xf32>
    %956 = arith.divf %954, %955 : vector<8x128xf32>
    %957 = vector.extract_strided_slice %919 {offsets = [0, 256], sizes = [8, 128], strides = [1, 1]} : vector<8x512xf32> to vector<8x128xf32>
    %958 = math.tanh %957 : vector<8x128xf32>
    %959 = vector.extract_strided_slice %919 {offsets = [0, 384], sizes = [8, 128], strides = [1, 1]} : vector<8x512xf32> to vector<8x128xf32>
    %960 = arith.negf %959 : vector<8x128xf32>
    %961 = math.exp %960 : vector<8x128xf32>
    %cst_297 = arith.constant 1.000000e+00 : f32
    %962 = vector.broadcast %cst_297 : f32 to vector<8x128xf32>
    %963 = arith.addf %962, %961 : vector<8x128xf32>
    %964 = arith.divf %962, %963 : vector<8x128xf32>
    %965 = arith.mulf %956, %894 : vector<8x128xf32>
    %966 = arith.mulf %950, %958 : vector<8x128xf32>
    %967 = arith.addf %965, %966 : vector<8x128xf32>
    %968 = math.tanh %967 : vector<8x128xf32>
    %969 = arith.mulf %964, %968 : vector<8x128xf32>
    %970 = arith.index_cast %c4_i32_280 : i32 to index
    %c0_298 = arith.constant 0 : index
    %c0_299 = arith.constant 0 : index
    %971 = vector.load %arg14[%970, %c0_298, %c0_299] : memref<8x8x256xf32, #tpu.memory_space<vmem>>, vector<1x8x128xf32>
    %972 = vector.shape_cast %971 : vector<1x8x128xf32> to vector<8x128xf32>
    %973 = vector.shape_cast %944 : vector<8x128xf32> to vector<1x8x128xf32>
    tpu.vector_store %arg14[%970, %c0_298, %c0_299], %973 {strides = array<i32>} : memref<8x8x256xf32, #tpu.memory_space<vmem>>, vector<1x8x128xf32>,
    %974 = arith.index_cast %905 : i32 to index
    %c0_300 = arith.constant 0 : index
    %c128_301 = arith.constant 128 : index
    %975 = vector.load %arg14[%974, %c0_300, %c128_301] : memref<8x8x256xf32, #tpu.memory_space<vmem>>, vector<1x8x128xf32>
    %976 = vector.shape_cast %975 : vector<1x8x128xf32> to vector<8x128xf32>
    %977 = vector.shape_cast %969 : vector<8x128xf32> to vector<1x8x128xf32>
    tpu.vector_store %arg14[%974, %c0_300, %c128_301], %977 {strides = array<i32>} : memref<8x8x256xf32, #tpu.memory_space<vmem>>, vector<1x8x128xf32>,
    %c5_i32_302 = arith.constant 5 : i32
    %c7_i32_303 = arith.constant 7 : i32
    %978 = arith.subi %c7_i32_303, %c5_i32_302 : i32
    %979 = arith.index_cast %c5_i32_302 : i32 to index
    %c0_304 = arith.constant 0 : index
    %c0_305 = arith.constant 0 : index
    %980 = vector.load %arg13[%979, %c0_304, %c0_305] : memref<8x8x1024xf32, #tpu.memory_space<vmem>>, vector<1x8x512xf32>
    %981 = vector.shape_cast %980 : vector<1x8x512xf32> to vector<8x512xf32>
    %982 = arith.truncf %944 : vector<8x128xf32> to vector<8x128xbf16>
    %c0_306 = arith.constant 0 : index
    %c0_307 = arith.constant 0 : index
    %983 = vector.load %arg7[%c0_306, %c0_307] : memref<128x512xbf16, #tpu.memory_space<vmem>>, vector<128x512xbf16>
    %cst_308 = arith.constant dense<0.000000e+00> : vector<8x512xf32>
    %984 = tpu.matmul %982, %983, %cst_308 {dimension_numbers = #tpu.dot_dimension_numbers<[1], [0], [0], [1], [0, 0, 1, 1], [], []>} : vector<8x128xbf16>, vector<128x512xbf16>, vector<8x512xf32> -> vector<8x512xf32>
    %985 = arith.addf %981, %984 : vector<8x512xf32>
    %986 = arith.index_cast %978 : i32 to index
    %c0_309 = arith.constant 0 : index
    %c512_310 = arith.constant 512 : index
    %987 = vector.load %arg13[%986, %c0_309, %c512_310] : memref<8x8x1024xf32, #tpu.memory_space<vmem>>, vector<1x8x512xf32>
    %988 = vector.shape_cast %987 : vector<1x8x512xf32> to vector<8x512xf32>
    %989 = arith.truncf %969 : vector<8x128xf32> to vector<8x128xbf16>
    %c0_311 = arith.constant 0 : index
    %c0_312 = arith.constant 0 : index
    %990 = vector.load %arg8[%c0_311, %c0_312] : memref<128x512xbf16, #tpu.memory_space<vmem>>, vector<128x512xbf16>
    %cst_313 = arith.constant dense<0.000000e+00> : vector<8x512xf32>
    %991 = tpu.matmul %989, %990, %cst_313 {dimension_numbers = #tpu.dot_dimension_numbers<[1], [0], [0], [1], [0, 0, 1, 1], [], []>} : vector<8x128xbf16>, vector<128x512xbf16>, vector<8x512xf32> -> vector<8x512xf32>
    %992 = arith.addf %988, %991 : vector<8x512xf32>
    %993 = vector.extract_strided_slice %985 {offsets = [0, 0], sizes = [8, 128], strides = [1, 1]} : vector<8x512xf32> to vector<8x128xf32>
    %994 = arith.negf %993 : vector<8x128xf32>
    %995 = math.exp %994 : vector<8x128xf32>
    %cst_314 = arith.constant 1.000000e+00 : f32
    %996 = vector.broadcast %cst_314 : f32 to vector<8x128xf32>
    %997 = arith.addf %996, %995 : vector<8x128xf32>
    %998 = arith.divf %996, %997 : vector<8x128xf32>
    %999 = vector.extract_strided_slice %985 {offsets = [0, 128], sizes = [8, 128], strides = [1, 1]} : vector<8x512xf32> to vector<8x128xf32>
    %1000 = arith.negf %999 : vector<8x128xf32>
    %1001 = math.exp %1000 : vector<8x128xf32>
    %cst_315 = arith.constant 1.000000e+00 : f32
    %1002 = vector.broadcast %cst_315 : f32 to vector<8x128xf32>
    %1003 = arith.addf %1002, %1001 : vector<8x128xf32>
    %1004 = arith.divf %1002, %1003 : vector<8x128xf32>
    %1005 = vector.extract_strided_slice %985 {offsets = [0, 256], sizes = [8, 128], strides = [1, 1]} : vector<8x512xf32> to vector<8x128xf32>
    %1006 = math.tanh %1005 : vector<8x128xf32>
    %1007 = vector.extract_strided_slice %985 {offsets = [0, 384], sizes = [8, 128], strides = [1, 1]} : vector<8x512xf32> to vector<8x128xf32>
    %1008 = arith.negf %1007 : vector<8x128xf32>
    %1009 = math.exp %1008 : vector<8x128xf32>
    %cst_316 = arith.constant 1.000000e+00 : f32
    %1010 = vector.broadcast %cst_316 : f32 to vector<8x128xf32>
    %1011 = arith.addf %1010, %1009 : vector<8x128xf32>
    %1012 = arith.divf %1010, %1011 : vector<8x128xf32>
    %1013 = arith.mulf %1004, %942 : vector<8x128xf32>
    %1014 = arith.mulf %998, %1006 : vector<8x128xf32>
    %1015 = arith.addf %1013, %1014 : vector<8x128xf32>
    %1016 = math.tanh %1015 : vector<8x128xf32>
    %1017 = arith.mulf %1012, %1016 : vector<8x128xf32>
    %1018 = vector.extract_strided_slice %992 {offsets = [0, 0], sizes = [8, 128], strides = [1, 1]} : vector<8x512xf32> to vector<8x128xf32>
    %1019 = arith.negf %1018 : vector<8x128xf32>
    %1020 = math.exp %1019 : vector<8x128xf32>
    %cst_317 = arith.constant 1.000000e+00 : f32
    %1021 = vector.broadcast %cst_317 : f32 to vector<8x128xf32>
    %1022 = arith.addf %1021, %1020 : vector<8x128xf32>
    %1023 = arith.divf %1021, %1022 : vector<8x128xf32>
    %1024 = vector.extract_strided_slice %992 {offsets = [0, 128], sizes = [8, 128], strides = [1, 1]} : vector<8x512xf32> to vector<8x128xf32>
    %1025 = arith.negf %1024 : vector<8x128xf32>
    %1026 = math.exp %1025 : vector<8x128xf32>
    %cst_318 = arith.constant 1.000000e+00 : f32
    %1027 = vector.broadcast %cst_318 : f32 to vector<8x128xf32>
    %1028 = arith.addf %1027, %1026 : vector<8x128xf32>
    %1029 = arith.divf %1027, %1028 : vector<8x128xf32>
    %1030 = vector.extract_strided_slice %992 {offsets = [0, 256], sizes = [8, 128], strides = [1, 1]} : vector<8x512xf32> to vector<8x128xf32>
    %1031 = math.tanh %1030 : vector<8x128xf32>
    %1032 = vector.extract_strided_slice %992 {offsets = [0, 384], sizes = [8, 128], strides = [1, 1]} : vector<8x512xf32> to vector<8x128xf32>
    %1033 = arith.negf %1032 : vector<8x128xf32>
    %1034 = math.exp %1033 : vector<8x128xf32>
    %cst_319 = arith.constant 1.000000e+00 : f32
    %1035 = vector.broadcast %cst_319 : f32 to vector<8x128xf32>
    %1036 = arith.addf %1035, %1034 : vector<8x128xf32>
    %1037 = arith.divf %1035, %1036 : vector<8x128xf32>
    %1038 = arith.mulf %1029, %967 : vector<8x128xf32>
    %1039 = arith.mulf %1023, %1031 : vector<8x128xf32>
    %1040 = arith.addf %1038, %1039 : vector<8x128xf32>
    %1041 = math.tanh %1040 : vector<8x128xf32>
    %1042 = arith.mulf %1037, %1041 : vector<8x128xf32>
    %1043 = arith.index_cast %c5_i32_302 : i32 to index
    %c0_320 = arith.constant 0 : index
    %c0_321 = arith.constant 0 : index
    %1044 = vector.load %arg14[%1043, %c0_320, %c0_321] : memref<8x8x256xf32, #tpu.memory_space<vmem>>, vector<1x8x128xf32>
    %1045 = vector.shape_cast %1044 : vector<1x8x128xf32> to vector<8x128xf32>
    %1046 = vector.shape_cast %1017 : vector<8x128xf32> to vector<1x8x128xf32>
    tpu.vector_store %arg14[%1043, %c0_320, %c0_321], %1046 {strides = array<i32>} : memref<8x8x256xf32, #tpu.memory_space<vmem>>, vector<1x8x128xf32>,
    %1047 = arith.index_cast %978 : i32 to index
    %c0_322 = arith.constant 0 : index
    %c128_323 = arith.constant 128 : index
    %1048 = vector.load %arg14[%1047, %c0_322, %c128_323] : memref<8x8x256xf32, #tpu.memory_space<vmem>>, vector<1x8x128xf32>
    %1049 = vector.shape_cast %1048 : vector<1x8x128xf32> to vector<8x128xf32>
    %1050 = vector.shape_cast %1042 : vector<8x128xf32> to vector<1x8x128xf32>
    tpu.vector_store %arg14[%1047, %c0_322, %c128_323], %1050 {strides = array<i32>} : memref<8x8x256xf32, #tpu.memory_space<vmem>>, vector<1x8x128xf32>,
    %c6_i32_324 = arith.constant 6 : i32
    %c7_i32_325 = arith.constant 7 : i32
    %1051 = arith.subi %c7_i32_325, %c6_i32_324 : i32
    %1052 = arith.index_cast %c6_i32_324 : i32 to index
    %c0_326 = arith.constant 0 : index
    %c0_327 = arith.constant 0 : index
    %1053 = vector.load %arg13[%1052, %c0_326, %c0_327] : memref<8x8x1024xf32, #tpu.memory_space<vmem>>, vector<1x8x512xf32>
    %1054 = vector.shape_cast %1053 : vector<1x8x512xf32> to vector<8x512xf32>
    %1055 = arith.truncf %1017 : vector<8x128xf32> to vector<8x128xbf16>
    %c0_328 = arith.constant 0 : index
    %c0_329 = arith.constant 0 : index
    %1056 = vector.load %arg7[%c0_328, %c0_329] : memref<128x512xbf16, #tpu.memory_space<vmem>>, vector<128x512xbf16>
    %cst_330 = arith.constant dense<0.000000e+00> : vector<8x512xf32>
    %1057 = tpu.matmul %1055, %1056, %cst_330 {dimension_numbers = #tpu.dot_dimension_numbers<[1], [0], [0], [1], [0, 0, 1, 1], [], []>} : vector<8x128xbf16>, vector<128x512xbf16>, vector<8x512xf32> -> vector<8x512xf32>
    %1058 = arith.addf %1054, %1057 : vector<8x512xf32>
    %1059 = arith.index_cast %1051 : i32 to index
    %c0_331 = arith.constant 0 : index
    %c512_332 = arith.constant 512 : index
    %1060 = vector.load %arg13[%1059, %c0_331, %c512_332] : memref<8x8x1024xf32, #tpu.memory_space<vmem>>, vector<1x8x512xf32>
    %1061 = vector.shape_cast %1060 : vector<1x8x512xf32> to vector<8x512xf32>
    %1062 = arith.truncf %1042 : vector<8x128xf32> to vector<8x128xbf16>
    %c0_333 = arith.constant 0 : index
    %c0_334 = arith.constant 0 : index
    %1063 = vector.load %arg8[%c0_333, %c0_334] : memref<128x512xbf16, #tpu.memory_space<vmem>>, vector<128x512xbf16>
    %cst_335 = arith.constant dense<0.000000e+00> : vector<8x512xf32>
    %1064 = tpu.matmul %1062, %1063, %cst_335 {dimension_numbers = #tpu.dot_dimension_numbers<[1], [0], [0], [1], [0, 0, 1, 1], [], []>} : vector<8x128xbf16>, vector<128x512xbf16>, vector<8x512xf32> -> vector<8x512xf32>
    %1065 = arith.addf %1061, %1064 : vector<8x512xf32>
    %1066 = vector.extract_strided_slice %1058 {offsets = [0, 0], sizes = [8, 128], strides = [1, 1]} : vector<8x512xf32> to vector<8x128xf32>
    %1067 = arith.negf %1066 : vector<8x128xf32>
    %1068 = math.exp %1067 : vector<8x128xf32>
    %cst_336 = arith.constant 1.000000e+00 : f32
    %1069 = vector.broadcast %cst_336 : f32 to vector<8x128xf32>
    %1070 = arith.addf %1069, %1068 : vector<8x128xf32>
    %1071 = arith.divf %1069, %1070 : vector<8x128xf32>
    %1072 = vector.extract_strided_slice %1058 {offsets = [0, 128], sizes = [8, 128], strides = [1, 1]} : vector<8x512xf32> to vector<8x128xf32>
    %1073 = arith.negf %1072 : vector<8x128xf32>
    %1074 = math.exp %1073 : vector<8x128xf32>
    %cst_337 = arith.constant 1.000000e+00 : f32
    %1075 = vector.broadcast %cst_337 : f32 to vector<8x128xf32>
    %1076 = arith.addf %1075, %1074 : vector<8x128xf32>
    %1077 = arith.divf %1075, %1076 : vector<8x128xf32>
    %1078 = vector.extract_strided_slice %1058 {offsets = [0, 256], sizes = [8, 128], strides = [1, 1]} : vector<8x512xf32> to vector<8x128xf32>
    %1079 = math.tanh %1078 : vector<8x128xf32>
    %1080 = vector.extract_strided_slice %1058 {offsets = [0, 384], sizes = [8, 128], strides = [1, 1]} : vector<8x512xf32> to vector<8x128xf32>
    %1081 = arith.negf %1080 : vector<8x128xf32>
    %1082 = math.exp %1081 : vector<8x128xf32>
    %cst_338 = arith.constant 1.000000e+00 : f32
    %1083 = vector.broadcast %cst_338 : f32 to vector<8x128xf32>
    %1084 = arith.addf %1083, %1082 : vector<8x128xf32>
    %1085 = arith.divf %1083, %1084 : vector<8x128xf32>
    %1086 = arith.mulf %1077, %1015 : vector<8x128xf32>
    %1087 = arith.mulf %1071, %1079 : vector<8x128xf32>
    %1088 = arith.addf %1086, %1087 : vector<8x128xf32>
    %1089 = math.tanh %1088 : vector<8x128xf32>
    %1090 = arith.mulf %1085, %1089 : vector<8x128xf32>
    %1091 = vector.extract_strided_slice %1065 {offsets = [0, 0], sizes = [8, 128], strides = [1, 1]} : vector<8x512xf32> to vector<8x128xf32>
    %1092 = arith.negf %1091 : vector<8x128xf32>
    %1093 = math.exp %1092 : vector<8x128xf32>
    %cst_339 = arith.constant 1.000000e+00 : f32
    %1094 = vector.broadcast %cst_339 : f32 to vector<8x128xf32>
    %1095 = arith.addf %1094, %1093 : vector<8x128xf32>
    %1096 = arith.divf %1094, %1095 : vector<8x128xf32>
    %1097 = vector.extract_strided_slice %1065 {offsets = [0, 128], sizes = [8, 128], strides = [1, 1]} : vector<8x512xf32> to vector<8x128xf32>
    %1098 = arith.negf %1097 : vector<8x128xf32>
    %1099 = math.exp %1098 : vector<8x128xf32>
    %cst_340 = arith.constant 1.000000e+00 : f32
    %1100 = vector.broadcast %cst_340 : f32 to vector<8x128xf32>
    %1101 = arith.addf %1100, %1099 : vector<8x128xf32>
    %1102 = arith.divf %1100, %1101 : vector<8x128xf32>
    %1103 = vector.extract_strided_slice %1065 {offsets = [0, 256], sizes = [8, 128], strides = [1, 1]} : vector<8x512xf32> to vector<8x128xf32>
    %1104 = math.tanh %1103 : vector<8x128xf32>
    %1105 = vector.extract_strided_slice %1065 {offsets = [0, 384], sizes = [8, 128], strides = [1, 1]} : vector<8x512xf32> to vector<8x128xf32>
    %1106 = arith.negf %1105 : vector<8x128xf32>
    %1107 = math.exp %1106 : vector<8x128xf32>
    %cst_341 = arith.constant 1.000000e+00 : f32
    %1108 = vector.broadcast %cst_341 : f32 to vector<8x128xf32>
    %1109 = arith.addf %1108, %1107 : vector<8x128xf32>
    %1110 = arith.divf %1108, %1109 : vector<8x128xf32>
    %1111 = arith.mulf %1102, %1040 : vector<8x128xf32>
    %1112 = arith.mulf %1096, %1104 : vector<8x128xf32>
    %1113 = arith.addf %1111, %1112 : vector<8x128xf32>
    %1114 = math.tanh %1113 : vector<8x128xf32>
    %1115 = arith.mulf %1110, %1114 : vector<8x128xf32>
    %1116 = arith.index_cast %c6_i32_324 : i32 to index
    %c0_342 = arith.constant 0 : index
    %c0_343 = arith.constant 0 : index
    %1117 = vector.load %arg14[%1116, %c0_342, %c0_343] : memref<8x8x256xf32, #tpu.memory_space<vmem>>, vector<1x8x128xf32>
    %1118 = vector.shape_cast %1117 : vector<1x8x128xf32> to vector<8x128xf32>
    %1119 = vector.shape_cast %1090 : vector<8x128xf32> to vector<1x8x128xf32>
    tpu.vector_store %arg14[%1116, %c0_342, %c0_343], %1119 {strides = array<i32>} : memref<8x8x256xf32, #tpu.memory_space<vmem>>, vector<1x8x128xf32>,
    %1120 = arith.index_cast %1051 : i32 to index
    %c0_344 = arith.constant 0 : index
    %c128_345 = arith.constant 128 : index
    %1121 = vector.load %arg14[%1120, %c0_344, %c128_345] : memref<8x8x256xf32, #tpu.memory_space<vmem>>, vector<1x8x128xf32>
    %1122 = vector.shape_cast %1121 : vector<1x8x128xf32> to vector<8x128xf32>
    %1123 = vector.shape_cast %1115 : vector<8x128xf32> to vector<1x8x128xf32>
    tpu.vector_store %arg14[%1120, %c0_344, %c128_345], %1123 {strides = array<i32>} : memref<8x8x256xf32, #tpu.memory_space<vmem>>, vector<1x8x128xf32>,
    %c7_i32_346 = arith.constant 7 : i32
    %c7_i32_347 = arith.constant 7 : i32
    %1124 = arith.subi %c7_i32_347, %c7_i32_346 : i32
    %1125 = arith.index_cast %c7_i32_346 : i32 to index
    %c0_348 = arith.constant 0 : index
    %c0_349 = arith.constant 0 : index
    %1126 = vector.load %arg13[%1125, %c0_348, %c0_349] : memref<8x8x1024xf32, #tpu.memory_space<vmem>>, vector<1x8x512xf32>
    %1127 = vector.shape_cast %1126 : vector<1x8x512xf32> to vector<8x512xf32>
    %1128 = arith.truncf %1090 : vector<8x128xf32> to vector<8x128xbf16>
    %c0_350 = arith.constant 0 : index
    %c0_351 = arith.constant 0 : index
    %1129 = vector.load %arg7[%c0_350, %c0_351] : memref<128x512xbf16, #tpu.memory_space<vmem>>, vector<128x512xbf16>
    %cst_352 = arith.constant dense<0.000000e+00> : vector<8x512xf32>
    %1130 = tpu.matmul %1128, %1129, %cst_352 {dimension_numbers = #tpu.dot_dimension_numbers<[1], [0], [0], [1], [0, 0, 1, 1], [], []>} : vector<8x128xbf16>, vector<128x512xbf16>, vector<8x512xf32> -> vector<8x512xf32>
    %1131 = arith.addf %1127, %1130 : vector<8x512xf32>
    %1132 = arith.index_cast %1124 : i32 to index
    %c0_353 = arith.constant 0 : index
    %c512_354 = arith.constant 512 : index
    %1133 = vector.load %arg13[%1132, %c0_353, %c512_354] : memref<8x8x1024xf32, #tpu.memory_space<vmem>>, vector<1x8x512xf32>
    %1134 = vector.shape_cast %1133 : vector<1x8x512xf32> to vector<8x512xf32>
    %1135 = arith.truncf %1115 : vector<8x128xf32> to vector<8x128xbf16>
    %c0_355 = arith.constant 0 : index
    %c0_356 = arith.constant 0 : index
    %1136 = vector.load %arg8[%c0_355, %c0_356] : memref<128x512xbf16, #tpu.memory_space<vmem>>, vector<128x512xbf16>
    %cst_357 = arith.constant dense<0.000000e+00> : vector<8x512xf32>
    %1137 = tpu.matmul %1135, %1136, %cst_357 {dimension_numbers = #tpu.dot_dimension_numbers<[1], [0], [0], [1], [0, 0, 1, 1], [], []>} : vector<8x128xbf16>, vector<128x512xbf16>, vector<8x512xf32> -> vector<8x512xf32>
    %1138 = arith.addf %1134, %1137 : vector<8x512xf32>
    %1139 = vector.extract_strided_slice %1131 {offsets = [0, 0], sizes = [8, 128], strides = [1, 1]} : vector<8x512xf32> to vector<8x128xf32>
    %1140 = arith.negf %1139 : vector<8x128xf32>
    %1141 = math.exp %1140 : vector<8x128xf32>
    %cst_358 = arith.constant 1.000000e+00 : f32
    %1142 = vector.broadcast %cst_358 : f32 to vector<8x128xf32>
    %1143 = arith.addf %1142, %1141 : vector<8x128xf32>
    %1144 = arith.divf %1142, %1143 : vector<8x128xf32>
    %1145 = vector.extract_strided_slice %1131 {offsets = [0, 128], sizes = [8, 128], strides = [1, 1]} : vector<8x512xf32> to vector<8x128xf32>
    %1146 = arith.negf %1145 : vector<8x128xf32>
    %1147 = math.exp %1146 : vector<8x128xf32>
    %cst_359 = arith.constant 1.000000e+00 : f32
    %1148 = vector.broadcast %cst_359 : f32 to vector<8x128xf32>
    %1149 = arith.addf %1148, %1147 : vector<8x128xf32>
    %1150 = arith.divf %1148, %1149 : vector<8x128xf32>
    %1151 = vector.extract_strided_slice %1131 {offsets = [0, 256], sizes = [8, 128], strides = [1, 1]} : vector<8x512xf32> to vector<8x128xf32>
    %1152 = math.tanh %1151 : vector<8x128xf32>
    %1153 = vector.extract_strided_slice %1131 {offsets = [0, 384], sizes = [8, 128], strides = [1, 1]} : vector<8x512xf32> to vector<8x128xf32>
    %1154 = arith.negf %1153 : vector<8x128xf32>
    %1155 = math.exp %1154 : vector<8x128xf32>
    %cst_360 = arith.constant 1.000000e+00 : f32
    %1156 = vector.broadcast %cst_360 : f32 to vector<8x128xf32>
    %1157 = arith.addf %1156, %1155 : vector<8x128xf32>
    %1158 = arith.divf %1156, %1157 : vector<8x128xf32>
    %1159 = arith.mulf %1150, %1088 : vector<8x128xf32>
    %1160 = arith.mulf %1144, %1152 : vector<8x128xf32>
    %1161 = arith.addf %1159, %1160 : vector<8x128xf32>
    %1162 = math.tanh %1161 : vector<8x128xf32>
    %1163 = arith.mulf %1158, %1162 : vector<8x128xf32>
    %1164 = vector.extract_strided_slice %1138 {offsets = [0, 0], sizes = [8, 128], strides = [1, 1]} : vector<8x512xf32> to vector<8x128xf32>
    %1165 = arith.negf %1164 : vector<8x128xf32>
    %1166 = math.exp %1165 : vector<8x128xf32>
    %cst_361 = arith.constant 1.000000e+00 : f32
    %1167 = vector.broadcast %cst_361 : f32 to vector<8x128xf32>
    %1168 = arith.addf %1167, %1166 : vector<8x128xf32>
    %1169 = arith.divf %1167, %1168 : vector<8x128xf32>
    %1170 = vector.extract_strided_slice %1138 {offsets = [0, 128], sizes = [8, 128], strides = [1, 1]} : vector<8x512xf32> to vector<8x128xf32>
    %1171 = arith.negf %1170 : vector<8x128xf32>
    %1172 = math.exp %1171 : vector<8x128xf32>
    %cst_362 = arith.constant 1.000000e+00 : f32
    %1173 = vector.broadcast %cst_362 : f32 to vector<8x128xf32>
    %1174 = arith.addf %1173, %1172 : vector<8x128xf32>
    %1175 = arith.divf %1173, %1174 : vector<8x128xf32>
    %1176 = vector.extract_strided_slice %1138 {offsets = [0, 256], sizes = [8, 128], strides = [1, 1]} : vector<8x512xf32> to vector<8x128xf32>
    %1177 = math.tanh %1176 : vector<8x128xf32>
    %1178 = vector.extract_strided_slice %1138 {offsets = [0, 384], sizes = [8, 128], strides = [1, 1]} : vector<8x512xf32> to vector<8x128xf32>
    %1179 = arith.negf %1178 : vector<8x128xf32>
    %1180 = math.exp %1179 : vector<8x128xf32>
    %cst_363 = arith.constant 1.000000e+00 : f32
    %1181 = vector.broadcast %cst_363 : f32 to vector<8x128xf32>
    %1182 = arith.addf %1181, %1180 : vector<8x128xf32>
    %1183 = arith.divf %1181, %1182 : vector<8x128xf32>
    %1184 = arith.mulf %1175, %1113 : vector<8x128xf32>
    %1185 = arith.mulf %1169, %1177 : vector<8x128xf32>
    %1186 = arith.addf %1184, %1185 : vector<8x128xf32>
    %1187 = math.tanh %1186 : vector<8x128xf32>
    %1188 = arith.mulf %1183, %1187 : vector<8x128xf32>
    %1189 = arith.index_cast %c7_i32_346 : i32 to index
    %c0_364 = arith.constant 0 : index
    %c0_365 = arith.constant 0 : index
    %1190 = vector.load %arg14[%1189, %c0_364, %c0_365] : memref<8x8x256xf32, #tpu.memory_space<vmem>>, vector<1x8x128xf32>
    %1191 = vector.shape_cast %1190 : vector<1x8x128xf32> to vector<8x128xf32>
    %1192 = vector.shape_cast %1163 : vector<8x128xf32> to vector<1x8x128xf32>
    tpu.vector_store %arg14[%1189, %c0_364, %c0_365], %1192 {strides = array<i32>} : memref<8x8x256xf32, #tpu.memory_space<vmem>>, vector<1x8x128xf32>,
    %1193 = arith.index_cast %1124 : i32 to index
    %c0_366 = arith.constant 0 : index
    %c128_367 = arith.constant 128 : index
    %1194 = vector.load %arg14[%1193, %c0_366, %c128_367] : memref<8x8x256xf32, #tpu.memory_space<vmem>>, vector<1x8x128xf32>
    %1195 = vector.shape_cast %1194 : vector<1x8x128xf32> to vector<8x128xf32>
    %1196 = vector.shape_cast %1188 : vector<8x128xf32> to vector<1x8x128xf32>
    tpu.vector_store %arg14[%1193, %c0_366, %c128_367], %1196 {strides = array<i32>} : memref<8x8x256xf32, #tpu.memory_space<vmem>>, vector<1x8x128xf32>,
    %c8_i32_368 = arith.constant 8 : i32
    %c7 = arith.constant 7 : index
    %c0_369 = arith.constant 0 : index
    %c0_370 = arith.constant 0 : index
    %1197 = vector.load %arg14[%c7, %c0_369, %c0_370] : memref<8x8x256xf32, #tpu.memory_space<vmem>>, vector<1x8x256xf32>
    %1198 = vector.shape_cast %1197 : vector<1x8x256xf32> to vector<8x256xf32>
    %1199 = arith.truncf %1198 : vector<8x256xf32> to vector<8x256xbf16>
    %c0_371 = arith.constant 0 : index
    %c0_372 = arith.constant 0 : index
    %1200 = vector.load %arg10[%c0_371, %c0_372] : memref<256x128xbf16, #tpu.memory_space<vmem>>, vector<256x128xbf16>
    %cst_373 = arith.constant dense<0.000000e+00> : vector<8x128xf32>
    %1201 = tpu.matmul %1199, %1200, %cst_373 {dimension_numbers = #tpu.dot_dimension_numbers<[1], [0], [0], [1], [0, 0, 1, 1], [], []>} : vector<8x256xbf16>, vector<256x128xbf16>, vector<8x128xf32> -> vector<8x128xf32>
    %c0_374 = arith.constant 0 : index
    %c0_375 = arith.constant 0 : index
    %1202 = vector.load %arg11[%c0_374, %c0_375] : memref<1x128xf32, #tpu.memory_space<vmem>>, vector<1x128xf32>
    %1203 = vector.broadcast %1202 : vector<1x128xf32> to vector<8x128xf32>
    %1204 = arith.addf %1201, %1203 : vector<8x128xf32>
    %c0_376 = arith.constant 0 : index
    %c0_377 = arith.constant 0 : index
    %1205 = vector.load %arg12[%c0_376, %c0_377] : memref<8x128xf32, #tpu.memory_space<vmem>>, vector<8x128xf32>
    tpu.vector_store %arg12[%c0_376, %c0_377], %1204 {strides = array<i32>} : memref<8x128xf32, #tpu.memory_space<vmem>>, vector<8x128xf32>,
    return
  }
}

</mosaic_0001>

<bundles_post_ra>
// kernel: tpu_custom_call.1
= control target key start
LH: loop header
LB: loop body
LE: loop exit
PB: predicated region body
PF: predicated region fallthrough
CT: control target
= control target key end

     0   :  { %17 = vsyncpa [#allocation5], 0  ;;  %s18590_s0 = inlined_call_operand.vmem [shape: s32[64,1], index: 0, kind: input, shape index: {}]   ;;  %s18591_s1 = inlined_call_operand.hbm [shape: f32[128,128], index: 1, kind: input, shape index: {}]   ;;  %s18592_s2 = inlined_call_operand.hbm [shape: bf16[128,1024], index: 2, kind: input, shape index: {}]   ;;  %s18593_s3 = inlined_call_operand.hbm [shape: bf16[128,512], index: 3, kind: input, shape index: {}]   ;;  %s18594_s4 = inlined_call_operand.hbm [shape: bf16[128,512], index: 4, kind: input, shape index: {}]   ;;  %s18595_s5 = inlined_call_operand.vmem [shape: f32[1,1024], index: 5, kind: input, shape index: {}]   ;;  %s18596_s6 = inlined_call_operand.hbm [shape: bf16[256,1024], index: 6, kind: input, shape index: {}]   ;;  %s18597_s7 = inlined_call_operand.hbm [shape: bf16[128,512], index: 7, kind: input, shape index: {}]   ;;  %s18598_s8 = inlined_call_operand.hbm [shape: bf16[128,512], index: 8, kind: input, shape index: {}]   ;;  %s18599_s9 = inlined_call_operand.vmem [shape: f32[1,1024], index: 9, kind: input, shape index: {}]   ;;  %s18600_s10 = inlined_call_operand.hbm [shape: bf16[256,128], index: 10, kind: input, shape index: {}]   ;;  %s18601_s11 = inlined_call_operand.vmem [shape: f32[1,128], index: 11, kind: input, shape index: {}]   ;;  %s18602_s12 = inlined_call_operand.hbm [shape: f32[8,128], index: 12, kind: output, shape index: {}]  }
   0x1   :  { %18 = vsyncpa [#allocation8], 0 }
   0x2   :  { %19 = vsyncpa [#allocation11], 0 }
   0x3   :  { %20 = vsyncpa [#allocation14], 0 }
   0x4   :  { %21 = vsyncpa [#allocation17], 0 }
   0x5   :  { %22 = vsyncpa [#allocation6], 0  ;;  %s15336_s21 = smov [#allocation7]   ;;  %s15126_s25 = scalar_lea.hbm %s18592_s2, 8192 }
   0x6   :  { %s42_s22 = sshll.u32 %s15336_s21, 4  ;;  %p15127_p0 = scmp.ne.s32.totalorder %s18592_s2, %s15126_s25  ;;  %s43_s22 = int_to_ptr.vmem [resolvable:$true] %s42_s22 }
   0x7   :  { %p15130_p1 = scmp.lt.u32.totalorder %s15126_s25, %s18592_s2 }
   0x9   :  { %p15132_p2 = pnand %p15130_p1, %p15127_p0 }
   0xb   :  { %15135 = shalt.err (!%p15132_p2)
}
   0xc   :  { %s15136_s30 = scalar_lea.vmem %s43_s22, 8192  ;;  %p15141_p4 = scmp.lt.s32.totalorder %s43_s22, %s43_s22 }
   0xd   :  { %p15137_p3 = scmp.ne.s32.totalorder %s43_s22, %s15136_s30  ;;  %p15142_p5 = scmp.lt.s32.totalorder %s15136_s30, %s15136_s30 }
   0xf   :  { %p15143_p6 = por %p15142_p5, %p15141_p4 }
  0x11   :  { %p15144_p7 = pnand %p15143_p6, %p15137_p3 }
  0x13   :  { %15147 = shalt.err (!%p15144_p7)
}
  0x14   :  { %s15337_s13 = smov 512   ;;  %s15338_s14 = smov 32  }
  0x15   :  { %48 = dma.hbm_to_vmem [thread:$0]  %s18592_s2, 8192, %s43_s22, [#allocation8], %s15337_s13, %s15337_s13, %s15338_s14  }
  0x16   :  { %s15339_s17 = smov [#allocation10]   ;;  %s15340_s19 = smov [#allocation13]  }
  0x17   :  { %s66_s18 = sshll.u32 %s15339_s17, 4  ;;  %s92_s20 = sshll.u32 %s15340_s19, 4  ;;  %s67_s18 = int_to_ptr.vmem [resolvable:$true] %s66_s18  ;;  %s93_s20 = int_to_ptr.vmem [resolvable:$true] %s92_s20 }
  0x18   :  { %s15148_s24 = scalar_lea.hbm %s18594_s4, 4096 }
  0x19   :  { %p15149_p8 = scmp.ne.s32.totalorder %s18594_s4, %s15148_s24  ;;  %p15152_p9 = scmp.lt.u32.totalorder %s15148_s24, %s18594_s4 }
  0x1b   :  { %p15154_p10 = pnand %p15152_p9, %p15149_p8 }
  0x1d   :  { %15157 = shalt.err (!%p15154_p10)
}
  0x1e   :  { %s15158_s2 = scalar_lea.vmem %s67_s18, 4096  ;;  %p15163_p12 = scmp.lt.s32.totalorder %s67_s18, %s67_s18 }
  0x1f   :  { %p15159_p11 = scmp.ne.s32.totalorder %s67_s18, %s15158_s2  ;;  %p15164_p13 = scmp.lt.s32.totalorder %s15158_s2, %s15158_s2 }
  0x21   :  { %p15165_p0 = por %p15164_p13, %p15163_p12 }
  0x23   :  { %p15166_p1 = pnand %p15165_p0, %p15159_p11 }
  0x25   :  { %15169 = shalt.err (!%p15166_p1)
}
  0x26   :  { %s15341_s22 = smov 256   ;;  %s15342_s29 = smov 16  }
  0x27   :  { %72 = dma.hbm_to_vmem [thread:$0]  %s18594_s4, 4096, %s67_s18, [#allocation11], %s15341_s22, %s15341_s22, %s15342_s29  }
  0x28   :  { %s15170_s19 = scalar_lea.hbm %s18597_s7, 4096 }
  0x29   :  { %p15171_p2 = scmp.ne.s32.totalorder %s18597_s7, %s15170_s19  ;;  %p15174_p3 = scmp.lt.u32.totalorder %s15170_s19, %s18597_s7 }
  0x2b   :  { %p15176_p4 = pnand %p15174_p3, %p15171_p2 }
  0x2d   :  { %15179 = shalt.err (!%p15176_p4)
}
  0x2e   :  { %s15180_s26 = scalar_lea.vmem %s93_s20, 4096  ;;  %p15185_p6 = scmp.lt.s32.totalorder %s93_s20, %s93_s20 }
  0x2f   :  { %p15181_p5 = scmp.ne.s32.totalorder %s93_s20, %s15180_s26  ;;  %p15186_p7 = scmp.lt.s32.totalorder %s15180_s26, %s15180_s26 }
  0x31   :  { %p15187_p8 = por %p15186_p7, %p15185_p6 }
  0x33   :  { %p15188_p9 = pnand %p15187_p8, %p15181_p5 }
  0x35   :  { %15191 = shalt.err (!%p15188_p9)
}
  0x36   :  { %98 = dma.hbm_to_vmem [thread:$0]  %s18597_s7, 4096, %s93_s20, [#allocation14], %s15341_s22, %s15341_s22, %s15342_s29  }
  0x37   :  { %s15343_s27 = smov [#allocation4]   ;;  %s15192_s15 = scalar_lea.hbm %s18591_s1, 2048 }
  0x38   :  { %s30_s28 = sshll.u32 %s15343_s27, 4  ;;  %p15193_p10 = scmp.ne.s32.totalorder %s18591_s1, %s15192_s15  ;;  %s31_s28 = int_to_ptr.vmem [resolvable:$true] %s30_s28 }
  0x39   :  { %p15196_p11 = scmp.lt.u32.totalorder %s15192_s15, %s18591_s1 }
  0x3b   :  { %p15198_p12 = pnand %p15196_p11, %p15193_p10 }
  0x3d   :  { %15201 = shalt.err (!%p15198_p12)
}
  0x3e   :  { %s15202_s23 = scalar_lea.vmem %s31_s28, 2048  ;;  %p15207_p0 = scmp.lt.s32.totalorder %s31_s28, %s31_s28 }
  0x3f   :  { %p15203_p13 = scmp.ne.s32.totalorder %s31_s28, %s15202_s23  ;;  %p15208_p1 = scmp.lt.s32.totalorder %s15202_s23, %s15202_s23 }
  0x41   :  { %p15209_p2 = por %p15208_p1, %p15207_p0 }
  0x43   :  { %p15210_p3 = pnand %p15209_p2, %p15203_p13 }
  0x45   :  { %15213 = shalt.err (!%p15210_p3)
}
  0x46   :  { %s15344_s7 = smov 128   ;;  %s15345_s20 = smov 8  }
  0x47   :  { %36 = dma.hbm_to_vmem [thread:$0]  %s18591_s1, 2048, %s31_s28, [#allocation5], %s15344_s7, %s15344_s7, %s15345_s20  }
  0x48   :  { %s15346_s26 = smov [#allocation9]   ;;  %s15347_s18 = smov [#allocation12]  }
  0x49   :  { %s54_s4 = sshll.u32 %s15346_s26, 4  ;;  %s80_s27 = sshll.u32 %s15347_s18, 4  ;;  %s55_s4 = int_to_ptr.vmem [resolvable:$true] %s54_s4  ;;  %s15477_s27 = int_to_ptr.vmem [resolvable:$true] %s80_s27 }
  0x4a   :  { %s15214_s15 = scalar_lea.hbm %s18593_s3, 4096 }
  0x4b   :  { %p15215_p4 = scmp.ne.s32.totalorder %s18593_s3, %s15214_s15  ;;  %p15218_p5 = scmp.lt.u32.totalorder %s15214_s15, %s18593_s3 }
  0x4d   :  { %p15220_p6 = pnand %p15218_p5, %p15215_p4 }
  0x4f   :  { %15223 = shalt.err (!%p15220_p6)
}
  0x50   :  { %s15224_s1 = scalar_lea.vmem %s55_s4, 4096  ;;  %p15229_p8 = scmp.lt.s32.totalorder %s55_s4, %s55_s4 }
  0x51   :  { %p15225_p7 = scmp.ne.s32.totalorder %s55_s4, %s15224_s1  ;;  %p15230_p9 = scmp.lt.s32.totalorder %s15224_s1, %s15224_s1 }
  0x53   :  { %p15231_p10 = por %p15230_p9, %p15229_p8 }
  0x55   :  { %p15232_p11 = pnand %p15231_p10, %p15225_p7 }
  0x57   :  { %15235 = shalt.err (!%p15232_p11)
}
  0x58   :  { %60 = dma.hbm_to_vmem [thread:$0]  %s18593_s3, 4096, %s55_s4, [#allocation8], %s15341_s22, %s15341_s22, %s15342_s29  }
  0x59   :  { %s15236_s24 = scalar_lea.hbm %s18596_s6, 16384 }
  0x5a   :  { %p15237_p12 = scmp.ne.s32.totalorder %s18596_s6, %s15236_s24  ;;  %p15240_p13 = scmp.lt.u32.totalorder %s15236_s24, %s18596_s6 }
  0x5c   :  { %p15242_p0 = pnand %p15240_p13, %p15237_p12 }
  0x5e   :  { %15245 = shalt.err (!%p15242_p0)
}
  0x5f   :  { %s15246_s30 = scalar_lea.vmem %s15477_s27, 16384  ;;  %p15251_p2 = scmp.lt.s32.totalorder %s15477_s27, %s15477_s27 }
  0x60   :  { %p15247_p1 = scmp.ne.s32.totalorder %s15477_s27, %s15246_s30  ;;  %p15252_p3 = scmp.lt.s32.totalorder %s15246_s30, %s15246_s30 }
  0x62   :  { %p15253_p4 = por %p15252_p3, %p15251_p2 }
  0x64   :  { %p15254_p5 = pnand %p15253_p4, %p15247_p1 }
  0x66   :  { %15257 = shalt.err (!%p15254_p5)
}
  0x67   :  { %86 = dma.hbm_to_vmem [thread:$0]  %s18596_s6, 16384, %s15477_s27, [#allocation11], %s15337_s13, %s15337_s13, %s15338_s14  }
  0x68   :  { %s15348_s15 = smov [#allocation15]   ;;  %s15349_s17 = smov [#allocation16]  }
  0x69   :  { %s104_s16 = sshll.u32 %s15348_s15, 4  ;;  %s118_s19 = sshll.u32 %s15349_s17, 4  ;;  %s105_s16 = int_to_ptr.vmem [resolvable:$true] %s104_s16  ;;  %s15514_s19 = int_to_ptr.vmem [resolvable:$true] %s118_s19 }
  0x6a   :  { %s15258_s28 = scalar_lea.hbm %s18598_s8, 4096 }
  0x6b   :  { %p15259_p6 = scmp.ne.s32.totalorder %s18598_s8, %s15258_s28  ;;  %p15262_p7 = scmp.lt.u32.totalorder %s15258_s28, %s18598_s8 }
  0x6d   :  { %p15264_p8 = pnand %p15262_p7, %p15259_p6 }
  0x6f   :  { %15267 = shalt.err (!%p15264_p8)
}
  0x70   :  { %s15268_s6 = scalar_lea.vmem %s105_s16, 4096  ;;  %p15273_p10 = scmp.lt.s32.totalorder %s105_s16, %s105_s16 }
  0x71   :  { %p15269_p9 = scmp.ne.s32.totalorder %s105_s16, %s15268_s6  ;;  %p15274_p11 = scmp.lt.s32.totalorder %s15268_s6, %s15268_s6 }
  0x73   :  { %p15275_p12 = por %p15274_p11, %p15273_p10 }
  0x75   :  { %p15276_p13 = pnand %p15275_p12, %p15269_p9 }
  0x77   :  { %15279 = shalt.err (!%p15276_p13)
}
  0x78   :  { %110 = dma.hbm_to_vmem [thread:$0]  %s18598_s8, 4096, %s105_s16, [#allocation14], %s15341_s22, %s15341_s22, %s15342_s29  }
  0x79   :  { %s15280_s26 = scalar_lea.hbm %s18600_s10, 2048 }
  0x7a   :  { %p15281_p0 = scmp.ne.s32.totalorder %s18600_s10, %s15280_s26  ;;  %p15284_p1 = scmp.lt.u32.totalorder %s15280_s26, %s18600_s10 }
  0x7c   :  { %p15286_p2 = pnand %p15284_p1, %p15281_p0 }
  0x7e   :  { %15289 = shalt.err (!%p15286_p2)
}
  0x7f   :  { %s15290_s4 = scalar_lea.vmem %s15514_s19, 2048  ;;  %p15295_p4 = scmp.lt.s32.totalorder %s15514_s19, %s15514_s19 }
  0x80   :  { %p15291_p3 = scmp.ne.s32.totalorder %s15514_s19, %s15290_s4  ;;  %p15296_p5 = scmp.lt.s32.totalorder %s15290_s4, %s15290_s4 }
  0x82   :  { %p15297_p6 = por %p15296_p5, %p15295_p4 }
  0x84   :  { %p15298_p7 = pnand %p15297_p6, %p15291_p3 }
  0x86   :  { %15301 = shalt.err (!%p15298_p7)
}
  0x87   :  { %s15350_s8 = smov 64   ;;  %s15351_s22 = smov 4  }
  0x88   :  { %124 = dma.hbm_to_vmem [thread:$0]  %s18600_s10, 2048, %s15514_s19, [#allocation17], %s15350_s8, %s15350_s8, %s15351_s22  }
  0x89   :  { %15324 = dma.done.wait [#allocation5], 2048  }
  0x8a   :  { %15325 = vsyncadd [#allocation5], 4294965248 }
  0x8b   :  { %15326 = dma.done.wait [#allocation8], 12288  }
  0x8c   :  { %15327 = vsyncadd [#allocation8], 4294955008 }
  0x8d   :  { %15328 = dma.done.wait [#allocation11], 20480  }
  0x8e   :  { %15329 = vsyncadd [#allocation11], 4294946816 }
  0x8f   :  { %15330 = dma.done.wait [#allocation14], 8192  }
  0x90   :  { %15331 = vsyncadd [#allocation14], 4294959104 }
  0x91   :  { %15332 = dma.done.wait [#allocation17], 2048  }
  0x92   :  { %15333 = vsyncadd [#allocation17], 4294965248  ;;  %v18604_v0 = vmov 0   ;;  %v156_v1 = vld [vmem:[%s18590_s0 + $0x10] sm:$0xff]  ;;  %v154_v2 = vld [vmem:[%s18590_s0] sm:$0xff]  ;;  %s15354_s30 = smov [#allocation18]  }
  0x93   :  { %13843 = vset.pattern.permute.xlu1 %v18604_v0  ;;  %13842 = vset.pattern.permute.xlu0 %v18604_v0  ;;  %v157_v3 = vld [vmem:[%s18590_s0 + $0x18] sm:$0xff]  ;;  %v155_v4 = vld [vmem:[%s18590_s0 + $0x8] sm:$0xff]  ;;  %v202_v5 = vld [vmem:[#allocation4] sm:$0xff]  ;;  %s12351_s3 = sshll.u32 %s15354_s30, 4  ;;  %s12352_s3 = int_to_ptr.vmem [resolvable:$true] %s12351_s3 }
  0x94   :  { %785 = vmatprep.mubr.bf16.mxu1 %v18604_v0  ;;  %169 = vperm.xlu1 %13843, %v156_v1   ;;  %v203_v6 = vld [vmem:[#allocation4 + $0x8] sm:$0xff]  ;;  %v204_v7 = vld [vmem:[#allocation4 + $0x10] sm:$0xff]  ;;  %v205_v8 = vld [vmem:[#allocation4 + $0x18] sm:$0xff]  ;;  %s15302_s4 = scalar_lea.vmem %s12352_s3, 128  ;;  %p15307_p9 = scmp.lt.s32.totalorder %s12352_s3, %s12352_s3 }
  0x95   :  { %163 = vperm.xlu0 %13842, %v154_v2   ;;  %v13791_v9 = vpack.c.bf16 %v203_v6, %v202_v5  ;;  %v13795_v10 = vpack.c.bf16 %v205_v8, %v204_v7  ;;  %v206_v11 = vld [vmem:[#allocation4 + $0x20] sm:$0xff]  ;;  %v207_v12 = vld [vmem:[#allocation4 + $0x28] sm:$0xff]  ;;  %v159_v13 = vld [vmem:[%s18590_s0 + $0x28] sm:$0xff]  ;;  %v18603_v5 = vlaneseq  ;;  %p15303_p8 = scmp.ne.s32.totalorder %s12352_s3, %s15302_s4  ;;  %p15308_p10 = scmp.lt.s32.totalorder %s15302_s4, %s15302_s4 }
  0x96   :  { %v158_v14 = vld [vmem:[%s18590_s0 + $0x20] sm:$0xff]  ;;  %v209_v16 = vld [vmem:[#allocation4 + $0x38] sm:$0xff]  ;;  %v161_v17 = vld [vmem:[%s18590_s0 + $0x38] sm:$0xff]  ;;  %v13799_v19 = vpack.c.bf16 %v207_v12, %v206_v11  ;;  %v15353_v11 = vmov 1.0  }
  0x97   :  { %13792 = vmatprep.subr.bf16.mxu0 %v13791_v9  ;;  %v208_v15 = vld [vmem:[#allocation4 + $0x30] sm:$0xff]  ;;  %v160_v18 = vld [vmem:[%s18590_s0 + $0x30] sm:$0xff]  ;;  %v211_v21 = vld [vmem:[#allocation4 + $0x48] sm:$0xff]  ;;  %v153_v6 = vand.u32 127, %v18603_v5  ;;  %p15309_p11 = por %p15308_p10, %p15307_p9 }
  0x98   :  { %172 = vperm.xlu1 %13843, %v157_v3   ;;  %13794 = vmatpush3.bf16.msra.mxu0 %v13791_v9  ;;  %v210_v20 = vld [vmem:[#allocation4 + $0x40] sm:$0xff]  ;;  %v13803_v22 = vpack.c.bf16 %v209_v16, %v208_v15  ;;  %v212_v23 = vld [vmem:[#allocation4 + $0x50] sm:$0xff]  ;;  %v213_v24 = vld [vmem:[#allocation4 + $0x58] sm:$0xff] }
  0x99   :  { %166 = vperm.xlu0 %13842, %v155_v4   ;;  %13796 = vmatprep.subr.bf16.mxu0 %v13795_v10  ;;  %v13807_v25 = vpack.c.bf16 %v211_v21, %v210_v20  ;;  %v327_v26 = vld [vmem:[#allocation7] sm:$0xff]  ;;  %v15575_v28 = vld [vmem:[#allocation7 + $0x8] sm:$0xff]  ;;  %v13811_v34 = vpack.c.bf16 %v213_v24, %v212_v23  ;;  %v216_v46 = vld [vmem:[#allocation4 + $0x70] sm:$0xff]  ;;  %p15310_p12 = pnand %p15309_p11, %p15303_p8 }
  0x9a   :  { %v331_v27 = vld [vmem:[#allocation7 + $0x20] sm:$0xff]  ;;  %v15577_v30 = vld [vmem:[#allocation7 + $0x28] sm:$0xff]  ;;  %v217_v47 = vld [vmem:[#allocation4 + $0x78] sm:$0xff] }
  0x9b   :  { %v12373_v29 = vcombine.high %v327_v26, %v331_v27  ;;  %v12372_v31 = vcombine.low %v327_v26, %v331_v27  ;;  %v335_v32 = vld [vmem:[#allocation7 + $0x40] sm:$0xff]  ;;  %v12374_v35 = vcombine.low %v15575_v28, %v15577_v30  ;;  %v215_v39 = vld [vmem:[#allocation4 + $0x68] sm:$0xff]  ;;  %v13819_v51 = vpack.c.bf16 %v217_v47, %v216_v46  ;;  %v329_v47 = vld [vmem:[#allocation7 + $0x10] sm:$0xff] }
  0x9c   :  { %178 = vperm.xlu1 %13843, %v159_v13   ;;  %13798 = vmatpush3.bf16.msra.mxu0 %v13795_v10  ;;  %v339_v33 = vld [vmem:[#allocation7 + $0x60] sm:$0xff]  ;;  %v12375_v56 = vcombine.high %v15575_v28, %v15577_v30  ;;  %v336_v7 = vld [vmem:[#allocation7 + $0x48] sm:$0xff] }
  0x9d   :  { %175 = vperm.xlu0 %13842, %v158_v14   ;;  %13800 = vmatprep.subr.bf16.mxu0 %v13799_v19  ;;  %v12381_v36 = vcombine.high %v335_v32, %v339_v33  ;;  %v343_v37 = vld [vmem:[#allocation7 + $0x80] sm:$0xff]  ;;  %v12380_v41 = vcombine.low %v335_v32, %v339_v33  ;;  %v340_v8 = vld [vmem:[#allocation7 + $0x68] sm:$0xff] }
  0x9e   :  { %v214_v38 = vld [vmem:[#allocation4 + $0x60] sm:$0xff]  ;;  %753 = vmatprep.subr.bf16.mxu1 %v12373_v29  ;;  %v344_v12 = vld [vmem:[#allocation7 + $0x88] sm:$0xff]  ;;  %v12383_v16 = vcombine.high %v336_v7, %v340_v8 }
  0x9f   :  { %v347_v40 = vld [vmem:[#allocation7 + $0xa0] sm:$0xff]  ;;  %754 = vmatpush1.bf16.msra.mxu1 %v12372_v31  ;;  %v13815_v43 = vpack.c.bf16 %v215_v39, %v214_v38  ;;  %v348_v13 = vld [vmem:[#allocation7 + $0xa8] sm:$0xff] }
  0xa0   :  { %184 = vperm.xlu1 %13843, %v161_v17   ;;  %13802 = vmatpush3.bf16.msra.mxu0 %v13799_v19  ;;  %v12389_v42 = vcombine.high %v343_v37, %v347_v40  ;;  %v351_v44 = vld [vmem:[#allocation7 + $0xc0] sm:$0xff]  ;;  %v12388_v48 = vcombine.low %v343_v37, %v347_v40  ;;  %v12382_v17 = vcombine.low %v336_v7, %v340_v8  ;;  %v356_v19 = vld [vmem:[#allocation7 + $0xe8] sm:$0xff] }
  0xa1   :  { %181 = vperm.xlu0 %13842, %v160_v18   ;;  %13804 = vmatprep.subr.bf16.mxu0 %v13803_v22  ;;  %v355_v45 = vld [vmem:[#allocation7 + $0xe0] sm:$0xff]  ;;  %v352_v18 = vld [vmem:[#allocation7 + $0xc8] sm:$0xff]  ;;  %v12390_v23 = vcombine.low %v344_v12, %v348_v13 }
  0xa2   :  { %755 = vmatprep.subr.bf16.mxu1 %v12381_v36  ;;  %v12397_v49 = vcombine.high %v351_v44, %v355_v45  ;;  %v359_v50 = vld [vmem:[#allocation7 + $0x100] sm:$0xff]  ;;  %v12396_v53 = vcombine.low %v351_v44, %v355_v45  ;;  %v360_v24 = vld [vmem:[#allocation7 + $0x108] sm:$0xff]  ;;  %v12399_v27 = vcombine.high %v352_v18, %v356_v19  ;;  %v12398_v29 = vcombine.low %v352_v18, %v356_v19 }
  0xa3   :  { %756 = vmatpush1.bf16.msra.mxu1 %v12380_v41  ;;  %v363_v52 = vld [vmem:[#allocation7 + $0x120] sm:$0xff]  ;;  %v368_v30 = vld [vmem:[#allocation7 + $0x148] sm:$0xff] }
  0xa4   :  { %13806 = vmatpush3.bf16.msra.mxu0 %v13803_v22  ;;  %757 = vmatprep.subr.bf16.mxu1 %v12389_v42  ;;  %v12405_v54 = vcombine.high %v359_v50, %v363_v52  ;;  %v367_v55 = vld [vmem:[#allocation7 + $0x140] sm:$0xff]  ;;  %v12404_v58 = vcombine.low %v359_v50, %v363_v52  ;;  %v12391_v22 = vcombine.high %v344_v12, %v348_v13  ;;  %v372_v31 = vld [vmem:[#allocation7 + $0x168] sm:$0xff]  ;;  %v353_v13 = vld [vmem:[#allocation7 + $0xd0] sm:$0xff] }
  0xa5   :  { %13808 = vmatprep.subr.bf16.mxu0 %v13807_v25  ;;  %v371_v57 = vld [vmem:[#allocation7 + $0x160] sm:$0xff]  ;;  %v12415_v36 = vcombine.high %v368_v30, %v372_v31  ;;  %v12414_v37 = vcombine.low %v368_v30, %v372_v31  ;;  %v384_v38 = vld [vmem:[#allocation7 + $0x1c8] sm:$0xff] }
  0xa6   :  { %v375_v59 = vld [vmem:[#allocation7 + $0x180] sm:$0xff]  ;;  %v12413_v61 = vcombine.high %v367_v55, %v371_v57  ;;  %v12412_v62 = vcombine.low %v367_v55, %v371_v57  ;;  %v388_v39 = vld [vmem:[#allocation7 + $0x1e8] sm:$0xff]  ;;  %v337_v55 = vld [vmem:[#allocation7 + $0x50] sm:$0xff] }
  0xa7   :  { %758 = vmatpush1.bf16.msra.mxu1 %v12388_v48  ;;  %v379_v60 = vld [vmem:[#allocation7 + $0x1a0] sm:$0xff]  ;;  %v12431_v42 = vcombine.high %v384_v38, %v388_v39  ;;  %v333_v48 = vld [vmem:[#allocation7 + $0x30] sm:$0xff]  ;;  %v338_v57 = vld [vmem:[#allocation7 + $0x58] sm:$0xff] }
  0xa8   :  { %13810 = vmatpush3.bf16.msra.mxu0 %v13807_v25  ;;  %759 = vmatprep.subr.bf16.mxu1 %v12397_v49  ;;  %v383_v63 = vld [vmem:[#allocation7 + $0x1c0] sm:$0xff]  ;;  %v12421_v2 = vcombine.high %v375_v59, %v379_v60  ;;  %v12420_v3 = vcombine.low %v375_v59, %v379_v60  ;;  %v364_v25 = vld [vmem:[#allocation7 + $0x128] sm:$0xff]  ;;  %v330_v49 = vld [vmem:[#allocation7 + $0x18] sm:$0xff]  ;;  %v12377_v50 = vcombine.high %v329_v47, %v333_v48 }
  0xa9   :  { %13812 = vmatprep.subr.bf16.mxu0 %v13811_v34  ;;  %v387_v1 = vld [vmem:[#allocation7 + $0x1e0] sm:$0xff]  ;;  %v12407_v32 = vcombine.high %v360_v24, %v364_v25  ;;  %v12406_v33 = vcombine.low %v360_v24, %v364_v25  ;;  %v12376_v52 = vcombine.low %v329_v47, %v333_v48  ;;  %v361_v24 = vld [vmem:[#allocation7 + $0x110] sm:$0xff] }
  0xaa   :  { %v12429_v4 = vcombine.high %v383_v63, %v387_v1  ;;  %v15124_v44 = vld [vmem:[#allocation7 + $0x1c0] sm:$0xff]  ;;  %v345_v1 = vld [vmem:[#allocation7 + $0x90] sm:$0xff] }
  0xab   :  { %760 = vmatpush1.bf16.msra.mxu1 %v12396_v53  ;;  %v15125_v45 = vld [vmem:[#allocation7 + $0x1e0] sm:$0xff]  ;;  %v365_v25 = vld [vmem:[#allocation7 + $0x130] sm:$0xff] }
  0xac   :  { %13814 = vmatpush3.bf16.msra.mxu0 %v13811_v34  ;;  %761 = vmatprep.subr.bf16.mxu1 %v12405_v54  ;;  %v376_v34 = vld [vmem:[#allocation7 + $0x188] sm:$0xff]  ;;  %v12428_v46 = vcombine.low %v15124_v44, %v15125_v45  ;;  %v381_v44 = vld [vmem:[#allocation7 + $0x1b0] sm:$0xff]  ;;  %v378_v45 = vld [vmem:[#allocation7 + $0x198] sm:$0xff] }
  0xad   :  { %13816 = vmatprep.subr.bf16.mxu0 %v13815_v43  ;;  %v15816_v5 = vld [vmem:[#allocation10 + $0xe0] ss:$16 sps:$4 sm:$0xff]  }
  0xaf   :  { %762 = vmatpush1.bf16.msra.mxu1 %v12404_v58  ;;  %v342_v58 = vld [vmem:[#allocation7 + $0x78] sm:$0xff] }
  0xb0   :  { %13818 = vmatpush3.bf16.msra.mxu0 %v13815_v43  ;;  %763 = vmatprep.subr.bf16.mxu1 %v12413_v61  ;;  %v12430_v43 = vcombine.low %v384_v38, %v388_v39  ;;  %v12387_v63 = vcombine.high %v338_v57, %v342_v58  ;;  %v374_v38 = vld [vmem:[#allocation7 + $0x178] sm:$0xff]  ;;  %v12408_v39 = vcombine.low %v361_v24, %v365_v25 }
  0xb1   :  { %13820 = vmatprep.subr.bf16.mxu0 %v13819_v51 }
  0xb3   :  { %764 = vmatpush1.bf16.msra.mxu1 %v12412_v62 }
  0xb4   :  { %13822 = vmatpush3.bf16.msra.mxu0 %v13819_v51  ;;  %765 = vmatprep.subr.bf16.mxu1 %v12421_v2  ;;  %v334_v51 = vld [vmem:[#allocation7 + $0x38] sm:$0xff]  ;;  %v349_v2 = vld [vmem:[#allocation7 + $0xb0] sm:$0xff] }
  0xb5   :  { %826 = vmatprep.subr.bf16.mxu0 %v12375_v56  ;;  %v12378_v53 = vcombine.low %v330_v49, %v334_v51  ;;  %v12379_v54 = vcombine.high %v330_v49, %v334_v51  ;;  %v341_v56 = vld [vmem:[#allocation7 + $0x70] sm:$0xff]  ;;  %v12392_v19 = vcombine.low %v345_v1, %v349_v2 }
  0xb6   :  { %v12385_v62 = vcombine.high %v337_v55, %v341_v56  ;;  %v12384_v8 = vcombine.low %v337_v55, %v341_v56  ;;  %v385_v51 = vld [vmem:[#allocation7 + $0x1d0] sm:$0xff] }
  0xb7   :  { %766 = vmatpush1.bf16.msra.mxu1 %v12420_v3  ;;  %v346_v3 = vld [vmem:[#allocation7 + $0x98] sm:$0xff] }
  0xb8   :  { %767 = vmatprep.subr.bf16.mxu1 %v12429_v4  ;;  %v350_v4 = vld [vmem:[#allocation7 + $0xb8] sm:$0xff] }
  0xb9   :  { %v12395_v12 = vcombine.high %v346_v3, %v350_v4 }
  0xbb   :  { %768 = vmatpush1.bf16.msra.mxu1 %v12428_v46  ;;  %v382_v46 = vld [vmem:[#allocation7 + $0x1b8] sm:$0xff] }
  0xbc   :  { %899 = vmatprep.subr.bf16.mxu1 %v12377_v50  ;;  %v12427_v50 = vcombine.high %v378_v45, %v382_v46  ;;  %v12426_v56 = vcombine.low %v378_v45, %v382_v46  ;;  %v15768_v45 = vld [vmem:[#allocation10 + $0x60] ss:$16 sps:$4 sm:$0xff]   ;;  %v15770_v46 = vld [vmem:[#allocation10 + $0x68] ss:$16 sps:$4 sm:$0xff]  }
 0x113   :  { %v170_v9 = vpop.permute.xlu1 %169 }
 0x114   :  { %v164_v10 = vpop.permute.xlu0 %163  ;;  %vm188_vm1 = vcmp.eq.s32.totalorder %v170_v9, %v153_v6  ;;  %v12386_v9 = vcombine.low %v338_v57, %v342_v58 }
 0x115   :  { %vm186_vm0 = vcmp.eq.s32.totalorder %v164_v10, %v153_v6 }
 0x116   :  { %13779 = vmatprep.mubr.msk.f32.mxu0 %vm186_vm0, %v15353_v11 }
 0x117   :  { %v173_v14 = vpop.permute.xlu1 %172 }
 0x118   :  { %v167_v15 = vpop.permute.xlu0 %166  ;;  %vm189_vm3 = vcmp.eq.s32.totalorder %v173_v14, %v153_v6  ;;  %v357_v14 = vld [vmem:[#allocation7 + $0xf0] sm:$0xff] }
 0x119   :  { %vm187_vm2 = vcmp.eq.s32.totalorder %v167_v15, %v153_v6  ;;  %v354_v15 = vld [vmem:[#allocation7 + $0xd8] sm:$0xff]  ;;  %v12400_v30 = vcombine.low %v353_v13, %v357_v14 }
 0x11a   :  { %13780 = vmatmul.mubr.msk.f32.vlgmr.msra.gmra.mrb[0].mxu0 %vm187_vm2, %v15353_v11 }
 0x11b   :  { %13782 = vmatprep.mubr.msk.f32.mxu0 %vm188_vm1, %v15353_v11  ;;  %827 = vmatpush1.bf16.msra.mxu0 %v12374_v35  ;;  %v179_v20 = vpop.permute.xlu1 %178  ;;  %v380_v35 = vld [vmem:[#allocation7 + $0x1a8] sm:$0xff] }
 0x11c   :  { %v176_v21 = vpop.permute.xlu0 %175  ;;  %828 = vmatprep.subr.bf16.mxu0 %v12383_v16  ;;  %vm191_vm5 = vcmp.eq.s32.totalorder %v179_v20, %v153_v6  ;;  %v12423_v40 = vcombine.high %v376_v34, %v380_v35  ;;  %v12422_v41 = vcombine.low %v376_v34, %v380_v35  ;;  %v358_v16 = vld [vmem:[#allocation7 + $0xf8] sm:$0xff]  ;;  %v12394_v20 = vcombine.low %v346_v3, %v350_v4  ;;  %v369_v35 = vld [vmem:[#allocation7 + $0x150] sm:$0xff] }
 0x11d   :  { %vm190_vm4 = vcmp.eq.s32.totalorder %v176_v21, %v153_v6  ;;  %v12402_v31 = vcombine.low %v354_v15, %v358_v16  ;;  %v15622_v3 = vld [vmem:[#allocation9 + $0x24] ss:$16 sps:$4 sm:$0xff]   ;;  %v15624_v4 = vld [vmem:[#allocation9 + $0x2c] ss:$16 sps:$4 sm:$0xff]  }
 0x11e   :  { %13783 = vmatmul.mubr.msk.f32.gmra.mrb[2].mxu0 %vm189_vm3, %v15353_v11 }
 0x11f   :  { %13785 = vmatprep.mubr.msk.f32.mxu0 %vm190_vm4, %v15353_v11  ;;  %829 = vmatpush1.bf16.msra.mxu0 %v12382_v17  ;;  %v185_v28 = vpop.permute.xlu1 %184 }
 0x120   :  { %v182_v26 = vpop.permute.xlu0 %181  ;;  %830 = vmatprep.subr.bf16.mxu0 %v12391_v22  ;;  %vm193_vm7 = vcmp.eq.s32.totalorder %v185_v28, %v153_v6  ;;  %v12401_v22 = vcombine.high %v353_v13, %v357_v14  ;;  %v15652_v13 = vld [vmem:[#allocation9 + $0x6c] ss:$16 sps:$4 sm:$0xff]   ;;  %v15658_v14 = vld [vmem:[#allocation9 + $0x60] ss:$16 sps:$4 sm:$0xff]  }
 0x121   :  { %vm192_vm6 = vcmp.eq.s32.totalorder %v182_v26, %v153_v6  ;;  %v362_v26 = vld [vmem:[#allocation7 + $0x118] sm:$0xff] }
 0x122   :  { %13786 = vmatmul.mubr.msk.f32.gmra.mrb[4].mxu0 %vm191_vm5, %v15353_v11 }
 0x123   :  { %13788 = vmatprep.mubr.msk.f32.mxu0 %vm192_vm6, %v15353_v11  ;;  %831 = vmatpush1.bf16.msra.mxu0 %v12390_v23  ;;  %v12403_v23 = vcombine.high %v354_v15, %v358_v16  ;;  %v15660_v15 = vld [vmem:[#allocation9 + $0x68] ss:$16 sps:$4 sm:$0xff]   ;;  %v15664_v16 = vld [vmem:[#allocation9 + $0x84] ss:$16 sps:$4 sm:$0xff]  }
 0x124   :  { %832 = vmatprep.subr.bf16.mxu0 %v12399_v27  ;;  %v366_v27 = vld [vmem:[#allocation7 + $0x138] sm:$0xff] }
 0x125   :  { %v12411_v34 = vcombine.high %v362_v26, %v366_v27 }
 0x126   :  { %13789 = vmatmul.mubr.msk.f32.gmra.mrb[6].mxu0 %vm193_vm7, %v15353_v11  ;;  %v12393_v11 = vcombine.high %v345_v1, %v349_v2  ;;  %v15616_v1 = vld [vmem:[#allocation9] ss:$16 sps:$4 sm:$0xff]   ;;  %v15618_v2 = vld [vmem:[#allocation9 + $0x8] ss:$16 sps:$4 sm:$0xff]  }
 0x127   :  { %833 = vmatpush1.bf16.msra.mxu0 %v12398_v29  ;;  %858 = vmatprep.mubr.bf16.mxu0 %v18604_v0 }
 0x128   :  { %834 = vmatprep.subr.bf16.mxu0 %v12407_v32 }
 0x12b   :  { %835 = vmatpush1.bf16.msra.mxu0 %v12406_v33  ;;  %v12409_v33 = vcombine.high %v361_v24, %v365_v25  ;;  %v15692_v24 = vld [vmem:[#allocation9 + $0xc4] ss:$16 sps:$4 sm:$0xff]   ;;  %v15694_v25 = vld [vmem:[#allocation9 + $0xcc] ss:$16 sps:$4 sm:$0xff]  }
 0x12c   :  { %836 = vmatprep.subr.bf16.mxu0 %v12415_v36  ;;  %v373_v36 = vld [vmem:[#allocation7 + $0x170] sm:$0xff] }
 0x12d   :  { %v12416_v47 = vcombine.low %v369_v35, %v373_v36 }
 0x12f   :  { %837 = vmatpush1.bf16.msra.mxu0 %v12414_v37  ;;  %v370_v37 = vld [vmem:[#allocation7 + $0x158] sm:$0xff] }
 0x130   :  { %838 = vmatprep.subr.bf16.mxu0 %v12423_v40  ;;  %v12410_v40 = vcombine.low %v362_v26, %v366_v27  ;;  %v12418_v48 = vcombine.low %v370_v37, %v374_v38  ;;  %v15702_v26 = vld [vmem:[#allocation9 + $0xc8] ss:$16 sps:$4 sm:$0xff]   ;;  %v15706_v27 = vld [vmem:[#allocation9 + $0xe4] ss:$16 sps:$4 sm:$0xff]  }
 0x133   :  { %839 = vmatpush1.bf16.msra.mxu0 %v12422_v41  ;;  %v12417_v41 = vcombine.high %v369_v35, %v373_v36  ;;  %v15734_v35 = vld [vmem:[#allocation10 + $0x24] ss:$16 sps:$4 sm:$0xff]   ;;  %v15736_v36 = vld [vmem:[#allocation10 + $0x2c] ss:$16 sps:$4 sm:$0xff]  }
 0x134   :  { %840 = vmatprep.subr.bf16.mxu0 %v12431_v42  ;;  %v12419_v42 = vcombine.high %v370_v37, %v374_v38  ;;  %v15742_v37 = vld [vmem:[#allocation10 + $0x20] ss:$16 sps:$4 sm:$0xff]   ;;  %v15744_v38 = vld [vmem:[#allocation10 + $0x28] ss:$16 sps:$4 sm:$0xff]  }
 0x137   :  { %841 = vmatpush1.bf16.msra.mxu0 %v12430_v43  ;;  %v377_v43 = vld [vmem:[#allocation7 + $0x190] sm:$0xff] }
 0x138   :  { %972 = vmatprep.subr.bf16.mxu0 %v12379_v54  ;;  %v12425_v49 = vcombine.high %v377_v43, %v381_v44  ;;  %v390_v54 = vld [vmem:[#allocation7 + $0x1f8] sm:$0xff]  ;;  %v12424_v55 = vcombine.low %v377_v43, %v381_v44  ;;  %v15762_v43 = vld [vmem:[#allocation10 + $0x64] ss:$16 sps:$4 sm:$0xff]  }
 0x139   :  { %v15764_v44 = vld [vmem:[#allocation10 + $0x6c] ss:$16 sps:$4 sm:$0xff]  }
 0x1ed   :  { %v13781_v59 = vpop.f32.mrb[0].mxu0 }
 0x1ee   :  { %v284_v60 = vpop.f32.mrb[1].mxu0 }
 0x1ef   :  { %v15588_v61 = vpack.c.bf16 %v13781_v59, %v284_v60 }
 0x1f1   :  { %v13784_v6 = vpop.f32.mrb[2].mxu0  ;;  %786 = vmatmul.mubr.bf16.vlgmr.msra.gmra.mrb[0].mxu1 %v15588_v61  ;;  %859 = vmatmul.mubr.bf16.vlgmr.msra.gmra.mrb[8].mxu0 %v15588_v61 }
 0x1f2   :  { %900 = vmatpush1.bf16.msra.mxu1 %v12376_v52  ;;  %973 = vmatpush1.bf16.msra.mxu0 %v12378_v53  ;;  %v294_v7 = vpop.f32.mrb[3].mxu0  ;;  %v389_v52 = vld [vmem:[#allocation7 + $0x1f0] sm:$0xff]  ;;  %v386_v53 = vld [vmem:[#allocation7 + $0x1d8] sm:$0xff] }
 0x1f3   :  { %v15592_v10 = vpack.c.bf16 %v13784_v6, %v294_v7  ;;  %901 = vmatprep.subr.bf16.mxu1 %v12385_v62  ;;  %974 = vmatprep.subr.bf16.mxu0 %v12387_v63  ;;  %v12433_v57 = vcombine.high %v385_v51, %v389_v52  ;;  %v12435_v58 = vcombine.high %v386_v53, %v390_v54  ;;  %v15610_v62 = vld [vmem:[#allocation9 + $0x4] ss:$16 sps:$4 sm:$0xff]   ;;  %v15612_v63 = vld [vmem:[#allocation9 + $0xc] ss:$16 sps:$4 sm:$0xff]   ;;  %v15630_v6 = vld [vmem:[#allocation9 + $0x20] ss:$16 sps:$4 sm:$0xff]  }
 0x1f4   :  { %795 = vmatprep.mubr.bf16.mxu1 %v18604_v0  ;;  %868 = vmatprep.mubr.bf16.mxu0 %v18604_v0  ;;  %v12432_v59 = vcombine.low %v385_v51, %v389_v52  ;;  %v12434_v60 = vcombine.low %v386_v53, %v390_v54  ;;  %v15632_v7 = vld [vmem:[#allocation9 + $0x28] ss:$16 sps:$4 sm:$0xff]   ;;  %v15786_v51 = vld [vmem:[#allocation10 + $0xa4] ss:$16 sps:$4 sm:$0xff]   ;;  %v15788_v52 = vld [vmem:[#allocation10 + $0xac] ss:$16 sps:$4 sm:$0xff]  }
 0x1f5   :  { %v13787_v17 = vpop.f32.mrb[4].mxu0  ;;  %v15792_v53 = vld [vmem:[#allocation10 + $0xa0] ss:$16 sps:$4 sm:$0xff]   ;;  %v15794_v54 = vld [vmem:[#allocation10 + $0xa8] ss:$16 sps:$4 sm:$0xff]  }
 0x1f6   :  { %902 = vmatpush1.bf16.msra.mxu1 %v12384_v8  ;;  %975 = vmatpush1.bf16.msra.mxu0 %v12386_v9  ;;  %v304_v18 = vpop.f32.mrb[5].mxu0  ;;  %v15636_v8 = vld [vmem:[#allocation9 + $0x44] ss:$16 sps:$4 sm:$0xff]   ;;  %v15638_v9 = vld [vmem:[#allocation9 + $0x4c] ss:$16 sps:$4 sm:$0xff]  }
 0x1f7   :  { %v15596_v21 = vpack.c.bf16 %v13787_v17, %v304_v18  ;;  %903 = vmatprep.subr.bf16.mxu1 %v12393_v11  ;;  %976 = vmatprep.subr.bf16.mxu0 %v12395_v12  ;;  %v15646_v11 = vld [vmem:[#allocation9 + $0x48] ss:$16 sps:$4 sm:$0xff]   ;;  %v15650_v12 = vld [vmem:[#allocation9 + $0x64] ss:$16 sps:$4 sm:$0xff]   ;;  %v15666_v17 = vld [vmem:[#allocation9 + $0x8c] ss:$16 sps:$4 sm:$0xff]  }
 0x1f8   :  { %v15674_v18 = vld [vmem:[#allocation9 + $0x88] ss:$16 sps:$4 sm:$0xff]  }
 0x1f9   :  { %v13790_v28 = vpop.f32.mrb[6].mxu0  ;;  %796 = vmatmul.mubr.bf16.gmra.mrb[4].mxu1 %v15592_v10  ;;  %869 = vmatmul.mubr.bf16.gmra.mrb[12].mxu0 %v15592_v10 }
 0x1fa   :  { %904 = vmatpush1.bf16.msra.mxu1 %v12392_v19  ;;  %977 = vmatpush1.bf16.msra.mxu0 %v12394_v20  ;;  %v314_v29 = vpop.f32.mrb[7].mxu0  ;;  %v15678_v19 = vld [vmem:[#allocation9 + $0xa4] ss:$16 sps:$4 sm:$0xff]   ;;  %v15680_v20 = vld [vmem:[#allocation9 + $0xac] ss:$16 sps:$4 sm:$0xff]  }
 0x1fb   :  { %v15600_v32 = vpack.c.bf16 %v13790_v28, %v314_v29  ;;  %905 = vmatprep.subr.bf16.mxu1 %v12401_v22  ;;  %978 = vmatprep.subr.bf16.mxu0 %v12403_v23  ;;  %v15686_v22 = vld [vmem:[#allocation9 + $0xa0] ss:$16 sps:$4 sm:$0xff]   ;;  %v15688_v23 = vld [vmem:[#allocation9 + $0xa8] ss:$16 sps:$4 sm:$0xff]   ;;  %v15708_v28 = vld [vmem:[#allocation9 + $0xec] ss:$16 sps:$4 sm:$0xff]  }
 0x1fc   :  { %805 = vmatprep.mubr.bf16.mxu1 %v18604_v0  ;;  %878 = vmatprep.mubr.bf16.mxu0 %v18604_v0  ;;  %v15714_v29 = vld [vmem:[#allocation9 + $0xe0] ss:$16 sps:$4 sm:$0xff]  }
 0x1fe   :  { %906 = vmatpush1.bf16.msra.mxu1 %v12400_v30  ;;  %979 = vmatpush1.bf16.msra.mxu0 %v12402_v31  ;;  %v15716_v30 = vld [vmem:[#allocation9 + $0xe8] ss:$16 sps:$4 sm:$0xff]   ;;  %v15720_v31 = vld [vmem:[#allocation10 + $0x4] ss:$16 sps:$4 sm:$0xff]  }
 0x1ff   :  { %907 = vmatprep.subr.bf16.mxu1 %v12409_v33  ;;  %980 = vmatprep.subr.bf16.mxu0 %v12411_v34  ;;  %v15722_v33 = vld [vmem:[#allocation10 + $0xc] ss:$16 sps:$4 sm:$0xff]   ;;  %v15730_v34 = vld [vmem:[#allocation10 + $0x8] ss:$16 sps:$4 sm:$0xff]  }
 0x201   :  { %806 = vmatmul.mubr.bf16.gmra.mrb[8].mxu1 %v15596_v21  ;;  %879 = vmatmul.mubr.bf16.gmra.mrb[16].mxu0 %v15596_v21 }
 0x202   :  { %908 = vmatpush1.bf16.msra.mxu1 %v12408_v39  ;;  %981 = vmatpush1.bf16.msra.mxu0 %v12410_v40  ;;  %v15748_v39 = vld [vmem:[#allocation10 + $0x44] ss:$16 sps:$4 sm:$0xff]   ;;  %v15750_v40 = vld [vmem:[#allocation10 + $0x4c] ss:$16 sps:$4 sm:$0xff]  }
 0x203   :  { %909 = vmatprep.subr.bf16.mxu1 %v12417_v41  ;;  %982 = vmatprep.subr.bf16.mxu0 %v12419_v42  ;;  %v15756_v41 = vld [vmem:[#allocation10 + $0x40] ss:$16 sps:$4 sm:$0xff]   ;;  %v15758_v42 = vld [vmem:[#allocation10 + $0x48] ss:$16 sps:$4 sm:$0xff]  }
 0x204   :  { %815 = vmatprep.mubr.bf16.mxu1 %v18604_v0  ;;  %888 = vmatprep.mubr.bf16.mxu0 %v18604_v0 }
 0x206   :  { %910 = vmatpush1.bf16.msra.mxu1 %v12416_v47  ;;  %983 = vmatpush1.bf16.msra.mxu0 %v12418_v48  ;;  %v15774_v47 = vld [vmem:[#allocation10 + $0x84] ss:$16 sps:$4 sm:$0xff]   ;;  %v15776_v48 = vld [vmem:[#allocation10 + $0x8c] ss:$16 sps:$4 sm:$0xff]  }
 0x207   :  { %911 = vmatprep.subr.bf16.mxu1 %v12425_v49  ;;  %984 = vmatprep.subr.bf16.mxu0 %v12427_v50  ;;  %v15780_v49 = vld [vmem:[#allocation10 + $0x80] ss:$16 sps:$4 sm:$0xff]   ;;  %v15782_v50 = vld [vmem:[#allocation10 + $0x88] ss:$16 sps:$4 sm:$0xff]  }
 0x209   :  { %816 = vmatmul.mubr.bf16.gmra.mrb[12].mxu1 %v15600_v32  ;;  %889 = vmatmul.mubr.bf16.gmra.mrb[20].mxu0 %v15600_v32 }
 0x20a   :  { %912 = vmatpush1.bf16.msra.mxu1 %v12424_v55  ;;  %985 = vmatpush1.bf16.msra.mxu0 %v12426_v56  ;;  %v15798_v55 = vld [vmem:[#allocation10 + $0xc4] ss:$16 sps:$4 sm:$0xff]   ;;  %v15800_v56 = vld [vmem:[#allocation10 + $0xcc] ss:$16 sps:$4 sm:$0xff]  }
 0x20b   :  { %913 = vmatprep.subr.bf16.mxu1 %v12433_v57  ;;  %986 = vmatprep.subr.bf16.mxu0 %v12435_v58  ;;  %18668 = vst [vmem:[#allocation25_spill] sm:$0xff] %v15800_v56  ;;  %v15804_v57 = vld [vmem:[#allocation10 + $0xc0] ss:$16 sps:$4 sm:$0xff]   ;;  %v15806_v58 = vld [vmem:[#allocation10 + $0xc8] ss:$16 sps:$4 sm:$0xff]  }
 0x20c   :  { %931 = vmatprep.mubr.bf16.mxu1 %v18604_v0  ;;  %1004 = vmatprep.mubr.bf16.mxu0 %v18604_v0 }
 0x20e   :  { %914 = vmatpush1.bf16.msra.mxu1 %v12432_v59  ;;  %987 = vmatpush1.bf16.msra.mxu0 %v12434_v60  ;;  %v15810_v59 = vld [vmem:[#allocation10 + $0xe4] ss:$16 sps:$4 sm:$0xff]   ;;  %v15812_v60 = vld [vmem:[#allocation10 + $0xec] ss:$16 sps:$4 sm:$0xff]  }
 0x20f   :  { %1305 = vmatprep.subr.bf16.mxu1 %v15610_v62  ;;  %1346 = vmatprep.subr.bf16.mxu0 %v15612_v63 }
 0x211   :  { %932 = vmatmul.mubr.bf16.vlgmr.msra.gmra.mrb[16].mxu1 %v15588_v61  ;;  %1005 = vmatmul.mubr.bf16.vlgmr.msra.gmra.mrb[24].mxu0 %v15588_v61  ;;  %v15644_v61 = vld [vmem:[#allocation9 + $0x40] ss:$16 sps:$4 sm:$0xff]  }
 0x212   :  { %1306 = vmatpush1.bf16.msra.mxu1 %v15616_v1  ;;  %1347 = vmatpush1.bf16.msra.mxu0 %v15618_v2 }
 0x213   :  { %1307 = vmatprep.subr.bf16.mxu1 %v15622_v3  ;;  %1348 = vmatprep.subr.bf16.mxu0 %v15624_v4 }
 0x214   :  { %941 = vmatprep.mubr.bf16.mxu1 %v18604_v0  ;;  %1014 = vmatprep.mubr.bf16.mxu0 %v18604_v0 }
 0x216   :  { %1308 = vmatpush1.bf16.msra.mxu1 %v15630_v6  ;;  %1349 = vmatpush1.bf16.msra.mxu0 %v15632_v7 }
 0x217   :  { %1309 = vmatprep.subr.bf16.mxu1 %v15636_v8  ;;  %1350 = vmatprep.subr.bf16.mxu0 %v15638_v9 }
 0x219   :  { %942 = vmatmul.mubr.bf16.gmra.mrb[20].mxu1 %v15592_v10  ;;  %1015 = vmatmul.mubr.bf16.gmra.mrb[28].mxu0 %v15592_v10  ;;  %v15672_v10 = vld [vmem:[#allocation9 + $0x80] ss:$16 sps:$4 sm:$0xff]  }
 0x21a   :  { %1310 = vmatpush1.bf16.msra.mxu1 %v15644_v61  ;;  %1351 = vmatpush1.bf16.msra.mxu0 %v15646_v11 }
 0x21b   :  { %1311 = vmatprep.subr.bf16.mxu1 %v15650_v12  ;;  %1352 = vmatprep.subr.bf16.mxu0 %v15652_v13 }
 0x21c   :  { %951 = vmatprep.mubr.bf16.mxu1 %v18604_v0  ;;  %1024 = vmatprep.mubr.bf16.mxu0 %v18604_v0 }
 0x21e   :  { %1312 = vmatpush1.bf16.msra.mxu1 %v15658_v14  ;;  %1353 = vmatpush1.bf16.msra.mxu0 %v15660_v15 }
 0x21f   :  { %1313 = vmatprep.subr.bf16.mxu1 %v15664_v16  ;;  %1354 = vmatprep.subr.bf16.mxu0 %v15666_v17 }
 0x221   :  { %952 = vmatmul.mubr.bf16.gmra.mrb[24].mxu1 %v15596_v21  ;;  %1025 = vmatmul.mubr.bf16.gmra.mrb[32].mxu0 %v15596_v21  ;;  %v15700_v21 = vld [vmem:[#allocation9 + $0xc0] ss:$16 sps:$4 sm:$0xff]  }
 0x222   :  { %1314 = vmatpush1.bf16.msra.mxu1 %v15672_v10  ;;  %1355 = vmatpush1.bf16.msra.mxu0 %v15674_v18 }
 0x223   :  { %1315 = vmatprep.subr.bf16.mxu1 %v15678_v19  ;;  %1356 = vmatprep.subr.bf16.mxu0 %v15680_v20 }
 0x224   :  { %961 = vmatprep.mubr.bf16.mxu1 %v18604_v0  ;;  %1034 = vmatprep.mubr.bf16.mxu0 %v18604_v0 }
 0x226   :  { %1316 = vmatpush1.bf16.msra.mxu1 %v15686_v22  ;;  %1357 = vmatpush1.bf16.msra.mxu0 %v15688_v23 }
 0x227   :  { %1317 = vmatprep.subr.bf16.mxu1 %v15692_v24  ;;  %1358 = vmatprep.subr.bf16.mxu0 %v15694_v25 }
 0x229   :  { %962 = vmatmul.mubr.bf16.gmra.mrb[28].mxu1 %v15600_v32  ;;  %1035 = vmatmul.mubr.bf16.gmra.mrb[36].mxu0 %v15600_v32  ;;  %v15728_v32 = vld [vmem:[#allocation10] ss:$16 sps:$4 sm:$0xff]  }
 0x22a   :  { %1318 = vmatpush1.bf16.msra.mxu1 %v15700_v21  ;;  %1359 = vmatpush1.bf16.msra.mxu0 %v15702_v26 }
 0x22b   :  { %1319 = vmatprep.subr.bf16.mxu1 %v15706_v27  ;;  %1360 = vmatprep.subr.bf16.mxu0 %v15708_v28 }
 0x22c   :  { %1337 = vmatprep.mubr.bf16.mxu1 %v18604_v0  ;;  %1378 = vmatprep.mubr.bf16.mxu0 %v18604_v0 }
 0x22e   :  { %1320 = vmatpush1.bf16.msra.mxu1 %v15714_v29  ;;  %1361 = vmatpush1.bf16.msra.mxu0 %v15716_v30 }
 0x22f   :  { %1588 = vmatprep.subr.bf16.mxu1 %v15720_v31  ;;  %1629 = vmatprep.subr.bf16.mxu0 %v15722_v33 }
 0x231   :  { %1338 = vmatmul.mubr.bf16.vlgmr.msra.gmra.mrb[32].mxu1 %v18604_v0  ;;  %1379 = vmatmul.mubr.bf16.vlgmr.msra.gmra.mrb[40].mxu0 %v18604_v0 }
 0x232   :  { %1589 = vmatpush1.bf16.msra.mxu1 %v15728_v32  ;;  %1630 = vmatpush1.bf16.msra.mxu0 %v15730_v34 }
 0x233   :  { %1590 = vmatprep.subr.bf16.mxu1 %v15734_v35  ;;  %1631 = vmatprep.subr.bf16.mxu0 %v15736_v36 }
 0x234   :  { %1620 = vmatprep.mubr.bf16.mxu1 %v18604_v0  ;;  %1661 = vmatprep.mubr.bf16.mxu0 %v18604_v0  ;;  %v15818_v0 = vld [vmem:[#allocation10 + $0xe8] ss:$16 sps:$4 sm:$0xff]  }
 0x236   :  { %1591 = vmatpush1.bf16.msra.mxu1 %v15742_v37  ;;  %1632 = vmatpush1.bf16.msra.mxu0 %v15744_v38 }
 0x237   :  { %1592 = vmatprep.subr.bf16.mxu1 %v15748_v39  ;;  %1633 = vmatprep.subr.bf16.mxu0 %v15750_v40 }
 0x23a   :  { %1593 = vmatpush1.bf16.msra.mxu1 %v15756_v41  ;;  %1634 = vmatpush1.bf16.msra.mxu0 %v15758_v42 }
 0x23b   :  { %1594 = vmatprep.subr.bf16.mxu1 %v15762_v43  ;;  %1635 = vmatprep.subr.bf16.mxu0 %v15764_v44 }
 0x23e   :  { %1595 = vmatpush1.bf16.msra.mxu1 %v15768_v45  ;;  %1636 = vmatpush1.bf16.msra.mxu0 %v15770_v46 }
 0x23f   :  { %1596 = vmatprep.subr.bf16.mxu1 %v15774_v47  ;;  %1637 = vmatprep.subr.bf16.mxu0 %v15776_v48 }
 0x242   :  { %1597 = vmatpush1.bf16.msra.mxu1 %v15780_v49  ;;  %1638 = vmatpush1.bf16.msra.mxu0 %v15782_v50 }
 0x243   :  { %1598 = vmatprep.subr.bf16.mxu1 %v15786_v51  ;;  %1639 = vmatprep.subr.bf16.mxu0 %v15788_v52 }
 0x246   :  { %1599 = vmatpush1.bf16.msra.mxu1 %v15792_v53  ;;  %1640 = vmatpush1.bf16.msra.mxu0 %v15794_v54 }
 0x247   :  { %1600 = vmatprep.subr.bf16.mxu1 %v15798_v55  ;;  %1641 = vmatprep.subr.bf16.mxu0 %v15800_v56  ;;  %v18669_v56 = vmov 0  }
 0x24a   :  { %1601 = vmatpush1.bf16.msra.mxu1 %v15804_v57  ;;  %1642 = vmatpush1.bf16.msra.mxu0 %v15806_v58 }
 0x24b   :  { %1602 = vmatprep.subr.bf16.mxu1 %v15810_v59  ;;  %1643 = vmatprep.subr.bf16.mxu0 %v15812_v60 }
 0x24e   :  { %1603 = vmatpush1.bf16.msra.mxu1 %v15816_v5  ;;  %1644 = vmatpush1.bf16.msra.mxu0 %v15818_v0 }
 0x24f   :  { %1923 = vmatprep.subr.bf16.mxu1 %v15610_v62  ;;  %1964 = vmatprep.subr.bf16.mxu0 %v15612_v63  ;;  %v18670_v62 = vlaneseq }
 0x251   :  { %1621 = vmatmul.mubr.bf16.vlgmr.msra.gmra.mrb[36].mxu1 %v18669_v56  ;;  %1662 = vmatmul.mubr.bf16.vlgmr.msra.gmra.mrb[44].mxu0 %v18669_v56  ;;  %v15863_v63 = vshrl.u32 %v18670_v62, 7 }
 0x252   :  { %1924 = vmatpush1.bf16.msra.mxu1 %v15616_v1  ;;  %1965 = vmatpush1.bf16.msra.mxu0 %v15618_v2 }
 0x253   :  { %1925 = vmatprep.subr.bf16.mxu1 %v15622_v3  ;;  %1966 = vmatprep.subr.bf16.mxu0 %v15624_v4  ;;  %18671 = vst [vmem:[#allocation26_spill] sm:$0xff] %v15863_v63  ;;  %v18610_v1 = vsub.s32 0, %v15863_v63  ;;  %v18609_v2 = vsub.s32 2, %v15863_v63  ;;  %v15870_v3 = vld [vmem:[%s18595_s5] sm:$0xff]  ;;  %v18608_v4 = vsub.s32 1, %v15863_v63 }
 0x254   :  { %1955 = vmatprep.mubr.bf16.mxu1 %v18669_v56  ;;  %1996 = vmatprep.mubr.bf16.mxu0 %v18669_v56 }
 0x256   :  { %1926 = vmatpush1.bf16.msra.mxu1 %v15630_v6  ;;  %1967 = vmatpush1.bf16.msra.mxu0 %v15632_v7  ;;  %v18607_v6 = vsub.s32 3, %v15863_v63 }
 0x257   :  { %1927 = vmatprep.subr.bf16.mxu1 %v15636_v8  ;;  %1968 = vmatprep.subr.bf16.mxu0 %v15638_v9  ;;  %v15881_v9 = vrot.slane %v15870_v3, %v18610_v1 }
 0x25a   :  { %1928 = vmatpush1.bf16.msra.mxu1 %v15644_v61  ;;  %1969 = vmatpush1.bf16.msra.mxu0 %v15646_v11  ;;  %v15886_v61 = vrot.slane %v15870_v3, %v18609_v2 }
 0x25b   :  { %1929 = vmatprep.subr.bf16.mxu1 %v15650_v12  ;;  %1970 = vmatprep.subr.bf16.mxu0 %v15652_v13  ;;  %v15895_v13 = vrot.slane %v15870_v3, %v18608_v4 }
 0x25e   :  { %1930 = vmatpush1.bf16.msra.mxu1 %v15658_v14  ;;  %1971 = vmatpush1.bf16.msra.mxu0 %v15660_v15  ;;  %v15900_v14 = vrot.slane %v15870_v3, %v18607_v6 }
 0x25f   :  { %1931 = vmatprep.subr.bf16.mxu1 %v15664_v16  ;;  %1972 = vmatprep.subr.bf16.mxu0 %v15666_v17 }
 0x262   :  { %1932 = vmatpush1.bf16.msra.mxu1 %v15672_v10  ;;  %1973 = vmatpush1.bf16.msra.mxu0 %v15674_v18 }
 0x263   :  { %1933 = vmatprep.subr.bf16.mxu1 %v15678_v19  ;;  %1974 = vmatprep.subr.bf16.mxu0 %v15680_v20 }
 0x266   :  { %1934 = vmatpush1.bf16.msra.mxu1 %v15686_v22  ;;  %1975 = vmatpush1.bf16.msra.mxu0 %v15688_v23 }
 0x267   :  { %1935 = vmatprep.subr.bf16.mxu1 %v15692_v24  ;;  %1976 = vmatprep.subr.bf16.mxu0 %v15694_v25 }
 0x26a   :  { %1936 = vmatpush1.bf16.msra.mxu1 %v15700_v21  ;;  %1977 = vmatpush1.bf16.msra.mxu0 %v15702_v26 }
 0x26b   :  { %1937 = vmatprep.subr.bf16.mxu1 %v15706_v27  ;;  %1978 = vmatprep.subr.bf16.mxu0 %v15708_v28 }
 0x26e   :  { %1938 = vmatpush1.bf16.msra.mxu1 %v15714_v29  ;;  %1979 = vmatpush1.bf16.msra.mxu0 %v15716_v30 }
 0x26f   :  { %2207 = vmatprep.subr.bf16.mxu1 %v15720_v31  ;;  %2248 = vmatprep.subr.bf16.mxu0 %v15722_v33 }
 0x2c4   :  { %v15874_v7 = vpop.f32.mrb[0].mxu1  ;;  %v15876_v8 = vpop.f32.mrb[8].mxu0 }
 0x2c5   :  { %v15888_v11 = vpop.f32.mrb[1].mxu1  ;;  %v15890_v12 = vpop.f32.mrb[9].mxu0 }
 0x2c6   :  { %v791_v15 = vpop.f32.mrb[2].mxu1  ;;  %v864_v16 = vpop.f32.mrb[10].mxu0 }
 0x2c7   :  { %v15903_v17 = vadd.f32 %v791_v15, %v15881_v9  ;;  %v15906_v10 = vadd.f32 %v864_v16, %v15886_v61  ;;  %v793_v18 = vpop.f32.mrb[3].mxu1  ;;  %v866_v19 = vpop.f32.mrb[11].mxu0 }
 0x2c8   :  { %v15909_v20 = vadd.f32 %v793_v18, %v15895_v13  ;;  %v15912_v22 = vadd.f32 %v866_v19, %v15900_v14 }
 0x2ca   :  { %18672 = vst [vmem:[#allocation27_spill] sm:$0xff] %v15912_v22 }
 0x2cc   :  { %v797_v23 = vpop.f32.mrb[4].mxu1  ;;  %v870_v24 = vpop.f32.mrb[12].mxu0 }
 0x2cd   :  { %v15915_v25 = vadd.f32 %v797_v23, %v15881_v9  ;;  %v15918_v21 = vadd.f32 %v870_v24, %v15886_v61  ;;  %v799_v26 = vpop.f32.mrb[5].mxu1  ;;  %v872_v27 = vpop.f32.mrb[13].mxu0 }
 0x2ce   :  { %v15921_v28 = vadd.f32 %v799_v26, %v15895_v13  ;;  %v15924_v29 = vadd.f32 %v872_v27, %v15900_v14  ;;  %v801_v30 = vpop.f32.mrb[6].mxu1  ;;  %v874_v31 = vpop.f32.mrb[14].mxu0 }
 0x2cf   :  { %18673 = vst [vmem:[#allocation28_spill] sm:$0xff] %v15915_v25  ;;  %18674 = vst [vmem:[#allocation29_spill] sm:$0xff] %v15918_v21  ;;  %v15927_v33 = vadd.f32 %v801_v30, %v15881_v9  ;;  %v15930_v62 = vadd.f32 %v874_v31, %v15886_v61  ;;  %v803_v15 = vpop.f32.mrb[7].mxu1  ;;  %v876_v16 = vpop.f32.mrb[15].mxu0 }
 0x2d0   :  { %18675 = vst [vmem:[#allocation30_spill] sm:$0xff] %v15921_v28  ;;  %18676 = vst [vmem:[#allocation31_spill] sm:$0xff] %v15924_v29  ;;  %v15933_v18 = vadd.f32 %v803_v15, %v15895_v13  ;;  %v15936_v19 = vadd.f32 %v876_v16, %v15900_v14 }
 0x2d1   :  { %18677 = vst [vmem:[#allocation32_spill] sm:$0xff] %v15927_v33  ;;  %18678 = vst [vmem:[#allocation33_spill] sm:$0xff] %v15930_v62 }
 0x2d2   :  { %18679 = vst [vmem:[#allocation34_spill] sm:$0xff] %v15933_v18  ;;  %18680 = vst [vmem:[#allocation35_spill] sm:$0xff] %v15936_v19 }
 0x2d4   :  { %v807_v23 = vpop.f32.mrb[8].mxu1  ;;  %v880_v24 = vpop.f32.mrb[16].mxu0 }
 0x2d5   :  { %v15939_v26 = vadd.f32 %v807_v23, %v15881_v9  ;;  %v15942_v27 = vadd.f32 %v880_v24, %v15886_v61  ;;  %v809_v30 = vpop.f32.mrb[9].mxu1  ;;  %v882_v6 = vpop.f32.mrb[17].mxu0 }
 0x2d6   :  { %v15945_v31 = vadd.f32 %v809_v30, %v15895_v13  ;;  %v15948_v4 = vadd.f32 %v882_v6, %v15900_v14  ;;  %v811_v15 = vpop.f32.mrb[10].mxu1  ;;  %v884_v2 = vpop.f32.mrb[18].mxu0 }
 0x2d7   :  { %18681 = vst [vmem:[#allocation36_spill] sm:$0xff] %v15939_v26  ;;  %18682 = vst [vmem:[#allocation37_spill] sm:$0xff] %v15942_v27  ;;  %v15951_v16 = vadd.f32 %v811_v15, %v15881_v9  ;;  %v15954_v1 = vadd.f32 %v884_v2, %v15886_v61  ;;  %v813_v23 = vpop.f32.mrb[11].mxu1  ;;  %v886_v26 = vpop.f32.mrb[19].mxu0 }
 0x2d8   :  { %18683 = vst [vmem:[#allocation38_spill] sm:$0xff] %v15945_v31  ;;  %18684 = vst [vmem:[#allocation39_spill] sm:$0xff] %v15948_v4  ;;  %v15957_v24 = vadd.f32 %v813_v23, %v15895_v13  ;;  %v15960_v27 = vadd.f32 %v886_v26, %v15900_v14 }
 0x2d9   :  { %18685 = vst [vmem:[#allocation40_spill] sm:$0xff] %v15951_v16  ;;  %18686 = vst [vmem:[#allocation41_spill] sm:$0xff] %v15954_v1 }
 0x2da   :  { %18687 = vst [vmem:[#allocation42_spill] sm:$0xff] %v15957_v24  ;;  %18688 = vst [vmem:[#allocation43_spill] sm:$0xff] %v15960_v27 }
 0x2dc   :  { %v817_v30 = vpop.f32.mrb[12].mxu1  ;;  %v890_v31 = vpop.f32.mrb[20].mxu0 }
 0x2dd   :  { %v15963_v6 = vadd.f32 %v817_v30, %v15881_v9  ;;  %v15966_v4 = vadd.f32 %v890_v31, %v15886_v61  ;;  %v819_v15 = vpop.f32.mrb[13].mxu1  ;;  %v892_v16 = vpop.f32.mrb[21].mxu0 }
 0x2de   :  { %v15971_v23 = vadd.f32 %v819_v15, %v15895_v13  ;;  %v15974_v26 = vadd.f32 %v892_v16, %v15900_v14  ;;  %v821_v27 = vpop.f32.mrb[14].mxu1  ;;  %v894_v24 = vpop.f32.mrb[22].mxu0 }
 0x2df   :  { %18689 = vst [vmem:[#allocation44_spill] sm:$0xff] %v15963_v6  ;;  %18690 = vst [vmem:[#allocation45_spill] sm:$0xff] %v15966_v4  ;;  %v15979_v31 = vadd.f32 %v821_v27, %v15881_v9  ;;  %v15982_v4 = vadd.f32 %v894_v24, %v15886_v61  ;;  %v823_v2 = vpop.f32.mrb[15].mxu1  ;;  %v896_v1 = vpop.f32.mrb[23].mxu0  ;;  %v18698_v6 = vsub.s32 6, %v15863_v63  ;;  %v18699_v24 = vsub.s32 5, %v15863_v63 }
 0x2e0   :  { %18691 = vst [vmem:[#allocation46_spill] sm:$0xff] %v15971_v23  ;;  %18692 = vst [vmem:[#allocation47_spill] sm:$0xff] %v15974_v26  ;;  %v15985_v15 = vadd.f32 %v823_v2, %v15895_v13  ;;  %v15988_v16 = vadd.f32 %v896_v1, %v15900_v14  ;;  %v18697_v26 = vsub.s32 4, %v15863_v63  ;;  %v18700_v2 = vsub.s32 7, %v15863_v63 }
 0x2e1   :  { %18693 = vst [vmem:[#allocation48_spill] sm:$0xff] %v15979_v31  ;;  %18694 = vst [vmem:[#allocation49_spill] sm:$0xff] %v15982_v4  ;;  %v15998_v27 = vrot.slane %v15870_v3, %v18698_v6  ;;  %v16003_v4 = vrot.slane %v15870_v3, %v18699_v24 }
 0x2e2   :  { %18695 = vst [vmem:[#allocation50_spill] sm:$0xff] %v15985_v15  ;;  %18696 = vst [vmem:[#allocation51_spill] sm:$0xff] %v15988_v16  ;;  %v15993_v30 = vrot.slane %v15870_v3, %v18697_v26  ;;  %v16008_v1 = vrot.slane %v15870_v3, %v18700_v2 }
 0x2e4   :  { %v933_v16 = vpop.f32.mrb[16].mxu1  ;;  %v1006_v15 = vpop.f32.mrb[24].mxu0 }
 0x2e5   :  { %v16011_v26 = vadd.f32 %v933_v16, %v15993_v30  ;;  %v16014_v31 = vadd.f32 %v1006_v15, %v15998_v27  ;;  %v935_v6 = vpop.f32.mrb[17].mxu1  ;;  %v1008_v23 = vpop.f32.mrb[25].mxu0 }
 0x2e6   :  { %v16017_v19 = vadd.f32 %v935_v6, %v16003_v4  ;;  %v16020_v24 = vadd.f32 %v1008_v23, %v16008_v1  ;;  %v937_v63 = vpop.f32.mrb[18].mxu1  ;;  %v1010_v18 = vpop.f32.mrb[26].mxu0 }
 0x2e7   :  { %18701 = vst [vmem:[#allocation52_spill] sm:$0xff] %v16011_v26  ;;  %18702 = vst [vmem:[#allocation53_spill] sm:$0xff] %v16014_v31  ;;  %v16023_v3 = vadd.f32 %v937_v63, %v15993_v30  ;;  %v16026_v2 = vadd.f32 %v1010_v18, %v15998_v27  ;;  %v939_v16 = vpop.f32.mrb[19].mxu1  ;;  %v1012_v26 = vpop.f32.mrb[27].mxu0 }
 0x2e8   :  { %18703 = vst [vmem:[#allocation54_spill] sm:$0xff] %v16017_v19  ;;  %18704 = vst [vmem:[#allocation55_spill] sm:$0xff] %v16020_v24  ;;  %v16029_v15 = vadd.f32 %v939_v16, %v16003_v4  ;;  %v16032_v31 = vadd.f32 %v1012_v26, %v16008_v1 }
 0x2e9   :  { %18705 = vst [vmem:[#allocation56_spill] sm:$0xff] %v16023_v3  ;;  %18706 = vst [vmem:[#allocation57_spill] sm:$0xff] %v16026_v2 }
 0x2ea   :  { %18707 = vst [vmem:[#allocation58_spill] sm:$0xff] %v16029_v15  ;;  %18708 = vst [vmem:[#allocation59_spill] sm:$0xff] %v16032_v31 }
 0x2ec   :  { %v943_v6 = vpop.f32.mrb[20].mxu1  ;;  %v1016_v19 = vpop.f32.mrb[28].mxu0 }
 0x2ed   :  { %v16035_v23 = vadd.f32 %v943_v6, %v15993_v30  ;;  %v16038_v24 = vadd.f32 %v1016_v19, %v15998_v27  ;;  %v945_v63 = vpop.f32.mrb[21].mxu1  ;;  %v1018_v3 = vpop.f32.mrb[29].mxu0 }
 0x2ee   :  { %v16041_v18 = vadd.f32 %v945_v63, %v16003_v4  ;;  %v16044_v2 = vadd.f32 %v1018_v3, %v16008_v1  ;;  %v947_v16 = vpop.f32.mrb[22].mxu1  ;;  %v1020_v15 = vpop.f32.mrb[30].mxu0 }
 0x2ef   :  { %18709 = vst [vmem:[#allocation60_spill] sm:$0xff] %v16035_v23  ;;  %18710 = vst [vmem:[#allocation61_spill] sm:$0xff] %v16038_v24  ;;  %v16047_v26 = vadd.f32 %v947_v16, %v15993_v30  ;;  %v16050_v31 = vadd.f32 %v1020_v15, %v15998_v27  ;;  %v949_v6 = vpop.f32.mrb[23].mxu1  ;;  %v1022_v23 = vpop.f32.mrb[31].mxu0 }
 0x2f0   :  { %18711 = vst [vmem:[#allocation62_spill] sm:$0xff] %v16041_v18  ;;  %18712 = vst [vmem:[#allocation63_spill] sm:$0xff] %v16044_v2  ;;  %v16053_v19 = vadd.f32 %v949_v6, %v16003_v4  ;;  %v16056_v24 = vadd.f32 %v1022_v23, %v16008_v1 }
 0x2f1   :  { %18713 = vst [vmem:[#allocation64_spill] sm:$0xff] %v16047_v26  ;;  %18714 = vst [vmem:[#allocation65_spill] sm:$0xff] %v16050_v31 }
 0x2f2   :  { %18715 = vst [vmem:[#allocation66_spill] sm:$0xff] %v16053_v19  ;;  %18716 = vst [vmem:[#allocation67_spill] sm:$0xff] %v16056_v24 }
 0x2f4   :  { %v953_v63 = vpop.f32.mrb[24].mxu1  ;;  %v1026_v18 = vpop.f32.mrb[32].mxu0 }
 0x2f5   :  { %v16059_v3 = vadd.f32 %v953_v63, %v15993_v30  ;;  %v16062_v2 = vadd.f32 %v1026_v18, %v15998_v27  ;;  %v955_v16 = vpop.f32.mrb[25].mxu1  ;;  %v1028_v26 = vpop.f32.mrb[33].mxu0 }
 0x2f6   :  { %v16065_v15 = vadd.f32 %v955_v16, %v16003_v4  ;;  %v16068_v31 = vadd.f32 %v1028_v26, %v16008_v1  ;;  %v957_v6 = vpop.f32.mrb[26].mxu1  ;;  %v1030_v19 = vpop.f32.mrb[34].mxu0 }
 0x2f7   :  { %18717 = vst [vmem:[#allocation68_spill] sm:$0xff] %v16059_v3  ;;  %18718 = vst [vmem:[#allocation69_spill] sm:$0xff] %v16062_v2  ;;  %v16071_v23 = vadd.f32 %v957_v6, %v15993_v30  ;;  %v16074_v24 = vadd.f32 %v1030_v19, %v15998_v27  ;;  %v959_v63 = vpop.f32.mrb[27].mxu1  ;;  %v1032_v3 = vpop.f32.mrb[35].mxu0 }
 0x2f8   :  { %18719 = vst [vmem:[#allocation70_spill] sm:$0xff] %v16065_v15  ;;  %18720 = vst [vmem:[#allocation71_spill] sm:$0xff] %v16068_v31  ;;  %v16077_v18 = vadd.f32 %v959_v63, %v16003_v4  ;;  %v16080_v2 = vadd.f32 %v1032_v3, %v16008_v1 }
 0x2f9   :  { %18721 = vst [vmem:[#allocation72_spill] sm:$0xff] %v16071_v23  ;;  %18722 = vst [vmem:[#allocation73_spill] sm:$0xff] %v16074_v24  ;;  %v788_v24 = vadd.f32 %v15874_v7, %v15881_v9 }
 0x2fa   :  { %18723 = vst [vmem:[#allocation74_spill] sm:$0xff] %v16077_v18  ;;  %18724 = vst [vmem:[#allocation75_spill] sm:$0xff] %v16080_v2 }
 0x2fc   :  { %v963_v16 = vpop.f32.mrb[28].mxu1  ;;  %v1036_v15 = vpop.f32.mrb[36].mxu0 }
 0x2fd   :  { %v16083_v26 = vadd.f32 %v963_v16, %v15993_v30  ;;  %v16086_v31 = vadd.f32 %v1036_v15, %v15998_v27  ;;  %v965_v6 = vpop.f32.mrb[29].mxu1  ;;  %v1038_v62 = vpop.f32.mrb[37].mxu0  ;;  %v861_v16 = vadd.f32 %v15876_v8, %v15886_v61  ;;  %v790_v15 = vadd.f32 %v15888_v11, %v15895_v13 }
 0x2fe   :  { %v16089_v19 = vadd.f32 %v965_v6, %v16003_v4  ;;  %v16092_v33 = vadd.f32 %v1038_v62, %v16008_v1  ;;  %v967_v63 = vpop.f32.mrb[30].mxu1  ;;  %v1040_v18 = vpop.f32.mrb[38].mxu0  ;;  %v863_v6 = vadd.f32 %v15890_v12, %v15900_v14 }
 0x2ff   :  { %18725 = vst [vmem:[#allocation76_spill] sm:$0xff] %v16083_v26  ;;  %18726 = vst [vmem:[#allocation77_spill] sm:$0xff] %v16086_v31  ;;  %v969_v3 = vpop.f32.mrb[31].mxu1  ;;  %v1042_v2 = vpop.f32.mrb[39].mxu0 }
 0x300   :  { %18727 = vst [vmem:[#allocation78_spill] sm:$0xff] %v16089_v19  ;;  %18728 = vst [vmem:[#allocation79_spill] sm:$0xff] %v16092_v33 }
 0x304   :  { %v1339_v23 = vpop.f32.mrb[32].mxu1  ;;  %v1380_v29 = vpop.f32.mrb[40].mxu0 }
 0x305   :  { %v1387_v62 = vadd.f32 %v1339_v23, %v788_v24  ;;  %v1389_v28 = vadd.f32 %v1380_v29, %v861_v16  ;;  %v1341_v21 = vpop.f32.mrb[33].mxu1  ;;  %v1382_v25 = vpop.f32.mrb[41].mxu0  ;;  %v1043_v16 = vadd.f32 %v1042_v2, %v16008_v1 }
 0x306   :  { %v1388_v33 = vadd.f32 %v1341_v21, %v790_v15  ;;  %v1390_v19 = vadd.f32 %v1382_v25, %v863_v6  ;;  %v1343_v31 = vpop.f32.mrb[34].mxu1  ;;  %v1384_v26 = vpop.f32.mrb[42].mxu0 }
 0x307   :  { %v12500_v7 = vmul.f32 -1.442695, %v1387_v62  ;;  %v1344_v9 = vpop.f32.mrb[35].mxu1  ;;  %v1385_v22 = vpop.f32.mrb[43].mxu0 }
 0x308   :  { %v12501_v8 = vmul.f32 -1.442695, %v1388_v33  ;;  %v12502_v61 = vmul.f32 -1.442695, %v1390_v19  ;;  %v968_v22 = vadd.f32 %v967_v63, %v15993_v30  ;;  %v1041_v33 = vadd.f32 %v1040_v18, %v15998_v27 }
 0x309   :  { %14628 = vpow2.f32 %v12500_v7  ;;  %v970_v19 = vadd.f32 %v969_v3, %v16003_v4 }
 0x30a   :  { %14630 = vpow2.f32 %v12501_v8 }
 0x30b   :  { %14632 = vpow2.f32 %v12502_v61 }
 0x30c   :  { %14634 = vtanh.f32 %v1389_v28 }
 0x313   :  { %v14629_v11 = vpop.eup %14628 }
 0x314   :  { %v14631_v13 = vpop.eup %14630  ;;  %v1677_v12 = vadd.f32 1.0, %v14629_v11 }
 0x315   :  { %v1683_v14 = vadd.f32 1.0, %v14631_v13  ;;  %v14633_v29 = vpop.eup %14632 }
 0x316   :  { %14636 = vrcp.f32 %v1677_v12  ;;  %v14635_v21 = vpop.eup %14634  ;;  %v1690_v23 = vadd.f32 1.0, %v14633_v29 }
 0x317   :  { %14638 = vrcp.f32 %v1683_v14 }
 0x318   :  { %14640 = vrcp.f32 %v1690_v23 }
 0x320   :  { %v14637_v25 = vpop.eup %14636 }
 0x321   :  { %v14639_v31 = vpop.eup %14638  ;;  %v1694_v24 = vmul.f32 %v14637_v25, %v14635_v21 }
 0x322   :  { %v1693_v26 = vmul.f32 0.0, %v14639_v31  ;;  %v14641_v1 = vpop.eup %14640 }
 0x324   :  { %v16106_v15 = vadd.f32 %v1694_v24, %v1693_v26  ;;  %v1622_v28 = vpop.f32.mrb[36].mxu1  ;;  %v1663_v6 = vpop.f32.mrb[44].mxu0  ;;  %v16206_v26 = vld [vmem:[#allocation9 + $0x80] ss:$16 sps:$4 sm:$0xff]  }
 0x325   :  { %v1670_v62 = vadd.f32 %v1622_v28, %v968_v22  ;;  %v1672_v7 = vadd.f32 %v1663_v6, %v1041_v33  ;;  %v1624_v9 = vpop.f32.mrb[37].mxu1  ;;  %v1665_v8 = vpop.f32.mrb[45].mxu0  ;;  %v16208_v22 = vld [vmem:[#allocation9 + $0x88] ss:$16 sps:$4 sm:$0xff]   ;;  %v16214_v33 = vld [vmem:[#allocation9 + $0xa4] ss:$16 sps:$4 sm:$0xff]  }
 0x326   :  { %14642 = vtanh.f32 %v16106_v15  ;;  %v1671_v61 = vadd.f32 %v1624_v9, %v970_v19  ;;  %v1673_v11 = vadd.f32 %v1665_v8, %v1043_v16  ;;  %v1626_v30 = vpop.f32.mrb[38].mxu1  ;;  %v1667_v63 = vpop.f32.mrb[46].mxu0  ;;  %v16216_v19 = vld [vmem:[#allocation9 + $0xac] ss:$16 sps:$4 sm:$0xff]   ;;  %v16218_v16 = vld [vmem:[#allocation9 + $0xa0] ss:$16 sps:$4 sm:$0xff]  }
 0x327   :  { %v12503_v27 = vmul.f32 -1.442695, %v1670_v62  ;;  %v1627_v18 = vpop.f32.mrb[39].mxu1  ;;  %v1668_v4 = vpop.f32.mrb[47].mxu0  ;;  %v16220_v28 = vld [vmem:[#allocation9 + $0xa8] ss:$16 sps:$4 sm:$0xff]  }
 0x328   :  { %v12504_v3 = vmul.f32 -1.442695, %v1671_v61  ;;  %v12505_v13 = vmul.f32 -1.442695, %v1673_v11  ;;  %v16226_v6 = vld [vmem:[#allocation9 + $0xc4] ss:$16 sps:$4 sm:$0xff]  }
 0x329   :  { %14644 = vpow2.f32 %v12503_v27  ;;  %v16228_v62 = vld [vmem:[#allocation9 + $0xcc] ss:$16 sps:$4 sm:$0xff]   ;;  %v16232_v9 = vld [vmem:[#allocation9 + $0xc8] ss:$16 sps:$4 sm:$0xff]   ;;  %v16238_v8 = vld [vmem:[#allocation9 + $0xe4] ss:$16 sps:$4 sm:$0xff]  }
 0x32a   :  { %14646 = vpow2.f32 %v12504_v3  ;;  %v16240_v61 = vld [vmem:[#allocation9 + $0xec] ss:$16 sps:$4 sm:$0xff]   ;;  %v16242_v11 = vld [vmem:[#allocation9 + $0xe0] ss:$16 sps:$4 sm:$0xff]   ;;  %v16244_v30 = vld [vmem:[#allocation9 + $0xe8] ss:$16 sps:$4 sm:$0xff]  }
 0x32b   :  { %14648 = vpow2.f32 %v12505_v13  ;;  %v16250_v63 = vld [vmem:[#allocation10 + $0x4] ss:$16 sps:$4 sm:$0xff]   ;;  %v16252_v27 = vld [vmem:[#allocation10 + $0xc] ss:$16 sps:$4 sm:$0xff]  }
 0x32c   :  { %14650 = vtanh.f32 %v1672_v7  ;;  %v16230_v7 = vld [vmem:[#allocation9 + $0xc0] ss:$16 sps:$4 sm:$0xff]  }
 0x330   :  { %v14643_v2 = vpop.eup %14642 }
 0x331   :  { %v16109_v12 = vmul.f32 %v14643_v2, %v14641_v1 }
 0x333   :  { %18729 = vst [vmem:[#allocation80_spill] sm:$0xff] %v16109_v12  ;;  %v14645_v14 = vpop.eup %14644  ;;  %v1730_v29 = vpack.c.bf16 %v16109_v12, %v16109_v12  ;;  %v16329_v12 = vld [vmem:[#allocation10 + $0xac] ss:$16 sps:$4 sm:$0xff]  }
 0x334   :  { %v14647_v21 = vpop.eup %14646  ;;  %v1701_v25 = vadd.f32 1.0, %v14645_v14 }
 0x335   :  { %v1707_v31 = vadd.f32 1.0, %v14647_v21  ;;  %1956 = vmatmul.mubr.bf16.vlgmr.msra.gmra.mrb[40].mxu1 %v1730_v29  ;;  %1997 = vmatmul.mubr.bf16.vlgmr.msra.gmra.mrb[48].mxu0 %v1730_v29  ;;  %v18732_v29 = vld [vmem:[#allocation27_spill] sm:$0xff] }
 0x336   :  { %14652 = vrcp.f32 %v1701_v25  ;;  %2208 = vmatpush1.bf16.msra.mxu1 %v15728_v32  ;;  %2249 = vmatpush1.bf16.msra.mxu0 %v15730_v34  ;;  %v14649_v32 = vpop.eup %14648 }
 0x337   :  { %14654 = vrcp.f32 %v1707_v31  ;;  %2209 = vmatprep.subr.bf16.mxu1 %v15734_v35  ;;  %2250 = vmatprep.subr.bf16.mxu0 %v15736_v36  ;;  %v14651_v34 = vpop.eup %14650 }
 0x338   :  { %2239 = vmatprep.mubr.bf16.mxu1 %v18669_v56  ;;  %2280 = vmatprep.mubr.bf16.mxu0 %v18669_v56 }
 0x33a   :  { %2210 = vmatpush1.bf16.msra.mxu1 %v15742_v37  ;;  %2251 = vmatpush1.bf16.msra.mxu0 %v15744_v38  ;;  %v1714_v37 = vadd.f32 1.0, %v14649_v32 }
 0x33b   :  { %2211 = vmatprep.subr.bf16.mxu1 %v15748_v39  ;;  %2252 = vmatprep.subr.bf16.mxu0 %v15750_v40  ;;  %v18730_v39 = vld [vmem:[#allocation25_spill] sm:$0xff] }
 0x33c   :  { %14656 = vrcp.f32 %v1714_v37 }
 0x33e   :  { %2212 = vmatpush1.bf16.msra.mxu1 %v15756_v41  ;;  %2253 = vmatpush1.bf16.msra.mxu0 %v15758_v42 }
 0x33f   :  { %2213 = vmatprep.subr.bf16.mxu1 %v15762_v43  ;;  %2254 = vmatprep.subr.bf16.mxu0 %v15764_v44  ;;  %v16154_v44 = vld [vmem:[#allocation9 + $0x4] ss:$16 sps:$4 sm:$0xff]  }
 0x340   :  { %v14653_v35 = vpop.eup %14652 }
 0x341   :  { %v14655_v36 = vpop.eup %14654  ;;  %v1718_v24 = vmul.f32 %v14653_v35, %v14651_v34 }
 0x342   :  { %v1717_v23 = vmul.f32 0.0, %v14655_v36  ;;  %2214 = vmatpush1.bf16.msra.mxu1 %v15768_v45  ;;  %2255 = vmatpush1.bf16.msra.mxu0 %v15770_v46  ;;  %v16156_v45 = vld [vmem:[#allocation9 + $0xc] ss:$16 sps:$4 sm:$0xff]   ;;  %v16158_v46 = vld [vmem:[#allocation9] ss:$16 sps:$4 sm:$0xff]  }
 0x343   :  { %2215 = vmatprep.subr.bf16.mxu1 %v15774_v47  ;;  %2256 = vmatprep.subr.bf16.mxu0 %v15776_v48  ;;  %v16160_v47 = vld [vmem:[#allocation9 + $0x8] ss:$16 sps:$4 sm:$0xff]   ;;  %v16170_v48 = vld [vmem:[#allocation9 + $0x20] ss:$16 sps:$4 sm:$0xff]  }
 0x344   :  { %v16131_v38 = vadd.f32 %v1718_v24, %v1717_v23 }
 0x346   :  { %14658 = vtanh.f32 %v16131_v38  ;;  %2216 = vmatpush1.bf16.msra.mxu1 %v15780_v49  ;;  %2257 = vmatpush1.bf16.msra.mxu0 %v15782_v50  ;;  %v14657_v40 = vpop.eup %14656  ;;  %v16172_v49 = vld [vmem:[#allocation9 + $0x28] ss:$16 sps:$4 sm:$0xff]   ;;  %v16178_v50 = vld [vmem:[#allocation9 + $0x44] ss:$16 sps:$4 sm:$0xff]  }
 0x347   :  { %2217 = vmatprep.subr.bf16.mxu1 %v15786_v51  ;;  %2258 = vmatprep.subr.bf16.mxu0 %v15788_v52  ;;  %v16180_v51 = vld [vmem:[#allocation9 + $0x4c] ss:$16 sps:$4 sm:$0xff]   ;;  %v16182_v52 = vld [vmem:[#allocation9 + $0x40] ss:$16 sps:$4 sm:$0xff]  }
 0x34a   :  { %2218 = vmatpush1.bf16.msra.mxu1 %v15792_v53  ;;  %2259 = vmatpush1.bf16.msra.mxu0 %v15794_v54  ;;  %v16184_v53 = vld [vmem:[#allocation9 + $0x48] ss:$16 sps:$4 sm:$0xff]   ;;  %v16190_v54 = vld [vmem:[#allocation9 + $0x64] ss:$16 sps:$4 sm:$0xff]  }
 0x34b   :  { %2219 = vmatprep.subr.bf16.mxu1 %v15798_v55  ;;  %2260 = vmatprep.subr.bf16.mxu0 %v18730_v39  ;;  %v16192_v55 = vld [vmem:[#allocation9 + $0x6c] ss:$16 sps:$4 sm:$0xff]  }
 0x34e   :  { %2220 = vmatpush1.bf16.msra.mxu1 %v15804_v57  ;;  %2261 = vmatpush1.bf16.msra.mxu0 %v15806_v58  ;;  %v16194_v57 = vld [vmem:[#allocation9 + $0x60] ss:$16 sps:$4 sm:$0xff]   ;;  %v16196_v58 = vld [vmem:[#allocation9 + $0x68] ss:$16 sps:$4 sm:$0xff]  }
 0x34f   :  { %2221 = vmatprep.subr.bf16.mxu1 %v15810_v59  ;;  %2262 = vmatprep.subr.bf16.mxu0 %v15812_v60  ;;  %v16202_v59 = vld [vmem:[#allocation9 + $0x84] ss:$16 sps:$4 sm:$0xff]   ;;  %v16204_v60 = vld [vmem:[#allocation9 + $0x8c] ss:$16 sps:$4 sm:$0xff]  }
 0x350   :  { %v14659_v41 = vpop.eup %14658 }
 0x351   :  { %v16146_v42 = vmul.f32 %v14659_v41, %v14657_v40 }
 0x352   :  { %2222 = vmatpush1.bf16.msra.mxu1 %v15816_v5  ;;  %2263 = vmatpush1.bf16.msra.mxu0 %v15818_v0  ;;  %v16166_v0 = vld [vmem:[#allocation9 + $0x24] ss:$16 sps:$4 sm:$0xff]   ;;  %v16168_v5 = vld [vmem:[#allocation9 + $0x2c] ss:$16 sps:$4 sm:$0xff]  }
 0x353   :  { %18731 = vst [vmem:[#allocation25_spill] sm:$0xff] %v16146_v42  ;;  %v2014_v43 = vpack.c.bf16 %v16146_v42, %v16146_v42  ;;  %2543 = vmatprep.subr.bf16.mxu1 %v16154_v44  ;;  %2584 = vmatprep.subr.bf16.mxu0 %v16156_v45  ;;  %v16323_v42 = vld [vmem:[#allocation10 + $0x88] ss:$16 sps:$4 sm:$0xff]  }
 0x355   :  { %2240 = vmatmul.mubr.bf16.vlgmr.msra.gmra.mrb[44].mxu1 %v2014_v43  ;;  %2281 = vmatmul.mubr.bf16.vlgmr.msra.gmra.mrb[52].mxu0 %v2014_v43 }
 0x356   :  { %2575 = vmatprep.mubr.bf16.mxu1 %v18669_v56  ;;  %2616 = vmatprep.mubr.bf16.mxu0 %v18669_v56 }
 0x357   :  { %2544 = vmatpush1.bf16.msra.mxu1 %v16158_v46  ;;  %2585 = vmatpush1.bf16.msra.mxu0 %v16160_v47 }
 0x358   :  { %2545 = vmatprep.subr.bf16.mxu1 %v16166_v0  ;;  %2586 = vmatprep.subr.bf16.mxu0 %v16168_v5 }
 0x35b   :  { %2546 = vmatpush1.bf16.msra.mxu1 %v16170_v48  ;;  %2587 = vmatpush1.bf16.msra.mxu0 %v16172_v49 }
 0x35c   :  { %2547 = vmatprep.subr.bf16.mxu1 %v16178_v50  ;;  %2588 = vmatprep.subr.bf16.mxu0 %v16180_v51 }
 0x35f   :  { %2548 = vmatpush1.bf16.msra.mxu1 %v16182_v52  ;;  %2589 = vmatpush1.bf16.msra.mxu0 %v16184_v53 }
 0x360   :  { %2549 = vmatprep.subr.bf16.mxu1 %v16190_v54  ;;  %2590 = vmatprep.subr.bf16.mxu0 %v16192_v55 }
 0x363   :  { %2550 = vmatpush1.bf16.msra.mxu1 %v16194_v57  ;;  %2591 = vmatpush1.bf16.msra.mxu0 %v16196_v58 }
 0x364   :  { %2551 = vmatprep.subr.bf16.mxu1 %v16202_v59  ;;  %2592 = vmatprep.subr.bf16.mxu0 %v16204_v60 }
 0x367   :  { %2552 = vmatpush1.bf16.msra.mxu1 %v16206_v26  ;;  %2593 = vmatpush1.bf16.msra.mxu0 %v16208_v22 }
 0x368   :  { %2553 = vmatprep.subr.bf16.mxu1 %v16214_v33  ;;  %2594 = vmatprep.subr.bf16.mxu0 %v16216_v19 }
 0x36b   :  { %2554 = vmatpush1.bf16.msra.mxu1 %v16218_v16  ;;  %2595 = vmatpush1.bf16.msra.mxu0 %v16220_v28 }
 0x36c   :  { %2555 = vmatprep.subr.bf16.mxu1 %v16226_v6  ;;  %2596 = vmatprep.subr.bf16.mxu0 %v16228_v62 }
 0x36f   :  { %2556 = vmatpush1.bf16.msra.mxu1 %v16230_v7  ;;  %2597 = vmatpush1.bf16.msra.mxu0 %v16232_v9 }
 0x370   :  { %2557 = vmatprep.subr.bf16.mxu1 %v16238_v8  ;;  %2598 = vmatprep.subr.bf16.mxu0 %v16240_v61 }
 0x373   :  { %2558 = vmatpush1.bf16.msra.mxu1 %v16242_v11  ;;  %2599 = vmatpush1.bf16.msra.mxu0 %v16244_v30 }
 0x374   :  { %2827 = vmatprep.subr.bf16.mxu1 %v16250_v63  ;;  %2868 = vmatprep.subr.bf16.mxu0 %v16252_v27 }
 0x408   :  { %v1957_v18 = vpop.f32.mrb[40].mxu1  ;;  %v1998_v4 = vpop.f32.mrb[48].mxu0 }
 0x409   :  { %v2005_v3 = vadd.f32 %v1957_v18, %v15903_v17  ;;  %v2007_v1 = vadd.f32 %v1998_v4, %v15906_v10  ;;  %v1959_v2 = vpop.f32.mrb[41].mxu1  ;;  %v2000_v13 = vpop.f32.mrb[49].mxu0 }
 0x40a   :  { %v2006_v14 = vadd.f32 %v1959_v2, %v15909_v20  ;;  %v2008_v21 = vadd.f32 %v2000_v13, %v18732_v29  ;;  %v1961_v25 = vpop.f32.mrb[42].mxu1  ;;  %v2002_v31 = vpop.f32.mrb[50].mxu0 }
 0x40b   :  { %v12570_v32 = vmul.f32 -1.442695, %v2005_v3  ;;  %v1962_v34 = vpop.f32.mrb[43].mxu1  ;;  %v2003_v35 = vpop.f32.mrb[51].mxu0 }
 0x40c   :  { %v12571_v36 = vmul.f32 -1.442695, %v2006_v14  ;;  %v12572_v24 = vmul.f32 -1.442695, %v2008_v21  ;;  %v18733_v14 = vld [vmem:[#allocation76_spill] sm:$0xff]  ;;  %v18734_v21 = vld [vmem:[#allocation77_spill] sm:$0xff] }
 0x40d   :  { %14660 = vpow2.f32 %v12570_v32  ;;  %v18735_v32 = vld [vmem:[#allocation78_spill] sm:$0xff]  ;;  %v18736_v35 = vld [vmem:[#allocation79_spill] sm:$0xff]  ;;  %18738 = vst [vmem:[#allocation76_spill] sm:$0xff] %v16323_v42 }
 0x40e   :  { %14662 = vpow2.f32 %v12571_v36  ;;  %18740 = vst [vmem:[#allocation78_spill] sm:$0xff] %v16329_v12 }
 0x40f   :  { %14664 = vpow2.f32 %v12572_v24 }
 0x410   :  { %14666 = vtanh.f32 %v2007_v1 }
 0x417   :  { %v14661_v37 = vpop.eup %14660 }
 0x418   :  { %v14663_v23 = vpop.eup %14662  ;;  %v2296_v17 = vadd.f32 1.0, %v14661_v37 }
 0x419   :  { %v2302_v10 = vadd.f32 1.0, %v14663_v23  ;;  %v14665_v20 = vpop.eup %14664 }
 0x41a   :  { %14668 = vrcp.f32 %v2296_v17  ;;  %v14667_v39 = vpop.eup %14666  ;;  %v2309_v18 = vadd.f32 1.0, %v14665_v20 }
 0x41b   :  { %14670 = vrcp.f32 %v2302_v10 }
 0x41c   :  { %14672 = vrcp.f32 %v2309_v18  ;;  %v16272_v18 = vld [vmem:[#allocation10 + $0x8] ss:$16 sps:$4 sm:$0xff]  }
 0x424   :  { %v14669_v40 = vpop.eup %14668 }
 0x425   :  { %v14671_v41 = vpop.eup %14670  ;;  %v2313_v43 = vmul.f32 %v14669_v40, %v14667_v39 }
 0x426   :  { %v2312_v4 = vmul.f32 %v14671_v41, %v16106_v15  ;;  %v14673_v20 = vpop.eup %14672 }
 0x428   :  { %v16261_v3 = vadd.f32 %v2313_v43, %v2312_v4  ;;  %v2241_v2 = vpop.f32.mrb[44].mxu1  ;;  %v2282_v13 = vpop.f32.mrb[52].mxu0  ;;  %v16270_v43 = vld [vmem:[#allocation10] ss:$16 sps:$4 sm:$0xff]  }
 0x429   :  { %v2289_v29 = vadd.f32 %v2241_v2, %v18733_v14  ;;  %v2291_v1 = vadd.f32 %v2282_v13, %v18734_v21  ;;  %v2243_v25 = vpop.f32.mrb[45].mxu1  ;;  %v2284_v31 = vpop.f32.mrb[53].mxu0  ;;  %v16276_v13 = vld [vmem:[#allocation10 + $0x24] ss:$16 sps:$4 sm:$0xff]   ;;  %v16278_v14 = vld [vmem:[#allocation10 + $0x2c] ss:$16 sps:$4 sm:$0xff]  }
 0x42a   :  { %14674 = vtanh.f32 %v16261_v3  ;;  %v2290_v34 = vadd.f32 %v2243_v25, %v18735_v32  ;;  %v2292_v36 = vadd.f32 %v2284_v31, %v18736_v35  ;;  %v2245_v24 = vpop.f32.mrb[46].mxu1  ;;  %v2286_v37 = vpop.f32.mrb[54].mxu0  ;;  %v16282_v31 = vld [vmem:[#allocation10 + $0x20] ss:$16 sps:$4 sm:$0xff]   ;;  %v16284_v32 = vld [vmem:[#allocation10 + $0x28] ss:$16 sps:$4 sm:$0xff]  }
 0x42b   :  { %v12573_v15 = vmul.f32 -1.442695, %v2289_v29  ;;  %v2246_v23 = vpop.f32.mrb[47].mxu1  ;;  %v2287_v17 = vpop.f32.mrb[55].mxu0  ;;  %v16296_v35 = vld [vmem:[#allocation10 + $0x40] ss:$16 sps:$4 sm:$0xff]  }
 0x42c   :  { %v12574_v10 = vmul.f32 -1.442695, %v2290_v34  ;;  %v12575_v40 = vmul.f32 -1.442695, %v2292_v36  ;;  %v16288_v34 = vld [vmem:[#allocation10 + $0x44] ss:$16 sps:$4 sm:$0xff]  }
 0x42d   :  { %14676 = vpow2.f32 %v12573_v15  ;;  %v16298_v36 = vld [vmem:[#allocation10 + $0x48] ss:$16 sps:$4 sm:$0xff]   ;;  %v16302_v24 = vld [vmem:[#allocation10 + $0x64] ss:$16 sps:$4 sm:$0xff]   ;;  %v16304_v37 = vld [vmem:[#allocation10 + $0x6c] ss:$16 sps:$4 sm:$0xff]  }
 0x42e   :  { %14678 = vpow2.f32 %v12574_v10  ;;  %v16308_v23 = vld [vmem:[#allocation10 + $0x60] ss:$16 sps:$4 sm:$0xff]   ;;  %v16310_v17 = vld [vmem:[#allocation10 + $0x68] ss:$16 sps:$4 sm:$0xff]  }
 0x42f   :  { %14680 = vpow2.f32 %v12575_v40 }
 0x430   :  { %14682 = vtanh.f32 %v2291_v1  ;;  %v16290_v1 = vld [vmem:[#allocation10 + $0x4c] ss:$16 sps:$4 sm:$0xff]  }
 0x434   :  { %v14675_v39 = vpop.eup %14674 }
 0x435   :  { %v16268_v41 = vmul.f32 %v14675_v39, %v14673_v20  ;;  %v16314_v20 = vld [vmem:[#allocation10 + $0x84] ss:$16 sps:$4 sm:$0xff]   ;;  %v16316_v39 = vld [vmem:[#allocation10 + $0x8c] ss:$16 sps:$4 sm:$0xff]  }
 0x437   :  { %18737 = vst [vmem:[#allocation27_spill] sm:$0xff] %v16268_v41  ;;  %v14677_v4 = vpop.eup %14676  ;;  %v2350_v2 = vpack.c.bf16 %v16268_v41, %v16268_v41  ;;  %v16327_v41 = vld [vmem:[#allocation10 + $0xa4] ss:$16 sps:$4 sm:$0xff]  }
 0x438   :  { %v14679_v29 = vpop.eup %14678  ;;  %v2320_v21 = vadd.f32 1.0, %v14677_v4  ;;  %18739 = vst [vmem:[#allocation77_spill] sm:$0xff] %v16327_v41 }
 0x439   :  { %v2326_v25 = vadd.f32 1.0, %v14679_v29  ;;  %2576 = vmatmul.mubr.bf16.vlgmr.msra.gmra.mrb[48].mxu1 %v2350_v2  ;;  %2617 = vmatmul.mubr.bf16.vlgmr.msra.gmra.mrb[56].mxu0 %v2350_v2  ;;  %v14681_v15 = vpop.eup %14680 }
 0x43a   :  { %14684 = vrcp.f32 %v2320_v21  ;;  %2828 = vmatpush1.bf16.msra.mxu1 %v16270_v43  ;;  %2869 = vmatpush1.bf16.msra.mxu0 %v16272_v18  ;;  %v14683_v10 = vpop.eup %14682  ;;  %v2333_v29 = vadd.f32 1.0, %v14681_v15  ;;  %v16338_v15 = vld [vmem:[#allocation10 + $0xa8] ss:$16 sps:$4 sm:$0xff]  }
 0x43b   :  { %14686 = vrcp.f32 %v2326_v25  ;;  %2829 = vmatprep.subr.bf16.mxu1 %v16276_v13  ;;  %2870 = vmatprep.subr.bf16.mxu0 %v16278_v14  ;;  %v16321_v25 = vld [vmem:[#allocation10 + $0x80] ss:$16 sps:$4 sm:$0xff]   ;;  %18742 = vst [vmem:[#allocation81_spill] sm:$0xff] %v16338_v15 }
 0x43c   :  { %2859 = vmatprep.mubr.bf16.mxu1 %v18669_v56  ;;  %2900 = vmatprep.mubr.bf16.mxu0 %v18669_v56  ;;  %14688 = vrcp.f32 %v2333_v29  ;;  %v16350_v29 = vld [vmem:[#allocation10 + $0xc8] ss:$16 sps:$4 sm:$0xff]  }
 0x43e   :  { %2830 = vmatpush1.bf16.msra.mxu1 %v16282_v31  ;;  %2871 = vmatpush1.bf16.msra.mxu0 %v16284_v32 }
 0x43f   :  { %2831 = vmatprep.subr.bf16.mxu1 %v16288_v34  ;;  %2872 = vmatprep.subr.bf16.mxu0 %v16290_v1 }
 0x442   :  { %2832 = vmatpush1.bf16.msra.mxu1 %v16296_v35  ;;  %2873 = vmatpush1.bf16.msra.mxu0 %v16298_v36 }
 0x443   :  { %2833 = vmatprep.subr.bf16.mxu1 %v16302_v24  ;;  %2874 = vmatprep.subr.bf16.mxu0 %v16304_v37 }
 0x444   :  { %v14685_v40 = vpop.eup %14684 }
 0x445   :  { %v14687_v4 = vpop.eup %14686  ;;  %v2337_v2 = vmul.f32 %v14685_v40, %v14683_v10  ;;  %v16342_v40 = vld [vmem:[#allocation10 + $0xc4] ss:$16 sps:$4 sm:$0xff]  }
 0x446   :  { %v2336_v21 = vmul.f32 %v14687_v4, %v16131_v38  ;;  %2834 = vmatpush1.bf16.msra.mxu1 %v16308_v23  ;;  %2875 = vmatpush1.bf16.msra.mxu0 %v16310_v17  ;;  %v16336_v38 = vld [vmem:[#allocation10 + $0xa0] ss:$16 sps:$4 sm:$0xff]   ;;  %18743 = vst [vmem:[#allocation82_spill] sm:$0xff] %v16342_v40  ;;  %v16344_v4 = vld [vmem:[#allocation10 + $0xcc] ss:$16 sps:$4 sm:$0xff]  }
 0x447   :  { %2835 = vmatprep.subr.bf16.mxu1 %v16314_v20  ;;  %2876 = vmatprep.subr.bf16.mxu0 %v16316_v39  ;;  %18741 = vst [vmem:[#allocation79_spill] sm:$0xff] %v16336_v38 }
 0x448   :  { %v16331_v10 = vadd.f32 %v2337_v2, %v2336_v21  ;;  %v16348_v2 = vld [vmem:[#allocation10 + $0xc0] ss:$16 sps:$4 sm:$0xff]   ;;  %v16354_v21 = vld [vmem:[#allocation10 + $0xe4] ss:$16 sps:$4 sm:$0xff]  }
 0x449   :  { %18744 = vst [vmem:[#allocation83_spill] sm:$0xff] %v16348_v2 }
 0x44a   :  { %14690 = vtanh.f32 %v16331_v10  ;;  %2836 = vmatpush1.bf16.msra.mxu1 %v16321_v25  ;;  %2877 = vmatpush1.bf16.msra.mxu0 %v16323_v42 }
 0x44b   :  { %2837 = vmatprep.subr.bf16.mxu1 %v16327_v41  ;;  %2878 = vmatprep.subr.bf16.mxu0 %v16329_v12  ;;  %v16356_v41 = vld [vmem:[#allocation10 + $0xec] ss:$16 sps:$4 sm:$0xff]   ;;  %v16360_v12 = vld [vmem:[#allocation10 + $0xe0] ss:$16 sps:$4 sm:$0xff]  }
 0x44e   :  { %2838 = vmatpush1.bf16.msra.mxu1 %v16336_v38  ;;  %2879 = vmatpush1.bf16.msra.mxu0 %v16338_v15  ;;  %v16362_v38 = vld [vmem:[#allocation10 + $0xe8] ss:$16 sps:$4 sm:$0xff]   ;;  %v14689_v15 = vpop.eup %14688 }
 0x44f   :  { %2839 = vmatprep.subr.bf16.mxu1 %v16342_v40  ;;  %2880 = vmatprep.subr.bf16.mxu0 %v16344_v4 }
 0x452   :  { %2840 = vmatpush1.bf16.msra.mxu1 %v16348_v2  ;;  %2881 = vmatpush1.bf16.msra.mxu0 %v16350_v29 }
 0x453   :  { %2841 = vmatprep.subr.bf16.mxu1 %v16354_v21  ;;  %2882 = vmatprep.subr.bf16.mxu0 %v16356_v41 }
 0x454   :  { %v14691_v40 = vpop.eup %14690 }
 0x455   :  { %v16366_v42 = vmul.f32 %v14691_v40, %v14689_v15  ;;  %v18751_v40 = vld [vmem:[#allocation73_spill] sm:$0xff] }
 0x456   :  { %2842 = vmatpush1.bf16.msra.mxu1 %v16360_v12  ;;  %2883 = vmatpush1.bf16.msra.mxu0 %v16362_v38 }
 0x457   :  { %18745 = vst [vmem:[#allocation84_spill] sm:$0xff] %v16366_v42  ;;  %v2634_v2 = vpack.c.bf16 %v16366_v42, %v16366_v42  ;;  %3163 = vmatprep.subr.bf16.mxu1 %v16154_v44  ;;  %3204 = vmatprep.subr.bf16.mxu0 %v16156_v45  ;;  %v16633_v42 = vld [vmem:[#allocation10 + $0x80] ss:$16 sps:$4 sm:$0xff]  }
 0x459   :  { %2860 = vmatmul.mubr.bf16.vlgmr.msra.gmra.mrb[52].mxu1 %v2634_v2  ;;  %2901 = vmatmul.mubr.bf16.vlgmr.msra.gmra.mrb[60].mxu0 %v2634_v2 }
 0x45a   :  { %3164 = vmatpush1.bf16.msra.mxu1 %v16158_v46  ;;  %3205 = vmatpush1.bf16.msra.mxu0 %v16160_v47  ;;  %v18746_v46 = vld [vmem:[#allocation28_spill] sm:$0xff] }
 0x45b   :  { %3165 = vmatprep.subr.bf16.mxu1 %v16166_v0  ;;  %3206 = vmatprep.subr.bf16.mxu0 %v16168_v5  ;;  %v18747_v0 = vld [vmem:[#allocation29_spill] sm:$0xff] }
 0x45c   :  { %3195 = vmatprep.mubr.bf16.mxu1 %v18669_v56  ;;  %3236 = vmatprep.mubr.bf16.mxu0 %v18669_v56 }
 0x45e   :  { %3166 = vmatpush1.bf16.msra.mxu1 %v16170_v48  ;;  %3207 = vmatpush1.bf16.msra.mxu0 %v16172_v49 }
 0x45f   :  { %3167 = vmatprep.subr.bf16.mxu1 %v16178_v50  ;;  %3208 = vmatprep.subr.bf16.mxu0 %v16180_v51  ;;  %v18748_v50 = vld [vmem:[#allocation30_spill] sm:$0xff] }
 0x462   :  { %3168 = vmatpush1.bf16.msra.mxu1 %v16182_v52  ;;  %3209 = vmatpush1.bf16.msra.mxu0 %v16184_v53  ;;  %v18749_v52 = vld [vmem:[#allocation31_spill] sm:$0xff] }
 0x463   :  { %3169 = vmatprep.subr.bf16.mxu1 %v16190_v54  ;;  %3210 = vmatprep.subr.bf16.mxu0 %v16192_v55 }
 0x466   :  { %3170 = vmatpush1.bf16.msra.mxu1 %v16194_v57  ;;  %3211 = vmatpush1.bf16.msra.mxu0 %v16196_v58 }
 0x467   :  { %3171 = vmatprep.subr.bf16.mxu1 %v16202_v59  ;;  %3212 = vmatprep.subr.bf16.mxu0 %v16204_v60 }
 0x46a   :  { %3172 = vmatpush1.bf16.msra.mxu1 %v16206_v26  ;;  %3213 = vmatpush1.bf16.msra.mxu0 %v16208_v22 }
 0x46b   :  { %3173 = vmatprep.subr.bf16.mxu1 %v16214_v33  ;;  %3214 = vmatprep.subr.bf16.mxu0 %v16216_v19 }
 0x46e   :  { %3174 = vmatpush1.bf16.msra.mxu1 %v16218_v16  ;;  %3215 = vmatpush1.bf16.msra.mxu0 %v16220_v28 }
 0x46f   :  { %3175 = vmatprep.subr.bf16.mxu1 %v16226_v6  ;;  %3216 = vmatprep.subr.bf16.mxu0 %v16228_v62 }
 0x472   :  { %3176 = vmatpush1.bf16.msra.mxu1 %v16230_v7  ;;  %3217 = vmatpush1.bf16.msra.mxu0 %v16232_v9 }
 0x473   :  { %3177 = vmatprep.subr.bf16.mxu1 %v16238_v8  ;;  %3218 = vmatprep.subr.bf16.mxu0 %v16240_v61 }
 0x476   :  { %3178 = vmatpush1.bf16.msra.mxu1 %v16242_v11  ;;  %3219 = vmatpush1.bf16.msra.mxu0 %v16244_v30 }
 0x477   :  { %3447 = vmatprep.subr.bf16.mxu1 %v16250_v63  ;;  %3488 = vmatprep.subr.bf16.mxu0 %v16252_v27  ;;  %v18750_v27 = vld [vmem:[#allocation72_spill] sm:$0xff] }
 0x50c   :  { %v2577_v44 = vpop.f32.mrb[48].mxu1  ;;  %v2618_v45 = vpop.f32.mrb[56].mxu0 }
 0x50d   :  { %v2625_v47 = vadd.f32 %v2577_v44, %v18746_v46  ;;  %v2627_v5 = vadd.f32 %v2618_v45, %v18747_v0  ;;  %v2579_v48 = vpop.f32.mrb[49].mxu1  ;;  %v2620_v49 = vpop.f32.mrb[57].mxu0  ;;  %v18752_v46 = vld [vmem:[#allocation74_spill] sm:$0xff]  ;;  %v18753_v0 = vld [vmem:[#allocation75_spill] sm:$0xff] }
 0x50e   :  { %v2626_v51 = vadd.f32 %v2579_v48, %v18748_v50  ;;  %v2628_v53 = vadd.f32 %v2620_v49, %v18749_v52  ;;  %v2581_v54 = vpop.f32.mrb[50].mxu1  ;;  %v2622_v55 = vpop.f32.mrb[58].mxu0 }
 0x50f   :  { %v12640_v57 = vmul.f32 -1.442695, %v2625_v47  ;;  %v2582_v58 = vpop.f32.mrb[51].mxu1  ;;  %v2623_v59 = vpop.f32.mrb[59].mxu0 }
 0x510   :  { %v12641_v60 = vmul.f32 -1.442695, %v2626_v51  ;;  %v12642_v26 = vmul.f32 -1.442695, %v2628_v53 }
 0x511   :  { %14692 = vpow2.f32 %v12640_v57 }
 0x512   :  { %14694 = vpow2.f32 %v12641_v60 }
 0x513   :  { %14696 = vpow2.f32 %v12642_v26 }
 0x514   :  { %14698 = vtanh.f32 %v2627_v5 }
 0x51b   :  { %v14693_v22 = vpop.eup %14692 }
 0x51c   :  { %v14695_v33 = vpop.eup %14694  ;;  %v2916_v19 = vadd.f32 1.0, %v14693_v22 }
 0x51d   :  { %v2922_v16 = vadd.f32 1.0, %v14695_v33  ;;  %v14697_v28 = vpop.eup %14696 }
 0x51e   :  { %14700 = vrcp.f32 %v2916_v19  ;;  %v14699_v6 = vpop.eup %14698  ;;  %v2929_v8 = vadd.f32 1.0, %v14697_v28  ;;  %v16482_v19 = vld [vmem:[#allocation9 + $0x20] ss:$16 sps:$4 sm:$0xff]   ;;  %v16490_v28 = vld [vmem:[#allocation9 + $0x44] ss:$16 sps:$4 sm:$0xff]  }
 0x51f   :  { %14702 = vrcp.f32 %v2922_v16  ;;  %v16484_v16 = vld [vmem:[#allocation9 + $0x28] ss:$16 sps:$4 sm:$0xff]  }
 0x520   :  { %14704 = vrcp.f32 %v2929_v8  ;;  %v16504_v8 = vld [vmem:[#allocation9 + $0x6c] ss:$16 sps:$4 sm:$0xff]  }
 0x528   :  { %v14701_v62 = vpop.eup %14700 }
 0x529   :  { %v14703_v7 = vpop.eup %14702  ;;  %v2933_v9 = vmul.f32 %v14701_v62, %v14699_v6  ;;  %v16492_v6 = vld [vmem:[#allocation9 + $0x4c] ss:$16 sps:$4 sm:$0xff]   ;;  %v16494_v62 = vld [vmem:[#allocation9 + $0x40] ss:$16 sps:$4 sm:$0xff]  }
 0x52a   :  { %v2932_v61 = vmul.f32 %v14703_v7, %v16261_v3  ;;  %v14705_v53 = vpop.eup %14704  ;;  %v16496_v7 = vld [vmem:[#allocation9 + $0x48] ss:$16 sps:$4 sm:$0xff]  }
 0x52c   :  { %v16413_v11 = vadd.f32 %v2933_v9, %v2932_v61  ;;  %v2861_v30 = vpop.f32.mrb[52].mxu1  ;;  %v2902_v63 = vpop.f32.mrb[60].mxu0  ;;  %v16502_v9 = vld [vmem:[#allocation9 + $0x64] ss:$16 sps:$4 sm:$0xff]   ;;  %v16506_v61 = vld [vmem:[#allocation9 + $0x60] ss:$16 sps:$4 sm:$0xff]  }
 0x52d   :  { %v2909_v15 = vadd.f32 %v2861_v30, %v18750_v27  ;;  %v2911_v2 = vadd.f32 %v2902_v63, %v18751_v40  ;;  %v2863_v44 = vpop.f32.mrb[53].mxu1  ;;  %v2904_v45 = vpop.f32.mrb[61].mxu0  ;;  %v16508_v30 = vld [vmem:[#allocation9 + $0x68] ss:$16 sps:$4 sm:$0xff]   ;;  %v16514_v63 = vld [vmem:[#allocation9 + $0x84] ss:$16 sps:$4 sm:$0xff]  }
 0x52e   :  { %14706 = vtanh.f32 %v16413_v11  ;;  %v2910_v47 = vadd.f32 %v2863_v44, %v18752_v46  ;;  %v2912_v5 = vadd.f32 %v2904_v45, %v18753_v0  ;;  %v2865_v48 = vpop.f32.mrb[54].mxu1  ;;  %v2906_v49 = vpop.f32.mrb[62].mxu0  ;;  %v16516_v27 = vld [vmem:[#allocation9 + $0x8c] ss:$16 sps:$4 sm:$0xff]   ;;  %v16520_v40 = vld [vmem:[#allocation9 + $0x88] ss:$16 sps:$4 sm:$0xff]  }
 0x52f   :  { %v12643_v3 = vmul.f32 -1.442695, %v2909_v15  ;;  %v2866_v50 = vpop.f32.mrb[55].mxu1  ;;  %v2907_v51 = vpop.f32.mrb[63].mxu0  ;;  %v16518_v15 = vld [vmem:[#allocation9 + $0x80] ss:$16 sps:$4 sm:$0xff]  }
 0x530   :  { %v12644_v52 = vmul.f32 -1.442695, %v2910_v47  ;;  %v12645_v55 = vmul.f32 -1.442695, %v2912_v5  ;;  %v16528_v44 = vld [vmem:[#allocation9 + $0xac] ss:$16 sps:$4 sm:$0xff]  }
 0x531   :  { %14708 = vpow2.f32 %v12643_v3  ;;  %v16530_v45 = vld [vmem:[#allocation9 + $0xa0] ss:$16 sps:$4 sm:$0xff]   ;;  %v16532_v46 = vld [vmem:[#allocation9 + $0xa8] ss:$16 sps:$4 sm:$0xff]   ;;  %v16538_v47 = vld [vmem:[#allocation9 + $0xc4] ss:$16 sps:$4 sm:$0xff]  }
 0x532   :  { %14710 = vpow2.f32 %v12644_v52  ;;  %v16540_v0 = vld [vmem:[#allocation9 + $0xcc] ss:$16 sps:$4 sm:$0xff]   ;;  %v16542_v5 = vld [vmem:[#allocation9 + $0xc0] ss:$16 sps:$4 sm:$0xff]   ;;  %v16544_v48 = vld [vmem:[#allocation9 + $0xc8] ss:$16 sps:$4 sm:$0xff]  }
 0x533   :  { %14712 = vpow2.f32 %v12645_v55  ;;  %v16550_v49 = vld [vmem:[#allocation9 + $0xe4] ss:$16 sps:$4 sm:$0xff]   ;;  %v16552_v3 = vld [vmem:[#allocation9 + $0xec] ss:$16 sps:$4 sm:$0xff]   ;;  %v16554_v50 = vld [vmem:[#allocation9 + $0xe0] ss:$16 sps:$4 sm:$0xff]  }
 0x534   :  { %14714 = vtanh.f32 %v2911_v2  ;;  %v16526_v2 = vld [vmem:[#allocation9 + $0xa4] ss:$16 sps:$4 sm:$0xff]   ;;  %v16556_v51 = vld [vmem:[#allocation9 + $0xe8] ss:$16 sps:$4 sm:$0xff]  }
 0x535   :  { %v16562_v52 = vld [vmem:[#allocation10 + $0x4] ss:$16 sps:$4 sm:$0xff]  }
 0x538   :  { %v14707_v54 = vpop.eup %14706 }
 0x539   :  { %v16420_v57 = vmul.f32 %v14707_v54, %v14705_v53  ;;  %v16564_v53 = vld [vmem:[#allocation10 + $0xc] ss:$16 sps:$4 sm:$0xff]  }
 0x53b   :  { %18754 = vst [vmem:[#allocation28_spill] sm:$0xff] %v16420_v57  ;;  %v14709_v58 = vpop.eup %14708  ;;  %v2970_v59 = vpack.c.bf16 %v16420_v57, %v16420_v57  ;;  %v16641_v57 = vld [vmem:[#allocation10 + $0xac] ss:$16 sps:$4 sm:$0xff]  }
 0x53c   :  { %v14711_v60 = vpop.eup %14710  ;;  %v2940_v26 = vadd.f32 1.0, %v14709_v58  ;;  %v18763_v58 = vld [vmem:[#allocation32_spill] sm:$0xff]  ;;  %18774 = vst [vmem:[#allocation73_spill] sm:$0xff] %v16641_v57 }
 0x53d   :  { %v2946_v22 = vadd.f32 1.0, %v14711_v60  ;;  %3196 = vmatmul.mubr.bf16.vlgmr.msra.gmra.mrb[56].mxu1 %v2970_v59  ;;  %3237 = vmatmul.mubr.bf16.vlgmr.msra.gmra.mrb[64].mxu0 %v2970_v59  ;;  %v18764_v60 = vld [vmem:[#allocation33_spill] sm:$0xff] }
 0x53e   :  { %14716 = vrcp.f32 %v2940_v26  ;;  %3448 = vmatpush1.bf16.msra.mxu1 %v16270_v43  ;;  %3489 = vmatpush1.bf16.msra.mxu0 %v16272_v18  ;;  %v14713_v43 = vpop.eup %14712 }
 0x53f   :  { %14718 = vrcp.f32 %v2946_v22  ;;  %3449 = vmatprep.subr.bf16.mxu1 %v16276_v13  ;;  %3490 = vmatprep.subr.bf16.mxu0 %v16278_v14  ;;  %v14715_v18 = vpop.eup %14714 }
 0x540   :  { %3479 = vmatprep.mubr.bf16.mxu1 %v18669_v56  ;;  %3520 = vmatprep.mubr.bf16.mxu0 %v18669_v56 }
 0x542   :  { %3450 = vmatpush1.bf16.msra.mxu1 %v16282_v31  ;;  %3491 = vmatpush1.bf16.msra.mxu0 %v16284_v32  ;;  %v2953_v31 = vadd.f32 1.0, %v14713_v43 }
 0x543   :  { %3451 = vmatprep.subr.bf16.mxu1 %v16288_v34  ;;  %3492 = vmatprep.subr.bf16.mxu0 %v16290_v1  ;;  %v18755_v1 = vld [vmem:[#allocation76_spill] sm:$0xff] }
 0x544   :  { %14720 = vrcp.f32 %v2953_v31 }
 0x546   :  { %3452 = vmatpush1.bf16.msra.mxu1 %v16296_v35  ;;  %3493 = vmatpush1.bf16.msra.mxu0 %v16298_v36  ;;  %v18756_v35 = vld [vmem:[#allocation77_spill] sm:$0xff]  ;;  %v18757_v36 = vld [vmem:[#allocation78_spill] sm:$0xff] }
 0x547   :  { %3453 = vmatprep.subr.bf16.mxu1 %v16302_v24  ;;  %3494 = vmatprep.subr.bf16.mxu0 %v16304_v37  ;;  %v18758_v24 = vld [vmem:[#allocation79_spill] sm:$0xff]  ;;  %v18759_v37 = vld [vmem:[#allocation81_spill] sm:$0xff] }
 0x548   :  { %v14717_v13 = vpop.eup %14716 }
 0x549   :  { %v14719_v14 = vpop.eup %14718  ;;  %v2957_v33 = vmul.f32 %v14717_v13, %v14715_v18  ;;  %v18765_v18 = vld [vmem:[#allocation34_spill] sm:$0xff] }
 0x54a   :  { %v2956_v32 = vmul.f32 %v14719_v14, %v16331_v10  ;;  %3454 = vmatpush1.bf16.msra.mxu1 %v16308_v23  ;;  %3495 = vmatpush1.bf16.msra.mxu0 %v16310_v17  ;;  %v18760_v23 = vld [vmem:[#allocation82_spill] sm:$0xff]  ;;  %v18761_v17 = vld [vmem:[#allocation83_spill] sm:$0xff] }
 0x54b   :  { %3455 = vmatprep.subr.bf16.mxu1 %v16314_v20  ;;  %3496 = vmatprep.subr.bf16.mxu0 %v16316_v39  ;;  %v18766_v14 = vld [vmem:[#allocation35_spill] sm:$0xff] }
 0x54c   :  { %v16443_v34 = vadd.f32 %v2957_v33, %v2956_v32 }
 0x54e   :  { %14722 = vtanh.f32 %v16443_v34  ;;  %3456 = vmatpush1.bf16.msra.mxu1 %v16321_v25  ;;  %3497 = vmatpush1.bf16.msra.mxu0 %v18755_v1  ;;  %v14721_v20 = vpop.eup %14720 }
 0x54f   :  { %3457 = vmatprep.subr.bf16.mxu1 %v18756_v35  ;;  %3498 = vmatprep.subr.bf16.mxu0 %v18757_v36 }
 0x552   :  { %3458 = vmatpush1.bf16.msra.mxu1 %v18758_v24  ;;  %3499 = vmatpush1.bf16.msra.mxu0 %v18759_v37 }
 0x553   :  { %3459 = vmatprep.subr.bf16.mxu1 %v18760_v23  ;;  %3500 = vmatprep.subr.bf16.mxu0 %v16344_v4  ;;  %v16466_v4 = vld [vmem:[#allocation9 + $0x4] ss:$16 sps:$4 sm:$0xff]  }
 0x556   :  { %3460 = vmatpush1.bf16.msra.mxu1 %v18761_v17  ;;  %3501 = vmatpush1.bf16.msra.mxu0 %v16350_v29  ;;  %v16468_v29 = vld [vmem:[#allocation9 + $0xc] ss:$16 sps:$4 sm:$0xff]  }
 0x557   :  { %3461 = vmatprep.subr.bf16.mxu1 %v16354_v21  ;;  %3502 = vmatprep.subr.bf16.mxu0 %v16356_v41  ;;  %v16470_v41 = vld [vmem:[#allocation9] ss:$16 sps:$4 sm:$0xff]   ;;  %v16472_v21 = vld [vmem:[#allocation9 + $0x8] ss:$16 sps:$4 sm:$0xff]  }
 0x558   :  { %v14723_v39 = vpop.eup %14722 }
 0x559   :  { %v16458_v25 = vmul.f32 %v14723_v39, %v14721_v20 }
 0x55a   :  { %3462 = vmatpush1.bf16.msra.mxu1 %v16360_v12  ;;  %3503 = vmatpush1.bf16.msra.mxu0 %v16362_v38  ;;  %v16478_v12 = vld [vmem:[#allocation9 + $0x24] ss:$16 sps:$4 sm:$0xff]   ;;  %v16480_v38 = vld [vmem:[#allocation9 + $0x2c] ss:$16 sps:$4 sm:$0xff]  }
 0x55b   :  { %18762 = vst [vmem:[#allocation29_spill] sm:$0xff] %v16458_v25  ;;  %v3254_v10 = vpack.c.bf16 %v16458_v25, %v16458_v25  ;;  %3782 = vmatprep.subr.bf16.mxu1 %v16466_v4  ;;  %3823 = vmatprep.subr.bf16.mxu0 %v16468_v29  ;;  %v16635_v25 = vld [vmem:[#allocation10 + $0x88] ss:$16 sps:$4 sm:$0xff]  }
 0x55c   :  { %18772 = vst [vmem:[#allocation31_spill] sm:$0xff] %v16635_v25 }
 0x55d   :  { %3480 = vmatmul.mubr.bf16.vlgmr.msra.gmra.mrb[60].mxu1 %v3254_v10  ;;  %3521 = vmatmul.mubr.bf16.vlgmr.msra.gmra.mrb[68].mxu0 %v3254_v10 }
 0x55e   :  { %3814 = vmatprep.mubr.bf16.mxu1 %v18669_v56  ;;  %3855 = vmatprep.mubr.bf16.mxu0 %v18669_v56 }
 0x55f   :  { %3783 = vmatpush1.bf16.msra.mxu1 %v16470_v41  ;;  %3824 = vmatpush1.bf16.msra.mxu0 %v16472_v21 }
 0x560   :  { %3784 = vmatprep.subr.bf16.mxu1 %v16478_v12  ;;  %3825 = vmatprep.subr.bf16.mxu0 %v16480_v38 }
 0x563   :  { %3785 = vmatpush1.bf16.msra.mxu1 %v16482_v19  ;;  %3826 = vmatpush1.bf16.msra.mxu0 %v16484_v16 }
 0x564   :  { %3786 = vmatprep.subr.bf16.mxu1 %v16490_v28  ;;  %3827 = vmatprep.subr.bf16.mxu0 %v16492_v6 }
 0x567   :  { %3787 = vmatpush1.bf16.msra.mxu1 %v16494_v62  ;;  %3828 = vmatpush1.bf16.msra.mxu0 %v16496_v7 }
 0x568   :  { %3788 = vmatprep.subr.bf16.mxu1 %v16502_v9  ;;  %3829 = vmatprep.subr.bf16.mxu0 %v16504_v8 }
 0x56b   :  { %3789 = vmatpush1.bf16.msra.mxu1 %v16506_v61  ;;  %3830 = vmatpush1.bf16.msra.mxu0 %v16508_v30 }
 0x56c   :  { %3790 = vmatprep.subr.bf16.mxu1 %v16514_v63  ;;  %3831 = vmatprep.subr.bf16.mxu0 %v16516_v27 }
 0x56f   :  { %3791 = vmatpush1.bf16.msra.mxu1 %v16518_v15  ;;  %3832 = vmatpush1.bf16.msra.mxu0 %v16520_v40 }
 0x570   :  { %3792 = vmatprep.subr.bf16.mxu1 %v16526_v2  ;;  %3833 = vmatprep.subr.bf16.mxu0 %v16528_v44 }
 0x573   :  { %3793 = vmatpush1.bf16.msra.mxu1 %v16530_v45  ;;  %3834 = vmatpush1.bf16.msra.mxu0 %v16532_v46 }
 0x574   :  { %3794 = vmatprep.subr.bf16.mxu1 %v16538_v47  ;;  %3835 = vmatprep.subr.bf16.mxu0 %v16540_v0 }
 0x577   :  { %3795 = vmatpush1.bf16.msra.mxu1 %v16542_v5  ;;  %3836 = vmatpush1.bf16.msra.mxu0 %v16544_v48 }
 0x578   :  { %3796 = vmatprep.subr.bf16.mxu1 %v16550_v49  ;;  %3837 = vmatprep.subr.bf16.mxu0 %v16552_v3 }
 0x57b   :  { %3797 = vmatpush1.bf16.msra.mxu1 %v16554_v50  ;;  %3838 = vmatpush1.bf16.msra.mxu0 %v16556_v51 }
 0x57c   :  { %4065 = vmatprep.subr.bf16.mxu1 %v16562_v52  ;;  %4106 = vmatprep.subr.bf16.mxu0 %v16564_v53 }
 0x610   :  { %v3197_v54 = vpop.f32.mrb[56].mxu1  ;;  %v3238_v55 = vpop.f32.mrb[64].mxu0 }
 0x611   :  { %v3245_v59 = vadd.f32 %v3197_v54, %v18763_v58  ;;  %v3247_v26 = vadd.f32 %v3238_v55, %v18764_v60  ;;  %v3199_v22 = vpop.f32.mrb[57].mxu1  ;;  %v3240_v43 = vpop.f32.mrb[65].mxu0 }
 0x612   :  { %v3246_v13 = vadd.f32 %v3199_v22, %v18765_v18  ;;  %v3248_v33 = vadd.f32 %v3240_v43, %v18766_v14  ;;  %v3201_v31 = vpop.f32.mrb[58].mxu1  ;;  %v3242_v32 = vpop.f32.mrb[66].mxu0  ;;  %v18767_v14 = vld [vmem:[#allocation68_spill] sm:$0xff] }
 0x613   :  { %v12710_v1 = vmul.f32 -1.442695, %v3245_v59  ;;  %v3202_v35 = vpop.f32.mrb[59].mxu1  ;;  %v3243_v36 = vpop.f32.mrb[67].mxu0  ;;  %v18768_v31 = vld [vmem:[#allocation69_spill] sm:$0xff] }
 0x614   :  { %v12711_v24 = vmul.f32 -1.442695, %v3246_v13  ;;  %v12712_v37 = vmul.f32 -1.442695, %v3248_v33  ;;  %v18769_v35 = vld [vmem:[#allocation70_spill] sm:$0xff] }
 0x615   :  { %14724 = vpow2.f32 %v12710_v1 }
 0x616   :  { %14726 = vpow2.f32 %v12711_v24  ;;  %v18770_v24 = vld [vmem:[#allocation71_spill] sm:$0xff] }
 0x617   :  { %14728 = vpow2.f32 %v12712_v37 }
 0x618   :  { %14730 = vtanh.f32 %v3247_v26 }
 0x61f   :  { %v14725_v23 = vpop.eup %14724 }
 0x620   :  { %v14727_v17 = vpop.eup %14726  ;;  %v3536_v20 = vadd.f32 1.0, %v14725_v23 }
 0x621   :  { %v3542_v39 = vadd.f32 1.0, %v14727_v17  ;;  %v14729_v10 = vpop.eup %14728 }
 0x622   :  { %14732 = vrcp.f32 %v3536_v20  ;;  %v14731_v54 = vpop.eup %14730  ;;  %v3549_v59 = vadd.f32 1.0, %v14729_v10 }
 0x623   :  { %14734 = vrcp.f32 %v3542_v39 }
 0x624   :  { %14736 = vrcp.f32 %v3549_v59  ;;  %v16582_v59 = vld [vmem:[#allocation10] ss:$16 sps:$4 sm:$0xff]  }
 0x62c   :  { %v14733_v55 = vpop.eup %14732 }
 0x62d   :  { %v14735_v58 = vpop.eup %14734  ;;  %v3553_v60 = vmul.f32 %v14733_v55, %v14731_v54 }
 0x62e   :  { %v3552_v22 = vmul.f32 %v14735_v58, %v16413_v11  ;;  %v14737_v54 = vpop.eup %14736 }
 0x630   :  { %v16573_v43 = vadd.f32 %v3553_v60, %v3552_v22  ;;  %v3481_v18 = vpop.f32.mrb[60].mxu1  ;;  %v3522_v13 = vpop.f32.mrb[68].mxu0  ;;  %v16584_v22 = vld [vmem:[#allocation10 + $0x8] ss:$16 sps:$4 sm:$0xff]  }
 0x631   :  { %v3529_v33 = vadd.f32 %v3481_v18, %v18767_v14  ;;  %v3531_v26 = vadd.f32 %v3522_v13, %v18768_v31  ;;  %v3483_v32 = vpop.f32.mrb[61].mxu1  ;;  %v3524_v1 = vpop.f32.mrb[69].mxu0  ;;  %v16588_v14 = vld [vmem:[#allocation10 + $0x24] ss:$16 sps:$4 sm:$0xff]  }
 0x632   :  { %14738 = vtanh.f32 %v16573_v43  ;;  %v3530_v36 = vadd.f32 %v3483_v32, %v18769_v35  ;;  %v3532_v37 = vadd.f32 %v3524_v1, %v18770_v24  ;;  %v3485_v23 = vpop.f32.mrb[62].mxu1  ;;  %v3526_v17 = vpop.f32.mrb[70].mxu0  ;;  %v16594_v35 = vld [vmem:[#allocation10 + $0x20] ss:$16 sps:$4 sm:$0xff]   ;;  %v16600_v24 = vld [vmem:[#allocation10 + $0x44] ss:$16 sps:$4 sm:$0xff]  }
 0x633   :  { %v12713_v11 = vmul.f32 -1.442695, %v3529_v33  ;;  %v3486_v20 = vpop.f32.mrb[63].mxu1  ;;  %v3527_v39 = vpop.f32.mrb[71].mxu0  ;;  %v16590_v33 = vld [vmem:[#allocation10 + $0x2c] ss:$16 sps:$4 sm:$0xff]  }
 0x634   :  { %v12714_v10 = vmul.f32 -1.442695, %v3530_v36  ;;  %v12715_v58 = vmul.f32 -1.442695, %v3532_v37  ;;  %v16596_v36 = vld [vmem:[#allocation10 + $0x28] ss:$16 sps:$4 sm:$0xff]  }
 0x635   :  { %14740 = vpow2.f32 %v12713_v11  ;;  %v16608_v37 = vld [vmem:[#allocation10 + $0x40] ss:$16 sps:$4 sm:$0xff]   ;;  %v16610_v23 = vld [vmem:[#allocation10 + $0x48] ss:$16 sps:$4 sm:$0xff]   ;;  %v16614_v17 = vld [vmem:[#allocation10 + $0x64] ss:$16 sps:$4 sm:$0xff]  }
 0x636   :  { %14742 = vpow2.f32 %v12714_v10  ;;  %v16616_v11 = vld [vmem:[#allocation10 + $0x6c] ss:$16 sps:$4 sm:$0xff]   ;;  %v16620_v39 = vld [vmem:[#allocation10 + $0x60] ss:$16 sps:$4 sm:$0xff]   ;;  %v16622_v10 = vld [vmem:[#allocation10 + $0x68] ss:$16 sps:$4 sm:$0xff]  }
 0x637   :  { %14744 = vpow2.f32 %v12715_v58  ;;  %v16628_v58 = vld [vmem:[#allocation10 + $0x8c] ss:$16 sps:$4 sm:$0xff]  }
 0x638   :  { %14746 = vtanh.f32 %v3531_v26  ;;  %v16602_v26 = vld [vmem:[#allocation10 + $0x4c] ss:$16 sps:$4 sm:$0xff]  }
 0x63c   :  { %v14739_v55 = vpop.eup %14738 }
 0x63d   :  { %v16580_v60 = vmul.f32 %v14739_v55, %v14737_v54  ;;  %v16626_v55 = vld [vmem:[#allocation10 + $0x84] ss:$16 sps:$4 sm:$0xff]  }
 0x63f   :  { %18771 = vst [vmem:[#allocation30_spill] sm:$0xff] %v16580_v60  ;;  %v14741_v18 = vpop.eup %14740  ;;  %v3589_v13 = vpack.c.bf16 %v16580_v60, %v16580_v60  ;;  %v16639_v60 = vld [vmem:[#allocation10 + $0xa4] ss:$16 sps:$4 sm:$0xff]  }
 0x640   :  { %v14743_v31 = vpop.eup %14742  ;;  %v3560_v32 = vadd.f32 1.0, %v14741_v18  ;;  %18773 = vst [vmem:[#allocation72_spill] sm:$0xff] %v16639_v60 }
 0x641   :  { %v3566_v1 = vadd.f32 1.0, %v14743_v31  ;;  %3815 = vmatmul.mubr.bf16.vlgmr.msra.gmra.mrb[64].mxu1 %v3589_v13  ;;  %3856 = vmatmul.mubr.bf16.vlgmr.msra.gmra.mrb[72].mxu0 %v3589_v13  ;;  %v14745_v20 = vpop.eup %14744 }
 0x642   :  { %14748 = vrcp.f32 %v3560_v32  ;;  %4066 = vmatpush1.bf16.msra.mxu1 %v16582_v59  ;;  %4107 = vmatpush1.bf16.msra.mxu0 %v16584_v22  ;;  %v14747_v54 = vpop.eup %14746  ;;  %v3573_v32 = vadd.f32 1.0, %v14745_v20  ;;  %v16650_v20 = vld [vmem:[#allocation10 + $0xa8] ss:$16 sps:$4 sm:$0xff]  }
 0x643   :  { %14750 = vrcp.f32 %v3566_v1  ;;  %4067 = vmatprep.subr.bf16.mxu1 %v16588_v14  ;;  %4108 = vmatprep.subr.bf16.mxu0 %v16590_v33  ;;  %18776 = vst [vmem:[#allocation75_spill] sm:$0xff] %v16650_v20 }
 0x644   :  { %4097 = vmatprep.mubr.bf16.mxu1 %v18669_v56  ;;  %4138 = vmatprep.mubr.bf16.mxu0 %v18669_v56  ;;  %14752 = vrcp.f32 %v3573_v32  ;;  %v16662_v32 = vld [vmem:[#allocation10 + $0xc8] ss:$16 sps:$4 sm:$0xff]  }
 0x646   :  { %4068 = vmatpush1.bf16.msra.mxu1 %v16594_v35  ;;  %4109 = vmatpush1.bf16.msra.mxu0 %v16596_v36 }
 0x647   :  { %4069 = vmatprep.subr.bf16.mxu1 %v16600_v24  ;;  %4110 = vmatprep.subr.bf16.mxu0 %v16602_v26 }
 0x64a   :  { %4070 = vmatpush1.bf16.msra.mxu1 %v16608_v37  ;;  %4111 = vmatpush1.bf16.msra.mxu0 %v16610_v23 }
 0x64b   :  { %4071 = vmatprep.subr.bf16.mxu1 %v16614_v17  ;;  %4112 = vmatprep.subr.bf16.mxu0 %v16616_v11 }
 0x64c   :  { %v14749_v18 = vpop.eup %14748 }
 0x64d   :  { %v14751_v13 = vpop.eup %14750  ;;  %v3577_v31 = vmul.f32 %v14749_v18, %v14747_v54  ;;  %v16654_v18 = vld [vmem:[#allocation10 + $0xc4] ss:$16 sps:$4 sm:$0xff]  }
 0x64e   :  { %v3576_v1 = vmul.f32 %v14751_v13, %v16443_v34  ;;  %4072 = vmatpush1.bf16.msra.mxu1 %v16620_v39  ;;  %4113 = vmatpush1.bf16.msra.mxu0 %v16622_v10  ;;  %v16648_v34 = vld [vmem:[#allocation10 + $0xa0] ss:$16 sps:$4 sm:$0xff]   ;;  %18777 = vst [vmem:[#allocation76_spill] sm:$0xff] %v16654_v18  ;;  %v16656_v13 = vld [vmem:[#allocation10 + $0xcc] ss:$16 sps:$4 sm:$0xff]  }
 0x64f   :  { %4073 = vmatprep.subr.bf16.mxu1 %v16626_v55  ;;  %4114 = vmatprep.subr.bf16.mxu0 %v16628_v58  ;;  %18775 = vst [vmem:[#allocation74_spill] sm:$0xff] %v16648_v34 }
 0x650   :  { %v16643_v54 = vadd.f32 %v3577_v31, %v3576_v1  ;;  %v16660_v31 = vld [vmem:[#allocation10 + $0xc0] ss:$16 sps:$4 sm:$0xff]   ;;  %v16666_v1 = vld [vmem:[#allocation10 + $0xe4] ss:$16 sps:$4 sm:$0xff]  }
 0x651   :  { %18778 = vst [vmem:[#allocation77_spill] sm:$0xff] %v16660_v31 }
 0x652   :  { %14754 = vtanh.f32 %v16643_v54  ;;  %4074 = vmatpush1.bf16.msra.mxu1 %v16633_v42  ;;  %4115 = vmatpush1.bf16.msra.mxu0 %v16635_v25 }
 0x653   :  { %4075 = vmatprep.subr.bf16.mxu1 %v16639_v60  ;;  %4116 = vmatprep.subr.bf16.mxu0 %v16641_v57  ;;  %v16668_v60 = vld [vmem:[#allocation10 + $0xec] ss:$16 sps:$4 sm:$0xff]   ;;  %v16672_v57 = vld [vmem:[#allocation10 + $0xe0] ss:$16 sps:$4 sm:$0xff]  }
 0x656   :  { %4076 = vmatpush1.bf16.msra.mxu1 %v16648_v34  ;;  %4117 = vmatpush1.bf16.msra.mxu0 %v16650_v20  ;;  %v16674_v34 = vld [vmem:[#allocation10 + $0xe8] ss:$16 sps:$4 sm:$0xff]   ;;  %v14753_v20 = vpop.eup %14752 }
 0x657   :  { %4077 = vmatprep.subr.bf16.mxu1 %v16654_v18  ;;  %4118 = vmatprep.subr.bf16.mxu0 %v16656_v13 }
 0x65a   :  { %4078 = vmatpush1.bf16.msra.mxu1 %v16660_v31  ;;  %4119 = vmatpush1.bf16.msra.mxu0 %v16662_v32 }
 0x65b   :  { %4079 = vmatprep.subr.bf16.mxu1 %v16666_v1  ;;  %4120 = vmatprep.subr.bf16.mxu0 %v16668_v60 }
 0x65c   :  { %v14755_v18 = vpop.eup %14754 }
 0x65d   :  { %v16678_v25 = vmul.f32 %v14755_v18, %v14753_v20  ;;  %v18785_v18 = vld [vmem:[#allocation65_spill] sm:$0xff] }
 0x65e   :  { %4080 = vmatpush1.bf16.msra.mxu1 %v16672_v57  ;;  %4121 = vmatpush1.bf16.msra.mxu0 %v16674_v34 }
 0x65f   :  { %18779 = vst [vmem:[#allocation78_spill] sm:$0xff] %v16678_v25  ;;  %v3872_v31 = vpack.c.bf16 %v16678_v25, %v16678_v25  ;;  %4398 = vmatprep.subr.bf16.mxu1 %v16466_v4  ;;  %4439 = vmatprep.subr.bf16.mxu0 %v16468_v29  ;;  %v16951_v25 = vld [vmem:[#allocation10 + $0xa4] ss:$16 sps:$4 sm:$0xff]  }
 0x660   :  { %18807 = vst [vmem:[#allocation32_spill] sm:$0xff] %v16951_v25 }
 0x661   :  { %4098 = vmatmul.mubr.bf16.vlgmr.msra.gmra.mrb[68].mxu1 %v3872_v31  ;;  %4139 = vmatmul.mubr.bf16.vlgmr.msra.gmra.mrb[76].mxu0 %v3872_v31 }
 0x662   :  { %4399 = vmatpush1.bf16.msra.mxu1 %v16470_v41  ;;  %4440 = vmatpush1.bf16.msra.mxu0 %v16472_v21  ;;  %v18780_v41 = vld [vmem:[#allocation36_spill] sm:$0xff] }
 0x663   :  { %4400 = vmatprep.subr.bf16.mxu1 %v16478_v12  ;;  %4441 = vmatprep.subr.bf16.mxu0 %v16480_v38  ;;  %v18781_v12 = vld [vmem:[#allocation37_spill] sm:$0xff] }
 0x664   :  { %4430 = vmatprep.mubr.bf16.mxu1 %v18669_v56  ;;  %4471 = vmatprep.mubr.bf16.mxu0 %v18669_v56 }
 0x666   :  { %4401 = vmatpush1.bf16.msra.mxu1 %v16482_v19  ;;  %4442 = vmatpush1.bf16.msra.mxu0 %v16484_v16 }
 0x667   :  { %4402 = vmatprep.subr.bf16.mxu1 %v16490_v28  ;;  %4443 = vmatprep.subr.bf16.mxu0 %v16492_v6  ;;  %v18782_v28 = vld [vmem:[#allocation38_spill] sm:$0xff] }
 0x66a   :  { %4403 = vmatpush1.bf16.msra.mxu1 %v16494_v62  ;;  %4444 = vmatpush1.bf16.msra.mxu0 %v16496_v7  ;;  %v18783_v62 = vld [vmem:[#allocation39_spill] sm:$0xff] }
 0x66b   :  { %4404 = vmatprep.subr.bf16.mxu1 %v16502_v9  ;;  %4445 = vmatprep.subr.bf16.mxu0 %v16504_v8 }
 0x66e   :  { %4405 = vmatpush1.bf16.msra.mxu1 %v16506_v61  ;;  %4446 = vmatpush1.bf16.msra.mxu0 %v16508_v30 }
 0x66f   :  { %4406 = vmatprep.subr.bf16.mxu1 %v16514_v63  ;;  %4447 = vmatprep.subr.bf16.mxu0 %v16516_v27 }
 0x672   :  { %4407 = vmatpush1.bf16.msra.mxu1 %v16518_v15  ;;  %4448 = vmatpush1.bf16.msra.mxu0 %v16520_v40 }
 0x673   :  { %4408 = vmatprep.subr.bf16.mxu1 %v16526_v2  ;;  %4449 = vmatprep.subr.bf16.mxu0 %v16528_v44 }
 0x676   :  { %4409 = vmatpush1.bf16.msra.mxu1 %v16530_v45  ;;  %4450 = vmatpush1.bf16.msra.mxu0 %v16532_v46 }
 0x677   :  { %4410 = vmatprep.subr.bf16.mxu1 %v16538_v47  ;;  %4451 = vmatprep.subr.bf16.mxu0 %v16540_v0 }
 0x67a   :  { %4411 = vmatpush1.bf16.msra.mxu1 %v16542_v5  ;;  %4452 = vmatpush1.bf16.msra.mxu0 %v16544_v48 }
 0x67b   :  { %4412 = vmatprep.subr.bf16.mxu1 %v16550_v49  ;;  %4453 = vmatprep.subr.bf16.mxu0 %v16552_v3 }
 0x67e   :  { %4413 = vmatpush1.bf16.msra.mxu1 %v16554_v50  ;;  %4454 = vmatpush1.bf16.msra.mxu0 %v16556_v51 }
 0x67f   :  { %4681 = vmatprep.subr.bf16.mxu1 %v16562_v52  ;;  %4722 = vmatprep.subr.bf16.mxu0 %v16564_v53  ;;  %v18784_v53 = vld [vmem:[#allocation64_spill] sm:$0xff] }
 0x714   :  { %v3816_v4 = vpop.f32.mrb[64].mxu1  ;;  %v3857_v29 = vpop.f32.mrb[72].mxu0 }
 0x715   :  { %v3864_v21 = vadd.f32 %v3816_v4, %v18780_v41  ;;  %v3866_v38 = vadd.f32 %v3857_v29, %v18781_v12  ;;  %v3818_v19 = vpop.f32.mrb[65].mxu1  ;;  %v3859_v16 = vpop.f32.mrb[73].mxu0  ;;  %v18786_v41 = vld [vmem:[#allocation66_spill] sm:$0xff]  ;;  %v18787_v12 = vld [vmem:[#allocation67_spill] sm:$0xff] }
 0x716   :  { %v3865_v6 = vadd.f32 %v3818_v19, %v18782_v28  ;;  %v3867_v7 = vadd.f32 %v3859_v16, %v18783_v62  ;;  %v3820_v9 = vpop.f32.mrb[66].mxu1  ;;  %v3861_v8 = vpop.f32.mrb[74].mxu0 }
 0x717   :  { %v12780_v61 = vmul.f32 -1.442695, %v3864_v21  ;;  %v3821_v30 = vpop.f32.mrb[67].mxu1  ;;  %v3862_v63 = vpop.f32.mrb[75].mxu0 }
 0x718   :  { %v12781_v27 = vmul.f32 -1.442695, %v3865_v6  ;;  %v12782_v15 = vmul.f32 -1.442695, %v3867_v7 }
 0x719   :  { %14756 = vpow2.f32 %v12780_v61 }
 0x71a   :  { %14758 = vpow2.f32 %v12781_v27 }
 0x71b   :  { %14760 = vpow2.f32 %v12782_v15 }
 0x71c   :  { %14762 = vtanh.f32 %v3866_v38 }
 0x723   :  { %v14757_v40 = vpop.eup %14756 }
 0x724   :  { %v14759_v2 = vpop.eup %14758  ;;  %v4154_v44 = vadd.f32 1.0, %v14757_v40 }
 0x725   :  { %v4160_v45 = vadd.f32 1.0, %v14759_v2  ;;  %v14761_v46 = vpop.eup %14760 }
 0x726   :  { %14764 = vrcp.f32 %v4154_v44  ;;  %v14763_v47 = vpop.eup %14762  ;;  %v4167_v49 = vadd.f32 1.0, %v14761_v46  ;;  %v16794_v44 = vld [vmem:[#allocation9 + $0x20] ss:$16 sps:$4 sm:$0xff]   ;;  %v16802_v46 = vld [vmem:[#allocation9 + $0x44] ss:$16 sps:$4 sm:$0xff]  }
 0x727   :  { %14766 = vrcp.f32 %v4160_v45  ;;  %v16796_v45 = vld [vmem:[#allocation9 + $0x28] ss:$16 sps:$4 sm:$0xff]  }
 0x728   :  { %14768 = vrcp.f32 %v4167_v49  ;;  %v16816_v49 = vld [vmem:[#allocation9 + $0x6c] ss:$16 sps:$4 sm:$0xff]  }
 0x730   :  { %v14765_v0 = vpop.eup %14764 }
 0x731   :  { %v14767_v5 = vpop.eup %14766  ;;  %v4171_v48 = vmul.f32 %v14765_v0, %v14763_v47  ;;  %v16804_v47 = vld [vmem:[#allocation9 + $0x4c] ss:$16 sps:$4 sm:$0xff]   ;;  %v16806_v0 = vld [vmem:[#allocation9 + $0x40] ss:$16 sps:$4 sm:$0xff]  }
 0x732   :  { %v4170_v3 = vmul.f32 %v14767_v5, %v16573_v43  ;;  %v14769_v7 = vpop.eup %14768  ;;  %v16808_v5 = vld [vmem:[#allocation9 + $0x48] ss:$16 sps:$4 sm:$0xff]  }
 0x734   :  { %v16725_v50 = vadd.f32 %v4171_v48, %v4170_v3  ;;  %v4099_v51 = vpop.f32.mrb[68].mxu1  ;;  %v4140_v52 = vpop.f32.mrb[76].mxu0  ;;  %v16814_v48 = vld [vmem:[#allocation9 + $0x64] ss:$16 sps:$4 sm:$0xff]   ;;  %v16818_v3 = vld [vmem:[#allocation9 + $0x60] ss:$16 sps:$4 sm:$0xff]  }
 0x735   :  { %v4147_v20 = vadd.f32 %v4099_v51, %v18784_v53  ;;  %v4149_v31 = vadd.f32 %v4140_v52, %v18785_v18  ;;  %v4101_v4 = vpop.f32.mrb[69].mxu1  ;;  %v4142_v29 = vpop.f32.mrb[77].mxu0  ;;  %v16820_v51 = vld [vmem:[#allocation9 + $0x68] ss:$16 sps:$4 sm:$0xff]   ;;  %v16826_v52 = vld [vmem:[#allocation9 + $0x84] ss:$16 sps:$4 sm:$0xff]  }
 0x736   :  { %14770 = vtanh.f32 %v16725_v50  ;;  %v4148_v21 = vadd.f32 %v4101_v4, %v18786_v41  ;;  %v4150_v38 = vadd.f32 %v4142_v29, %v18787_v12  ;;  %v4103_v19 = vpop.f32.mrb[70].mxu1  ;;  %v4144_v16 = vpop.f32.mrb[78].mxu0  ;;  %v16828_v53 = vld [vmem:[#allocation9 + $0x8c] ss:$16 sps:$4 sm:$0xff]   ;;  %v16832_v18 = vld [vmem:[#allocation9 + $0x88] ss:$16 sps:$4 sm:$0xff]  }
 0x737   :  { %v12783_v43 = vmul.f32 -1.442695, %v4147_v20  ;;  %v4104_v28 = vpop.f32.mrb[71].mxu1  ;;  %v4145_v6 = vpop.f32.mrb[79].mxu0  ;;  %v16830_v20 = vld [vmem:[#allocation9 + $0x80] ss:$16 sps:$4 sm:$0xff]  }
 0x738   :  { %v12784_v62 = vmul.f32 -1.442695, %v4148_v21  ;;  %v12785_v8 = vmul.f32 -1.442695, %v4150_v38  ;;  %v16840_v4 = vld [vmem:[#allocation9 + $0xac] ss:$16 sps:$4 sm:$0xff]  }
 0x739   :  { %14772 = vpow2.f32 %v12783_v43  ;;  %v16842_v29 = vld [vmem:[#allocation9 + $0xa0] ss:$16 sps:$4 sm:$0xff]   ;;  %v16844_v41 = vld [vmem:[#allocation9 + $0xa8] ss:$16 sps:$4 sm:$0xff]   ;;  %v16850_v21 = vld [vmem:[#allocation9 + $0xc4] ss:$16 sps:$4 sm:$0xff]  }
 0x73a   :  { %14774 = vpow2.f32 %v12784_v62  ;;  %v16852_v12 = vld [vmem:[#allocation9 + $0xcc] ss:$16 sps:$4 sm:$0xff]   ;;  %v16854_v38 = vld [vmem:[#allocation9 + $0xc0] ss:$16 sps:$4 sm:$0xff]   ;;  %v16856_v19 = vld [vmem:[#allocation9 + $0xc8] ss:$16 sps:$4 sm:$0xff]  }
 0x73b   :  { %14776 = vpow2.f32 %v12785_v8  ;;  %v16862_v16 = vld [vmem:[#allocation9 + $0xe4] ss:$16 sps:$4 sm:$0xff]   ;;  %v16864_v43 = vld [vmem:[#allocation9 + $0xec] ss:$16 sps:$4 sm:$0xff]   ;;  %v16866_v28 = vld [vmem:[#allocation9 + $0xe0] ss:$16 sps:$4 sm:$0xff]  }
 0x73c   :  { %14778 = vtanh.f32 %v4149_v31  ;;  %v16838_v31 = vld [vmem:[#allocation9 + $0xa4] ss:$16 sps:$4 sm:$0xff]   ;;  %v16868_v6 = vld [vmem:[#allocation9 + $0xe8] ss:$16 sps:$4 sm:$0xff]  }
 0x73d   :  { %v16874_v62 = vld [vmem:[#allocation10 + $0x4] ss:$16 sps:$4 sm:$0xff]  }
 0x740   :  { %v14771_v9 = vpop.eup %14770 }
 0x741   :  { %v16732_v61 = vmul.f32 %v14771_v9, %v14769_v7  ;;  %v16876_v7 = vld [vmem:[#allocation10 + $0xc] ss:$16 sps:$4 sm:$0xff]  }
 0x743   :  { %18788 = vst [vmem:[#allocation79_spill] sm:$0xff] %v16732_v61  ;;  %v14773_v30 = vpop.eup %14772  ;;  %v4205_v63 = vpack.c.bf16 %v16732_v61, %v16732_v61  ;;  %v16947_v61 = vld [vmem:[#allocation10 + $0x88] ss:$16 sps:$4 sm:$0xff]  }
 0x744   :  { %v14775_v27 = vpop.eup %14774  ;;  %v4178_v15 = vadd.f32 1.0, %v14773_v30  ;;  %v18797_v30 = vld [vmem:[#allocation40_spill] sm:$0xff]  ;;  %18806 = vst [vmem:[#allocation83_spill] sm:$0xff] %v16947_v61 }
 0x745   :  { %v4184_v40 = vadd.f32 1.0, %v14775_v27  ;;  %4431 = vmatmul.mubr.bf16.vlgmr.msra.gmra.mrb[72].mxu1 %v4205_v63  ;;  %4472 = vmatmul.mubr.bf16.vlgmr.msra.gmra.mrb[80].mxu0 %v4205_v63  ;;  %v18798_v27 = vld [vmem:[#allocation41_spill] sm:$0xff] }
 0x746   :  { %14780 = vrcp.f32 %v4178_v15  ;;  %4682 = vmatpush1.bf16.msra.mxu1 %v16582_v59  ;;  %4723 = vmatpush1.bf16.msra.mxu0 %v16584_v22  ;;  %v14777_v59 = vpop.eup %14776 }
 0x747   :  { %14782 = vrcp.f32 %v4184_v40  ;;  %4683 = vmatprep.subr.bf16.mxu1 %v16588_v14  ;;  %4724 = vmatprep.subr.bf16.mxu0 %v16590_v33  ;;  %v14779_v22 = vpop.eup %14778 }
 0x748   :  { %4713 = vmatprep.mubr.bf16.mxu1 %v18669_v56  ;;  %4754 = vmatprep.mubr.bf16.mxu0 %v18669_v56 }
 0x74a   :  { %4684 = vmatpush1.bf16.msra.mxu1 %v16594_v35  ;;  %4725 = vmatpush1.bf16.msra.mxu0 %v16596_v36  ;;  %v4191_v35 = vadd.f32 1.0, %v14777_v59 }
 0x74b   :  { %4685 = vmatprep.subr.bf16.mxu1 %v16600_v24  ;;  %4726 = vmatprep.subr.bf16.mxu0 %v16602_v26  ;;  %v18789_v26 = vld [vmem:[#allocation31_spill] sm:$0xff] }
 0x74c   :  { %14784 = vrcp.f32 %v4191_v35 }
 0x74e   :  { %4686 = vmatpush1.bf16.msra.mxu1 %v16608_v37  ;;  %4727 = vmatpush1.bf16.msra.mxu0 %v16610_v23  ;;  %v18790_v37 = vld [vmem:[#allocation72_spill] sm:$0xff]  ;;  %v18791_v23 = vld [vmem:[#allocation73_spill] sm:$0xff] }
 0x74f   :  { %4687 = vmatprep.subr.bf16.mxu1 %v16614_v17  ;;  %4728 = vmatprep.subr.bf16.mxu0 %v16616_v11  ;;  %v18792_v17 = vld [vmem:[#allocation74_spill] sm:$0xff]  ;;  %v18793_v11 = vld [vmem:[#allocation75_spill] sm:$0xff] }
 0x750   :  { %v14781_v14 = vpop.eup %14780 }
 0x751   :  { %v14783_v33 = vpop.eup %14782  ;;  %v4195_v2 = vmul.f32 %v14781_v14, %v14779_v22  ;;  %v18799_v22 = vld [vmem:[#allocation42_spill] sm:$0xff] }
 0x752   :  { %v4194_v36 = vmul.f32 %v14783_v33, %v16643_v54  ;;  %4688 = vmatpush1.bf16.msra.mxu1 %v16620_v39  ;;  %4729 = vmatpush1.bf16.msra.mxu0 %v16622_v10  ;;  %v18794_v39 = vld [vmem:[#allocation76_spill] sm:$0xff]  ;;  %v18795_v10 = vld [vmem:[#allocation77_spill] sm:$0xff]  ;;  %v18800_v33 = vld [vmem:[#allocation43_spill] sm:$0xff] }
 0x753   :  { %4689 = vmatprep.subr.bf16.mxu1 %v16626_v55  ;;  %4730 = vmatprep.subr.bf16.mxu0 %v16628_v58 }
 0x754   :  { %v16755_v24 = vadd.f32 %v4195_v2, %v4194_v36 }
 0x756   :  { %14786 = vtanh.f32 %v16755_v24  ;;  %4690 = vmatpush1.bf16.msra.mxu1 %v16633_v42  ;;  %4731 = vmatpush1.bf16.msra.mxu0 %v18789_v26  ;;  %v14785_v55 = vpop.eup %14784 }
 0x757   :  { %4691 = vmatprep.subr.bf16.mxu1 %v18790_v37  ;;  %4732 = vmatprep.subr.bf16.mxu0 %v18791_v23 }
 0x75a   :  { %4692 = vmatpush1.bf16.msra.mxu1 %v18792_v17  ;;  %4733 = vmatpush1.bf16.msra.mxu0 %v18793_v11 }
 0x75b   :  { %4693 = vmatprep.subr.bf16.mxu1 %v18794_v39  ;;  %4734 = vmatprep.subr.bf16.mxu0 %v16656_v13  ;;  %v16778_v13 = vld [vmem:[#allocation9 + $0x4] ss:$16 sps:$4 sm:$0xff]  }
 0x75e   :  { %4694 = vmatpush1.bf16.msra.mxu1 %v18795_v10  ;;  %4735 = vmatpush1.bf16.msra.mxu0 %v16662_v32  ;;  %v16780_v32 = vld [vmem:[#allocation9 + $0xc] ss:$16 sps:$4 sm:$0xff]  }
 0x75f   :  { %4695 = vmatprep.subr.bf16.mxu1 %v16666_v1  ;;  %4736 = vmatprep.subr.bf16.mxu0 %v16668_v60  ;;  %v16782_v60 = vld [vmem:[#allocation9] ss:$16 sps:$4 sm:$0xff]   ;;  %v16784_v1 = vld [vmem:[#allocation9 + $0x8] ss:$16 sps:$4 sm:$0xff]  }
 0x760   :  { %v14787_v42 = vpop.eup %14786 }
 0x761   :  { %v16770_v58 = vmul.f32 %v14787_v42, %v14785_v55 }
 0x762   :  { %4696 = vmatpush1.bf16.msra.mxu1 %v16672_v57  ;;  %4737 = vmatpush1.bf16.msra.mxu0 %v16674_v34  ;;  %v16790_v57 = vld [vmem:[#allocation9 + $0x24] ss:$16 sps:$4 sm:$0xff]   ;;  %v16792_v34 = vld [vmem:[#allocation9 + $0x2c] ss:$16 sps:$4 sm:$0xff]  }
 0x763   :  { %18796 = vst [vmem:[#allocation81_spill] sm:$0xff] %v16770_v58  ;;  %v4488_v54 = vpack.c.bf16 %v16770_v58, %v16770_v58  ;;  %5014 = vmatprep.subr.bf16.mxu1 %v16778_v13  ;;  %5055 = vmatprep.subr.bf16.mxu0 %v16780_v32  ;;  %v16953_v58 = vld [vmem:[#allocation10 + $0xac] ss:$16 sps:$4 sm:$0xff]  }
 0x764   :  { %18808 = vst [vmem:[#allocation33_spill] sm:$0xff] %v16953_v58 }
 0x765   :  { %4714 = vmatmul.mubr.bf16.vlgmr.msra.gmra.mrb[76].mxu1 %v4488_v54  ;;  %4755 = vmatmul.mubr.bf16.vlgmr.msra.gmra.mrb[84].mxu0 %v4488_v54 }
 0x766   :  { %5046 = vmatprep.mubr.bf16.mxu1 %v18669_v56  ;;  %5087 = vmatprep.mubr.bf16.mxu0 %v18669_v56 }
 0x767   :  { %5015 = vmatpush1.bf16.msra.mxu1 %v16782_v60  ;;  %5056 = vmatpush1.bf16.msra.mxu0 %v16784_v1 }
 0x768   :  { %5016 = vmatprep.subr.bf16.mxu1 %v16790_v57  ;;  %5057 = vmatprep.subr.bf16.mxu0 %v16792_v34 }
 0x76b   :  { %5017 = vmatpush1.bf16.msra.mxu1 %v16794_v44  ;;  %5058 = vmatpush1.bf16.msra.mxu0 %v16796_v45 }
 0x76c   :  { %5018 = vmatprep.subr.bf16.mxu1 %v16802_v46  ;;  %5059 = vmatprep.subr.bf16.mxu0 %v16804_v47 }
 0x76f   :  { %5019 = vmatpush1.bf16.msra.mxu1 %v16806_v0  ;;  %5060 = vmatpush1.bf16.msra.mxu0 %v16808_v5 }
 0x770   :  { %5020 = vmatprep.subr.bf16.mxu1 %v16814_v48  ;;  %5061 = vmatprep.subr.bf16.mxu0 %v16816_v49 }
 0x773   :  { %5021 = vmatpush1.bf16.msra.mxu1 %v16818_v3  ;;  %5062 = vmatpush1.bf16.msra.mxu0 %v16820_v51 }
 0x774   :  { %5022 = vmatprep.subr.bf16.mxu1 %v16826_v52  ;;  %5063 = vmatprep.subr.bf16.mxu0 %v16828_v53 }
 0x777   :  { %5023 = vmatpush1.bf16.msra.mxu1 %v16830_v20  ;;  %5064 = vmatpush1.bf16.msra.mxu0 %v16832_v18 }
 0x778   :  { %5024 = vmatprep.subr.bf16.mxu1 %v16838_v31  ;;  %5065 = vmatprep.subr.bf16.mxu0 %v16840_v4 }
 0x77b   :  { %5025 = vmatpush1.bf16.msra.mxu1 %v16842_v29  ;;  %5066 = vmatpush1.bf16.msra.mxu0 %v16844_v41 }
 0x77c   :  { %5026 = vmatprep.subr.bf16.mxu1 %v16850_v21  ;;  %5067 = vmatprep.subr.bf16.mxu0 %v16852_v12 }
 0x77f   :  { %5027 = vmatpush1.bf16.msra.mxu1 %v16854_v38  ;;  %5068 = vmatpush1.bf16.msra.mxu0 %v16856_v19 }
 0x780   :  { %5028 = vmatprep.subr.bf16.mxu1 %v16862_v16  ;;  %5069 = vmatprep.subr.bf16.mxu0 %v16864_v43 }
 0x783   :  { %5029 = vmatpush1.bf16.msra.mxu1 %v16866_v28  ;;  %5070 = vmatpush1.bf16.msra.mxu0 %v16868_v6 }
 0x784   :  { %5297 = vmatprep.subr.bf16.mxu1 %v16874_v62  ;;  %5338 = vmatprep.subr.bf16.mxu0 %v16876_v7 }
 0x818   :  { %v4432_v9 = vpop.f32.mrb[72].mxu1  ;;  %v4473_v8 = vpop.f32.mrb[80].mxu0 }
 0x819   :  { %v4480_v63 = vadd.f32 %v4432_v9, %v18797_v30  ;;  %v4482_v15 = vadd.f32 %v4473_v8, %v18798_v27  ;;  %v4434_v40 = vpop.f32.mrb[73].mxu1  ;;  %v4475_v59 = vpop.f32.mrb[81].mxu0 }
 0x81a   :  { %v4481_v14 = vadd.f32 %v4434_v40, %v18799_v22  ;;  %v4483_v2 = vadd.f32 %v4475_v59, %v18800_v33  ;;  %v4436_v35 = vpop.f32.mrb[74].mxu1  ;;  %v4477_v36 = vpop.f32.mrb[82].mxu0  ;;  %v18801_v33 = vld [vmem:[#allocation60_spill] sm:$0xff] }
 0x81b   :  { %v12850_v26 = vmul.f32 -1.442695, %v4480_v63  ;;  %v4437_v37 = vpop.f32.mrb[75].mxu1  ;;  %v4478_v23 = vpop.f32.mrb[83].mxu0  ;;  %v18802_v35 = vld [vmem:[#allocation61_spill] sm:$0xff] }
 0x81c   :  { %v12851_v17 = vmul.f32 -1.442695, %v4481_v14  ;;  %v12852_v11 = vmul.f32 -1.442695, %v4483_v2  ;;  %v18803_v37 = vld [vmem:[#allocation62_spill] sm:$0xff] }
 0x81d   :  { %14788 = vpow2.f32 %v12850_v26 }
 0x81e   :  { %14790 = vpow2.f32 %v12851_v17  ;;  %v18804_v17 = vld [vmem:[#allocation63_spill] sm:$0xff] }
 0x81f   :  { %14792 = vpow2.f32 %v12852_v11 }
 0x820   :  { %14794 = vtanh.f32 %v4482_v15 }
 0x827   :  { %v14789_v39 = vpop.eup %14788 }
 0x828   :  { %v14791_v10 = vpop.eup %14790  ;;  %v4770_v55 = vadd.f32 1.0, %v14789_v39 }
 0x829   :  { %v4776_v42 = vadd.f32 1.0, %v14791_v10  ;;  %v14793_v54 = vpop.eup %14792 }
 0x82a   :  { %14796 = vrcp.f32 %v4770_v55  ;;  %v14795_v9 = vpop.eup %14794  ;;  %v4783_v63 = vadd.f32 1.0, %v14793_v54 }
 0x82b   :  { %14798 = vrcp.f32 %v4776_v42 }
 0x82c   :  { %14800 = vrcp.f32 %v4783_v63  ;;  %v16894_v63 = vld [vmem:[#allocation10] ss:$16 sps:$4 sm:$0xff]  }
 0x834   :  { %v14797_v8 = vpop.eup %14796 }
 0x835   :  { %v14799_v30 = vpop.eup %14798  ;;  %v4787_v27 = vmul.f32 %v14797_v8, %v14795_v9 }
 0x836   :  { %v4786_v40 = vmul.f32 %v14799_v30, %v16725_v50  ;;  %v14801_v9 = vpop.eup %14800 }
 0x838   :  { %v16885_v59 = vadd.f32 %v4787_v27, %v4786_v40  ;;  %v4715_v22 = vpop.f32.mrb[76].mxu1  ;;  %v4756_v14 = vpop.f32.mrb[84].mxu0  ;;  %v16896_v40 = vld [vmem:[#allocation10 + $0x8] ss:$16 sps:$4 sm:$0xff]  }
 0x839   :  { %v4763_v2 = vadd.f32 %v4715_v22, %v18801_v33  ;;  %v4765_v15 = vadd.f32 %v4756_v14, %v18802_v35  ;;  %v4717_v36 = vpop.f32.mrb[77].mxu1  ;;  %v4758_v26 = vpop.f32.mrb[85].mxu0  ;;  %v16900_v33 = vld [vmem:[#allocation10 + $0x24] ss:$16 sps:$4 sm:$0xff]  }
 0x83a   :  { %14802 = vtanh.f32 %v16885_v59  ;;  %v4764_v23 = vadd.f32 %v4717_v36, %v18803_v37  ;;  %v4766_v11 = vadd.f32 %v4758_v26, %v18804_v17  ;;  %v4719_v39 = vpop.f32.mrb[78].mxu1  ;;  %v4760_v10 = vpop.f32.mrb[86].mxu0  ;;  %v16906_v37 = vld [vmem:[#allocation10 + $0x20] ss:$16 sps:$4 sm:$0xff]   ;;  %v16912_v17 = vld [vmem:[#allocation10 + $0x44] ss:$16 sps:$4 sm:$0xff]  }
 0x83b   :  { %v12853_v50 = vmul.f32 -1.442695, %v4763_v2  ;;  %v4720_v55 = vpop.f32.mrb[79].mxu1  ;;  %v4761_v42 = vpop.f32.mrb[87].mxu0  ;;  %v16902_v2 = vld [vmem:[#allocation10 + $0x2c] ss:$16 sps:$4 sm:$0xff]  }
 0x83c   :  { %v12854_v54 = vmul.f32 -1.442695, %v4764_v23  ;;  %v12855_v30 = vmul.f32 -1.442695, %v4766_v11  ;;  %v16908_v23 = vld [vmem:[#allocation10 + $0x28] ss:$16 sps:$4 sm:$0xff]  }
 0x83d   :  { %14804 = vpow2.f32 %v12853_v50  ;;  %v16920_v11 = vld [vmem:[#allocation10 + $0x40] ss:$16 sps:$4 sm:$0xff]   ;;  %v16922_v39 = vld [vmem:[#allocation10 + $0x48] ss:$16 sps:$4 sm:$0xff]   ;;  %v16926_v10 = vld [vmem:[#allocation10 + $0x64] ss:$16 sps:$4 sm:$0xff]  }
 0x83e   :  { %14806 = vpow2.f32 %v12854_v54  ;;  %v16928_v50 = vld [vmem:[#allocation10 + $0x6c] ss:$16 sps:$4 sm:$0xff]   ;;  %v16932_v42 = vld [vmem:[#allocation10 + $0x60] ss:$16 sps:$4 sm:$0xff]   ;;  %v16934_v54 = vld [vmem:[#allocation10 + $0x68] ss:$16 sps:$4 sm:$0xff]  }
 0x83f   :  { %14808 = vpow2.f32 %v12855_v30  ;;  %v16940_v30 = vld [vmem:[#allocation10 + $0x8c] ss:$16 sps:$4 sm:$0xff]  }
 0x840   :  { %14810 = vtanh.f32 %v4765_v15  ;;  %v16914_v15 = vld [vmem:[#allocation10 + $0x4c] ss:$16 sps:$4 sm:$0xff]  }
 0x844   :  { %v14803_v8 = vpop.eup %14802 }
 0x845   :  { %v16892_v27 = vmul.f32 %v14803_v8, %v14801_v9  ;;  %v16938_v8 = vld [vmem:[#allocation10 + $0x84] ss:$16 sps:$4 sm:$0xff]  }
 0x847   :  { %18805 = vst [vmem:[#allocation82_spill] sm:$0xff] %v16892_v27  ;;  %v14805_v22 = vpop.eup %14804  ;;  %v4821_v14 = vpack.c.bf16 %v16892_v27, %v16892_v27  ;;  %v16945_v27 = vld [vmem:[#allocation10 + $0x80] ss:$16 sps:$4 sm:$0xff]  }
 0x848   :  { %v14807_v35 = vpop.eup %14806  ;;  %v4794_v36 = vadd.f32 1.0, %v14805_v22 }
 0x849   :  { %v4800_v26 = vadd.f32 1.0, %v14807_v35  ;;  %5047 = vmatmul.mubr.bf16.vlgmr.msra.gmra.mrb[80].mxu1 %v4821_v14  ;;  %5088 = vmatmul.mubr.bf16.vlgmr.msra.gmra.mrb[88].mxu0 %v4821_v14  ;;  %v14809_v55 = vpop.eup %14808 }
 0x84a   :  { %14812 = vrcp.f32 %v4794_v36  ;;  %5298 = vmatpush1.bf16.msra.mxu1 %v16894_v63  ;;  %5339 = vmatpush1.bf16.msra.mxu0 %v16896_v40  ;;  %v14811_v9 = vpop.eup %14810  ;;  %v4807_v36 = vadd.f32 1.0, %v14809_v55  ;;  %v16962_v55 = vld [vmem:[#allocation10 + $0xa8] ss:$16 sps:$4 sm:$0xff]  }
 0x84b   :  { %14814 = vrcp.f32 %v4800_v26  ;;  %5299 = vmatprep.subr.bf16.mxu1 %v16900_v33  ;;  %5340 = vmatprep.subr.bf16.mxu0 %v16902_v2  ;;  %18810 = vst [vmem:[#allocation35_spill] sm:$0xff] %v16962_v55 }
 0x84c   :  { %5329 = vmatprep.mubr.bf16.mxu1 %v18669_v56  ;;  %5370 = vmatprep.mubr.bf16.mxu0 %v18669_v56  ;;  %14816 = vrcp.f32 %v4807_v36  ;;  %v16974_v36 = vld [vmem:[#allocation10 + $0xc8] ss:$16 sps:$4 sm:$0xff]  }
 0x84e   :  { %5300 = vmatpush1.bf16.msra.mxu1 %v16906_v37  ;;  %5341 = vmatpush1.bf16.msra.mxu0 %v16908_v23 }
 0x84f   :  { %5301 = vmatprep.subr.bf16.mxu1 %v16912_v17  ;;  %5342 = vmatprep.subr.bf16.mxu0 %v16914_v15 }
 0x852   :  { %5302 = vmatpush1.bf16.msra.mxu1 %v16920_v11  ;;  %5343 = vmatpush1.bf16.msra.mxu0 %v16922_v39 }
 0x853   :  { %5303 = vmatprep.subr.bf16.mxu1 %v16926_v10  ;;  %5344 = vmatprep.subr.bf16.mxu0 %v16928_v50 }
 0x854   :  { %v14813_v22 = vpop.eup %14812 }
 0x855   :  { %v14815_v14 = vpop.eup %14814  ;;  %v4811_v35 = vmul.f32 %v14813_v22, %v14811_v9  ;;  %v16966_v22 = vld [vmem:[#allocation10 + $0xc4] ss:$16 sps:$4 sm:$0xff]  }
 0x856   :  { %v4810_v26 = vmul.f32 %v14815_v14, %v16755_v24  ;;  %5304 = vmatpush1.bf16.msra.mxu1 %v16932_v42  ;;  %5345 = vmatpush1.bf16.msra.mxu0 %v16934_v54  ;;  %v16960_v24 = vld [vmem:[#allocation10 + $0xa0] ss:$16 sps:$4 sm:$0xff]   ;;  %18811 = vst [vmem:[#allocation68_spill] sm:$0xff] %v16966_v22  ;;  %v16968_v14 = vld [vmem:[#allocation10 + $0xcc] ss:$16 sps:$4 sm:$0xff]  }
 0x857   :  { %5305 = vmatprep.subr.bf16.mxu1 %v16938_v8  ;;  %5346 = vmatprep.subr.bf16.mxu0 %v16940_v30  ;;  %18809 = vst [vmem:[#allocation34_spill] sm:$0xff] %v16960_v24 }
 0x858   :  { %v16955_v9 = vadd.f32 %v4811_v35, %v4810_v26  ;;  %v16972_v35 = vld [vmem:[#allocation10 + $0xc0] ss:$16 sps:$4 sm:$0xff]   ;;  %v16978_v26 = vld [vmem:[#allocation10 + $0xe4] ss:$16 sps:$4 sm:$0xff]  }
 0x859   :  { %18812 = vst [vmem:[#allocation69_spill] sm:$0xff] %v16972_v35 }
 0x85a   :  { %14818 = vtanh.f32 %v16955_v9  ;;  %5306 = vmatpush1.bf16.msra.mxu1 %v16945_v27  ;;  %5347 = vmatpush1.bf16.msra.mxu0 %v16947_v61 }
 0x85b   :  { %5307 = vmatprep.subr.bf16.mxu1 %v16951_v25  ;;  %5348 = vmatprep.subr.bf16.mxu0 %v16953_v58  ;;  %v16980_v25 = vld [vmem:[#allocation10 + $0xec] ss:$16 sps:$4 sm:$0xff]   ;;  %v16984_v58 = vld [vmem:[#allocation10 + $0xe0] ss:$16 sps:$4 sm:$0xff]  }
 0x85e   :  { %5308 = vmatpush1.bf16.msra.mxu1 %v16960_v24  ;;  %5349 = vmatpush1.bf16.msra.mxu0 %v16962_v55  ;;  %v16986_v24 = vld [vmem:[#allocation10 + $0xe8] ss:$16 sps:$4 sm:$0xff]   ;;  %v14817_v55 = vpop.eup %14816 }
 0x85f   :  { %5309 = vmatprep.subr.bf16.mxu1 %v16966_v22  ;;  %5350 = vmatprep.subr.bf16.mxu0 %v16968_v14 }
 0x862   :  { %5310 = vmatpush1.bf16.msra.mxu1 %v16972_v35  ;;  %5351 = vmatpush1.bf16.msra.mxu0 %v16974_v36 }
 0x863   :  { %5311 = vmatprep.subr.bf16.mxu1 %v16978_v26  ;;  %5352 = vmatprep.subr.bf16.mxu0 %v16980_v25 }
 0x864   :  { %v14819_v22 = vpop.eup %14818 }
 0x865   :  { %v16990_v61 = vmul.f32 %v14819_v22, %v14817_v55  ;;  %v18818_v22 = vld [vmem:[#allocation57_spill] sm:$0xff] }
 0x866   :  { %5312 = vmatpush1.bf16.msra.mxu1 %v16984_v58  ;;  %5353 = vmatpush1.bf16.msra.mxu0 %v16986_v24 }
 0x867   :  { %v5104_v35 = vpack.c.bf16 %v16990_v61, %v16990_v61  ;;  %5630 = vmatprep.subr.bf16.mxu1 %v16778_v13  ;;  %5671 = vmatprep.subr.bf16.mxu0 %v16780_v32 }
 0x869   :  { %5330 = vmatmul.mubr.bf16.vlgmr.msra.gmra.mrb[84].mxu1 %v5104_v35  ;;  %5371 = vmatmul.mubr.bf16.vlgmr.msra.gmra.mrb[92].mxu0 %v5104_v35 }
 0x86a   :  { %5631 = vmatpush1.bf16.msra.mxu1 %v16782_v60  ;;  %5672 = vmatpush1.bf16.msra.mxu0 %v16784_v1  ;;  %v18813_v60 = vld [vmem:[#allocation44_spill] sm:$0xff] }
 0x86b   :  { %5632 = vmatprep.subr.bf16.mxu1 %v16790_v57  ;;  %5673 = vmatprep.subr.bf16.mxu0 %v16792_v34  ;;  %v18814_v57 = vld [vmem:[#allocation45_spill] sm:$0xff] }
 0x86c   :  { %5662 = vmatprep.mubr.bf16.mxu1 %v18669_v56  ;;  %5703 = vmatprep.mubr.bf16.mxu0 %v18669_v56 }
 0x86e   :  { %5633 = vmatpush1.bf16.msra.mxu1 %v16794_v44  ;;  %5674 = vmatpush1.bf16.msra.mxu0 %v16796_v45 }
 0x86f   :  { %5634 = vmatprep.subr.bf16.mxu1 %v16802_v46  ;;  %5675 = vmatprep.subr.bf16.mxu0 %v16804_v47  ;;  %v18815_v46 = vld [vmem:[#allocation46_spill] sm:$0xff] }
 0x872   :  { %5635 = vmatpush1.bf16.msra.mxu1 %v16806_v0  ;;  %5676 = vmatpush1.bf16.msra.mxu0 %v16808_v5  ;;  %v18816_v0 = vld [vmem:[#allocation47_spill] sm:$0xff] }
 0x873   :  { %5636 = vmatprep.subr.bf16.mxu1 %v16814_v48  ;;  %5677 = vmatprep.subr.bf16.mxu0 %v16816_v49 }
 0x876   :  { %5637 = vmatpush1.bf16.msra.mxu1 %v16818_v3  ;;  %5678 = vmatpush1.bf16.msra.mxu0 %v16820_v51 }
 0x877   :  { %5638 = vmatprep.subr.bf16.mxu1 %v16826_v52  ;;  %5679 = vmatprep.subr.bf16.mxu0 %v16828_v53 }
 0x87a   :  { %5639 = vmatpush1.bf16.msra.mxu1 %v16830_v20  ;;  %5680 = vmatpush1.bf16.msra.mxu0 %v16832_v18 }
 0x87b   :  { %5640 = vmatprep.subr.bf16.mxu1 %v16838_v31  ;;  %5681 = vmatprep.subr.bf16.mxu0 %v16840_v4 }
 0x87e   :  { %5641 = vmatpush1.bf16.msra.mxu1 %v16842_v29  ;;  %5682 = vmatpush1.bf16.msra.mxu0 %v16844_v41 }
 0x87f   :  { %5642 = vmatprep.subr.bf16.mxu1 %v16850_v21  ;;  %5683 = vmatprep.subr.bf16.mxu0 %v16852_v12 }
 0x882   :  { %5643 = vmatpush1.bf16.msra.mxu1 %v16854_v38  ;;  %5684 = vmatpush1.bf16.msra.mxu0 %v16856_v19 }
 0x883   :  { %5644 = vmatprep.subr.bf16.mxu1 %v16862_v16  ;;  %5685 = vmatprep.subr.bf16.mxu0 %v16864_v43 }
 0x886   :  { %5645 = vmatpush1.bf16.msra.mxu1 %v16866_v28  ;;  %5686 = vmatpush1.bf16.msra.mxu0 %v16868_v6 }
 0x887   :  { %5913 = vmatprep.subr.bf16.mxu1 %v16874_v62  ;;  %5954 = vmatprep.subr.bf16.mxu0 %v16876_v7  ;;  %v18817_v7 = vld [vmem:[#allocation56_spill] sm:$0xff] }
 0x91c   :  { %v5048_v13 = vpop.f32.mrb[80].mxu1  ;;  %v5089_v32 = vpop.f32.mrb[88].mxu0 }
 0x91d   :  { %v5096_v1 = vadd.f32 %v5048_v13, %v18813_v60  ;;  %v5098_v34 = vadd.f32 %v5089_v32, %v18814_v57  ;;  %v5050_v44 = vpop.f32.mrb[81].mxu1  ;;  %v5091_v45 = vpop.f32.mrb[89].mxu0  ;;  %v18819_v60 = vld [vmem:[#allocation58_spill] sm:$0xff]  ;;  %v18820_v57 = vld [vmem:[#allocation59_spill] sm:$0xff] }
 0x91e   :  { %v5097_v47 = vadd.f32 %v5050_v44, %v18815_v46  ;;  %v5099_v5 = vadd.f32 %v5091_v45, %v18816_v0  ;;  %v5052_v48 = vpop.f32.mrb[82].mxu1  ;;  %v5093_v49 = vpop.f32.mrb[90].mxu0 }
 0x91f   :  { %v12920_v3 = vmul.f32 -1.442695, %v5096_v1  ;;  %v5053_v51 = vpop.f32.mrb[83].mxu1  ;;  %v5094_v52 = vpop.f32.mrb[91].mxu0 }
 0x920   :  { %v12921_v53 = vmul.f32 -1.442695, %v5097_v47  ;;  %v12922_v20 = vmul.f32 -1.442695, %v5099_v5 }
 0x921   :  { %14820 = vpow2.f32 %v12920_v3 }
 0x922   :  { %14822 = vpow2.f32 %v12921_v53 }
 0x923   :  { %14824 = vpow2.f32 %v12922_v20 }
 0x924   :  { %14826 = vtanh.f32 %v5098_v34 }
 0x92b   :  { %v14821_v18 = vpop.eup %14820 }
 0x92c   :  { %v14823_v31 = vpop.eup %14822  ;;  %v5386_v4 = vadd.f32 1.0, %v14821_v18 }
 0x92d   :  { %v5392_v29 = vadd.f32 1.0, %v14823_v31  ;;  %v14825_v41 = vpop.eup %14824 }
 0x92e   :  { %14828 = vrcp.f32 %v5386_v4  ;;  %v14827_v21 = vpop.eup %14826  ;;  %v5399_v16 = vadd.f32 1.0, %v14825_v41  ;;  %v6077_v4 = vld [vmem:[#allocation12 + $0x20] sm:$0xff]  ;;  %v6078_v41 = vld [vmem:[#allocation12 + $0x28] sm:$0xff] }
 0x92f   :  { %14830 = vrcp.f32 %v5392_v29 }
 0x930   :  { %14832 = vrcp.f32 %v5399_v16 }
 0x938   :  { %v14829_v12 = vpop.eup %14828 }
 0x939   :  { %v14831_v38 = vpop.eup %14830  ;;  %v5403_v19 = vmul.f32 %v14829_v12, %v14827_v21  ;;  %v6081_v12 = vld [vmem:[#allocation12 + $0x40] sm:$0xff] }
 0x93a   :  { %v5402_v43 = vmul.f32 %v14831_v38, %v16885_v59  ;;  %v14833_v5 = vpop.eup %14832  ;;  %v6082_v38 = vld [vmem:[#allocation12 + $0x48] sm:$0xff] }
 0x93c   :  { %v17037_v28 = vadd.f32 %v5403_v19, %v5402_v43  ;;  %v5331_v6 = vpop.f32.mrb[84].mxu1  ;;  %v5372_v62 = vpop.f32.mrb[92].mxu0  ;;  %v6086_v19 = vld [vmem:[#allocation12 + $0x68] sm:$0xff] }
 0x93d   :  { %v5379_v55 = vadd.f32 %v5331_v6, %v18817_v7  ;;  %v5381_v35 = vadd.f32 %v5372_v62, %v18818_v22  ;;  %v5333_v13 = vpop.f32.mrb[85].mxu1  ;;  %v5374_v32 = vpop.f32.mrb[93].mxu0  ;;  %v13006_v43 = vcombine.low %v6082_v38, %v6086_v19  ;;  %v13007_v6 = vcombine.high %v6082_v38, %v6086_v19  ;;  %v6089_v62 = vld [vmem:[#allocation12 + $0x80] sm:$0xff]  ;;  %v6142_v38 = vld [vmem:[#allocation12 + $0x228] sm:$0xff] }
 0x93e   :  { %14834 = vtanh.f32 %v17037_v28  ;;  %v5380_v1 = vadd.f32 %v5333_v13, %v18819_v60  ;;  %v5382_v34 = vadd.f32 %v5374_v32, %v18820_v57  ;;  %v5335_v44 = vpop.f32.mrb[86].mxu1  ;;  %v5376_v45 = vpop.f32.mrb[94].mxu0  ;;  %v6093_v7 = vld [vmem:[#allocation12 + $0xa0] sm:$0xff] }
 0x93f   :  { %v12923_v59 = vmul.f32 -1.442695, %v5379_v55  ;;  %v5336_v46 = vpop.f32.mrb[87].mxu1  ;;  %v5377_v47 = vpop.f32.mrb[95].mxu0  ;;  %v6090_v55 = vld [vmem:[#allocation12 + $0x88] sm:$0xff]  ;;  %v13013_v22 = vcombine.high %v6089_v62, %v6093_v7  ;;  %v13012_v13 = vcombine.low %v6089_v62, %v6093_v7  ;;  %v6101_v57 = vld [vmem:[#allocation12 + $0xe0] sm:$0xff] }
 0x940   :  { %v12924_v0 = vmul.f32 -1.442695, %v5380_v1  ;;  %v12925_v49 = vmul.f32 -1.442695, %v5382_v34  ;;  %v6097_v1 = vld [vmem:[#allocation12 + $0xc0] sm:$0xff]  ;;  %v6098_v34 = vld [vmem:[#allocation12 + $0xc8] sm:$0xff] }
 0x941   :  { %14836 = vpow2.f32 %v12923_v59  ;;  %v13021_v44 = vcombine.high %v6097_v1, %v6101_v57  ;;  %v6102_v45 = vld [vmem:[#allocation12 + $0xe8] sm:$0xff]  ;;  %v13020_v59 = vcombine.low %v6097_v1, %v6101_v57 }
 0x942   :  { %14838 = vpow2.f32 %v12924_v0  ;;  %v13022_v46 = vcombine.low %v6098_v34, %v6102_v45  ;;  %v13023_v47 = vcombine.high %v6098_v34, %v6102_v45  ;;  %v6105_v0 = vld [vmem:[#allocation12 + $0x100] sm:$0xff]  ;;  %v6146_v62 = vld [vmem:[#allocation12 + $0x248] sm:$0xff] }
 0x943   :  { %14840 = vpow2.f32 %v12925_v49  ;;  %v6154_v1 = vld [vmem:[#allocation12 + $0x288] sm:$0xff] }
 0x944   :  { %14842 = vtanh.f32 %v5381_v35  ;;  %v6094_v35 = vld [vmem:[#allocation12 + $0xa8] sm:$0xff] }
 0x945   :  { %v13014_v32 = vcombine.low %v6090_v55, %v6094_v35  ;;  %v13015_v60 = vcombine.high %v6090_v55, %v6094_v35  ;;  %v6150_v55 = vld [vmem:[#allocation12 + $0x268] sm:$0xff] }
 0x946   :  { %v13070_v35 = vcombine.low %v6146_v62, %v6150_v55  ;;  %v6158_v34 = vld [vmem:[#allocation12 + $0x2a8] sm:$0xff] }
 0x947   :  { %v13078_v45 = vcombine.low %v6154_v1, %v6158_v34 }
 0x948   :  { %v14835_v48 = vpop.eup %14834 }
 0x949   :  { %v17044_v3 = vmul.f32 %v14835_v48, %v14833_v5  ;;  %v6109_v5 = vld [vmem:[#allocation12 + $0x120] sm:$0xff]  ;;  %v6106_v48 = vld [vmem:[#allocation12 + $0x108] sm:$0xff] }
 0x94a   :  { %v13029_v49 = vcombine.high %v6105_v0, %v6109_v5 }
 0x94b   :  { %v14837_v51 = vpop.eup %14836  ;;  %v5437_v52 = vpack.c.bf16 %v17044_v3, %v17044_v3 }
 0x94c   :  { %v14839_v53 = vpop.eup %14838  ;;  %v5410_v20 = vadd.f32 1.0, %v14837_v51  ;;  %v6110_v51 = vld [vmem:[#allocation12 + $0x128] sm:$0xff] }
 0x94d   :  { %v5416_v18 = vadd.f32 1.0, %v14839_v53  ;;  %5663 = vmatmul.mubr.bf16.vlgmr.msra.gmra.mrb[88].mxu1 %v5437_v52  ;;  %5704 = vmatmul.mubr.bf16.vlgmr.msra.gmra.mrb[96].mxu0 %v5437_v52  ;;  %v13028_v52 = vcombine.low %v6105_v0, %v6109_v5  ;;  %v13030_v53 = vcombine.low %v6106_v48, %v6110_v51  ;;  %v6162_v0 = vld [vmem:[#allocation12 + $0x2c8] sm:$0xff] }
 0x94e   :  { %14844 = vrcp.f32 %v5410_v20  ;;  %5914 = vmatpush1.bf16.msra.mxu1 %v16894_v63  ;;  %5955 = vmatpush1.bf16.msra.mxu0 %v16896_v40  ;;  %v14841_v63 = vpop.eup %14840  ;;  %v13031_v20 = vcombine.high %v6106_v48, %v6110_v51  ;;  %v6166_v48 = vld [vmem:[#allocation12 + $0x2e8] sm:$0xff] }
 0x94f   :  { %14846 = vrcp.f32 %v5416_v18  ;;  %5915 = vmatprep.subr.bf16.mxu1 %v16900_v33  ;;  %5956 = vmatprep.subr.bf16.mxu0 %v16902_v2  ;;  %v14843_v40 = vpop.eup %14842  ;;  %v6113_v18 = vld [vmem:[#allocation12 + $0x140] sm:$0xff]  ;;  %v13086_v51 = vcombine.low %v6162_v0, %v6166_v48 }
 0x950   :  { %5945 = vmatprep.mubr.bf16.mxu1 %v18669_v56  ;;  %5986 = vmatprep.mubr.bf16.mxu0 %v18669_v56 }
 0x952   :  { %5916 = vmatpush1.bf16.msra.mxu1 %v16906_v37  ;;  %5957 = vmatpush1.bf16.msra.mxu0 %v16908_v23  ;;  %v5423_v37 = vadd.f32 1.0, %v14841_v63  ;;  %v6117_v63 = vld [vmem:[#allocation12 + $0x160] sm:$0xff] }
 0x953   :  { %5917 = vmatprep.subr.bf16.mxu1 %v16912_v17  ;;  %5958 = vmatprep.subr.bf16.mxu0 %v16914_v15  ;;  %v18821_v15 = vld [vmem:[#allocation83_spill] sm:$0xff] }
 0x954   :  { %14848 = vrcp.f32 %v5423_v37 }
 0x956   :  { %5918 = vmatpush1.bf16.msra.mxu1 %v16920_v11  ;;  %5959 = vmatpush1.bf16.msra.mxu0 %v16922_v39  ;;  %v18822_v11 = vld [vmem:[#allocation32_spill] sm:$0xff]  ;;  %v18823_v39 = vld [vmem:[#allocation33_spill] sm:$0xff] }
 0x957   :  { %5919 = vmatprep.subr.bf16.mxu1 %v16926_v10  ;;  %5960 = vmatprep.subr.bf16.mxu0 %v16928_v50  ;;  %v18824_v10 = vld [vmem:[#allocation34_spill] sm:$0xff]  ;;  %v18825_v50 = vld [vmem:[#allocation35_spill] sm:$0xff] }
 0x958   :  { %v14845_v33 = vpop.eup %14844 }
 0x959   :  { %v14847_v2 = vpop.eup %14846  ;;  %v5427_v31 = vmul.f32 %v14845_v33, %v14843_v40  ;;  %v6114_v40 = vld [vmem:[#allocation12 + $0x148] sm:$0xff]  ;;  %v13037_v33 = vcombine.high %v6113_v18, %v6117_v63 }
 0x95a   :  { %v5426_v23 = vmul.f32 %v14847_v2, %v16955_v9  ;;  %5920 = vmatpush1.bf16.msra.mxu1 %v16932_v42  ;;  %5961 = vmatpush1.bf16.msra.mxu0 %v16934_v54  ;;  %v18826_v42 = vld [vmem:[#allocation68_spill] sm:$0xff]  ;;  %v18827_v54 = vld [vmem:[#allocation69_spill] sm:$0xff] }
 0x95b   :  { %5921 = vmatprep.subr.bf16.mxu1 %v16938_v8  ;;  %5962 = vmatprep.subr.bf16.mxu0 %v16940_v30  ;;  %v6118_v2 = vld [vmem:[#allocation12 + $0x168] sm:$0xff] }
 0x95c   :  { %v17067_v17 = vadd.f32 %v5427_v31, %v5426_v23  ;;  %v13036_v31 = vcombine.low %v6113_v18, %v6117_v63  ;;  %v13038_v37 = vcombine.low %v6114_v40, %v6118_v2  ;;  %v13039_v23 = vcombine.high %v6114_v40, %v6118_v2  ;;  %v6170_v18 = vld [vmem:[#allocation12 + $0x308] sm:$0xff] }
 0x95d   :  { %v6174_v40 = vld [vmem:[#allocation12 + $0x328] sm:$0xff] }
 0x95e   :  { %14850 = vtanh.f32 %v17067_v17  ;;  %5922 = vmatpush1.bf16.msra.mxu1 %v16945_v27  ;;  %5963 = vmatpush1.bf16.msra.mxu0 %v18821_v15  ;;  %v14849_v8 = vpop.eup %14848  ;;  %v6121_v15 = vld [vmem:[#allocation12 + $0x180] sm:$0xff]  ;;  %v13094_v2 = vcombine.low %v6170_v18, %v6174_v40 }
 0x95f   :  { %5923 = vmatprep.subr.bf16.mxu1 %v18822_v11  ;;  %5964 = vmatprep.subr.bf16.mxu0 %v18823_v39  ;;  %v6125_v11 = vld [vmem:[#allocation12 + $0x1a0] sm:$0xff]  ;;  %v6122_v39 = vld [vmem:[#allocation12 + $0x188] sm:$0xff] }
 0x962   :  { %5924 = vmatpush1.bf16.msra.mxu1 %v18824_v10  ;;  %5965 = vmatpush1.bf16.msra.mxu0 %v18825_v50  ;;  %v13045_v10 = vcombine.high %v6121_v15, %v6125_v11  ;;  %v6126_v50 = vld [vmem:[#allocation12 + $0x1a8] sm:$0xff] }
 0x963   :  { %5925 = vmatprep.subr.bf16.mxu1 %v18826_v42  ;;  %5966 = vmatprep.subr.bf16.mxu0 %v16968_v14  ;;  %v6073_v14 = vld [vmem:[#allocation12] sm:$0xff]  ;;  %v13044_v42 = vcombine.low %v6121_v15, %v6125_v11  ;;  %v6178_v15 = vld [vmem:[#allocation12 + $0x348] sm:$0xff] }
 0x964   :  { %v12997_v29 = vcombine.high %v6073_v14, %v6077_v4 }
 0x966   :  { %5926 = vmatpush1.bf16.msra.mxu1 %v18827_v54  ;;  %5967 = vmatpush1.bf16.msra.mxu0 %v16974_v36  ;;  %v6074_v36 = vld [vmem:[#allocation12 + $0x8] sm:$0xff]  ;;  %v13046_v54 = vcombine.low %v6122_v39, %v6126_v50 }
 0x967   :  { %5927 = vmatprep.subr.bf16.mxu1 %v16978_v26  ;;  %5968 = vmatprep.subr.bf16.mxu0 %v16980_v25  ;;  %v12996_v26 = vcombine.low %v6073_v14, %v6077_v4  ;;  %v12998_v21 = vcombine.low %v6074_v36, %v6078_v41  ;;  %v12999_v25 = vcombine.high %v6074_v36, %v6078_v41  ;;  %v6130_v14 = vld [vmem:[#allocation12 + $0x1c8] sm:$0xff] }
 0x968   :  { %v14851_v27 = vpop.eup %14850  ;;  %v6134_v36 = vld [vmem:[#allocation12 + $0x1e8] sm:$0xff] }
 0x969   :  { %v17082_v30 = vmul.f32 %v14851_v27, %v14849_v8  ;;  %v13047_v8 = vcombine.high %v6122_v39, %v6126_v50  ;;  %v6129_v27 = vld [vmem:[#allocation12 + $0x1c0] sm:$0xff]  ;;  %v13054_v41 = vcombine.low %v6130_v14, %v6134_v36 }
 0x96a   :  { %5928 = vmatpush1.bf16.msra.mxu1 %v16984_v58  ;;  %5969 = vmatpush1.bf16.msra.mxu0 %v16986_v24  ;;  %v6085_v58 = vld [vmem:[#allocation12 + $0x60] sm:$0xff] }
 0x96b   :  { %v5720_v9 = vpack.c.bf16 %v17082_v30, %v17082_v30  ;;  %6883 = vmatprep.subr.bf16.mxu1 %v12997_v29  ;;  %6956 = vmatprep.subr.bf16.mxu0 %v12999_v25  ;;  %v13005_v24 = vcombine.high %v6081_v12, %v6085_v58  ;;  %v13004_v16 = vcombine.low %v6081_v12, %v6085_v58  ;;  %v6141_v25 = vld [vmem:[#allocation12 + $0x220] sm:$0xff]  ;;  %v6138_v12 = vld [vmem:[#allocation12 + $0x208] sm:$0xff] }
 0x96c   :  { %v13062_v19 = vcombine.low %v6138_v12, %v6142_v38  ;;  %v6185_v50 = vld [vmem:[#allocation12 + $0x380] sm:$0xff] }
 0x96d   :  { %5946 = vmatmul.mubr.bf16.vlgmr.msra.gmra.mrb[92].mxu1 %v5720_v9  ;;  %5987 = vmatmul.mubr.bf16.vlgmr.msra.gmra.mrb[100].mxu0 %v5720_v9  ;;  %v6133_v9 = vld [vmem:[#allocation12 + $0x1e0] sm:$0xff] }
 0x96e   :  { %6884 = vmatpush1.bf16.msra.mxu1 %v12996_v26  ;;  %6957 = vmatpush1.bf16.msra.mxu0 %v12998_v21  ;;  %v13053_v4 = vcombine.high %v6129_v27, %v6133_v9  ;;  %v13052_v29 = vcombine.low %v6129_v27, %v6133_v9  ;;  %v13055_v26 = vcombine.high %v6130_v14, %v6134_v36  ;;  %v6137_v21 = vld [vmem:[#allocation12 + $0x200] sm:$0xff]  ;;  %v6186_v9 = vld [vmem:[#allocation12 + $0x388] sm:$0xff] }
 0x96f   :  { %6885 = vmatprep.subr.bf16.mxu1 %v13005_v24  ;;  %6958 = vmatprep.subr.bf16.mxu0 %v13007_v6  ;;  %v13061_v58 = vcombine.high %v6137_v21, %v6141_v25  ;;  %v13060_v24 = vcombine.low %v6137_v21, %v6141_v25  ;;  %v6149_v6 = vld [vmem:[#allocation12 + $0x260] sm:$0xff]  ;;  %v6190_v14 = vld [vmem:[#allocation12 + $0x3a8] sm:$0xff] }
 0x970   :  { %v6193_v36 = vld [vmem:[#allocation12 + $0x3c0] sm:$0xff]  ;;  %v13110_v25 = vcombine.low %v6186_v9, %v6190_v14 }
 0x972   :  { %6886 = vmatpush1.bf16.msra.mxu1 %v13004_v16  ;;  %6959 = vmatpush1.bf16.msra.mxu0 %v13006_v43  ;;  %v13063_v16 = vcombine.high %v6138_v12, %v6142_v38  ;;  %v6145_v43 = vld [vmem:[#allocation12 + $0x240] sm:$0xff] }
 0x973   :  { %6887 = vmatprep.subr.bf16.mxu1 %v13013_v22  ;;  %6960 = vmatprep.subr.bf16.mxu0 %v13015_v60  ;;  %v13069_v7 = vcombine.high %v6145_v43, %v6149_v6  ;;  %v13068_v22 = vcombine.low %v6145_v43, %v6149_v6  ;;  %v6157_v60 = vld [vmem:[#allocation12 + $0x2a0] sm:$0xff]  ;;  %v17092_v43 = vld [vmem:[#allocation12 + $0x18] sm:$0xff] }
 0x976   :  { %6888 = vmatpush1.bf16.msra.mxu1 %v13012_v13  ;;  %6961 = vmatpush1.bf16.msra.mxu0 %v13014_v32  ;;  %v13071_v13 = vcombine.high %v6146_v62, %v6150_v55  ;;  %v6153_v32 = vld [vmem:[#allocation12 + $0x280] sm:$0xff]  ;;  %v17096_v62 = vld [vmem:[#allocation12 + $0x38] sm:$0xff] }
 0x977   :  { %6889 = vmatprep.subr.bf16.mxu1 %v13021_v44  ;;  %6962 = vmatprep.subr.bf16.mxu0 %v13023_v47  ;;  %v13077_v57 = vcombine.high %v6153_v32, %v6157_v60  ;;  %v13076_v44 = vcombine.low %v6153_v32, %v6157_v60  ;;  %v6165_v47 = vld [vmem:[#allocation12 + $0x2e0] sm:$0xff]  ;;  %v13002_v55 = vcombine.low %v17092_v43, %v17096_v62 }
 0x978   :  { %v18828_v32 = vld [vmem:[#allocation48_spill] sm:$0xff] }
 0x97a   :  { %6890 = vmatpush1.bf16.msra.mxu1 %v13020_v59  ;;  %6963 = vmatpush1.bf16.msra.mxu0 %v13022_v46  ;;  %v13079_v59 = vcombine.high %v6154_v1, %v6158_v34  ;;  %v6161_v46 = vld [vmem:[#allocation12 + $0x2c0] sm:$0xff]  ;;  %v18829_v1 = vld [vmem:[#allocation49_spill] sm:$0xff] }
 0x97b   :  { %6891 = vmatprep.subr.bf16.mxu1 %v13029_v49  ;;  %6964 = vmatprep.subr.bf16.mxu0 %v13031_v20  ;;  %v13085_v5 = vcombine.high %v6161_v46, %v6165_v47  ;;  %v13084_v49 = vcombine.low %v6161_v46, %v6165_v47  ;;  %v6173_v20 = vld [vmem:[#allocation12 + $0x320] sm:$0xff]  ;;  %v18831_v46 = vld [vmem:[#allocation51_spill] sm:$0xff] }
 0x97e   :  { %6892 = vmatpush1.bf16.msra.mxu1 %v13028_v52  ;;  %6965 = vmatpush1.bf16.msra.mxu0 %v13030_v53  ;;  %v13087_v52 = vcombine.high %v6162_v0, %v6166_v48  ;;  %v6169_v53 = vld [vmem:[#allocation12 + $0x300] sm:$0xff] }
 0x97f   :  { %6893 = vmatprep.subr.bf16.mxu1 %v13037_v33  ;;  %6966 = vmatprep.subr.bf16.mxu0 %v13039_v23  ;;  %v13093_v63 = vcombine.high %v6169_v53, %v6173_v20  ;;  %v13092_v33 = vcombine.low %v6169_v53, %v6173_v20  ;;  %v6181_v23 = vld [vmem:[#allocation12 + $0x360] sm:$0xff] }
 0x982   :  { %6894 = vmatpush1.bf16.msra.mxu1 %v13036_v31  ;;  %6967 = vmatpush1.bf16.msra.mxu0 %v13038_v37  ;;  %v13095_v31 = vcombine.high %v6170_v18, %v6174_v40  ;;  %v6177_v37 = vld [vmem:[#allocation12 + $0x340] sm:$0xff] }
 0x983   :  { %6895 = vmatprep.subr.bf16.mxu1 %v13045_v10  ;;  %6968 = vmatprep.subr.bf16.mxu0 %v13047_v8  ;;  %v13100_v11 = vcombine.low %v6177_v37, %v6181_v23  ;;  %v13101_v39 = vcombine.high %v6177_v37, %v6181_v23  ;;  %v6182_v10 = vld [vmem:[#allocation12 + $0x368] sm:$0xff] }
 0x984   :  { %v13103_v8 = vcombine.high %v6178_v15, %v6182_v10 }
 0x986   :  { %6896 = vmatpush1.bf16.msra.mxu1 %v13044_v42  ;;  %6969 = vmatpush1.bf16.msra.mxu0 %v13046_v54  ;;  %v6189_v42 = vld [vmem:[#allocation12 + $0x3a0] sm:$0xff]  ;;  %v13102_v54 = vcombine.low %v6178_v15, %v6182_v10 }
 0x987   :  { %6897 = vmatprep.subr.bf16.mxu1 %v13053_v4  ;;  %6970 = vmatprep.subr.bf16.mxu0 %v13055_v26  ;;  %v13109_v27 = vcombine.high %v6185_v50, %v6189_v42  ;;  %v13111_v4 = vcombine.high %v6186_v9, %v6190_v14  ;;  %v6198_v26 = vld [vmem:[#allocation12 + $0x3e8] sm:$0xff]  ;;  %v13108_v21 = vcombine.low %v6185_v50, %v6189_v42  ;;  %v18832_v42 = vld [vmem:[#allocation52_spill] sm:$0xff] }
 0x98a   :  { %6898 = vmatpush1.bf16.msra.mxu1 %v13052_v29  ;;  %6971 = vmatpush1.bf16.msra.mxu0 %v13054_v41  ;;  %v6197_v29 = vld [vmem:[#allocation12 + $0x3e0] sm:$0xff]  ;;  %v6194_v41 = vld [vmem:[#allocation12 + $0x3c8] sm:$0xff] }
 0x98b   :  { %6899 = vmatprep.subr.bf16.mxu1 %v13061_v58  ;;  %6972 = vmatprep.subr.bf16.mxu0 %v13063_v16  ;;  %v13117_v12 = vcombine.high %v6193_v36, %v6197_v29  ;;  %v13119_v58 = vcombine.high %v6194_v41, %v6198_v26  ;;  %v13116_v38 = vcombine.low %v6193_v36, %v6197_v29  ;;  %v17090_v16 = vld [vmem:[#allocation12 + $0x30] sm:$0xff]  ;;  %v18835_v29 = vld [vmem:[#allocation55_spill] sm:$0xff] }
 0x98e   :  { %6900 = vmatpush1.bf16.msra.mxu1 %v13060_v24  ;;  %6973 = vmatpush1.bf16.msra.mxu0 %v13062_v19  ;;  %v13118_v24 = vcombine.low %v6194_v41, %v6198_v26  ;;  %v17088_v19 = vld [vmem:[#allocation12 + $0x10] sm:$0xff] }
 0x98f   :  { %6901 = vmatprep.subr.bf16.mxu1 %v13069_v7  ;;  %6974 = vmatprep.subr.bf16.mxu0 %v13071_v13  ;;  %v13001_v6 = vcombine.high %v17088_v19, %v17090_v16  ;;  %v13000_v7 = vcombine.low %v17088_v19, %v17090_v16 }
 0x992   :  { %6902 = vmatpush1.bf16.msra.mxu1 %v13068_v22  ;;  %6975 = vmatpush1.bf16.msra.mxu0 %v13070_v35  ;;  %v13003_v22 = vcombine.high %v17092_v43, %v17096_v62  ;;  %v18839_v43 = vld [vmem:[#allocation28_spill] sm:$0xff]  ;;  %v18840_v62 = vld [vmem:[#allocation30_spill] sm:$0xff] }
 0x993   :  { %6903 = vmatprep.subr.bf16.mxu1 %v13077_v57  ;;  %6976 = vmatprep.subr.bf16.mxu0 %v13079_v59 }
 0x996   :  { %6904 = vmatpush1.bf16.msra.mxu1 %v13076_v44  ;;  %6977 = vmatpush1.bf16.msra.mxu0 %v13078_v45  ;;  %v18830_v45 = vld [vmem:[#allocation50_spill] sm:$0xff] }
 0x997   :  { %6905 = vmatprep.subr.bf16.mxu1 %v13085_v5  ;;  %6978 = vmatprep.subr.bf16.mxu0 %v13087_v52 }
 0x99a   :  { %6906 = vmatpush1.bf16.msra.mxu1 %v13084_v49  ;;  %6979 = vmatpush1.bf16.msra.mxu0 %v13086_v51 }
 0x99b   :  { %6907 = vmatprep.subr.bf16.mxu1 %v13093_v63  ;;  %6980 = vmatprep.subr.bf16.mxu0 %v13095_v31 }
 0x99e   :  { %6908 = vmatpush1.bf16.msra.mxu1 %v13092_v33  ;;  %6981 = vmatpush1.bf16.msra.mxu0 %v13094_v2 }
 0x99f   :  { %6909 = vmatprep.subr.bf16.mxu1 %v13101_v39  ;;  %6982 = vmatprep.subr.bf16.mxu0 %v13103_v8  ;;  %v18833_v8 = vld [vmem:[#allocation53_spill] sm:$0xff] }
 0x9a2   :  { %6910 = vmatpush1.bf16.msra.mxu1 %v13100_v11  ;;  %6983 = vmatpush1.bf16.msra.mxu0 %v13102_v54 }
 0x9a3   :  { %6911 = vmatprep.subr.bf16.mxu1 %v13109_v27  ;;  %6984 = vmatprep.subr.bf16.mxu0 %v13111_v4  ;;  %v18834_v4 = vld [vmem:[#allocation54_spill] sm:$0xff] }
 0x9a6   :  { %6912 = vmatpush1.bf16.msra.mxu1 %v13108_v21  ;;  %6985 = vmatpush1.bf16.msra.mxu0 %v13110_v25 }
 0x9a7   :  { %6913 = vmatprep.subr.bf16.mxu1 %v13117_v12  ;;  %6986 = vmatprep.subr.bf16.mxu0 %v13119_v58 }
 0x9aa   :  { %6914 = vmatpush1.bf16.msra.mxu1 %v13116_v38  ;;  %6987 = vmatpush1.bf16.msra.mxu0 %v13118_v24 }
 0x9ab   :  { %7029 = vmatprep.subr.bf16.mxu1 %v13001_v6  ;;  %7102 = vmatprep.subr.bf16.mxu0 %v13003_v22 }
 0xa20   :  { %v5664_v35 = vpop.f32.mrb[88].mxu1  ;;  %v5705_v13 = vpop.f32.mrb[96].mxu0 }
 0xa21   :  { %v5712_v60 = vadd.f32 %v5664_v35, %v18828_v32  ;;  %v5714_v57 = vadd.f32 %v5705_v13, %v18829_v1  ;;  %v5666_v34 = vpop.f32.mrb[89].mxu1  ;;  %v5707_v44 = vpop.f32.mrb[97].mxu0 }
 0xa22   :  { %v5713_v59 = vadd.f32 %v5666_v34, %v18830_v45  ;;  %v5715_v47 = vadd.f32 %v5707_v44, %v18831_v46  ;;  %v5668_v0 = vpop.f32.mrb[90].mxu1  ;;  %v5709_v5 = vpop.f32.mrb[98].mxu0 }
 0xa23   :  { %v12990_v48 = vmul.f32 -1.442695, %v5712_v60  ;;  %v5669_v49 = vpop.f32.mrb[91].mxu1  ;;  %v5710_v51 = vpop.f32.mrb[99].mxu0 }
 0xa24   :  { %v12991_v52 = vmul.f32 -1.442695, %v5713_v59  ;;  %v12992_v53 = vmul.f32 -1.442695, %v5715_v47  ;;  %v6083_v49 = vld [vmem:[#allocation12 + $0x50] sm:$0xff] }
 0xa25   :  { %14852 = vpow2.f32 %v12990_v48  ;;  %v6087_v51 = vld [vmem:[#allocation12 + $0x70] sm:$0xff] }
 0xa26   :  { %14854 = vpow2.f32 %v12991_v52  ;;  %v6084_v52 = vld [vmem:[#allocation12 + $0x58] sm:$0xff] }
 0xa27   :  { %14856 = vpow2.f32 %v12992_v53  ;;  %v6088_v53 = vld [vmem:[#allocation12 + $0x78] sm:$0xff] }
 0xa28   :  { %14858 = vtanh.f32 %v5714_v57 }
 0xa2f   :  { %v14853_v20 = vpop.eup %14852 }
 0xa30   :  { %v14855_v18 = vpop.eup %14854  ;;  %v6002_v63 = vadd.f32 1.0, %v14853_v20 }
 0xa31   :  { %v6008_v40 = vadd.f32 1.0, %v14855_v18  ;;  %v14857_v33 = vpop.eup %14856  ;;  %v18836_v18 = vld [vmem:[#allocation80_spill] sm:$0xff] }
 0xa32   :  { %14860 = vrcp.f32 %v6002_v63  ;;  %v14859_v2 = vpop.eup %14858  ;;  %v6015_v15 = vadd.f32 1.0, %v14857_v33  ;;  %v18837_v63 = vld [vmem:[#allocation27_spill] sm:$0xff]  ;;  %v6091_v33 = vld [vmem:[#allocation12 + $0x90] sm:$0xff] }
 0xa33   :  { %14862 = vrcp.f32 %v6008_v40  ;;  %v17121_v40 = vpack.c.bf16 %v18837_v63, %v18836_v18  ;;  %v6135_v18 = vld [vmem:[#allocation12 + $0x1f0] sm:$0xff]  ;;  %v6132_v63 = vld [vmem:[#allocation12 + $0x1d8] sm:$0xff] }
 0xa34   :  { %14864 = vrcp.f32 %v6015_v15 }
 0xa3c   :  { %v14861_v31 = vpop.eup %14860 }
 0xa3d   :  { %v14863_v37 = vpop.eup %14862  ;;  %v6019_v23 = vmul.f32 %v14861_v31, %v14859_v2  ;;  %v13011_v2 = vcombine.high %v6084_v52, %v6088_v53  ;;  %v6095_v31 = vld [vmem:[#allocation12 + $0xb0] sm:$0xff] }
 0xa3e   :  { %v6018_v11 = vmul.f32 %v14863_v37, %v17037_v28  ;;  %v14865_v38 = vpop.eup %14864  ;;  %v6092_v37 = vld [vmem:[#allocation12 + $0x98] sm:$0xff]  ;;  %v13016_v19 = vcombine.low %v6091_v33, %v6095_v31 }
 0xa40   :  { %v6020_v39 = vadd.f32 %v6019_v23, %v6018_v11  ;;  %v5947_v10 = vpop.f32.mrb[92].mxu1  ;;  %v5988_v50 = vpop.f32.mrb[100].mxu0  ;;  %v6096_v23 = vld [vmem:[#allocation12 + $0xb8] sm:$0xff]  ;;  %v13008_v11 = vcombine.low %v6083_v49, %v6087_v51 }
 0xa41   :  { %v5995_v54 = vadd.f32 %v5947_v10, %v18832_v42  ;;  %v5997_v27 = vadd.f32 %v5988_v50, %v18833_v8  ;;  %v5949_v9 = vpop.f32.mrb[93].mxu1  ;;  %v5990_v14 = vpop.f32.mrb[101].mxu0  ;;  %v13017_v10 = vcombine.high %v6091_v33, %v6095_v31  ;;  %v13019_v50 = vcombine.high %v6092_v37, %v6096_v23  ;;  %v6103_v42 = vld [vmem:[#allocation12 + $0xf0] sm:$0xff]  ;;  %v6104_v8 = vld [vmem:[#allocation12 + $0xf8] sm:$0xff] }
 0xa42   :  { %14866 = vtanh.f32 %v6020_v39  ;;  %v5996_v36 = vadd.f32 %v5949_v9, %v18834_v4  ;;  %v5998_v41 = vadd.f32 %v5990_v14, %v18835_v29  ;;  %v5951_v26 = vpop.f32.mrb[94].mxu1  ;;  %v5992_v21 = vpop.f32.mrb[102].mxu0  ;;  %v13010_v39 = vcombine.low %v6084_v52, %v6088_v53  ;;  %v6111_v14 = vld [vmem:[#allocation12 + $0x130] sm:$0xff]  ;;  %v6108_v4 = vld [vmem:[#allocation12 + $0x118] sm:$0xff] }
 0xa43   :  { %v12993_v25 = vmul.f32 -1.442695, %v5995_v54  ;;  %v5952_v12 = vpop.f32.mrb[95].mxu1  ;;  %v5993_v28 = vpop.f32.mrb[103].mxu0  ;;  %v6100_v54 = vld [vmem:[#allocation12 + $0xd8] sm:$0xff]  ;;  %v13018_v16 = vcombine.low %v6092_v37, %v6096_v23  ;;  %v18841_v29 = vld [vmem:[#allocation78_spill] sm:$0xff] }
 0xa44   :  { %v12994_v58 = vmul.f32 -1.442695, %v5996_v36  ;;  %v12995_v6 = vmul.f32 -1.442695, %v5998_v41  ;;  %v13027_v9 = vcombine.high %v6100_v54, %v6104_v8  ;;  %v6112_v36 = vld [vmem:[#allocation12 + $0x138] sm:$0xff]  ;;  %v18842_v41 = vld [vmem:[#allocation29_spill] sm:$0xff] }
 0xa45   :  { %14868 = vpow2.f32 %v12993_v25  ;;  %v17147_v26 = vpack.c.bf16 %v18842_v41, %v18841_v29  ;;  %v13026_v25 = vcombine.low %v6100_v54, %v6104_v8  ;;  %v13035_v28 = vcombine.high %v6108_v4, %v6112_v36  ;;  %v6131_v53 = vld [vmem:[#allocation12 + $0x1d0] sm:$0xff]  ;;  %v6136_v33 = vld [vmem:[#allocation12 + $0x1f8] sm:$0xff] }
 0xa46   :  { %14870 = vpow2.f32 %v12994_v58  ;;  %v6115_v58 = vld [vmem:[#allocation12 + $0x150] sm:$0xff]  ;;  %v13057_v23 = vcombine.high %v6131_v53, %v6135_v18  ;;  %v6148_v8 = vld [vmem:[#allocation12 + $0x258] sm:$0xff] }
 0xa47   :  { %14872 = vpow2.f32 %v12995_v6  ;;  %v6120_v6 = vld [vmem:[#allocation12 + $0x178] sm:$0xff]  ;;  %v6139_v37 = vld [vmem:[#allocation12 + $0x210] sm:$0xff] }
 0xa48   :  { %14874 = vtanh.f32 %v5997_v27  ;;  %v6151_v54 = vld [vmem:[#allocation12 + $0x270] sm:$0xff] }
 0xa4c   :  { %v14867_v24 = vpop.eup %14866 }
 0xa4d   :  { %v17113_v22 = vmul.f32 %v14867_v24, %v14865_v38  ;;  %v6119_v38 = vld [vmem:[#allocation12 + $0x170] sm:$0xff]  ;;  %v6116_v24 = vld [vmem:[#allocation12 + $0x158] sm:$0xff] }
 0xa4f   :  { %v14869_v35 = vpop.eup %14868  ;;  %v17165_v31 = vpack.c.bf16 %v17113_v22, %v17044_v3 }
 0xa50   :  { %v14871_v13 = vpop.eup %14870  ;;  %v6026_v32 = vadd.f32 1.0, %v14869_v35 }
 0xa51   :  { %v6032_v60 = vadd.f32 1.0, %v14871_v13  ;;  %v14873_v1 = vpop.eup %14872  ;;  %v13034_v13 = vcombine.low %v6108_v4, %v6112_v36 }
 0xa52   :  { %14876 = vrcp.f32 %v6026_v32  ;;  %v14875_v57 = vpop.eup %14874  ;;  %v6039_v59 = vadd.f32 1.0, %v14873_v1  ;;  %v18843_v32 = vld [vmem:[#allocation79_spill] sm:$0xff] }
 0xa53   :  { %14878 = vrcp.f32 %v6032_v60  ;;  %v18844_v60 = vld [vmem:[#allocation82_spill] sm:$0xff] }
 0xa54   :  { %14880 = vrcp.f32 %v6039_v59  ;;  %v17153_v1 = vpack.c.bf16 %v18844_v60, %v18843_v32  ;;  %v6124_v59 = vld [vmem:[#allocation12 + $0x198] sm:$0xff] }
 0xa55   :  { %v6172_v32 = vld [vmem:[#allocation12 + $0x318] sm:$0xff] }
 0xa56   :  { %v6176_v60 = vld [vmem:[#allocation12 + $0x338] sm:$0xff] }
 0xa5c   :  { %v14877_v34 = vpop.eup %14876 }
 0xa5d   :  { %v14879_v44 = vpop.eup %14878  ;;  %v6043_v45 = vmul.f32 %v14877_v34, %v14875_v57  ;;  %v6123_v57 = vld [vmem:[#allocation12 + $0x190] sm:$0xff]  ;;  %v13041_v34 = vcombine.high %v6115_v58, %v6119_v38 }
 0xa5e   :  { %v6042_v46 = vmul.f32 %v14879_v44, %v17067_v17  ;;  %v14881_v0 = vpop.eup %14880  ;;  %v13009_v17 = vcombine.high %v6083_v49, %v6087_v51  ;;  %v13043_v44 = vcombine.high %v6116_v24, %v6120_v6  ;;  %v13042_v49 = vcombine.low %v6116_v24, %v6120_v6 }
 0xa60   :  { %v6044_v47 = vadd.f32 %v6043_v45, %v6042_v46  ;;  %v6127_v45 = vld [vmem:[#allocation12 + $0x1b0] sm:$0xff]  ;;  %v6128_v46 = vld [vmem:[#allocation12 + $0x1b8] sm:$0xff] }
 0xa61   :  { %v13049_v51 = vcombine.high %v6123_v57, %v6127_v45  ;;  %v13051_v52 = vcombine.high %v6124_v59, %v6128_v46 }
 0xa62   :  { %14882 = vtanh.f32 %v6044_v47  ;;  %v18845_v47 = vld [vmem:[#allocation84_spill] sm:$0xff] }
 0xa6c   :  { %v14883_v5 = vpop.eup %14882 }
 0xa6d   :  { %v6046_v48 = vmul.f32 %v14883_v5, %v14881_v0  ;;  %v18846_v0 = vld [vmem:[#allocation25_spill] sm:$0xff] }
 0xa6e   :  { %v17159_v5 = vpack.c.bf16 %v18846_v0, %v18845_v47  ;;  %v6180_v47 = vld [vmem:[#allocation12 + $0x358] sm:$0xff] }
 0xa6f   :  { %v17117_v20 = vpack.c.bf16 %v17082_v30, %v6046_v48  ;;  %v18838_v30 = vld [vmem:[#allocation81_spill] sm:$0xff]  ;;  %v13040_v48 = vcombine.low %v6115_v58, %v6119_v38  ;;  %v6184_v0 = vld [vmem:[#allocation12 + $0x378] sm:$0xff] }
 0xa70   :  { %v17129_v15 = vpack.c.bf16 %v18838_v30, %v16990_v61  ;;  %v6099_v61 = vld [vmem:[#allocation12 + $0xd0] sm:$0xff]  ;;  %v13059_v30 = vcombine.high %v6132_v63, %v6136_v33 }
 0xa71   :  { %6915 = vmatprep.mubr.bf16.mxu1 %v17117_v20  ;;  %6988 = vmatprep.mubr.bf16.mxu0 %v17117_v20  ;;  %v13025_v27 = vcombine.high %v6099_v61, %v6103_v42  ;;  %v13024_v21 = vcombine.low %v6099_v61, %v6103_v42  ;;  %v13058_v61 = vcombine.low %v6132_v63, %v6136_v33  ;;  %v6147_v42 = vld [vmem:[#allocation12 + $0x250] sm:$0xff]  ;;  %v6188_v63 = vld [vmem:[#allocation12 + $0x398] sm:$0xff] }
 0xa72   :  { %6916 = vmatmul.mubr.bf16.vlgmr.msra.gmra.mrb[96].mxu1 %v17121_v40  ;;  %6989 = vmatmul.mubr.bf16.vlgmr.msra.gmra.mrb[104].mxu0 %v17121_v40  ;;  %v13072_v4 = vcombine.low %v6147_v42, %v6151_v54  ;;  %v6192_v33 = vld [vmem:[#allocation12 + $0x3b8] sm:$0xff] }
 0xa73   :  { %7030 = vmatpush1.bf16.msra.mxu1 %v13000_v7  ;;  %7103 = vmatpush1.bf16.msra.mxu0 %v13002_v55  ;;  %v17141_v7 = vpack.c.bf16 %v18840_v62, %v18839_v43  ;;  %v6107_v55 = vld [vmem:[#allocation12 + $0x110] sm:$0xff]  ;;  %v13073_v62 = vcombine.high %v6147_v42, %v6151_v54 }
 0xa74   :  { %6925 = vmatprep.mubr.bf16.mxu1 %v17129_v15  ;;  %6998 = vmatprep.mubr.bf16.mxu0 %v17129_v15  ;;  %v13033_v12 = vcombine.high %v6107_v55, %v6111_v14  ;;  %v13032_v35 = vcombine.low %v6107_v55, %v6111_v14  ;;  %v6156_v14 = vld [vmem:[#allocation12 + $0x298] sm:$0xff] }
 0xa75   :  { %7031 = vmatprep.subr.bf16.mxu1 %v13009_v17  ;;  %7104 = vmatprep.subr.bf16.mxu0 %v13011_v2  ;;  %v13048_v17 = vcombine.low %v6123_v57, %v6127_v45  ;;  %v13050_v2 = vcombine.low %v6124_v59, %v6128_v46  ;;  %v13099_v45 = vcombine.high %v6172_v32, %v6176_v60  ;;  %v6179_v59 = vld [vmem:[#allocation12 + $0x350] sm:$0xff] }
 0xa76   :  { %v6183_v46 = vld [vmem:[#allocation12 + $0x370] sm:$0xff] }
 0xa77   :  { %7032 = vmatpush1.bf16.msra.mxu1 %v13008_v11  ;;  %7105 = vmatpush1.bf16.msra.mxu0 %v13010_v39  ;;  %v6143_v11 = vld [vmem:[#allocation12 + $0x230] sm:$0xff]  ;;  %v6140_v39 = vld [vmem:[#allocation12 + $0x218] sm:$0xff] }
 0xa78   :  { %7033 = vmatprep.subr.bf16.mxu1 %v13017_v10  ;;  %7106 = vmatprep.subr.bf16.mxu0 %v13019_v50  ;;  %v6144_v10 = vld [vmem:[#allocation12 + $0x238] sm:$0xff]  ;;  %v13056_v50 = vcombine.low %v6131_v53, %v6135_v18  ;;  %v13065_v3 = vcombine.high %v6139_v37, %v6143_v11  ;;  %v6187_v53 = vld [vmem:[#allocation12 + $0x390] sm:$0xff] }
 0xa79   :  { %v13067_v22 = vcombine.high %v6140_v39, %v6144_v10  ;;  %v13066_v43 = vcombine.low %v6140_v39, %v6144_v10  ;;  %v6191_v18 = vld [vmem:[#allocation12 + $0x3b0] sm:$0xff]  ;;  %v6196_v39 = vld [vmem:[#allocation12 + $0x3d8] sm:$0xff] }
 0xa7a   :  { %6926 = vmatmul.mubr.bf16.gmra.mrb[100].mxu1 %v17141_v7  ;;  %6999 = vmatmul.mubr.bf16.gmra.mrb[108].mxu0 %v17141_v7  ;;  %v6200_v10 = vld [vmem:[#allocation12 + $0x3f8] sm:$0xff] }
 0xa7b   :  { %7034 = vmatpush1.bf16.msra.mxu1 %v13016_v19  ;;  %7107 = vmatpush1.bf16.msra.mxu0 %v13018_v16  ;;  %v6152_v19 = vld [vmem:[#allocation12 + $0x278] sm:$0xff]  ;;  %v13064_v16 = vcombine.low %v6139_v37, %v6143_v11  ;;  %v13113_v37 = vcombine.high %v6187_v53, %v6191_v18  ;;  %v6199_v11 = vld [vmem:[#allocation12 + $0x3f0] sm:$0xff]  ;;  %v13122_v54 = vcombine.low %v6196_v39, %v6200_v10 }
 0xa7c   :  { %6935 = vmatprep.mubr.bf16.mxu1 %v17147_v26  ;;  %7008 = vmatprep.mubr.bf16.mxu0 %v17147_v26  ;;  %v13075_v55 = vcombine.high %v6148_v8, %v6152_v19  ;;  %v13074_v36 = vcombine.low %v6148_v8, %v6152_v19  ;;  %v17171_v8 = vld [vmem:[#allocation13 + $0x4] ss:$16 sps:$4 sm:$0xff]   ;;  %v17173_v19 = vld [vmem:[#allocation13 + $0xc] ss:$16 sps:$4 sm:$0xff]  }
 0xa7d   :  { %7035 = vmatprep.subr.bf16.mxu1 %v13025_v27  ;;  %7108 = vmatprep.subr.bf16.mxu0 %v13027_v9  ;;  %v6155_v27 = vld [vmem:[#allocation12 + $0x290] sm:$0xff] }
 0xa7e   :  { %v6159_v9 = vld [vmem:[#allocation12 + $0x2b0] sm:$0xff] }
 0xa7f   :  { %7036 = vmatpush1.bf16.msra.mxu1 %v13024_v21  ;;  %7109 = vmatpush1.bf16.msra.mxu0 %v13026_v25  ;;  %v13081_v29 = vcombine.high %v6155_v27, %v6159_v9  ;;  %v6163_v21 = vld [vmem:[#allocation12 + $0x2d0] sm:$0xff]  ;;  %v13080_v58 = vcombine.low %v6155_v27, %v6159_v9  ;;  %v17193_v9 = vld [vmem:[#allocation13 + $0x28] ss:$16 sps:$4 sm:$0xff]  }
 0xa80   :  { %7037 = vmatprep.subr.bf16.mxu1 %v13033_v12  ;;  %7110 = vmatprep.subr.bf16.mxu0 %v13035_v28  ;;  %v6167_v25 = vld [vmem:[#allocation12 + $0x2f0] sm:$0xff]  ;;  %v6164_v12 = vld [vmem:[#allocation12 + $0x2d8] sm:$0xff] }
 0xa81   :  { %v6168_v28 = vld [vmem:[#allocation12 + $0x2f8] sm:$0xff]  ;;  %v13089_v24 = vcombine.high %v6163_v21, %v6167_v25  ;;  %v13088_v57 = vcombine.low %v6163_v21, %v6167_v25  ;;  %v17191_v27 = vld [vmem:[#allocation13 + $0x20] ss:$16 sps:$4 sm:$0xff]   ;;  %v17225_v21 = vld [vmem:[#allocation13 + $0x84] ss:$16 sps:$4 sm:$0xff]  }
 0xa82   :  { %6936 = vmatmul.mubr.bf16.gmra.mrb[104].mxu1 %v17153_v1  ;;  %7009 = vmatmul.mubr.bf16.gmra.mrb[112].mxu0 %v17153_v1  ;;  %v13091_v6 = vcombine.high %v6164_v12, %v6168_v28  ;;  %v17227_v25 = vld [vmem:[#allocation13 + $0x8c] ss:$16 sps:$4 sm:$0xff]  }
 0xa83   :  { %7038 = vmatpush1.bf16.msra.mxu1 %v13032_v35  ;;  %7111 = vmatpush1.bf16.msra.mxu0 %v13034_v13  ;;  %v6171_v35 = vld [vmem:[#allocation12 + $0x310] sm:$0xff] }
 0xa84   :  { %6945 = vmatprep.mubr.bf16.mxu1 %v17159_v5  ;;  %7018 = vmatprep.mubr.bf16.mxu0 %v17159_v5  ;;  %v6175_v13 = vld [vmem:[#allocation12 + $0x330] sm:$0xff] }
 0xa85   :  { %7039 = vmatprep.subr.bf16.mxu1 %v13041_v34  ;;  %7112 = vmatprep.subr.bf16.mxu0 %v13043_v44  ;;  %v13090_v34 = vcombine.low %v6164_v12, %v6168_v28  ;;  %v13097_v44 = vcombine.high %v6171_v35, %v6175_v13  ;;  %v17237_v12 = vld [vmem:[#allocation13 + $0xa4] ss:$16 sps:$4 sm:$0xff]   ;;  %v17239_v28 = vld [vmem:[#allocation13 + $0xac] ss:$16 sps:$4 sm:$0xff]  }
 0xa87   :  { %7040 = vmatpush1.bf16.msra.mxu1 %v13040_v48  ;;  %7113 = vmatpush1.bf16.msra.mxu0 %v13042_v49  ;;  %v13096_v48 = vcombine.low %v6171_v35, %v6175_v13  ;;  %v13098_v49 = vcombine.low %v6172_v32, %v6176_v60  ;;  %v17265_v35 = vld [vmem:[#allocation13 + $0xe4] ss:$16 sps:$4 sm:$0xff]   ;;  %v17267_v13 = vld [vmem:[#allocation13 + $0xec] ss:$16 sps:$4 sm:$0xff]   ;;  %v17275_v32 = vld [vmem:[#allocation13 + $0xe0] ss:$16 sps:$4 sm:$0xff]  }
 0xa88   :  { %7041 = vmatprep.subr.bf16.mxu1 %v13049_v51  ;;  %7114 = vmatprep.subr.bf16.mxu0 %v13051_v52  ;;  %v13105_v51 = vcombine.high %v6179_v59, %v6183_v46  ;;  %v13107_v52 = vcombine.high %v6180_v47, %v6184_v0  ;;  %v17277_v60 = vld [vmem:[#allocation13 + $0xe8] ss:$16 sps:$4 sm:$0xff]  }
 0xa8a   :  { %6946 = vmatmul.mubr.bf16.gmra.mrb[108].mxu1 %v17165_v31  ;;  %7019 = vmatmul.mubr.bf16.gmra.mrb[116].mxu0 %v17165_v31 }
 0xa8b   :  { %7042 = vmatpush1.bf16.msra.mxu1 %v13048_v17  ;;  %7115 = vmatpush1.bf16.msra.mxu0 %v13050_v2  ;;  %v13104_v17 = vcombine.low %v6179_v59, %v6183_v46  ;;  %v13106_v2 = vcombine.low %v6180_v47, %v6184_v0  ;;  %v17295_v59 = vld [vmem:[#allocation15 + $0x2c] ss:$16 sps:$4 sm:$0xff]   ;;  %v17301_v46 = vld [vmem:[#allocation15 + $0x20] ss:$16 sps:$4 sm:$0xff]   ;;  %v17303_v47 = vld [vmem:[#allocation15 + $0x28] ss:$16 sps:$4 sm:$0xff]  }
 0xa8c   :  { %7061 = vmatprep.mubr.bf16.mxu1 %v17117_v20  ;;  %7134 = vmatprep.mubr.bf16.mxu0 %v17117_v20  ;;  %v6160_v20 = vld [vmem:[#allocation12 + $0x2b8] sm:$0xff]  ;;  %v17307_v0 = vld [vmem:[#allocation15 + $0x44] ss:$16 sps:$4 sm:$0xff]  }
 0xa8d   :  { %7043 = vmatprep.subr.bf16.mxu1 %v13057_v23  ;;  %7116 = vmatprep.subr.bf16.mxu0 %v13059_v30  ;;  %v13083_v41 = vcombine.high %v6156_v14, %v6160_v20  ;;  %v13082_v38 = vcombine.low %v6156_v14, %v6160_v20  ;;  %v13115_v23 = vcombine.high %v6188_v63, %v6192_v33  ;;  %v6195_v30 = vld [vmem:[#allocation12 + $0x3d0] sm:$0xff]  ;;  %v17199_v20 = vld [vmem:[#allocation13 + $0x4c] ss:$16 sps:$4 sm:$0xff]  }
 0xa8e   :  { %v13120_v42 = vcombine.low %v6195_v30, %v6199_v11  ;;  %v17197_v14 = vld [vmem:[#allocation13 + $0x44] ss:$16 sps:$4 sm:$0xff]  }
 0xa8f   :  { %7044 = vmatpush1.bf16.msra.mxu1 %v13056_v50  ;;  %7117 = vmatpush1.bf16.msra.mxu0 %v13058_v61  ;;  %v13112_v50 = vcombine.low %v6187_v53, %v6191_v18  ;;  %v13114_v61 = vcombine.low %v6188_v63, %v6192_v33  ;;  %v17323_v53 = vld [vmem:[#allocation15 + $0x6c] ss:$16 sps:$4 sm:$0xff]   ;;  %v17327_v18 = vld [vmem:[#allocation15 + $0x60] ss:$16 sps:$4 sm:$0xff]   ;;  %v17329_v63 = vld [vmem:[#allocation15 + $0x68] ss:$16 sps:$4 sm:$0xff]  }
 0xa90   :  { %7045 = vmatprep.subr.bf16.mxu1 %v13065_v3  ;;  %7118 = vmatprep.subr.bf16.mxu0 %v13067_v22  ;;  %v13121_v3 = vcombine.high %v6195_v30, %v6199_v11  ;;  %v13123_v22 = vcombine.high %v6196_v39, %v6200_v10  ;;  %v17333_v33 = vld [vmem:[#allocation15 + $0x84] ss:$16 sps:$4 sm:$0xff]   ;;  %v17347_v30 = vld [vmem:[#allocation15 + $0xac] ss:$16 sps:$4 sm:$0xff]   ;;  %v17351_v11 = vld [vmem:[#allocation15 + $0xa0] ss:$16 sps:$4 sm:$0xff]  }
 0xa91   :  { %18847 = vst [vmem:[#allocation70_spill] sm:$0xff] %v17351_v11  ;;  %v17353_v39 = vld [vmem:[#allocation15 + $0xa8] ss:$16 sps:$4 sm:$0xff]   ;;  %v17357_v10 = vld [vmem:[#allocation15 + $0xc4] ss:$16 sps:$4 sm:$0xff]  }
 0xa93   :  { %7046 = vmatpush1.bf16.msra.mxu1 %v13064_v16  ;;  %7119 = vmatpush1.bf16.msra.mxu0 %v13066_v43  ;;  %v17175_v16 = vld [vmem:[#allocation13] ss:$16 sps:$4 sm:$0xff]   ;;  %v17178_v43 = vld [vmem:[#allocation13 + $0x8] ss:$16 sps:$4 sm:$0xff]  }
 0xa94   :  { %7047 = vmatprep.subr.bf16.mxu1 %v13073_v62  ;;  %7120 = vmatprep.subr.bf16.mxu0 %v13075_v55  ;;  %v17181_v62 = vld [vmem:[#allocation13 + $0x24] ss:$16 sps:$4 sm:$0xff]   ;;  %v17183_v55 = vld [vmem:[#allocation13 + $0x2c] ss:$16 sps:$4 sm:$0xff]  }
 0xa97   :  { %7048 = vmatpush1.bf16.msra.mxu1 %v13072_v4  ;;  %7121 = vmatpush1.bf16.msra.mxu0 %v13074_v36  ;;  %v17209_v4 = vld [vmem:[#allocation13 + $0x64] ss:$16 sps:$4 sm:$0xff]   ;;  %v17211_v36 = vld [vmem:[#allocation13 + $0x6c] ss:$16 sps:$4 sm:$0xff]  }
 0xa98   :  { %7049 = vmatprep.subr.bf16.mxu1 %v13081_v29  ;;  %7122 = vmatprep.subr.bf16.mxu0 %v13083_v41  ;;  %v17219_v29 = vld [vmem:[#allocation13 + $0x60] ss:$16 sps:$4 sm:$0xff]   ;;  %v17221_v41 = vld [vmem:[#allocation13 + $0x68] ss:$16 sps:$4 sm:$0xff]  }
 0xa9b   :  { %7050 = vmatpush1.bf16.msra.mxu1 %v13080_v58  ;;  %7123 = vmatpush1.bf16.msra.mxu0 %v13082_v38  ;;  %v17247_v58 = vld [vmem:[#allocation13 + $0xa0] ss:$16 sps:$4 sm:$0xff]   ;;  %v17249_v38 = vld [vmem:[#allocation13 + $0xa8] ss:$16 sps:$4 sm:$0xff]  }
 0xa9c   :  { %7051 = vmatprep.subr.bf16.mxu1 %v13089_v24  ;;  %7124 = vmatprep.subr.bf16.mxu0 %v13091_v6  ;;  %v17253_v24 = vld [vmem:[#allocation13 + $0xc4] ss:$16 sps:$4 sm:$0xff]   ;;  %v17255_v6 = vld [vmem:[#allocation13 + $0xcc] ss:$16 sps:$4 sm:$0xff]  }
 0xa9f   :  { %7052 = vmatpush1.bf16.msra.mxu1 %v13088_v57  ;;  %7125 = vmatpush1.bf16.msra.mxu0 %v13090_v34  ;;  %v17281_v57 = vld [vmem:[#allocation15 + $0x4] ss:$16 sps:$4 sm:$0xff]   ;;  %v17283_v34 = vld [vmem:[#allocation15 + $0xc] ss:$16 sps:$4 sm:$0xff]  }
 0xaa0   :  { %7053 = vmatprep.subr.bf16.mxu1 %v13097_v44  ;;  %7126 = vmatprep.subr.bf16.mxu0 %v13099_v45  ;;  %v17289_v44 = vld [vmem:[#allocation15 + $0x8] ss:$16 sps:$4 sm:$0xff]   ;;  %v17293_v45 = vld [vmem:[#allocation15 + $0x24] ss:$16 sps:$4 sm:$0xff]  }
 0xaa3   :  { %7054 = vmatpush1.bf16.msra.mxu1 %v13096_v48  ;;  %7127 = vmatpush1.bf16.msra.mxu0 %v13098_v49  ;;  %v17309_v48 = vld [vmem:[#allocation15 + $0x4c] ss:$16 sps:$4 sm:$0xff]   ;;  %v17315_v49 = vld [vmem:[#allocation15 + $0x40] ss:$16 sps:$4 sm:$0xff]  }
 0xaa4   :  { %7055 = vmatprep.subr.bf16.mxu1 %v13105_v51  ;;  %7128 = vmatprep.subr.bf16.mxu0 %v13107_v52  ;;  %v17317_v51 = vld [vmem:[#allocation15 + $0x48] ss:$16 sps:$4 sm:$0xff]   ;;  %v17321_v52 = vld [vmem:[#allocation15 + $0x64] ss:$16 sps:$4 sm:$0xff]  }
 0xaa7   :  { %7056 = vmatpush1.bf16.msra.mxu1 %v13104_v17  ;;  %7129 = vmatpush1.bf16.msra.mxu0 %v13106_v2  ;;  %v17335_v17 = vld [vmem:[#allocation15 + $0x8c] ss:$16 sps:$4 sm:$0xff]   ;;  %v17339_v2 = vld [vmem:[#allocation15 + $0x80] ss:$16 sps:$4 sm:$0xff]  }
 0xaa8   :  { %7057 = vmatprep.subr.bf16.mxu1 %v13113_v37  ;;  %7130 = vmatprep.subr.bf16.mxu0 %v13115_v23  ;;  %v17341_v37 = vld [vmem:[#allocation15 + $0x88] ss:$16 sps:$4 sm:$0xff]   ;;  %v17345_v23 = vld [vmem:[#allocation15 + $0xa4] ss:$16 sps:$4 sm:$0xff]  }
 0xaab   :  { %7058 = vmatpush1.bf16.msra.mxu1 %v13112_v50  ;;  %7131 = vmatpush1.bf16.msra.mxu0 %v13114_v61  ;;  %v17359_v50 = vld [vmem:[#allocation15 + $0xcc] ss:$16 sps:$4 sm:$0xff]   ;;  %v17363_v61 = vld [vmem:[#allocation15 + $0xc0] ss:$16 sps:$4 sm:$0xff]  }
 0xaac   :  { %7059 = vmatprep.subr.bf16.mxu1 %v13121_v3  ;;  %7132 = vmatprep.subr.bf16.mxu0 %v13123_v22  ;;  %v17365_v3 = vld [vmem:[#allocation15 + $0xc8] ss:$16 sps:$4 sm:$0xff]   ;;  %v17369_v22 = vld [vmem:[#allocation15 + $0xe4] ss:$16 sps:$4 sm:$0xff]  }
 0xaaf   :  { %7060 = vmatpush1.bf16.msra.mxu1 %v13120_v42  ;;  %7133 = vmatpush1.bf16.msra.mxu0 %v13122_v54  ;;  %v17371_v42 = vld [vmem:[#allocation15 + $0xec] ss:$16 sps:$4 sm:$0xff]   ;;  %v17375_v54 = vld [vmem:[#allocation15 + $0xe0] ss:$16 sps:$4 sm:$0xff]  }
 0xab0   :  { %7435 = vmatprep.subr.bf16.mxu1 %v17171_v8  ;;  %7476 = vmatprep.subr.bf16.mxu0 %v17173_v19 }
 0xab2   :  { %7062 = vmatmul.mubr.bf16.vlgmr.msra.gmra.mrb[112].mxu1 %v17121_v40  ;;  %7135 = vmatmul.mubr.bf16.vlgmr.msra.gmra.mrb[120].mxu0 %v17121_v40  ;;  %v17203_v40 = vld [vmem:[#allocation13 + $0x40] ss:$16 sps:$4 sm:$0xff]  }
 0xab3   :  { %7071 = vmatprep.mubr.bf16.mxu1 %v17129_v15  ;;  %7144 = vmatprep.mubr.bf16.mxu0 %v17129_v15  ;;  %v17205_v15 = vld [vmem:[#allocation13 + $0x48] ss:$16 sps:$4 sm:$0xff]  }
 0xab4   :  { %7436 = vmatpush1.bf16.msra.mxu1 %v17175_v16  ;;  %7477 = vmatpush1.bf16.msra.mxu0 %v17178_v43 }
 0xab5   :  { %7437 = vmatprep.subr.bf16.mxu1 %v17181_v62  ;;  %7478 = vmatprep.subr.bf16.mxu0 %v17183_v55 }
 0xab8   :  { %7438 = vmatpush1.bf16.msra.mxu1 %v17191_v27  ;;  %7479 = vmatpush1.bf16.msra.mxu0 %v17193_v9 }
 0xab9   :  { %7439 = vmatprep.subr.bf16.mxu1 %v17197_v14  ;;  %7480 = vmatprep.subr.bf16.mxu0 %v17199_v20 }
 0xaba   :  { %7072 = vmatmul.mubr.bf16.gmra.mrb[116].mxu1 %v17141_v7  ;;  %7145 = vmatmul.mubr.bf16.gmra.mrb[124].mxu0 %v17141_v7  ;;  %v17231_v7 = vld [vmem:[#allocation13 + $0x80] ss:$16 sps:$4 sm:$0xff]  }
 0xabb   :  { %7081 = vmatprep.mubr.bf16.mxu1 %v17147_v26  ;;  %7154 = vmatprep.mubr.bf16.mxu0 %v17147_v26  ;;  %v17233_v26 = vld [vmem:[#allocation13 + $0x88] ss:$16 sps:$4 sm:$0xff]  }
 0xabc   :  { %7440 = vmatpush1.bf16.msra.mxu1 %v17203_v40  ;;  %7481 = vmatpush1.bf16.msra.mxu0 %v17205_v15 }
 0xabd   :  { %7441 = vmatprep.subr.bf16.mxu1 %v17209_v4  ;;  %7482 = vmatprep.subr.bf16.mxu0 %v17211_v36 }
 0xac0   :  { %7442 = vmatpush1.bf16.msra.mxu1 %v17219_v29  ;;  %7483 = vmatpush1.bf16.msra.mxu0 %v17221_v41 }
 0xac1   :  { %7443 = vmatprep.subr.bf16.mxu1 %v17225_v21  ;;  %7484 = vmatprep.subr.bf16.mxu0 %v17227_v25 }
 0xac2   :  { %7082 = vmatmul.mubr.bf16.gmra.mrb[120].mxu1 %v17153_v1  ;;  %7155 = vmatmul.mubr.bf16.gmra.mrb[128].mxu0 %v17153_v1  ;;  %v17259_v1 = vld [vmem:[#allocation13 + $0xc0] ss:$16 sps:$4 sm:$0xff]  }
 0xac3   :  { %7091 = vmatprep.mubr.bf16.mxu1 %v17159_v5  ;;  %7164 = vmatprep.mubr.bf16.mxu0 %v17159_v5  ;;  %v17261_v5 = vld [vmem:[#allocation13 + $0xc8] ss:$16 sps:$4 sm:$0xff]  }
 0xac4   :  { %7444 = vmatpush1.bf16.msra.mxu1 %v17231_v7  ;;  %7485 = vmatpush1.bf16.msra.mxu0 %v17233_v26 }
 0xac5   :  { %7445 = vmatprep.subr.bf16.mxu1 %v17237_v12  ;;  %7486 = vmatprep.subr.bf16.mxu0 %v17239_v28 }
 0xac8   :  { %7446 = vmatpush1.bf16.msra.mxu1 %v17247_v58  ;;  %7487 = vmatpush1.bf16.msra.mxu0 %v17249_v38 }
 0xac9   :  { %7447 = vmatprep.subr.bf16.mxu1 %v17253_v24  ;;  %7488 = vmatprep.subr.bf16.mxu0 %v17255_v6 }
 0xaca   :  { %7092 = vmatmul.mubr.bf16.gmra.mrb[124].mxu1 %v17165_v31  ;;  %7165 = vmatmul.mubr.bf16.gmra.mrb[132].mxu0 %v17165_v31  ;;  %v17287_v31 = vld [vmem:[#allocation15] ss:$16 sps:$4 sm:$0xff]  }
 0xacb   :  { %7467 = vmatprep.mubr.bf16.mxu1 %v18669_v56  ;;  %7508 = vmatprep.mubr.bf16.mxu0 %v18669_v56 }
 0xacc   :  { %7448 = vmatpush1.bf16.msra.mxu1 %v17259_v1  ;;  %7489 = vmatpush1.bf16.msra.mxu0 %v17261_v5 }
 0xacd   :  { %7449 = vmatprep.subr.bf16.mxu1 %v17265_v35  ;;  %7490 = vmatprep.subr.bf16.mxu0 %v17267_v13 }
 0xad0   :  { %7450 = vmatpush1.bf16.msra.mxu1 %v17275_v32  ;;  %7491 = vmatpush1.bf16.msra.mxu0 %v17277_v60 }
 0xad1   :  { %7717 = vmatprep.subr.bf16.mxu1 %v17281_v57  ;;  %7758 = vmatprep.subr.bf16.mxu0 %v17283_v34 }
 0xad3   :  { %7468 = vmatmul.mubr.bf16.vlgmr.msra.gmra.mrb[128].mxu1 %v18669_v56  ;;  %7509 = vmatmul.mubr.bf16.vlgmr.msra.gmra.mrb[136].mxu0 %v18669_v56 }
 0xad4   :  { %7718 = vmatpush1.bf16.msra.mxu1 %v17287_v31  ;;  %7759 = vmatpush1.bf16.msra.mxu0 %v17289_v44 }
 0xad5   :  { %7719 = vmatprep.subr.bf16.mxu1 %v17293_v45  ;;  %7760 = vmatprep.subr.bf16.mxu0 %v17295_v59 }
 0xad6   :  { %7749 = vmatprep.mubr.bf16.mxu1 %v18669_v56  ;;  %7790 = vmatprep.mubr.bf16.mxu0 %v18669_v56 }
 0xad8   :  { %7720 = vmatpush1.bf16.msra.mxu1 %v17301_v46  ;;  %7761 = vmatpush1.bf16.msra.mxu0 %v17303_v47 }
 0xad9   :  { %7721 = vmatprep.subr.bf16.mxu1 %v17307_v0  ;;  %7762 = vmatprep.subr.bf16.mxu0 %v17309_v48 }
 0xadc   :  { %7722 = vmatpush1.bf16.msra.mxu1 %v17315_v49  ;;  %7763 = vmatpush1.bf16.msra.mxu0 %v17317_v51 }
 0xadd   :  { %7723 = vmatprep.subr.bf16.mxu1 %v17321_v52  ;;  %7764 = vmatprep.subr.bf16.mxu0 %v17323_v53 }
 0xae0   :  { %7724 = vmatpush1.bf16.msra.mxu1 %v17327_v18  ;;  %7765 = vmatpush1.bf16.msra.mxu0 %v17329_v63 }
 0xae1   :  { %7725 = vmatprep.subr.bf16.mxu1 %v17333_v33  ;;  %7766 = vmatprep.subr.bf16.mxu0 %v17335_v17 }
 0xae4   :  { %7726 = vmatpush1.bf16.msra.mxu1 %v17339_v2  ;;  %7767 = vmatpush1.bf16.msra.mxu0 %v17341_v37 }
 0xae5   :  { %7727 = vmatprep.subr.bf16.mxu1 %v17345_v23  ;;  %7768 = vmatprep.subr.bf16.mxu0 %v17347_v30 }
 0xae8   :  { %7728 = vmatpush1.bf16.msra.mxu1 %v17351_v11  ;;  %7769 = vmatpush1.bf16.msra.mxu0 %v17353_v39  ;;  %v17377_v11 = vld [vmem:[#allocation15 + $0xe8] ss:$16 sps:$4 sm:$0xff]  }
 0xae9   :  { %7729 = vmatprep.subr.bf16.mxu1 %v17357_v10  ;;  %7770 = vmatprep.subr.bf16.mxu0 %v17359_v50 }
 0xaec   :  { %7730 = vmatpush1.bf16.msra.mxu1 %v17363_v61  ;;  %7771 = vmatpush1.bf16.msra.mxu0 %v17365_v3 }
 0xaed   :  { %7731 = vmatprep.subr.bf16.mxu1 %v17369_v22  ;;  %7772 = vmatprep.subr.bf16.mxu0 %v17371_v42 }
 0xaf0   :  { %7732 = vmatpush1.bf16.msra.mxu1 %v17375_v54  ;;  %7773 = vmatpush1.bf16.msra.mxu0 %v17377_v11 }
 0xaf1   :  { %8050 = vmatprep.subr.bf16.mxu1 %v17171_v8  ;;  %8091 = vmatprep.subr.bf16.mxu0 %v17173_v19  ;;  %v17424_v8 = vld [vmem:[%s18599_s9] sm:$0xff] }
 0xaf3   :  { %7750 = vmatmul.mubr.bf16.vlgmr.msra.gmra.mrb[132].mxu1 %v18669_v56  ;;  %7791 = vmatmul.mubr.bf16.vlgmr.msra.gmra.mrb[140].mxu0 %v18669_v56 }
 0xaf4   :  { %8051 = vmatpush1.bf16.msra.mxu1 %v17175_v16  ;;  %8092 = vmatpush1.bf16.msra.mxu0 %v17178_v43  ;;  %v18848_v43 = vld [vmem:[#allocation26_spill] sm:$0xff] }
 0xaf5   :  { %8052 = vmatprep.subr.bf16.mxu1 %v17181_v62  ;;  %8093 = vmatprep.subr.bf16.mxu0 %v17183_v55  ;;  %v18849_v62 = vsub.s32 0, %v18848_v43 }
 0xaf6   :  { %8082 = vmatprep.mubr.bf16.mxu1 %v18669_v56  ;;  %8123 = vmatprep.mubr.bf16.mxu0 %v18669_v56 }
 0xaf7   :  { %v17433_v55 = vrot.slane %v17424_v8, %v18849_v62 }
 0xaf8   :  { %8053 = vmatpush1.bf16.msra.mxu1 %v17191_v27  ;;  %8094 = vmatpush1.bf16.msra.mxu0 %v17193_v9  ;;  %v18850_v27 = vsub.s32 2, %v18848_v43 }
 0xaf9   :  { %8054 = vmatprep.subr.bf16.mxu1 %v17197_v14  ;;  %8095 = vmatprep.subr.bf16.mxu0 %v17199_v20 }
 0xafa   :  { %v17438_v9 = vrot.slane %v17424_v8, %v18850_v27 }
 0xafc   :  { %8055 = vmatpush1.bf16.msra.mxu1 %v17203_v40  ;;  %8096 = vmatpush1.bf16.msra.mxu0 %v17205_v15  ;;  %v18851_v40 = vsub.s32 1, %v18848_v43 }
 0xafd   :  { %8056 = vmatprep.subr.bf16.mxu1 %v17209_v4  ;;  %8097 = vmatprep.subr.bf16.mxu0 %v17211_v36  ;;  %v18852_v4 = vsub.s32 3, %v18848_v43 }
 0xafe   :  { %v17447_v15 = vrot.slane %v17424_v8, %v18851_v40 }
 0xaff   :  { %v17452_v36 = vrot.slane %v17424_v8, %v18852_v4 }
 0xb00   :  { %8057 = vmatpush1.bf16.msra.mxu1 %v17219_v29  ;;  %8098 = vmatpush1.bf16.msra.mxu0 %v17221_v41 }
 0xb01   :  { %8058 = vmatprep.subr.bf16.mxu1 %v17225_v21  ;;  %8099 = vmatprep.subr.bf16.mxu0 %v17227_v25 }
 0xb04   :  { %8059 = vmatpush1.bf16.msra.mxu1 %v17231_v7  ;;  %8100 = vmatpush1.bf16.msra.mxu0 %v17233_v26 }
 0xb05   :  { %8060 = vmatprep.subr.bf16.mxu1 %v17237_v12  ;;  %8101 = vmatprep.subr.bf16.mxu0 %v17239_v28 }
 0xb08   :  { %8061 = vmatpush1.bf16.msra.mxu1 %v17247_v58  ;;  %8102 = vmatpush1.bf16.msra.mxu0 %v17249_v38 }
 0xb09   :  { %8062 = vmatprep.subr.bf16.mxu1 %v17253_v24  ;;  %8103 = vmatprep.subr.bf16.mxu0 %v17255_v6 }
 0xb0c   :  { %8063 = vmatpush1.bf16.msra.mxu1 %v17259_v1  ;;  %8104 = vmatpush1.bf16.msra.mxu0 %v17261_v5 }
 0xb0d   :  { %8064 = vmatprep.subr.bf16.mxu1 %v17265_v35  ;;  %8105 = vmatprep.subr.bf16.mxu0 %v17267_v13 }
 0xb10   :  { %8065 = vmatpush1.bf16.msra.mxu1 %v17275_v32  ;;  %8106 = vmatpush1.bf16.msra.mxu0 %v17277_v60 }
 0xb11   :  { %8333 = vmatprep.subr.bf16.mxu1 %v17281_v57  ;;  %8374 = vmatprep.subr.bf16.mxu0 %v17283_v34 }
 0xb45   :  { %v17426_v19 = vpop.f32.mrb[96].mxu1  ;;  %v17428_v16 = vpop.f32.mrb[104].mxu0 }
 0xb46   :  { %v17440_v14 = vpop.f32.mrb[97].mxu1  ;;  %v17442_v20 = vpop.f32.mrb[105].mxu0 }
 0xb47   :  { %v6921_v29 = vpop.f32.mrb[98].mxu1  ;;  %v6994_v41 = vpop.f32.mrb[106].mxu0 }
 0xb48   :  { %v17455_v21 = vadd.f32 %v6921_v29, %v17433_v55  ;;  %v17458_v25 = vadd.f32 %v6994_v41, %v17438_v9  ;;  %v6923_v7 = vpop.f32.mrb[99].mxu1  ;;  %v6996_v26 = vpop.f32.mrb[107].mxu0 }
 0xb49   :  { %v17461_v12 = vadd.f32 %v6923_v7, %v17447_v15  ;;  %v17464_v28 = vadd.f32 %v6996_v26, %v17452_v36 }
 0xb4b   :  { %18853 = vst [vmem:[#allocation71_spill] sm:$0xff] %v17464_v28 }
 0xb4d   :  { %v6927_v58 = vpop.f32.mrb[100].mxu1  ;;  %v7000_v38 = vpop.f32.mrb[108].mxu0 }
 0xb4e   :  { %v17467_v24 = vadd.f32 %v6927_v58, %v17433_v55  ;;  %v17470_v6 = vadd.f32 %v7000_v38, %v17438_v9  ;;  %v6929_v1 = vpop.f32.mrb[101].mxu1  ;;  %v7002_v5 = vpop.f32.mrb[109].mxu0 }
 0xb4f   :  { %v17473_v35 = vadd.f32 %v6929_v1, %v17447_v15  ;;  %v17476_v13 = vadd.f32 %v7002_v5, %v17452_v36  ;;  %v6931_v32 = vpop.f32.mrb[102].mxu1  ;;  %v7004_v60 = vpop.f32.mrb[110].mxu0 }
 0xb50   :  { %18854 = vst [vmem:[#allocation36_spill] sm:$0xff] %v17467_v24  ;;  %18855 = vst [vmem:[#allocation37_spill] sm:$0xff] %v17470_v6  ;;  %v17479_v57 = vadd.f32 %v6931_v32, %v17433_v55  ;;  %v17482_v34 = vadd.f32 %v7004_v60, %v17438_v9  ;;  %v6933_v62 = vpop.f32.mrb[103].mxu1  ;;  %v7006_v27 = vpop.f32.mrb[111].mxu0 }
 0xb51   :  { %18856 = vst [vmem:[#allocation38_spill] sm:$0xff] %v17473_v35  ;;  %18857 = vst [vmem:[#allocation39_spill] sm:$0xff] %v17476_v13  ;;  %v17485_v40 = vadd.f32 %v6933_v62, %v17447_v15  ;;  %v17488_v4 = vadd.f32 %v7006_v27, %v17452_v36 }
 0xb52   :  { %18858 = vst [vmem:[#allocation64_spill] sm:$0xff] %v17479_v57  ;;  %18859 = vst [vmem:[#allocation65_spill] sm:$0xff] %v17482_v34 }
 0xb53   :  { %18860 = vst [vmem:[#allocation66_spill] sm:$0xff] %v17485_v40  ;;  %18861 = vst [vmem:[#allocation67_spill] sm:$0xff] %v17488_v4 }
 0xb55   :  { %v6937_v29 = vpop.f32.mrb[104].mxu1  ;;  %v7010_v41 = vpop.f32.mrb[112].mxu0 }
 0xb56   :  { %v17491_v7 = vadd.f32 %v6937_v29, %v17433_v55  ;;  %v17494_v26 = vadd.f32 %v7010_v41, %v17438_v9  ;;  %v6939_v58 = vpop.f32.mrb[105].mxu1  ;;  %v7012_v38 = vpop.f32.mrb[113].mxu0 }
 0xb57   :  { %v17497_v1 = vadd.f32 %v6939_v58, %v17447_v15  ;;  %v17500_v5 = vadd.f32 %v7012_v38, %v17452_v36  ;;  %v6941_v32 = vpop.f32.mrb[106].mxu1  ;;  %v7014_v60 = vpop.f32.mrb[114].mxu0 }
 0xb58   :  { %18862 = vst [vmem:[#allocation31_spill] sm:$0xff] %v17491_v7  ;;  %18863 = vst [vmem:[#allocation72_spill] sm:$0xff] %v17494_v26  ;;  %v17503_v62 = vadd.f32 %v6941_v32, %v17433_v55  ;;  %v17506_v27 = vadd.f32 %v7014_v60, %v17438_v9  ;;  %v6943_v29 = vpop.f32.mrb[107].mxu1  ;;  %v7016_v7 = vpop.f32.mrb[115].mxu0 }
 0xb59   :  { %18864 = vst [vmem:[#allocation73_spill] sm:$0xff] %v17497_v1  ;;  %18865 = vst [vmem:[#allocation74_spill] sm:$0xff] %v17500_v5  ;;  %v17509_v41 = vadd.f32 %v6943_v29, %v17447_v15  ;;  %v17512_v26 = vadd.f32 %v7016_v7, %v17452_v36 }
 0xb5a   :  { %18866 = vst [vmem:[#allocation75_spill] sm:$0xff] %v17503_v62  ;;  %18867 = vst [vmem:[#allocation76_spill] sm:$0xff] %v17506_v27 }
 0xb5b   :  { %18868 = vst [vmem:[#allocation77_spill] sm:$0xff] %v17509_v41  ;;  %18869 = vst [vmem:[#allocation40_spill] sm:$0xff] %v17512_v26 }
 0xb5d   :  { %v6947_v58 = vpop.f32.mrb[108].mxu1  ;;  %v7020_v1 = vpop.f32.mrb[116].mxu0 }
 0xb5e   :  { %v17515_v38 = vadd.f32 %v6947_v58, %v17433_v55  ;;  %v17518_v5 = vadd.f32 %v7020_v1, %v17438_v9  ;;  %v6949_v32 = vpop.f32.mrb[109].mxu1  ;;  %v7022_v62 = vpop.f32.mrb[117].mxu0 }
 0xb5f   :  { %v17521_v60 = vadd.f32 %v6949_v32, %v17447_v15  ;;  %v17524_v27 = vadd.f32 %v7022_v62, %v17452_v36  ;;  %v6951_v29 = vpop.f32.mrb[110].mxu1  ;;  %v7024_v41 = vpop.f32.mrb[118].mxu0  ;;  %v18878_v32 = vsub.s32 4, %v18848_v43 }
 0xb60   :  { %18870 = vst [vmem:[#allocation41_spill] sm:$0xff] %v17515_v38  ;;  %18871 = vst [vmem:[#allocation42_spill] sm:$0xff] %v17518_v5  ;;  %v17527_v7 = vadd.f32 %v6951_v29, %v17433_v55  ;;  %v17530_v26 = vadd.f32 %v7024_v41, %v17438_v9  ;;  %v6953_v58 = vpop.f32.mrb[111].mxu1  ;;  %v7026_v38 = vpop.f32.mrb[119].mxu0 }
 0xb61   :  { %18872 = vst [vmem:[#allocation43_spill] sm:$0xff] %v17521_v60  ;;  %18873 = vst [vmem:[#allocation60_spill] sm:$0xff] %v17524_v27  ;;  %v17533_v1 = vadd.f32 %v6953_v58, %v17447_v15  ;;  %v17536_v5 = vadd.f32 %v7026_v38, %v17452_v36  ;;  %v17541_v62 = vrot.slane %v17424_v8, %v18878_v32  ;;  %v18879_v27 = vsub.s32 6, %v18848_v43 }
 0xb62   :  { %18874 = vst [vmem:[#allocation61_spill] sm:$0xff] %v17527_v7  ;;  %18875 = vst [vmem:[#allocation62_spill] sm:$0xff] %v17530_v26  ;;  %v18880_v7 = vsub.s32 5, %v18848_v43  ;;  %v18881_v38 = vsub.s32 7, %v18848_v43 }
 0xb63   :  { %18876 = vst [vmem:[#allocation63_spill] sm:$0xff] %v17533_v1  ;;  %18877 = vst [vmem:[#allocation44_spill] sm:$0xff] %v17536_v5  ;;  %v17546_v29 = vrot.slane %v17424_v8, %v18879_v27 }
 0xb64   :  { %v17551_v58 = vrot.slane %v17424_v8, %v18880_v7  ;;  %v17556_v5 = vrot.slane %v17424_v8, %v18881_v38 }
 0xb85   :  { %v7063_v41 = vpop.f32.mrb[112].mxu1  ;;  %v7136_v26 = vpop.f32.mrb[120].mxu0 }
 0xb86   :  { %v7065_v1 = vpop.f32.mrb[113].mxu1  ;;  %v7138_v32 = vpop.f32.mrb[121].mxu0 }
 0xb87   :  { %v7067_v60 = vpop.f32.mrb[114].mxu1  ;;  %v7140_v4 = vpop.f32.mrb[122].mxu0 }
 0xb88   :  { %v17559_v40 = vadd.f32 %v7067_v60, %v17541_v62  ;;  %v17562_v27 = vadd.f32 %v7140_v4, %v17546_v29  ;;  %v7069_v26 = vpop.f32.mrb[115].mxu1  ;;  %v7142_v41 = vpop.f32.mrb[123].mxu0 }
 0xb89   :  { %v17565_v7 = vadd.f32 %v7069_v26, %v17551_v58  ;;  %v17568_v43 = vadd.f32 %v7142_v41, %v17556_v5 }
 0xb8a   :  { %18882 = vst [vmem:[#allocation45_spill] sm:$0xff] %v17559_v40  ;;  %18883 = vst [vmem:[#allocation46_spill] sm:$0xff] %v17562_v27 }
 0xb8b   :  { %18884 = vst [vmem:[#allocation47_spill] sm:$0xff] %v17565_v7  ;;  %18885 = vst [vmem:[#allocation56_spill] sm:$0xff] %v17568_v43 }
 0xb8d   :  { %v7073_v8 = vpop.f32.mrb[116].mxu1  ;;  %v7146_v38 = vpop.f32.mrb[124].mxu0 }
 0xb8e   :  { %v17571_v1 = vadd.f32 %v7073_v8, %v17541_v62  ;;  %v17574_v32 = vadd.f32 %v7146_v38, %v17546_v29  ;;  %v7075_v60 = vpop.f32.mrb[117].mxu1  ;;  %v7148_v40 = vpop.f32.mrb[125].mxu0 }
 0xb8f   :  { %v17577_v4 = vadd.f32 %v7075_v60, %v17551_v58  ;;  %v17580_v27 = vadd.f32 %v7148_v40, %v17556_v5  ;;  %v7077_v26 = vpop.f32.mrb[118].mxu1  ;;  %v7150_v7 = vpop.f32.mrb[126].mxu0 }
 0xb90   :  { %18886 = vst [vmem:[#allocation57_spill] sm:$0xff] %v17571_v1  ;;  %18887 = vst [vmem:[#allocation58_spill] sm:$0xff] %v17574_v32  ;;  %v17583_v41 = vadd.f32 %v7077_v26, %v17541_v62  ;;  %v17586_v43 = vadd.f32 %v7150_v7, %v17546_v29  ;;  %v7079_v8 = vpop.f32.mrb[119].mxu1  ;;  %v7152_v1 = vpop.f32.mrb[127].mxu0 }
 0xb91   :  { %18888 = vst [vmem:[#allocation59_spill] sm:$0xff] %v17577_v4  ;;  %18889 = vst [vmem:[#allocation83_spill] sm:$0xff] %v17580_v27  ;;  %v17589_v38 = vadd.f32 %v7079_v8, %v17551_v58  ;;  %v17592_v32 = vadd.f32 %v7152_v1, %v17556_v5 }
 0xb92   :  { %18890 = vst [vmem:[#allocation32_spill] sm:$0xff] %v17583_v41  ;;  %18891 = vst [vmem:[#allocation33_spill] sm:$0xff] %v17586_v43 }
 0xb93   :  { %18892 = vst [vmem:[#allocation34_spill] sm:$0xff] %v17589_v38  ;;  %18893 = vst [vmem:[#allocation35_spill] sm:$0xff] %v17592_v32 }
 0xb95   :  { %v7083_v60 = vpop.f32.mrb[120].mxu1  ;;  %v7156_v4 = vpop.f32.mrb[128].mxu0 }
 0xb96   :  { %v17595_v40 = vadd.f32 %v7083_v60, %v17541_v62  ;;  %v17598_v27 = vadd.f32 %v7156_v4, %v17546_v29  ;;  %v7085_v26 = vpop.f32.mrb[121].mxu1  ;;  %v7158_v41 = vpop.f32.mrb[129].mxu0 }
 0xb97   :  { %v17601_v7 = vadd.f32 %v7085_v26, %v17551_v58  ;;  %v17604_v43 = vadd.f32 %v7158_v41, %v17556_v5  ;;  %v7087_v8 = vpop.f32.mrb[122].mxu1  ;;  %v7160_v38 = vpop.f32.mrb[130].mxu0 }
 0xb98   :  { %18894 = vst [vmem:[#allocation68_spill] sm:$0xff] %v17595_v40  ;;  %18895 = vst [vmem:[#allocation69_spill] sm:$0xff] %v17598_v27  ;;  %v17607_v1 = vadd.f32 %v7087_v8, %v17541_v62  ;;  %v17610_v32 = vadd.f32 %v7160_v38, %v17546_v29  ;;  %v7089_v60 = vpop.f32.mrb[123].mxu1  ;;  %v7162_v40 = vpop.f32.mrb[131].mxu0 }
 0xb99   :  { %18896 = vst [vmem:[#allocation48_spill] sm:$0xff] %v17601_v7  ;;  %18897 = vst [vmem:[#allocation49_spill] sm:$0xff] %v17604_v43  ;;  %v17613_v4 = vadd.f32 %v7089_v60, %v17551_v58  ;;  %v17616_v27 = vadd.f32 %v7162_v40, %v17556_v5 }
 0xb9a   :  { %18898 = vst [vmem:[#allocation50_spill] sm:$0xff] %v17607_v1  ;;  %18899 = vst [vmem:[#allocation51_spill] sm:$0xff] %v17610_v32  ;;  %v6918_v32 = vadd.f32 %v17426_v19, %v17433_v55 }
 0xb9b   :  { %18900 = vst [vmem:[#allocation52_spill] sm:$0xff] %v17613_v4  ;;  %18901 = vst [vmem:[#allocation53_spill] sm:$0xff] %v17616_v27 }
 0xb9d   :  { %v7093_v26 = vpop.f32.mrb[124].mxu1  ;;  %v7166_v7 = vpop.f32.mrb[132].mxu0 }
 0xb9e   :  { %v17619_v41 = vadd.f32 %v7093_v26, %v17541_v62  ;;  %v17622_v43 = vadd.f32 %v7166_v7, %v17546_v29  ;;  %v7095_v8 = vpop.f32.mrb[125].mxu1  ;;  %v7168_v34 = vpop.f32.mrb[133].mxu0  ;;  %v6991_v26 = vadd.f32 %v17428_v16, %v17438_v9  ;;  %v6920_v7 = vadd.f32 %v17440_v14, %v17447_v15 }
 0xb9f   :  { %v17625_v38 = vadd.f32 %v7095_v8, %v17551_v58  ;;  %v17628_v57 = vadd.f32 %v7168_v34, %v17556_v5  ;;  %v7097_v60 = vpop.f32.mrb[126].mxu1  ;;  %v7170_v4 = vpop.f32.mrb[134].mxu0  ;;  %v6993_v8 = vadd.f32 %v17442_v20, %v17452_v36 }
 0xba0   :  { %18902 = vst [vmem:[#allocation54_spill] sm:$0xff] %v17619_v41  ;;  %18903 = vst [vmem:[#allocation55_spill] sm:$0xff] %v17622_v43  ;;  %v7099_v40 = vpop.f32.mrb[127].mxu1  ;;  %v7172_v27 = vpop.f32.mrb[135].mxu0 }
 0xba1   :  { %18904 = vst [vmem:[#allocation80_spill] sm:$0xff] %v17625_v38  ;;  %18905 = vst [vmem:[#allocation27_spill] sm:$0xff] %v17628_v57 }
 0xba6   :  { %v7469_v1 = vpop.f32.mrb[128].mxu1  ;;  %v7510_v13 = vpop.f32.mrb[136].mxu0 }
 0xba7   :  { %v7517_v34 = vadd.f32 %v7469_v1, %v6918_v32  ;;  %v7519_v35 = vadd.f32 %v7510_v13, %v6991_v26  ;;  %v7471_v6 = vpop.f32.mrb[129].mxu1  ;;  %v7512_v24 = vpop.f32.mrb[137].mxu0  ;;  %v7173_v26 = vadd.f32 %v7172_v27, %v17556_v5 }
 0xba8   :  { %v7518_v57 = vadd.f32 %v7471_v6, %v6920_v7  ;;  %v7520_v38 = vadd.f32 %v7512_v24, %v6993_v8  ;;  %v7473_v43 = vpop.f32.mrb[130].mxu1  ;;  %v7514_v41 = vpop.f32.mrb[138].mxu0 }
 0xba9   :  { %v13188_v19 = vmul.f32 -1.442695, %v7517_v34  ;;  %v7474_v55 = vpop.f32.mrb[131].mxu1  ;;  %v7515_v28 = vpop.f32.mrb[139].mxu0 }
 0xbaa   :  { %v13189_v16 = vmul.f32 -1.442695, %v7518_v57  ;;  %v13190_v9 = vmul.f32 -1.442695, %v7520_v38  ;;  %v7098_v28 = vadd.f32 %v7097_v60, %v17541_v62  ;;  %v7171_v57 = vadd.f32 %v7170_v4, %v17546_v29 }
 0xbab   :  { %14884 = vpow2.f32 %v13188_v19  ;;  %v7100_v38 = vadd.f32 %v7099_v40, %v17551_v58 }
 0xbac   :  { %14886 = vpow2.f32 %v13189_v16 }
 0xbad   :  { %14888 = vpow2.f32 %v13190_v9 }
 0xbae   :  { %14890 = vtanh.f32 %v7519_v35 }
 0xbb5   :  { %v14885_v14 = vpop.eup %14884 }
 0xbb6   :  { %v14887_v15 = vpop.eup %14886  ;;  %v7806_v20 = vadd.f32 1.0, %v14885_v14 }
 0xbb7   :  { %v7812_v36 = vadd.f32 1.0, %v14887_v15  ;;  %v14889_v13 = vpop.eup %14888 }
 0xbb8   :  { %14892 = vrcp.f32 %v7806_v20  ;;  %v14891_v6 = vpop.eup %14890  ;;  %v7819_v1 = vadd.f32 1.0, %v14889_v13 }
 0xbb9   :  { %14894 = vrcp.f32 %v7812_v36 }
 0xbba   :  { %14896 = vrcp.f32 %v7819_v1 }
 0xbc2   :  { %v14893_v24 = vpop.eup %14892 }
 0xbc3   :  { %v14895_v43 = vpop.eup %14894  ;;  %v7823_v32 = vmul.f32 %v14893_v24, %v14891_v6 }
 0xbc4   :  { %v7822_v41 = vmul.f32 0.0, %v14895_v43  ;;  %v14897_v5 = vpop.eup %14896 }
 0xbc6   :  { %v17642_v7 = vadd.f32 %v7823_v32, %v7822_v41  ;;  %v7751_v35 = vpop.f32.mrb[132].mxu1  ;;  %v7792_v8 = vpop.f32.mrb[140].mxu0  ;;  %v17738_v41 = vld [vmem:[#allocation13 + $0x80] ss:$16 sps:$4 sm:$0xff]  }
 0xbc7   :  { %v7799_v34 = vadd.f32 %v7751_v35, %v7098_v28  ;;  %v7801_v19 = vadd.f32 %v7792_v8, %v7171_v57  ;;  %v7753_v55 = vpop.f32.mrb[133].mxu1  ;;  %v7794_v16 = vpop.f32.mrb[141].mxu0  ;;  %v17740_v28 = vld [vmem:[#allocation13 + $0x88] ss:$16 sps:$4 sm:$0xff]   ;;  %v17746_v57 = vld [vmem:[#allocation13 + $0xa4] ss:$16 sps:$4 sm:$0xff]  }
 0xbc8   :  { %14898 = vtanh.f32 %v17642_v7  ;;  %v7800_v9 = vadd.f32 %v7753_v55, %v7100_v38  ;;  %v7802_v14 = vadd.f32 %v7794_v16, %v7173_v26  ;;  %v7755_v62 = vpop.f32.mrb[134].mxu1  ;;  %v7796_v60 = vpop.f32.mrb[142].mxu0  ;;  %v17748_v38 = vld [vmem:[#allocation13 + $0xac] ss:$16 sps:$4 sm:$0xff]   ;;  %v17750_v26 = vld [vmem:[#allocation13 + $0xa0] ss:$16 sps:$4 sm:$0xff]  }
 0xbc9   :  { %v13191_v29 = vmul.f32 -1.442695, %v7799_v34  ;;  %v7756_v4 = vpop.f32.mrb[135].mxu1  ;;  %v7797_v58 = vpop.f32.mrb[143].mxu0  ;;  %v17752_v35 = vld [vmem:[#allocation13 + $0xa8] ss:$16 sps:$4 sm:$0xff]  }
 0xbca   :  { %v13192_v40 = vmul.f32 -1.442695, %v7800_v9  ;;  %v13193_v15 = vmul.f32 -1.442695, %v7802_v14  ;;  %v17758_v8 = vld [vmem:[#allocation13 + $0xc4] ss:$16 sps:$4 sm:$0xff]  }
 0xbcb   :  { %14900 = vpow2.f32 %v13191_v29  ;;  %v17760_v34 = vld [vmem:[#allocation13 + $0xcc] ss:$16 sps:$4 sm:$0xff]   ;;  %v17764_v55 = vld [vmem:[#allocation13 + $0xc8] ss:$16 sps:$4 sm:$0xff]   ;;  %v17770_v16 = vld [vmem:[#allocation13 + $0xe4] ss:$16 sps:$4 sm:$0xff]  }
 0xbcc   :  { %14902 = vpow2.f32 %v13192_v40  ;;  %v17772_v9 = vld [vmem:[#allocation13 + $0xec] ss:$16 sps:$4 sm:$0xff]   ;;  %v17774_v14 = vld [vmem:[#allocation13 + $0xe0] ss:$16 sps:$4 sm:$0xff]   ;;  %v17776_v62 = vld [vmem:[#allocation13 + $0xe8] ss:$16 sps:$4 sm:$0xff]  }
 0xbcd   :  { %14904 = vpow2.f32 %v13193_v15  ;;  %v17782_v60 = vld [vmem:[#allocation15 + $0x4] ss:$16 sps:$4 sm:$0xff]   ;;  %v17784_v29 = vld [vmem:[#allocation15 + $0xc] ss:$16 sps:$4 sm:$0xff]  }
 0xbce   :  { %14906 = vtanh.f32 %v7801_v19  ;;  %v17762_v19 = vld [vmem:[#allocation13 + $0xc0] ss:$16 sps:$4 sm:$0xff]  }
 0xbd2   :  { %v14899_v27 = vpop.eup %14898 }
 0xbd3   :  { %v7826_v20 = vmul.f32 %v14899_v27, %v14897_v5 }
 0xbd5   :  { %v14901_v36 = vpop.eup %14900  ;;  %v7857_v13 = vpack.c.bf16 %v7826_v20, %v7826_v20 }
 0xbd6   :  { %v14903_v6 = vpop.eup %14902  ;;  %v7830_v24 = vadd.f32 1.0, %v14901_v36  ;;  %v18908_v36 = vld [vmem:[#allocation71_spill] sm:$0xff] }
 0xbd7   :  { %v7836_v43 = vadd.f32 1.0, %v14903_v6  ;;  %8083 = vmatmul.mubr.bf16.vlgmr.msra.gmra.mrb[136].mxu1 %v7857_v13  ;;  %8124 = vmatmul.mubr.bf16.vlgmr.msra.gmra.mrb[144].mxu0 %v7857_v13 }
 0xbd8   :  { %14908 = vrcp.f32 %v7830_v24  ;;  %8334 = vmatpush1.bf16.msra.mxu1 %v17287_v31  ;;  %8375 = vmatpush1.bf16.msra.mxu0 %v17289_v44  ;;  %v14905_v31 = vpop.eup %14904 }
 0xbd9   :  { %14910 = vrcp.f32 %v7836_v43  ;;  %8335 = vmatprep.subr.bf16.mxu1 %v17293_v45  ;;  %8376 = vmatprep.subr.bf16.mxu0 %v17295_v59  ;;  %v14907_v44 = vpop.eup %14906 }
 0xbda   :  { %8365 = vmatprep.mubr.bf16.mxu1 %v18669_v56  ;;  %8406 = vmatprep.mubr.bf16.mxu0 %v18669_v56 }
 0xbdc   :  { %8336 = vmatpush1.bf16.msra.mxu1 %v17301_v46  ;;  %8377 = vmatpush1.bf16.msra.mxu0 %v17303_v47  ;;  %v7843_v46 = vadd.f32 1.0, %v14905_v31 }
 0xbdd   :  { %8337 = vmatprep.subr.bf16.mxu1 %v17307_v0  ;;  %8378 = vmatprep.subr.bf16.mxu0 %v17309_v48  ;;  %v18906_v0 = vld [vmem:[#allocation70_spill] sm:$0xff] }
 0xbde   :  { %14912 = vrcp.f32 %v7843_v46 }
 0xbe0   :  { %8338 = vmatpush1.bf16.msra.mxu1 %v17315_v49  ;;  %8379 = vmatpush1.bf16.msra.mxu0 %v17317_v51 }
 0xbe1   :  { %8339 = vmatprep.subr.bf16.mxu1 %v17321_v52  ;;  %8380 = vmatprep.subr.bf16.mxu0 %v17323_v53  ;;  %v17686_v53 = vld [vmem:[#allocation13 + $0x4] ss:$16 sps:$4 sm:$0xff]  }
 0xbe2   :  { %v14909_v45 = vpop.eup %14908 }
 0xbe3   :  { %v14911_v59 = vpop.eup %14910  ;;  %v7847_v32 = vmul.f32 %v14909_v45, %v14907_v44 }
 0xbe4   :  { %v7846_v1 = vmul.f32 0.0, %v14911_v59  ;;  %8340 = vmatpush1.bf16.msra.mxu1 %v17327_v18  ;;  %8381 = vmatpush1.bf16.msra.mxu0 %v17329_v63  ;;  %v17688_v18 = vld [vmem:[#allocation13 + $0xc] ss:$16 sps:$4 sm:$0xff]   ;;  %v17690_v63 = vld [vmem:[#allocation13] ss:$16 sps:$4 sm:$0xff]  }
 0xbe5   :  { %8341 = vmatprep.subr.bf16.mxu1 %v17333_v33  ;;  %8382 = vmatprep.subr.bf16.mxu0 %v17335_v17  ;;  %v17692_v33 = vld [vmem:[#allocation13 + $0x8] ss:$16 sps:$4 sm:$0xff]   ;;  %v17698_v17 = vld [vmem:[#allocation13 + $0x24] ss:$16 sps:$4 sm:$0xff]  }
 0xbe6   :  { %v17663_v47 = vadd.f32 %v7847_v32, %v7846_v1 }
 0xbe8   :  { %14914 = vtanh.f32 %v17663_v47  ;;  %8342 = vmatpush1.bf16.msra.mxu1 %v17339_v2  ;;  %8383 = vmatpush1.bf16.msra.mxu0 %v17341_v37  ;;  %v14913_v48 = vpop.eup %14912  ;;  %v17700_v2 = vld [vmem:[#allocation13 + $0x2c] ss:$16 sps:$4 sm:$0xff]   ;;  %v17702_v37 = vld [vmem:[#allocation13 + $0x20] ss:$16 sps:$4 sm:$0xff]  }
 0xbe9   :  { %8343 = vmatprep.subr.bf16.mxu1 %v17345_v23  ;;  %8384 = vmatprep.subr.bf16.mxu0 %v17347_v30  ;;  %v17704_v23 = vld [vmem:[#allocation13 + $0x28] ss:$16 sps:$4 sm:$0xff]   ;;  %v17710_v30 = vld [vmem:[#allocation13 + $0x44] ss:$16 sps:$4 sm:$0xff]  }
 0xbec   :  { %8344 = vmatpush1.bf16.msra.mxu1 %v18906_v0  ;;  %8385 = vmatpush1.bf16.msra.mxu0 %v17353_v39  ;;  %v17714_v39 = vld [vmem:[#allocation13 + $0x40] ss:$16 sps:$4 sm:$0xff]  }
 0xbed   :  { %8345 = vmatprep.subr.bf16.mxu1 %v17357_v10  ;;  %8386 = vmatprep.subr.bf16.mxu0 %v17359_v50  ;;  %v17716_v10 = vld [vmem:[#allocation13 + $0x48] ss:$16 sps:$4 sm:$0xff]   ;;  %v17722_v50 = vld [vmem:[#allocation13 + $0x64] ss:$16 sps:$4 sm:$0xff]  }
 0xbf0   :  { %8346 = vmatpush1.bf16.msra.mxu1 %v17363_v61  ;;  %8387 = vmatpush1.bf16.msra.mxu0 %v17365_v3  ;;  %v17724_v61 = vld [vmem:[#allocation13 + $0x6c] ss:$16 sps:$4 sm:$0xff]   ;;  %v17726_v3 = vld [vmem:[#allocation13 + $0x60] ss:$16 sps:$4 sm:$0xff]  }
 0xbf1   :  { %8347 = vmatprep.subr.bf16.mxu1 %v17369_v22  ;;  %8388 = vmatprep.subr.bf16.mxu0 %v17371_v42  ;;  %v17728_v22 = vld [vmem:[#allocation13 + $0x68] ss:$16 sps:$4 sm:$0xff]   ;;  %v17734_v42 = vld [vmem:[#allocation13 + $0x84] ss:$16 sps:$4 sm:$0xff]  }
 0xbf2   :  { %v14915_v49 = vpop.eup %14914 }
 0xbf3   :  { %v7850_v51 = vmul.f32 %v14915_v49, %v14913_v48 }
 0xbf4   :  { %8348 = vmatpush1.bf16.msra.mxu1 %v17375_v54  ;;  %8389 = vmatpush1.bf16.msra.mxu0 %v17377_v11  ;;  %v17712_v11 = vld [vmem:[#allocation13 + $0x4c] ss:$16 sps:$4 sm:$0xff]  }
 0xbf5   :  { %v17680_v52 = vpack.c.bf16 %v7850_v51, %v7850_v51  ;;  %8666 = vmatprep.subr.bf16.mxu1 %v17686_v53  ;;  %8707 = vmatprep.subr.bf16.mxu0 %v17688_v18  ;;  %v17736_v54 = vld [vmem:[#allocation13 + $0x8c] ss:$16 sps:$4 sm:$0xff]  }
 0xbf7   :  { %18907 = vst [vmem:[#allocation81_spill] sm:$0xff] %v17680_v52  ;;  %8366 = vmatmul.mubr.bf16.vlgmr.msra.gmra.mrb[140].mxu1 %v17680_v52  ;;  %8407 = vmatmul.mubr.bf16.vlgmr.msra.gmra.mrb[148].mxu0 %v17680_v52  ;;  %v17857_v52 = vld [vmem:[#allocation15 + $0xac] ss:$16 sps:$4 sm:$0xff]  }
 0xbf8   :  { %8698 = vmatprep.mubr.bf16.mxu1 %v18669_v56  ;;  %8739 = vmatprep.mubr.bf16.mxu0 %v18669_v56  ;;  %18915 = vst [vmem:[#allocation78_spill] sm:$0xff] %v17857_v52 }
 0xbf9   :  { %8667 = vmatpush1.bf16.msra.mxu1 %v17690_v63  ;;  %8708 = vmatpush1.bf16.msra.mxu0 %v17692_v33 }
 0xbfa   :  { %8668 = vmatprep.subr.bf16.mxu1 %v17698_v17  ;;  %8709 = vmatprep.subr.bf16.mxu0 %v17700_v2 }
 0xbfd   :  { %8669 = vmatpush1.bf16.msra.mxu1 %v17702_v37  ;;  %8710 = vmatpush1.bf16.msra.mxu0 %v17704_v23 }
 0xbfe   :  { %8670 = vmatprep.subr.bf16.mxu1 %v17710_v30  ;;  %8711 = vmatprep.subr.bf16.mxu0 %v17712_v11 }
 0xc01   :  { %8671 = vmatpush1.bf16.msra.mxu1 %v17714_v39  ;;  %8712 = vmatpush1.bf16.msra.mxu0 %v17716_v10 }
 0xc02   :  { %8672 = vmatprep.subr.bf16.mxu1 %v17722_v50  ;;  %8713 = vmatprep.subr.bf16.mxu0 %v17724_v61 }
 0xc05   :  { %8673 = vmatpush1.bf16.msra.mxu1 %v17726_v3  ;;  %8714 = vmatpush1.bf16.msra.mxu0 %v17728_v22 }
 0xc06   :  { %8674 = vmatprep.subr.bf16.mxu1 %v17734_v42  ;;  %8715 = vmatprep.subr.bf16.mxu0 %v17736_v54 }
 0xc09   :  { %8675 = vmatpush1.bf16.msra.mxu1 %v17738_v41  ;;  %8716 = vmatpush1.bf16.msra.mxu0 %v17740_v28 }
 0xc0a   :  { %8676 = vmatprep.subr.bf16.mxu1 %v17746_v57  ;;  %8717 = vmatprep.subr.bf16.mxu0 %v17748_v38 }
 0xc0d   :  { %8677 = vmatpush1.bf16.msra.mxu1 %v17750_v26  ;;  %8718 = vmatpush1.bf16.msra.mxu0 %v17752_v35 }
 0xc0e   :  { %8678 = vmatprep.subr.bf16.mxu1 %v17758_v8  ;;  %8719 = vmatprep.subr.bf16.mxu0 %v17760_v34 }
 0xc11   :  { %8679 = vmatpush1.bf16.msra.mxu1 %v17762_v19  ;;  %8720 = vmatpush1.bf16.msra.mxu0 %v17764_v55 }
 0xc12   :  { %8680 = vmatprep.subr.bf16.mxu1 %v17770_v16  ;;  %8721 = vmatprep.subr.bf16.mxu0 %v17772_v9 }
 0xc15   :  { %8681 = vmatpush1.bf16.msra.mxu1 %v17774_v14  ;;  %8722 = vmatpush1.bf16.msra.mxu0 %v17776_v62 }
 0xc16   :  { %8949 = vmatprep.subr.bf16.mxu1 %v17782_v60  ;;  %8990 = vmatprep.subr.bf16.mxu0 %v17784_v29 }
 0xcaa   :  { %v8084_v4 = vpop.f32.mrb[136].mxu1  ;;  %v8125_v58 = vpop.f32.mrb[144].mxu0 }
 0xcab   :  { %v8132_v40 = vadd.f32 %v8084_v4, %v17455_v21  ;;  %v8134_v5 = vadd.f32 %v8125_v58, %v17458_v25  ;;  %v8086_v27 = vpop.f32.mrb[137].mxu1  ;;  %v8127_v15 = vpop.f32.mrb[145].mxu0 }
 0xcac   :  { %v8133_v20 = vadd.f32 %v8086_v27, %v17461_v12  ;;  %v8135_v13 = vadd.f32 %v8127_v15, %v18908_v36  ;;  %v8088_v6 = vpop.f32.mrb[138].mxu1  ;;  %v8129_v24 = vpop.f32.mrb[146].mxu0  ;;  %v18909_v15 = vld [vmem:[#allocation54_spill] sm:$0xff]  ;;  %v18910_v36 = vld [vmem:[#allocation55_spill] sm:$0xff] }
 0xcad   :  { %v13258_v43 = vmul.f32 -1.442695, %v8132_v40  ;;  %v8089_v31 = vpop.f32.mrb[139].mxu1  ;;  %v8130_v44 = vpop.f32.mrb[147].mxu0  ;;  %v18911_v24 = vld [vmem:[#allocation80_spill] sm:$0xff] }
 0xcae   :  { %v13259_v45 = vmul.f32 -1.442695, %v8133_v20  ;;  %v13260_v59 = vmul.f32 -1.442695, %v8135_v13  ;;  %v18912_v31 = vld [vmem:[#allocation27_spill] sm:$0xff] }
 0xcaf   :  { %14916 = vpow2.f32 %v13258_v43 }
 0xcb0   :  { %14918 = vpow2.f32 %v13259_v45 }
 0xcb1   :  { %14920 = vpow2.f32 %v13260_v59 }
 0xcb2   :  { %14922 = vtanh.f32 %v8134_v5 }
 0xcb9   :  { %v14917_v32 = vpop.eup %14916 }
 0xcba   :  { %v14919_v46 = vpop.eup %14918  ;;  %v8422_v21 = vadd.f32 1.0, %v14917_v32 }
 0xcbb   :  { %v8428_v25 = vadd.f32 1.0, %v14919_v46  ;;  %v14921_v12 = vpop.eup %14920 }
 0xcbc   :  { %14924 = vrcp.f32 %v8422_v21  ;;  %v14923_v1 = vpop.eup %14922  ;;  %v8435_v51 = vadd.f32 1.0, %v14921_v12 }
 0xcbd   :  { %14926 = vrcp.f32 %v8428_v25 }
 0xcbe   :  { %14928 = vrcp.f32 %v8435_v51 }
 0xcc6   :  { %v14925_v0 = vpop.eup %14924 }
 0xcc7   :  { %v14927_v48 = vpop.eup %14926  ;;  %v8439_v49 = vmul.f32 %v14925_v0, %v14923_v1 }
 0xcc8   :  { %v8438_v4 = vmul.f32 %v14927_v48, %v17642_v7  ;;  %v14929_v25 = vpop.eup %14928  ;;  %v17800_v48 = vld [vmem:[#allocation15] ss:$16 sps:$4 sm:$0xff]  }
 0xcca   :  { %v17793_v58 = vadd.f32 %v8439_v49, %v8438_v4  ;;  %v8367_v40 = vpop.f32.mrb[140].mxu1  ;;  %v8408_v27 = vpop.f32.mrb[148].mxu0  ;;  %v17802_v49 = vld [vmem:[#allocation15 + $0x8] ss:$16 sps:$4 sm:$0xff]  }
 0xccb   :  { %v8415_v20 = vadd.f32 %v8367_v40, %v18909_v15  ;;  %v8417_v5 = vadd.f32 %v8408_v27, %v18910_v36  ;;  %v8369_v13 = vpop.f32.mrb[141].mxu1  ;;  %v8410_v6 = vpop.f32.mrb[149].mxu0  ;;  %v17804_v40 = vld [vmem:[#allocation15 + $0x24] ss:$16 sps:$4 sm:$0xff]   ;;  %v17806_v27 = vld [vmem:[#allocation15 + $0x2c] ss:$16 sps:$4 sm:$0xff]  }
 0xccc   :  { %v8416_v43 = vadd.f32 %v8369_v13, %v18911_v24  ;;  %v8418_v44 = vadd.f32 %v8410_v6, %v18912_v31  ;;  %v8371_v45 = vpop.f32.mrb[142].mxu1  ;;  %v8412_v59 = vpop.f32.mrb[150].mxu0  ;;  %14930 = vtanh.f32 %v17793_v58  ;;  %v17810_v13 = vld [vmem:[#allocation15 + $0x20] ss:$16 sps:$4 sm:$0xff]   ;;  %v17812_v6 = vld [vmem:[#allocation15 + $0x28] ss:$16 sps:$4 sm:$0xff]  }
 0xccd   :  { %v13261_v7 = vmul.f32 -1.442695, %v8415_v20  ;;  %v8372_v32 = vpop.f32.mrb[143].mxu1  ;;  %v8413_v46 = vpop.f32.mrb[151].mxu0  ;;  %v17816_v24 = vld [vmem:[#allocation15 + $0x44] ss:$16 sps:$4 sm:$0xff]  }
 0xcce   :  { %v13262_v21 = vmul.f32 -1.442695, %v8416_v43  ;;  %v13263_v1 = vmul.f32 -1.442695, %v8418_v44  ;;  %v17824_v43 = vld [vmem:[#allocation15 + $0x40] ss:$16 sps:$4 sm:$0xff]  }
 0xccf   :  { %14932 = vpow2.f32 %v13261_v7  ;;  %v17826_v31 = vld [vmem:[#allocation15 + $0x48] ss:$16 sps:$4 sm:$0xff]   ;;  %v17830_v44 = vld [vmem:[#allocation15 + $0x64] ss:$16 sps:$4 sm:$0xff]   ;;  %v17832_v45 = vld [vmem:[#allocation15 + $0x6c] ss:$16 sps:$4 sm:$0xff]  }
 0xcd0   :  { %14934 = vpow2.f32 %v13262_v21  ;;  %v17836_v7 = vld [vmem:[#allocation15 + $0x60] ss:$16 sps:$4 sm:$0xff]   ;;  %v17838_v32 = vld [vmem:[#allocation15 + $0x68] ss:$16 sps:$4 sm:$0xff]   ;;  %v17842_v21 = vld [vmem:[#allocation15 + $0x84] ss:$16 sps:$4 sm:$0xff]  }
 0xcd1   :  { %14936 = vpow2.f32 %v13263_v1 }
 0xcd2   :  { %14938 = vtanh.f32 %v8417_v5  ;;  %v17818_v5 = vld [vmem:[#allocation15 + $0x4c] ss:$16 sps:$4 sm:$0xff]  }
 0xcd6   :  { %v14931_v12 = vpop.eup %14930 }
 0xcd7   :  { %v8442_v0 = vmul.f32 %v14931_v12, %v14929_v25  ;;  %v17844_v25 = vld [vmem:[#allocation15 + $0x8c] ss:$16 sps:$4 sm:$0xff]  }
 0xcd9   :  { %v14933_v51 = vpop.eup %14932  ;;  %v8473_v4 = vpack.c.bf16 %v8442_v0, %v8442_v0 }
 0xcda   :  { %v14935_v15 = vpop.eup %14934  ;;  %v8446_v20 = vadd.f32 1.0, %v14933_v51 }
 0xcdb   :  { %v8452_v36 = vadd.f32 1.0, %v14935_v15  ;;  %8699 = vmatmul.mubr.bf16.vlgmr.msra.gmra.mrb[144].mxu1 %v8473_v4  ;;  %8740 = vmatmul.mubr.bf16.vlgmr.msra.gmra.mrb[152].mxu0 %v8473_v4  ;;  %v14937_v59 = vpop.eup %14936  ;;  %v17849_v15 = vld [vmem:[#allocation15 + $0x80] ss:$16 sps:$4 sm:$0xff]  }
 0xcdc   :  { %14940 = vrcp.f32 %v8446_v20  ;;  %8950 = vmatpush1.bf16.msra.mxu1 %v17800_v48  ;;  %8991 = vmatpush1.bf16.msra.mxu0 %v17802_v49  ;;  %v14939_v46 = vpop.eup %14938  ;;  %v8459_v51 = vadd.f32 1.0, %v14937_v59  ;;  %v17851_v20 = vld [vmem:[#allocation15 + $0x88] ss:$16 sps:$4 sm:$0xff]  }
 0xcdd   :  { %14942 = vrcp.f32 %v8452_v36  ;;  %8951 = vmatprep.subr.bf16.mxu1 %v17804_v40  ;;  %8992 = vmatprep.subr.bf16.mxu0 %v17806_v27  ;;  %18913 = vst [vmem:[#allocation28_spill] sm:$0xff] %v17851_v20  ;;  %v17855_v36 = vld [vmem:[#allocation15 + $0xa4] ss:$16 sps:$4 sm:$0xff]   ;;  %v17865_v59 = vld [vmem:[#allocation15 + $0xa8] ss:$16 sps:$4 sm:$0xff]  }
 0xcde   :  { %8981 = vmatprep.mubr.bf16.mxu1 %v18669_v56  ;;  %9022 = vmatprep.mubr.bf16.mxu0 %v18669_v56  ;;  %18914 = vst [vmem:[#allocation30_spill] sm:$0xff] %v17855_v36  ;;  %14944 = vrcp.f32 %v8459_v51  ;;  %18917 = vst [vmem:[#allocation79_spill] sm:$0xff] %v17865_v59  ;;  %v17878_v51 = vld [vmem:[#allocation15 + $0xc8] ss:$16 sps:$4 sm:$0xff]  }
 0xce0   :  { %8952 = vmatpush1.bf16.msra.mxu1 %v17810_v13  ;;  %8993 = vmatpush1.bf16.msra.mxu0 %v17812_v6 }
 0xce1   :  { %8953 = vmatprep.subr.bf16.mxu1 %v17816_v24  ;;  %8994 = vmatprep.subr.bf16.mxu0 %v17818_v5 }
 0xce4   :  { %8954 = vmatpush1.bf16.msra.mxu1 %v17824_v43  ;;  %8995 = vmatpush1.bf16.msra.mxu0 %v17826_v31 }
 0xce5   :  { %8955 = vmatprep.subr.bf16.mxu1 %v17830_v44  ;;  %8996 = vmatprep.subr.bf16.mxu0 %v17832_v45 }
 0xce6   :  { %v14941_v12 = vpop.eup %14940 }
 0xce7   :  { %v14943_v1 = vpop.eup %14942  ;;  %v8463_v0 = vmul.f32 %v14941_v12, %v14939_v46  ;;  %v17870_v12 = vld [vmem:[#allocation15 + $0xc4] ss:$16 sps:$4 sm:$0xff]  }
 0xce8   :  { %v8462_v4 = vmul.f32 %v14943_v1, %v17663_v47  ;;  %8956 = vmatpush1.bf16.msra.mxu1 %v17836_v7  ;;  %8997 = vmatpush1.bf16.msra.mxu0 %v17838_v32  ;;  %v17863_v47 = vld [vmem:[#allocation15 + $0xa0] ss:$16 sps:$4 sm:$0xff]   ;;  %18918 = vst [vmem:[#allocation82_spill] sm:$0xff] %v17870_v12  ;;  %v17872_v1 = vld [vmem:[#allocation15 + $0xcc] ss:$16 sps:$4 sm:$0xff]  }
 0xce9   :  { %8957 = vmatprep.subr.bf16.mxu1 %v17842_v21  ;;  %8998 = vmatprep.subr.bf16.mxu0 %v17844_v25  ;;  %18916 = vst [vmem:[#allocation29_spill] sm:$0xff] %v17863_v47  ;;  %18919 = vst [vmem:[#allocation84_spill] sm:$0xff] %v17872_v1 }
 0xcea   :  { %v17859_v46 = vadd.f32 %v8463_v0, %v8462_v4  ;;  %v17876_v0 = vld [vmem:[#allocation15 + $0xc0] ss:$16 sps:$4 sm:$0xff]   ;;  %v17882_v4 = vld [vmem:[#allocation15 + $0xe4] ss:$16 sps:$4 sm:$0xff]  }
 0xcec   :  { %8958 = vmatpush1.bf16.msra.mxu1 %v17849_v15  ;;  %8999 = vmatpush1.bf16.msra.mxu0 %v17851_v20  ;;  %14946 = vtanh.f32 %v17859_v46 }
 0xced   :  { %8959 = vmatprep.subr.bf16.mxu1 %v17855_v36  ;;  %9000 = vmatprep.subr.bf16.mxu0 %v17857_v52  ;;  %v17884_v36 = vld [vmem:[#allocation15 + $0xec] ss:$16 sps:$4 sm:$0xff]   ;;  %v17888_v52 = vld [vmem:[#allocation15 + $0xe0] ss:$16 sps:$4 sm:$0xff]  }
 0xcf0   :  { %8960 = vmatpush1.bf16.msra.mxu1 %v17863_v47  ;;  %9001 = vmatpush1.bf16.msra.mxu0 %v17865_v59  ;;  %v17890_v47 = vld [vmem:[#allocation15 + $0xe8] ss:$16 sps:$4 sm:$0xff]   ;;  %v14945_v59 = vpop.eup %14944 }
 0xcf1   :  { %8961 = vmatprep.subr.bf16.mxu1 %v17870_v12  ;;  %9002 = vmatprep.subr.bf16.mxu0 %v17872_v1 }
 0xcf4   :  { %8962 = vmatpush1.bf16.msra.mxu1 %v17876_v0  ;;  %9003 = vmatpush1.bf16.msra.mxu0 %v17878_v51 }
 0xcf5   :  { %8963 = vmatprep.subr.bf16.mxu1 %v17882_v4  ;;  %9004 = vmatprep.subr.bf16.mxu0 %v17884_v36 }
 0xcf6   :  { %v14947_v12 = vpop.eup %14946 }
 0xcf7   :  { %v8466_v20 = vmul.f32 %v14947_v12, %v14945_v59  ;;  %v18925_v59 = vld [vmem:[#allocation51_spill] sm:$0xff] }
 0xcf8   :  { %8964 = vmatpush1.bf16.msra.mxu1 %v17888_v52  ;;  %9005 = vmatpush1.bf16.msra.mxu0 %v17890_v47 }
 0xcf9   :  { %v8756_v1 = vpack.c.bf16 %v8466_v20, %v8466_v20  ;;  %9282 = vmatprep.subr.bf16.mxu1 %v17686_v53  ;;  %9323 = vmatprep.subr.bf16.mxu0 %v17688_v18 }
 0xcfb   :  { %8982 = vmatmul.mubr.bf16.vlgmr.msra.gmra.mrb[148].mxu1 %v8756_v1  ;;  %9023 = vmatmul.mubr.bf16.vlgmr.msra.gmra.mrb[156].mxu0 %v8756_v1 }
 0xcfc   :  { %9283 = vmatpush1.bf16.msra.mxu1 %v17690_v63  ;;  %9324 = vmatpush1.bf16.msra.mxu0 %v17692_v33  ;;  %v18920_v63 = vld [vmem:[#allocation36_spill] sm:$0xff] }
 0xcfd   :  { %9284 = vmatprep.subr.bf16.mxu1 %v17698_v17  ;;  %9325 = vmatprep.subr.bf16.mxu0 %v17700_v2  ;;  %v18921_v17 = vld [vmem:[#allocation37_spill] sm:$0xff] }
 0xcfe   :  { %9314 = vmatprep.mubr.bf16.mxu1 %v18669_v56  ;;  %9355 = vmatprep.mubr.bf16.mxu0 %v18669_v56 }
 0xd00   :  { %9285 = vmatpush1.bf16.msra.mxu1 %v17702_v37  ;;  %9326 = vmatpush1.bf16.msra.mxu0 %v17704_v23 }
 0xd01   :  { %9286 = vmatprep.subr.bf16.mxu1 %v17710_v30  ;;  %9327 = vmatprep.subr.bf16.mxu0 %v17712_v11  ;;  %v18922_v30 = vld [vmem:[#allocation38_spill] sm:$0xff] }
 0xd04   :  { %9287 = vmatpush1.bf16.msra.mxu1 %v17714_v39  ;;  %9328 = vmatpush1.bf16.msra.mxu0 %v17716_v10  ;;  %v18923_v39 = vld [vmem:[#allocation39_spill] sm:$0xff] }
 0xd05   :  { %9288 = vmatprep.subr.bf16.mxu1 %v17722_v50  ;;  %9329 = vmatprep.subr.bf16.mxu0 %v17724_v61 }
 0xd08   :  { %9289 = vmatpush1.bf16.msra.mxu1 %v17726_v3  ;;  %9330 = vmatpush1.bf16.msra.mxu0 %v17728_v22 }
 0xd09   :  { %9290 = vmatprep.subr.bf16.mxu1 %v17734_v42  ;;  %9331 = vmatprep.subr.bf16.mxu0 %v17736_v54 }
 0xd0c   :  { %9291 = vmatpush1.bf16.msra.mxu1 %v17738_v41  ;;  %9332 = vmatpush1.bf16.msra.mxu0 %v17740_v28 }
 0xd0d   :  { %9292 = vmatprep.subr.bf16.mxu1 %v17746_v57  ;;  %9333 = vmatprep.subr.bf16.mxu0 %v17748_v38 }
 0xd10   :  { %9293 = vmatpush1.bf16.msra.mxu1 %v17750_v26  ;;  %9334 = vmatpush1.bf16.msra.mxu0 %v17752_v35 }
 0xd11   :  { %9294 = vmatprep.subr.bf16.mxu1 %v17758_v8  ;;  %9335 = vmatprep.subr.bf16.mxu0 %v17760_v34 }
 0xd14   :  { %9295 = vmatpush1.bf16.msra.mxu1 %v17762_v19  ;;  %9336 = vmatpush1.bf16.msra.mxu0 %v17764_v55 }
 0xd15   :  { %9296 = vmatprep.subr.bf16.mxu1 %v17770_v16  ;;  %9337 = vmatprep.subr.bf16.mxu0 %v17772_v9 }
 0xd18   :  { %9297 = vmatpush1.bf16.msra.mxu1 %v17774_v14  ;;  %9338 = vmatpush1.bf16.msra.mxu0 %v17776_v62 }
 0xd19   :  { %9565 = vmatprep.subr.bf16.mxu1 %v17782_v60  ;;  %9606 = vmatprep.subr.bf16.mxu0 %v17784_v29  ;;  %v18924_v29 = vld [vmem:[#allocation50_spill] sm:$0xff] }
 0xdae   :  { %v8700_v53 = vpop.f32.mrb[144].mxu1  ;;  %v8741_v18 = vpop.f32.mrb[152].mxu0 }
 0xdaf   :  { %v8748_v33 = vadd.f32 %v8700_v53, %v18920_v63  ;;  %v8750_v2 = vadd.f32 %v8741_v18, %v18921_v17  ;;  %v8702_v37 = vpop.f32.mrb[145].mxu1  ;;  %v8743_v23 = vpop.f32.mrb[153].mxu0  ;;  %v18926_v18 = vld [vmem:[#allocation52_spill] sm:$0xff] }
 0xdb0   :  { %v8749_v11 = vadd.f32 %v8702_v37, %v18922_v30  ;;  %v8751_v10 = vadd.f32 %v8743_v23, %v18923_v39  ;;  %v8704_v50 = vpop.f32.mrb[146].mxu1  ;;  %v8745_v61 = vpop.f32.mrb[154].mxu0 }
 0xdb1   :  { %v13328_v3 = vmul.f32 -1.442695, %v8748_v33  ;;  %v8705_v22 = vpop.f32.mrb[147].mxu1  ;;  %v8746_v42 = vpop.f32.mrb[155].mxu0  ;;  %v18927_v33 = vld [vmem:[#allocation53_spill] sm:$0xff] }
 0xdb2   :  { %v13329_v54 = vmul.f32 -1.442695, %v8749_v11  ;;  %v13330_v41 = vmul.f32 -1.442695, %v8751_v10 }
 0xdb3   :  { %14948 = vpow2.f32 %v13328_v3 }
 0xdb4   :  { %14950 = vpow2.f32 %v13329_v54 }
 0xdb5   :  { %14952 = vpow2.f32 %v13330_v41 }
 0xdb6   :  { %14954 = vtanh.f32 %v8750_v2 }
 0xdbd   :  { %v14949_v28 = vpop.eup %14948 }
 0xdbe   :  { %v14951_v57 = vpop.eup %14950  ;;  %v9038_v38 = vadd.f32 1.0, %v14949_v28 }
 0xdbf   :  { %v9044_v26 = vadd.f32 1.0, %v14951_v57  ;;  %v14953_v35 = vpop.eup %14952  ;;  %v17998_v57 = vld [vmem:[#allocation13 + $0x20] ss:$16 sps:$4 sm:$0xff]  }
 0xdc0   :  { %14956 = vrcp.f32 %v9038_v38  ;;  %v14955_v8 = vpop.eup %14954  ;;  %v9051_v16 = vadd.f32 1.0, %v14953_v35  ;;  %v18000_v38 = vld [vmem:[#allocation13 + $0x28] ss:$16 sps:$4 sm:$0xff]   ;;  %v18008_v35 = vld [vmem:[#allocation13 + $0x4c] ss:$16 sps:$4 sm:$0xff]  }
 0xdc1   :  { %14958 = vrcp.f32 %v9044_v26  ;;  %v18006_v26 = vld [vmem:[#allocation13 + $0x44] ss:$16 sps:$4 sm:$0xff]  }
 0xdc2   :  { %14960 = vrcp.f32 %v9051_v16  ;;  %v18022_v16 = vld [vmem:[#allocation13 + $0x60] ss:$16 sps:$4 sm:$0xff]  }
 0xdca   :  { %v14957_v34 = vpop.eup %14956 }
 0xdcb   :  { %v14959_v19 = vpop.eup %14958  ;;  %v9055_v55 = vmul.f32 %v14957_v34, %v14955_v8  ;;  %v18010_v8 = vld [vmem:[#allocation13 + $0x40] ss:$16 sps:$4 sm:$0xff]   ;;  %v18012_v34 = vld [vmem:[#allocation13 + $0x48] ss:$16 sps:$4 sm:$0xff]  }
 0xdcc   :  { %v9054_v9 = vmul.f32 %v14959_v19, %v17793_v58  ;;  %v14961_v39 = vpop.eup %14960  ;;  %v18018_v19 = vld [vmem:[#allocation13 + $0x64] ss:$16 sps:$4 sm:$0xff]  }
 0xdce   :  { %v17937_v14 = vadd.f32 %v9055_v55, %v9054_v9  ;;  %v8983_v62 = vpop.f32.mrb[148].mxu1  ;;  %v9024_v60 = vpop.f32.mrb[156].mxu0  ;;  %v18020_v55 = vld [vmem:[#allocation13 + $0x6c] ss:$16 sps:$4 sm:$0xff]   ;;  %v18024_v9 = vld [vmem:[#allocation13 + $0x68] ss:$16 sps:$4 sm:$0xff]  }
 0xdcf   :  { %v9031_v20 = vadd.f32 %v8983_v62, %v18924_v29  ;;  %v9033_v12 = vadd.f32 %v9024_v60, %v18925_v59  ;;  %v8985_v1 = vpop.f32.mrb[149].mxu1  ;;  %v9026_v53 = vpop.f32.mrb[157].mxu0  ;;  %v18030_v62 = vld [vmem:[#allocation13 + $0x84] ss:$16 sps:$4 sm:$0xff]   ;;  %v18032_v60 = vld [vmem:[#allocation13 + $0x8c] ss:$16 sps:$4 sm:$0xff]  }
 0xdd0   :  { %v9032_v63 = vadd.f32 %v8985_v1, %v18926_v18  ;;  %v9034_v17 = vadd.f32 %v9026_v53, %v18927_v33  ;;  %v8987_v2 = vpop.f32.mrb[150].mxu1  ;;  %v9028_v37 = vpop.f32.mrb[158].mxu0  ;;  %14962 = vtanh.f32 %v17937_v14  ;;  %v18034_v29 = vld [vmem:[#allocation13 + $0x80] ss:$16 sps:$4 sm:$0xff]   ;;  %v18042_v59 = vld [vmem:[#allocation13 + $0xa4] ss:$16 sps:$4 sm:$0xff]  }
 0xdd1   :  { %v13331_v58 = vmul.f32 -1.442695, %v9031_v20  ;;  %v8988_v23 = vpop.f32.mrb[151].mxu1  ;;  %v9029_v30 = vpop.f32.mrb[159].mxu0  ;;  %v18036_v20 = vld [vmem:[#allocation13 + $0x88] ss:$16 sps:$4 sm:$0xff]  }
 0xdd2   :  { %v13332_v11 = vmul.f32 -1.442695, %v9032_v63  ;;  %v13333_v50 = vmul.f32 -1.442695, %v9034_v17  ;;  %v18046_v1 = vld [vmem:[#allocation13 + $0xa0] ss:$16 sps:$4 sm:$0xff]  }
 0xdd3   :  { %14964 = vpow2.f32 %v13331_v58  ;;  %v18048_v53 = vld [vmem:[#allocation13 + $0xa8] ss:$16 sps:$4 sm:$0xff]   ;;  %v18054_v18 = vld [vmem:[#allocation13 + $0xc4] ss:$16 sps:$4 sm:$0xff]   ;;  %v18056_v63 = vld [vmem:[#allocation13 + $0xcc] ss:$16 sps:$4 sm:$0xff]  }
 0xdd4   :  { %14966 = vpow2.f32 %v13332_v11  ;;  %v18058_v33 = vld [vmem:[#allocation13 + $0xc0] ss:$16 sps:$4 sm:$0xff]   ;;  %v18060_v17 = vld [vmem:[#allocation13 + $0xc8] ss:$16 sps:$4 sm:$0xff]   ;;  %v18066_v2 = vld [vmem:[#allocation13 + $0xe4] ss:$16 sps:$4 sm:$0xff]  }
 0xdd5   :  { %14968 = vpow2.f32 %v13333_v50  ;;  %v18068_v37 = vld [vmem:[#allocation13 + $0xec] ss:$16 sps:$4 sm:$0xff]   ;;  %v18070_v58 = vld [vmem:[#allocation13 + $0xe0] ss:$16 sps:$4 sm:$0xff]   ;;  %v18072_v23 = vld [vmem:[#allocation13 + $0xe8] ss:$16 sps:$4 sm:$0xff]  }
 0xdd6   :  { %14970 = vtanh.f32 %v9033_v12  ;;  %v18044_v12 = vld [vmem:[#allocation13 + $0xac] ss:$16 sps:$4 sm:$0xff]   ;;  %v18078_v30 = vld [vmem:[#allocation15 + $0x4] ss:$16 sps:$4 sm:$0xff]  }
 0xdd7   :  { %v18080_v11 = vld [vmem:[#allocation15 + $0xc] ss:$16 sps:$4 sm:$0xff]   ;;  %v18935_v50 = vld [vmem:[#allocation64_spill] sm:$0xff] }
 0xdda   :  { %v14963_v10 = vpop.eup %14962 }
 0xddb   :  { %v9058_v61 = vmul.f32 %v14963_v10, %v14961_v39 }
 0xddd   :  { %v14965_v3 = vpop.eup %14964  ;;  %v9089_v22 = vpack.c.bf16 %v9058_v61, %v9058_v61 }
 0xdde   :  { %v14967_v42 = vpop.eup %14966  ;;  %v9062_v54 = vadd.f32 1.0, %v14965_v3  ;;  %v18936_v3 = vld [vmem:[#allocation65_spill] sm:$0xff] }
 0xddf   :  { %v9068_v41 = vadd.f32 1.0, %v14967_v42  ;;  %9315 = vmatmul.mubr.bf16.vlgmr.msra.gmra.mrb[152].mxu1 %v9089_v22  ;;  %9356 = vmatmul.mubr.bf16.vlgmr.msra.gmra.mrb[160].mxu0 %v9089_v22 }
 0xde0   :  { %14972 = vrcp.f32 %v9062_v54  ;;  %9566 = vmatpush1.bf16.msra.mxu1 %v17800_v48  ;;  %9607 = vmatpush1.bf16.msra.mxu0 %v17802_v49  ;;  %v14969_v48 = vpop.eup %14968 }
 0xde1   :  { %14974 = vrcp.f32 %v9068_v41  ;;  %9567 = vmatprep.subr.bf16.mxu1 %v17804_v40  ;;  %9608 = vmatprep.subr.bf16.mxu0 %v17806_v27  ;;  %v14971_v49 = vpop.eup %14970  ;;  %v18937_v41 = vld [vmem:[#allocation66_spill] sm:$0xff] }
 0xde2   :  { %9597 = vmatprep.mubr.bf16.mxu1 %v18669_v56  ;;  %9638 = vmatprep.mubr.bf16.mxu0 %v18669_v56 }
 0xde4   :  { %9568 = vmatpush1.bf16.msra.mxu1 %v17810_v13  ;;  %9609 = vmatpush1.bf16.msra.mxu0 %v17812_v6  ;;  %v9075_v13 = vadd.f32 1.0, %v14969_v48 }
 0xde5   :  { %9569 = vmatprep.subr.bf16.mxu1 %v17816_v24  ;;  %9610 = vmatprep.subr.bf16.mxu0 %v17818_v5  ;;  %v18928_v5 = vld [vmem:[#allocation28_spill] sm:$0xff] }
 0xde6   :  { %14976 = vrcp.f32 %v9075_v13 }
 0xde8   :  { %9570 = vmatpush1.bf16.msra.mxu1 %v17824_v43  ;;  %9611 = vmatpush1.bf16.msra.mxu0 %v17826_v31  ;;  %v18929_v43 = vld [vmem:[#allocation30_spill] sm:$0xff] }
 0xde9   :  { %9571 = vmatprep.subr.bf16.mxu1 %v17830_v44  ;;  %9612 = vmatprep.subr.bf16.mxu0 %v17832_v45  ;;  %v18930_v31 = vld [vmem:[#allocation78_spill] sm:$0xff]  ;;  %v18931_v44 = vld [vmem:[#allocation29_spill] sm:$0xff]  ;;  %v18932_v45 = vld [vmem:[#allocation79_spill] sm:$0xff] }
 0xdea   :  { %v14973_v40 = vpop.eup %14972 }
 0xdeb   :  { %v14975_v27 = vpop.eup %14974  ;;  %v9079_v28 = vmul.f32 %v14973_v40, %v14971_v49  ;;  %v18938_v49 = vld [vmem:[#allocation67_spill] sm:$0xff] }
 0xdec   :  { %v9078_v6 = vmul.f32 %v14975_v27, %v17859_v46  ;;  %9572 = vmatpush1.bf16.msra.mxu1 %v17836_v7  ;;  %9613 = vmatpush1.bf16.msra.mxu0 %v17838_v32  ;;  %v18933_v7 = vld [vmem:[#allocation82_spill] sm:$0xff]  ;;  %v18934_v32 = vld [vmem:[#allocation84_spill] sm:$0xff] }
 0xded   :  { %9573 = vmatprep.subr.bf16.mxu1 %v17842_v21  ;;  %9614 = vmatprep.subr.bf16.mxu0 %v17844_v25 }
 0xdee   :  { %v17963_v24 = vadd.f32 %v9079_v28, %v9078_v6 }
 0xdf0   :  { %9574 = vmatpush1.bf16.msra.mxu1 %v17849_v15  ;;  %9615 = vmatpush1.bf16.msra.mxu0 %v18928_v5  ;;  %14978 = vtanh.f32 %v17963_v24  ;;  %v14977_v21 = vpop.eup %14976 }
 0xdf1   :  { %9575 = vmatprep.subr.bf16.mxu1 %v18929_v43  ;;  %9616 = vmatprep.subr.bf16.mxu0 %v18930_v31 }
 0xdf4   :  { %9576 = vmatpush1.bf16.msra.mxu1 %v18931_v44  ;;  %9617 = vmatpush1.bf16.msra.mxu0 %v18932_v45 }
 0xdf5   :  { %9577 = vmatprep.subr.bf16.mxu1 %v18933_v7  ;;  %9618 = vmatprep.subr.bf16.mxu0 %v18934_v32 }
 0xdf8   :  { %9578 = vmatpush1.bf16.msra.mxu1 %v17876_v0  ;;  %9619 = vmatpush1.bf16.msra.mxu0 %v17878_v51  ;;  %v17982_v0 = vld [vmem:[#allocation13 + $0x4] ss:$16 sps:$4 sm:$0xff]   ;;  %v17984_v51 = vld [vmem:[#allocation13 + $0xc] ss:$16 sps:$4 sm:$0xff]  }
 0xdf9   :  { %9579 = vmatprep.subr.bf16.mxu1 %v17882_v4  ;;  %9620 = vmatprep.subr.bf16.mxu0 %v17884_v36  ;;  %v17986_v4 = vld [vmem:[#allocation13] ss:$16 sps:$4 sm:$0xff]   ;;  %v17988_v36 = vld [vmem:[#allocation13 + $0x8] ss:$16 sps:$4 sm:$0xff]  }
 0xdfa   :  { %v14979_v25 = vpop.eup %14978 }
 0xdfb   :  { %v9082_v15 = vmul.f32 %v14979_v25, %v14977_v21 }
 0xdfc   :  { %9580 = vmatpush1.bf16.msra.mxu1 %v17888_v52  ;;  %9621 = vmatpush1.bf16.msra.mxu0 %v17890_v47  ;;  %v17994_v52 = vld [vmem:[#allocation13 + $0x24] ss:$16 sps:$4 sm:$0xff]   ;;  %v17996_v47 = vld [vmem:[#allocation13 + $0x2c] ss:$16 sps:$4 sm:$0xff]  }
 0xdfd   :  { %v9372_v46 = vpack.c.bf16 %v9082_v15, %v9082_v15  ;;  %9898 = vmatprep.subr.bf16.mxu1 %v17982_v0  ;;  %9939 = vmatprep.subr.bf16.mxu0 %v17984_v51 }
 0xdff   :  { %9598 = vmatmul.mubr.bf16.vlgmr.msra.gmra.mrb[156].mxu1 %v9372_v46  ;;  %9639 = vmatmul.mubr.bf16.vlgmr.msra.gmra.mrb[164].mxu0 %v9372_v46 }
 0xe00   :  { %9930 = vmatprep.mubr.bf16.mxu1 %v18669_v56  ;;  %9971 = vmatprep.mubr.bf16.mxu0 %v18669_v56 }
 0xe01   :  { %9899 = vmatpush1.bf16.msra.mxu1 %v17986_v4  ;;  %9940 = vmatpush1.bf16.msra.mxu0 %v17988_v36 }
 0xe02   :  { %9900 = vmatprep.subr.bf16.mxu1 %v17994_v52  ;;  %9941 = vmatprep.subr.bf16.mxu0 %v17996_v47 }
 0xe05   :  { %9901 = vmatpush1.bf16.msra.mxu1 %v17998_v57  ;;  %9942 = vmatpush1.bf16.msra.mxu0 %v18000_v38 }
 0xe06   :  { %9902 = vmatprep.subr.bf16.mxu1 %v18006_v26  ;;  %9943 = vmatprep.subr.bf16.mxu0 %v18008_v35 }
 0xe09   :  { %9903 = vmatpush1.bf16.msra.mxu1 %v18010_v8  ;;  %9944 = vmatpush1.bf16.msra.mxu0 %v18012_v34 }
 0xe0a   :  { %9904 = vmatprep.subr.bf16.mxu1 %v18018_v19  ;;  %9945 = vmatprep.subr.bf16.mxu0 %v18020_v55 }
 0xe0d   :  { %9905 = vmatpush1.bf16.msra.mxu1 %v18022_v16  ;;  %9946 = vmatpush1.bf16.msra.mxu0 %v18024_v9 }
 0xe0e   :  { %9906 = vmatprep.subr.bf16.mxu1 %v18030_v62  ;;  %9947 = vmatprep.subr.bf16.mxu0 %v18032_v60 }
 0xe11   :  { %9907 = vmatpush1.bf16.msra.mxu1 %v18034_v29  ;;  %9948 = vmatpush1.bf16.msra.mxu0 %v18036_v20 }
 0xe12   :  { %9908 = vmatprep.subr.bf16.mxu1 %v18042_v59  ;;  %9949 = vmatprep.subr.bf16.mxu0 %v18044_v12 }
 0xe15   :  { %9909 = vmatpush1.bf16.msra.mxu1 %v18046_v1  ;;  %9950 = vmatpush1.bf16.msra.mxu0 %v18048_v53 }
 0xe16   :  { %9910 = vmatprep.subr.bf16.mxu1 %v18054_v18  ;;  %9951 = vmatprep.subr.bf16.mxu0 %v18056_v63 }
 0xe19   :  { %9911 = vmatpush1.bf16.msra.mxu1 %v18058_v33  ;;  %9952 = vmatpush1.bf16.msra.mxu0 %v18060_v17 }
 0xe1a   :  { %9912 = vmatprep.subr.bf16.mxu1 %v18066_v2  ;;  %9953 = vmatprep.subr.bf16.mxu0 %v18068_v37 }
 0xe1d   :  { %9913 = vmatpush1.bf16.msra.mxu1 %v18070_v58  ;;  %9954 = vmatpush1.bf16.msra.mxu0 %v18072_v23 }
 0xe1e   :  { %10181 = vmatprep.subr.bf16.mxu1 %v18078_v30  ;;  %10222 = vmatprep.subr.bf16.mxu0 %v18080_v11 }
 0xeb2   :  { %v9316_v39 = vpop.f32.mrb[152].mxu1  ;;  %v9357_v10 = vpop.f32.mrb[160].mxu0 }
 0xeb3   :  { %v9364_v61 = vadd.f32 %v9316_v39, %v18935_v50  ;;  %v9366_v22 = vadd.f32 %v9357_v10, %v18936_v3  ;;  %v9318_v42 = vpop.f32.mrb[153].mxu1  ;;  %v9359_v54 = vpop.f32.mrb[161].mxu0 }
 0xeb4   :  { %v9365_v48 = vadd.f32 %v9318_v42, %v18937_v41  ;;  %v9367_v40 = vadd.f32 %v9359_v54, %v18938_v49  ;;  %v9320_v27 = vpop.f32.mrb[154].mxu1  ;;  %v9361_v28 = vpop.f32.mrb[162].mxu0  ;;  %v18939_v54 = vld [vmem:[#allocation68_spill] sm:$0xff] }
 0xeb5   :  { %v13398_v13 = vmul.f32 -1.442695, %v9364_v61  ;;  %v9321_v6 = vpop.f32.mrb[155].mxu1  ;;  %v9362_v5 = vpop.f32.mrb[163].mxu0  ;;  %v18941_v27 = vld [vmem:[#allocation48_spill] sm:$0xff] }
 0xeb6   :  { %v13399_v43 = vmul.f32 -1.442695, %v9365_v48  ;;  %v13400_v31 = vmul.f32 -1.442695, %v9367_v40  ;;  %v18940_v48 = vld [vmem:[#allocation69_spill] sm:$0xff] }
 0xeb7   :  { %14980 = vpow2.f32 %v13398_v13  ;;  %v18942_v13 = vld [vmem:[#allocation49_spill] sm:$0xff] }
 0xeb8   :  { %14982 = vpow2.f32 %v13399_v43 }
 0xeb9   :  { %14984 = vpow2.f32 %v13400_v31 }
 0xeba   :  { %14986 = vtanh.f32 %v9366_v22 }
 0xec1   :  { %v14981_v44 = vpop.eup %14980 }
 0xec2   :  { %v14983_v45 = vpop.eup %14982  ;;  %v9654_v7 = vadd.f32 1.0, %v14981_v44 }
 0xec3   :  { %v9660_v32 = vadd.f32 1.0, %v14983_v45  ;;  %v14985_v21 = vpop.eup %14984 }
 0xec4   :  { %14988 = vrcp.f32 %v9654_v7  ;;  %v14987_v25 = vpop.eup %14986  ;;  %v9667_v10 = vadd.f32 1.0, %v14985_v21 }
 0xec5   :  { %14990 = vrcp.f32 %v9660_v32 }
 0xec6   :  { %14992 = vrcp.f32 %v9667_v10 }
 0xece   :  { %v14989_v15 = vpop.eup %14988 }
 0xecf   :  { %v14991_v46 = vpop.eup %14990  ;;  %v9671_v39 = vmul.f32 %v14989_v15, %v14987_v25  ;;  %v18096_v15 = vld [vmem:[#allocation15] ss:$16 sps:$4 sm:$0xff]  }
 0xed0   :  { %v9670_v50 = vmul.f32 %v14991_v46, %v17937_v14  ;;  %v14993_v7 = vpop.eup %14992  ;;  %v18098_v46 = vld [vmem:[#allocation15 + $0x8] ss:$16 sps:$4 sm:$0xff]  }
 0xed2   :  { %v18089_v61 = vadd.f32 %v9671_v39, %v9670_v50  ;;  %v9599_v3 = vpop.f32.mrb[156].mxu1  ;;  %v9640_v42 = vpop.f32.mrb[164].mxu0  ;;  %v18100_v50 = vld [vmem:[#allocation15 + $0x24] ss:$16 sps:$4 sm:$0xff]  }
 0xed3   :  { %v9647_v41 = vadd.f32 %v9599_v3, %v18939_v54  ;;  %v9649_v22 = vadd.f32 %v9640_v42, %v18940_v48  ;;  %v9601_v49 = vpop.f32.mrb[157].mxu1  ;;  %v9642_v40 = vpop.f32.mrb[165].mxu0  ;;  %v18102_v3 = vld [vmem:[#allocation15 + $0x2c] ss:$16 sps:$4 sm:$0xff]   ;;  %v18106_v48 = vld [vmem:[#allocation15 + $0x20] ss:$16 sps:$4 sm:$0xff]  }
 0xed4   :  { %v9648_v28 = vadd.f32 %v9601_v49, %v18941_v27  ;;  %v9650_v6 = vadd.f32 %v9642_v40, %v18942_v13  ;;  %v9603_v5 = vpop.f32.mrb[158].mxu1  ;;  %v9644_v43 = vpop.f32.mrb[166].mxu0  ;;  %14994 = vtanh.f32 %v18089_v61  ;;  %v18108_v49 = vld [vmem:[#allocation15 + $0x28] ss:$16 sps:$4 sm:$0xff]   ;;  %v18112_v40 = vld [vmem:[#allocation15 + $0x44] ss:$16 sps:$4 sm:$0xff]  }
 0xed5   :  { %v13401_v14 = vmul.f32 -1.442695, %v9647_v41  ;;  %v9604_v31 = vpop.f32.mrb[159].mxu1  ;;  %v9645_v44 = vpop.f32.mrb[167].mxu0  ;;  %v18120_v27 = vld [vmem:[#allocation15 + $0x40] ss:$16 sps:$4 sm:$0xff]  }
 0xed6   :  { %v13402_v45 = vmul.f32 -1.442695, %v9648_v28  ;;  %v13403_v21 = vmul.f32 -1.442695, %v9650_v6  ;;  %v18122_v28 = vld [vmem:[#allocation15 + $0x48] ss:$16 sps:$4 sm:$0xff]  }
 0xed7   :  { %14996 = vpow2.f32 %v13401_v14  ;;  %v18126_v13 = vld [vmem:[#allocation15 + $0x64] ss:$16 sps:$4 sm:$0xff]   ;;  %v18128_v6 = vld [vmem:[#allocation15 + $0x6c] ss:$16 sps:$4 sm:$0xff]   ;;  %v18132_v43 = vld [vmem:[#allocation15 + $0x60] ss:$16 sps:$4 sm:$0xff]  }
 0xed8   :  { %14998 = vpow2.f32 %v13402_v45  ;;  %v18134_v14 = vld [vmem:[#allocation15 + $0x68] ss:$16 sps:$4 sm:$0xff]   ;;  %v18138_v44 = vld [vmem:[#allocation15 + $0x84] ss:$16 sps:$4 sm:$0xff]   ;;  %v18140_v45 = vld [vmem:[#allocation15 + $0x8c] ss:$16 sps:$4 sm:$0xff]  }
 0xed9   :  { %15000 = vpow2.f32 %v13403_v21 }
 0xeda   :  { %15002 = vtanh.f32 %v9649_v22  ;;  %v18114_v22 = vld [vmem:[#allocation15 + $0x4c] ss:$16 sps:$4 sm:$0xff]  }
 0xede   :  { %v14995_v32 = vpop.eup %14994 }
 0xedf   :  { %v9674_v25 = vmul.f32 %v14995_v32, %v14993_v7 }
 0xee1   :  { %v14997_v39 = vpop.eup %14996  ;;  %v9705_v10 = vpack.c.bf16 %v9674_v25, %v9674_v25 }
 0xee2   :  { %v14999_v42 = vpop.eup %14998  ;;  %v9678_v54 = vadd.f32 1.0, %v14997_v39 }
 0xee3   :  { %v9684_v41 = vadd.f32 1.0, %v14999_v42  ;;  %9931 = vmatmul.mubr.bf16.vlgmr.msra.gmra.mrb[160].mxu1 %v9705_v10  ;;  %9972 = vmatmul.mubr.bf16.vlgmr.msra.gmra.mrb[168].mxu0 %v9705_v10  ;;  %v15001_v5 = vpop.eup %15000  ;;  %v18145_v10 = vld [vmem:[#allocation15 + $0x80] ss:$16 sps:$4 sm:$0xff]   ;;  %v18147_v42 = vld [vmem:[#allocation15 + $0x88] ss:$16 sps:$4 sm:$0xff]  }
 0xee4   :  { %15004 = vrcp.f32 %v9678_v54  ;;  %10182 = vmatpush1.bf16.msra.mxu1 %v18096_v15  ;;  %10223 = vmatpush1.bf16.msra.mxu0 %v18098_v46  ;;  %v15003_v31 = vpop.eup %15002  ;;  %v9691_v25 = vadd.f32 1.0, %v15001_v5  ;;  %18943 = vst [vmem:[#allocation25_spill] sm:$0xff] %v18147_v42  ;;  %v18151_v54 = vld [vmem:[#allocation15 + $0xa4] ss:$16 sps:$4 sm:$0xff]   ;;  %v18161_v5 = vld [vmem:[#allocation15 + $0xa8] ss:$16 sps:$4 sm:$0xff]  }
 0xee5   :  { %15006 = vrcp.f32 %v9684_v41  ;;  %10183 = vmatprep.subr.bf16.mxu1 %v18100_v50  ;;  %10224 = vmatprep.subr.bf16.mxu0 %v18102_v3  ;;  %18944 = vst [vmem:[#allocation26_spill] sm:$0xff] %v18151_v54  ;;  %v18153_v41 = vld [vmem:[#allocation15 + $0xac] ss:$16 sps:$4 sm:$0xff]   ;;  %18947 = vst [vmem:[#allocation54_spill] sm:$0xff] %v18161_v5 }
 0xee6   :  { %10213 = vmatprep.mubr.bf16.mxu1 %v18669_v56  ;;  %10254 = vmatprep.mubr.bf16.mxu0 %v18669_v56  ;;  %18945 = vst [vmem:[#allocation70_spill] sm:$0xff] %v18153_v41  ;;  %15008 = vrcp.f32 %v9691_v25  ;;  %v18174_v25 = vld [vmem:[#allocation15 + $0xc8] ss:$16 sps:$4 sm:$0xff]  }
 0xee8   :  { %10184 = vmatpush1.bf16.msra.mxu1 %v18106_v48  ;;  %10225 = vmatpush1.bf16.msra.mxu0 %v18108_v49 }
 0xee9   :  { %10185 = vmatprep.subr.bf16.mxu1 %v18112_v40  ;;  %10226 = vmatprep.subr.bf16.mxu0 %v18114_v22 }
 0xeec   :  { %10186 = vmatpush1.bf16.msra.mxu1 %v18120_v27  ;;  %10227 = vmatpush1.bf16.msra.mxu0 %v18122_v28 }
 0xeed   :  { %10187 = vmatprep.subr.bf16.mxu1 %v18126_v13  ;;  %10228 = vmatprep.subr.bf16.mxu0 %v18128_v6 }
 0xeee   :  { %v15005_v7 = vpop.eup %15004 }
 0xeef   :  { %v15007_v32 = vpop.eup %15006  ;;  %v9695_v21 = vmul.f32 %v15005_v7, %v15003_v31  ;;  %v18166_v7 = vld [vmem:[#allocation15 + $0xc4] ss:$16 sps:$4 sm:$0xff]  }
 0xef0   :  { %v9694_v39 = vmul.f32 %v15007_v32, %v17963_v24  ;;  %10188 = vmatpush1.bf16.msra.mxu1 %v18132_v43  ;;  %10229 = vmatpush1.bf16.msra.mxu0 %v18134_v14  ;;  %v18159_v24 = vld [vmem:[#allocation15 + $0xa0] ss:$16 sps:$4 sm:$0xff]   ;;  %18948 = vst [vmem:[#allocation55_spill] sm:$0xff] %v18166_v7  ;;  %v18168_v32 = vld [vmem:[#allocation15 + $0xcc] ss:$16 sps:$4 sm:$0xff]  }
 0xef1   :  { %10189 = vmatprep.subr.bf16.mxu1 %v18138_v44  ;;  %10230 = vmatprep.subr.bf16.mxu0 %v18140_v45  ;;  %18946 = vst [vmem:[#allocation71_spill] sm:$0xff] %v18159_v24  ;;  %18949 = vst [vmem:[#allocation80_spill] sm:$0xff] %v18168_v32 }
 0xef2   :  { %v18155_v31 = vadd.f32 %v9695_v21, %v9694_v39  ;;  %v18172_v21 = vld [vmem:[#allocation15 + $0xc0] ss:$16 sps:$4 sm:$0xff]   ;;  %v18178_v39 = vld [vmem:[#allocation15 + $0xe4] ss:$16 sps:$4 sm:$0xff]  }
 0xef4   :  { %10190 = vmatpush1.bf16.msra.mxu1 %v18145_v10  ;;  %10231 = vmatpush1.bf16.msra.mxu0 %v18147_v42  ;;  %15010 = vtanh.f32 %v18155_v31 }
 0xef5   :  { %10191 = vmatprep.subr.bf16.mxu1 %v18151_v54  ;;  %10232 = vmatprep.subr.bf16.mxu0 %v18153_v41  ;;  %v18180_v54 = vld [vmem:[#allocation15 + $0xec] ss:$16 sps:$4 sm:$0xff]   ;;  %v18184_v41 = vld [vmem:[#allocation15 + $0xe0] ss:$16 sps:$4 sm:$0xff]  }
 0xef8   :  { %10192 = vmatpush1.bf16.msra.mxu1 %v18159_v24  ;;  %10233 = vmatpush1.bf16.msra.mxu0 %v18161_v5  ;;  %v18186_v24 = vld [vmem:[#allocation15 + $0xe8] ss:$16 sps:$4 sm:$0xff]   ;;  %v15009_v5 = vpop.eup %15008 }
 0xef9   :  { %10193 = vmatprep.subr.bf16.mxu1 %v18166_v7  ;;  %10234 = vmatprep.subr.bf16.mxu0 %v18168_v32 }
 0xefc   :  { %10194 = vmatpush1.bf16.msra.mxu1 %v18172_v21  ;;  %10235 = vmatpush1.bf16.msra.mxu0 %v18174_v25 }
 0xefd   :  { %10195 = vmatprep.subr.bf16.mxu1 %v18178_v39  ;;  %10236 = vmatprep.subr.bf16.mxu0 %v18180_v54 }
 0xefe   :  { %v15011_v7 = vpop.eup %15010 }
 0xeff   :  { %v9698_v42 = vmul.f32 %v15011_v7, %v15009_v5  ;;  %v18955_v5 = vld [vmem:[#allocation33_spill] sm:$0xff] }
 0xf00   :  { %10196 = vmatpush1.bf16.msra.mxu1 %v18184_v41  ;;  %10237 = vmatpush1.bf16.msra.mxu0 %v18186_v24 }
 0xf01   :  { %v9988_v32 = vpack.c.bf16 %v9698_v42, %v9698_v42  ;;  %10514 = vmatprep.subr.bf16.mxu1 %v17982_v0  ;;  %10555 = vmatprep.subr.bf16.mxu0 %v17984_v51 }
 0xf03   :  { %10214 = vmatmul.mubr.bf16.vlgmr.msra.gmra.mrb[164].mxu1 %v9988_v32  ;;  %10255 = vmatmul.mubr.bf16.vlgmr.msra.gmra.mrb[172].mxu0 %v9988_v32 }
 0xf04   :  { %10515 = vmatpush1.bf16.msra.mxu1 %v17986_v4  ;;  %10556 = vmatpush1.bf16.msra.mxu0 %v17988_v36  ;;  %v18950_v4 = vld [vmem:[#allocation31_spill] sm:$0xff] }
 0xf05   :  { %10516 = vmatprep.subr.bf16.mxu1 %v17994_v52  ;;  %10557 = vmatprep.subr.bf16.mxu0 %v17996_v47  ;;  %v18951_v52 = vld [vmem:[#allocation72_spill] sm:$0xff] }
 0xf06   :  { %10546 = vmatprep.mubr.bf16.mxu1 %v18669_v56  ;;  %10587 = vmatprep.mubr.bf16.mxu0 %v18669_v56 }
 0xf08   :  { %10517 = vmatpush1.bf16.msra.mxu1 %v17998_v57  ;;  %10558 = vmatpush1.bf16.msra.mxu0 %v18000_v38 }
 0xf09   :  { %10518 = vmatprep.subr.bf16.mxu1 %v18006_v26  ;;  %10559 = vmatprep.subr.bf16.mxu0 %v18008_v35  ;;  %v18952_v26 = vld [vmem:[#allocation73_spill] sm:$0xff] }
 0xf0c   :  { %10519 = vmatpush1.bf16.msra.mxu1 %v18010_v8  ;;  %10560 = vmatpush1.bf16.msra.mxu0 %v18012_v34  ;;  %v18953_v8 = vld [vmem:[#allocation74_spill] sm:$0xff] }
 0xf0d   :  { %10520 = vmatprep.subr.bf16.mxu1 %v18018_v19  ;;  %10561 = vmatprep.subr.bf16.mxu0 %v18020_v55 }
 0xf10   :  { %10521 = vmatpush1.bf16.msra.mxu1 %v18022_v16  ;;  %10562 = vmatpush1.bf16.msra.mxu0 %v18024_v9 }
 0xf11   :  { %10522 = vmatprep.subr.bf16.mxu1 %v18030_v62  ;;  %10563 = vmatprep.subr.bf16.mxu0 %v18032_v60 }
 0xf14   :  { %10523 = vmatpush1.bf16.msra.mxu1 %v18034_v29  ;;  %10564 = vmatpush1.bf16.msra.mxu0 %v18036_v20 }
 0xf15   :  { %10524 = vmatprep.subr.bf16.mxu1 %v18042_v59  ;;  %10565 = vmatprep.subr.bf16.mxu0 %v18044_v12 }
 0xf18   :  { %10525 = vmatpush1.bf16.msra.mxu1 %v18046_v1  ;;  %10566 = vmatpush1.bf16.msra.mxu0 %v18048_v53 }
 0xf19   :  { %10526 = vmatprep.subr.bf16.mxu1 %v18054_v18  ;;  %10567 = vmatprep.subr.bf16.mxu0 %v18056_v63 }
 0xf1c   :  { %10527 = vmatpush1.bf16.msra.mxu1 %v18058_v33  ;;  %10568 = vmatpush1.bf16.msra.mxu0 %v18060_v17 }
 0xf1d   :  { %10528 = vmatprep.subr.bf16.mxu1 %v18066_v2  ;;  %10569 = vmatprep.subr.bf16.mxu0 %v18068_v37 }
 0xf20   :  { %10529 = vmatpush1.bf16.msra.mxu1 %v18070_v58  ;;  %10570 = vmatpush1.bf16.msra.mxu0 %v18072_v23 }
 0xf21   :  { %10797 = vmatprep.subr.bf16.mxu1 %v18078_v30  ;;  %10838 = vmatprep.subr.bf16.mxu0 %v18080_v11  ;;  %v18954_v11 = vld [vmem:[#allocation32_spill] sm:$0xff] }
 0xfb6   :  { %v9932_v0 = vpop.f32.mrb[160].mxu1  ;;  %v9973_v51 = vpop.f32.mrb[168].mxu0 }
 0xfb7   :  { %v9980_v36 = vadd.f32 %v9932_v0, %v18950_v4  ;;  %v9982_v47 = vadd.f32 %v9973_v51, %v18951_v52  ;;  %v9934_v57 = vpop.f32.mrb[161].mxu1  ;;  %v9975_v38 = vpop.f32.mrb[169].mxu0  ;;  %v18956_v51 = vld [vmem:[#allocation34_spill] sm:$0xff] }
 0xfb8   :  { %v9981_v35 = vadd.f32 %v9934_v57, %v18952_v26  ;;  %v9983_v34 = vadd.f32 %v9975_v38, %v18953_v8  ;;  %v9936_v19 = vpop.f32.mrb[162].mxu1  ;;  %v9977_v55 = vpop.f32.mrb[170].mxu0 }
 0xfb9   :  { %v13468_v16 = vmul.f32 -1.442695, %v9980_v36  ;;  %v9937_v9 = vpop.f32.mrb[163].mxu1  ;;  %v9978_v62 = vpop.f32.mrb[171].mxu0  ;;  %v18957_v36 = vld [vmem:[#allocation35_spill] sm:$0xff] }
 0xfba   :  { %v13469_v60 = vmul.f32 -1.442695, %v9981_v35  ;;  %v13470_v29 = vmul.f32 -1.442695, %v9983_v34 }
 0xfbb   :  { %15012 = vpow2.f32 %v13468_v16 }
 0xfbc   :  { %15014 = vpow2.f32 %v13469_v60 }
 0xfbd   :  { %15016 = vpow2.f32 %v13470_v29 }
 0xfbe   :  { %15018 = vtanh.f32 %v9982_v47 }
 0xfc5   :  { %v15013_v20 = vpop.eup %15012 }
 0xfc6   :  { %v15015_v59 = vpop.eup %15014  ;;  %v10270_v12 = vadd.f32 1.0, %v15013_v20 }
 0xfc7   :  { %v10276_v1 = vadd.f32 1.0, %v15015_v59  ;;  %v15017_v53 = vpop.eup %15016  ;;  %v18294_v59 = vld [vmem:[#allocation13 + $0x20] ss:$16 sps:$4 sm:$0xff]  }
 0xfc8   :  { %15020 = vrcp.f32 %v10270_v12  ;;  %v15019_v18 = vpop.eup %15018  ;;  %v10283_v2 = vadd.f32 1.0, %v15017_v53  ;;  %v18296_v12 = vld [vmem:[#allocation13 + $0x28] ss:$16 sps:$4 sm:$0xff]   ;;  %v18304_v53 = vld [vmem:[#allocation13 + $0x4c] ss:$16 sps:$4 sm:$0xff]  }
 0xfc9   :  { %15022 = vrcp.f32 %v10276_v1  ;;  %v18302_v1 = vld [vmem:[#allocation13 + $0x44] ss:$16 sps:$4 sm:$0xff]  }
 0xfca   :  { %15024 = vrcp.f32 %v10283_v2  ;;  %v18318_v2 = vld [vmem:[#allocation13 + $0x60] ss:$16 sps:$4 sm:$0xff]  }
 0xfd2   :  { %v15021_v63 = vpop.eup %15020 }
 0xfd3   :  { %v15023_v33 = vpop.eup %15022  ;;  %v10287_v17 = vmul.f32 %v15021_v63, %v15019_v18  ;;  %v18306_v18 = vld [vmem:[#allocation13 + $0x40] ss:$16 sps:$4 sm:$0xff]   ;;  %v18308_v63 = vld [vmem:[#allocation13 + $0x48] ss:$16 sps:$4 sm:$0xff]  }
 0xfd4   :  { %v10286_v37 = vmul.f32 %v15023_v33, %v18089_v61  ;;  %v15025_v8 = vpop.eup %15024  ;;  %v18314_v33 = vld [vmem:[#allocation13 + $0x64] ss:$16 sps:$4 sm:$0xff]  }
 0xfd6   :  { %v18233_v58 = vadd.f32 %v10287_v17, %v10286_v37  ;;  %v10215_v23 = vpop.f32.mrb[164].mxu1  ;;  %v10256_v30 = vpop.f32.mrb[172].mxu0  ;;  %v18316_v17 = vld [vmem:[#allocation13 + $0x6c] ss:$16 sps:$4 sm:$0xff]   ;;  %v18320_v37 = vld [vmem:[#allocation13 + $0x68] ss:$16 sps:$4 sm:$0xff]  }
 0xfd7   :  { %v10263_v42 = vadd.f32 %v10215_v23, %v18954_v11  ;;  %v10265_v7 = vadd.f32 %v10256_v30, %v18955_v5  ;;  %v10217_v32 = vpop.f32.mrb[165].mxu1  ;;  %v10258_v0 = vpop.f32.mrb[173].mxu0  ;;  %v18326_v23 = vld [vmem:[#allocation13 + $0x84] ss:$16 sps:$4 sm:$0xff]   ;;  %v18328_v30 = vld [vmem:[#allocation13 + $0x8c] ss:$16 sps:$4 sm:$0xff]  }
 0xfd8   :  { %v10264_v4 = vadd.f32 %v10217_v32, %v18956_v51  ;;  %v10266_v52 = vadd.f32 %v10258_v0, %v18957_v36  ;;  %v10219_v47 = vpop.f32.mrb[166].mxu1  ;;  %v10260_v57 = vpop.f32.mrb[174].mxu0  ;;  %15026 = vtanh.f32 %v18233_v58  ;;  %v18330_v11 = vld [vmem:[#allocation13 + $0x80] ss:$16 sps:$4 sm:$0xff]   ;;  %v18338_v5 = vld [vmem:[#allocation13 + $0xa4] ss:$16 sps:$4 sm:$0xff]  }
 0xfd9   :  { %v13471_v61 = vmul.f32 -1.442695, %v10263_v42  ;;  %v10220_v38 = vpop.f32.mrb[167].mxu1  ;;  %v10261_v26 = vpop.f32.mrb[175].mxu0  ;;  %v18332_v42 = vld [vmem:[#allocation13 + $0x88] ss:$16 sps:$4 sm:$0xff]  }
 0xfda   :  { %v13472_v35 = vmul.f32 -1.442695, %v10264_v4  ;;  %v13473_v19 = vmul.f32 -1.442695, %v10266_v52  ;;  %v18342_v32 = vld [vmem:[#allocation13 + $0xa0] ss:$16 sps:$4 sm:$0xff]  }
 0xfdb   :  { %15028 = vpow2.f32 %v13471_v61  ;;  %v18344_v0 = vld [vmem:[#allocation13 + $0xa8] ss:$16 sps:$4 sm:$0xff]   ;;  %v18350_v51 = vld [vmem:[#allocation13 + $0xc4] ss:$16 sps:$4 sm:$0xff]   ;;  %v18352_v4 = vld [vmem:[#allocation13 + $0xcc] ss:$16 sps:$4 sm:$0xff]  }
 0xfdc   :  { %15030 = vpow2.f32 %v13472_v35  ;;  %v18354_v36 = vld [vmem:[#allocation13 + $0xc0] ss:$16 sps:$4 sm:$0xff]   ;;  %v18356_v52 = vld [vmem:[#allocation13 + $0xc8] ss:$16 sps:$4 sm:$0xff]   ;;  %v18362_v47 = vld [vmem:[#allocation13 + $0xe4] ss:$16 sps:$4 sm:$0xff]  }
 0xfdd   :  { %15032 = vpow2.f32 %v13473_v19  ;;  %v18364_v57 = vld [vmem:[#allocation13 + $0xec] ss:$16 sps:$4 sm:$0xff]   ;;  %v18366_v61 = vld [vmem:[#allocation13 + $0xe0] ss:$16 sps:$4 sm:$0xff]   ;;  %v18368_v38 = vld [vmem:[#allocation13 + $0xe8] ss:$16 sps:$4 sm:$0xff]  }
 0xfde   :  { %15034 = vtanh.f32 %v10265_v7  ;;  %v18340_v7 = vld [vmem:[#allocation13 + $0xac] ss:$16 sps:$4 sm:$0xff]   ;;  %v18374_v26 = vld [vmem:[#allocation15 + $0x4] ss:$16 sps:$4 sm:$0xff]  }
 0xfdf   :  { %v18376_v35 = vld [vmem:[#allocation15 + $0xc] ss:$16 sps:$4 sm:$0xff]  }
 0xfe0   :  { %v18965_v19 = vld [vmem:[#allocation75_spill] sm:$0xff] }
 0xfe2   :  { %v15027_v34 = vpop.eup %15026 }
 0xfe3   :  { %v10290_v55 = vmul.f32 %v15027_v34, %v15025_v8 }
 0xfe5   :  { %v15029_v16 = vpop.eup %15028  ;;  %v10321_v9 = vpack.c.bf16 %v10290_v55, %v10290_v55 }
 0xfe6   :  { %v15031_v62 = vpop.eup %15030  ;;  %v10294_v60 = vadd.f32 1.0, %v15029_v16  ;;  %v18966_v16 = vld [vmem:[#allocation76_spill] sm:$0xff] }
 0xfe7   :  { %v10300_v29 = vadd.f32 1.0, %v15031_v62  ;;  %10547 = vmatmul.mubr.bf16.vlgmr.msra.gmra.mrb[168].mxu1 %v10321_v9  ;;  %10588 = vmatmul.mubr.bf16.vlgmr.msra.gmra.mrb[176].mxu0 %v10321_v9 }
 0xfe8   :  { %15036 = vrcp.f32 %v10294_v60  ;;  %10798 = vmatpush1.bf16.msra.mxu1 %v18096_v15  ;;  %10839 = vmatpush1.bf16.msra.mxu0 %v18098_v46  ;;  %v15033_v15 = vpop.eup %15032 }
 0xfe9   :  { %15038 = vrcp.f32 %v10300_v29  ;;  %10799 = vmatprep.subr.bf16.mxu1 %v18100_v50  ;;  %10840 = vmatprep.subr.bf16.mxu0 %v18102_v3  ;;  %v15035_v46 = vpop.eup %15034  ;;  %v18967_v29 = vld [vmem:[#allocation77_spill] sm:$0xff] }
 0xfea   :  { %10829 = vmatprep.mubr.bf16.mxu1 %v18669_v56  ;;  %10870 = vmatprep.mubr.bf16.mxu0 %v18669_v56 }
 0xfec   :  { %10800 = vmatpush1.bf16.msra.mxu1 %v18106_v48  ;;  %10841 = vmatpush1.bf16.msra.mxu0 %v18108_v49  ;;  %v10307_v48 = vadd.f32 1.0, %v15033_v15 }
 0xfed   :  { %10801 = vmatprep.subr.bf16.mxu1 %v18112_v40  ;;  %10842 = vmatprep.subr.bf16.mxu0 %v18114_v22  ;;  %v18958_v22 = vld [vmem:[#allocation25_spill] sm:$0xff] }
 0xfee   :  { %15040 = vrcp.f32 %v10307_v48 }
 0xff0   :  { %10802 = vmatpush1.bf16.msra.mxu1 %v18120_v27  ;;  %10843 = vmatpush1.bf16.msra.mxu0 %v18122_v28  ;;  %v18959_v27 = vld [vmem:[#allocation26_spill] sm:$0xff] }
 0xff1   :  { %10803 = vmatprep.subr.bf16.mxu1 %v18126_v13  ;;  %10844 = vmatprep.subr.bf16.mxu0 %v18128_v6  ;;  %v18960_v28 = vld [vmem:[#allocation70_spill] sm:$0xff]  ;;  %v18961_v13 = vld [vmem:[#allocation71_spill] sm:$0xff] }
 0xff2   :  { %v15037_v50 = vpop.eup %15036  ;;  %v18962_v6 = vld [vmem:[#allocation54_spill] sm:$0xff] }
 0xff3   :  { %v15039_v3 = vpop.eup %15038  ;;  %v10311_v20 = vmul.f32 %v15037_v50, %v15035_v46  ;;  %v18968_v46 = vld [vmem:[#allocation40_spill] sm:$0xff] }
 0xff4   :  { %v10310_v49 = vmul.f32 %v15039_v3, %v18155_v31  ;;  %10804 = vmatpush1.bf16.msra.mxu1 %v18132_v43  ;;  %10845 = vmatpush1.bf16.msra.mxu0 %v18134_v14  ;;  %v18963_v43 = vld [vmem:[#allocation55_spill] sm:$0xff]  ;;  %v18964_v14 = vld [vmem:[#allocation80_spill] sm:$0xff] }
 0xff5   :  { %10805 = vmatprep.subr.bf16.mxu1 %v18138_v44  ;;  %10846 = vmatprep.subr.bf16.mxu0 %v18140_v45 }
 0xff6   :  { %v18259_v40 = vadd.f32 %v10311_v20, %v10310_v49 }
 0xff8   :  { %10806 = vmatpush1.bf16.msra.mxu1 %v18145_v10  ;;  %10847 = vmatpush1.bf16.msra.mxu0 %v18958_v22  ;;  %15042 = vtanh.f32 %v18259_v40  ;;  %v15041_v44 = vpop.eup %15040 }
 0xff9   :  { %10807 = vmatprep.subr.bf16.mxu1 %v18959_v27  ;;  %10848 = vmatprep.subr.bf16.mxu0 %v18960_v28 }
 0xffc   :  { %10808 = vmatpush1.bf16.msra.mxu1 %v18961_v13  ;;  %10849 = vmatpush1.bf16.msra.mxu0 %v18962_v6 }
 0xffd   :  { %10809 = vmatprep.subr.bf16.mxu1 %v18963_v43  ;;  %10850 = vmatprep.subr.bf16.mxu0 %v18964_v14 }
0x1000   :  { %10810 = vmatpush1.bf16.msra.mxu1 %v18172_v21  ;;  %10851 = vmatpush1.bf16.msra.mxu0 %v18174_v25  ;;  %v18278_v21 = vld [vmem:[#allocation13 + $0x4] ss:$16 sps:$4 sm:$0xff]   ;;  %v18280_v25 = vld [vmem:[#allocation13 + $0xc] ss:$16 sps:$4 sm:$0xff]  }
0x1001   :  { %10811 = vmatprep.subr.bf16.mxu1 %v18178_v39  ;;  %10852 = vmatprep.subr.bf16.mxu0 %v18180_v54  ;;  %v18282_v39 = vld [vmem:[#allocation13] ss:$16 sps:$4 sm:$0xff]   ;;  %v18284_v54 = vld [vmem:[#allocation13 + $0x8] ss:$16 sps:$4 sm:$0xff]  }
0x1002   :  { %v15043_v45 = vpop.eup %15042 }
0x1003   :  { %v10314_v10 = vmul.f32 %v15043_v45, %v15041_v44 }
0x1004   :  { %10812 = vmatpush1.bf16.msra.mxu1 %v18184_v41  ;;  %10853 = vmatpush1.bf16.msra.mxu0 %v18186_v24  ;;  %v18290_v41 = vld [vmem:[#allocation13 + $0x24] ss:$16 sps:$4 sm:$0xff]   ;;  %v18292_v24 = vld [vmem:[#allocation13 + $0x2c] ss:$16 sps:$4 sm:$0xff]  }
0x1005   :  { %v10604_v31 = vpack.c.bf16 %v10314_v10, %v10314_v10  ;;  %11130 = vmatprep.subr.bf16.mxu1 %v18278_v21  ;;  %11171 = vmatprep.subr.bf16.mxu0 %v18280_v25 }
0x1007   :  { %10830 = vmatmul.mubr.bf16.vlgmr.msra.gmra.mrb[172].mxu1 %v10604_v31  ;;  %10871 = vmatmul.mubr.bf16.vlgmr.msra.gmra.mrb[180].mxu0 %v10604_v31 }
0x1008   :  { %11162 = vmatprep.mubr.bf16.mxu1 %v18669_v56  ;;  %11203 = vmatprep.mubr.bf16.mxu0 %v18669_v56 }
0x1009   :  { %11131 = vmatpush1.bf16.msra.mxu1 %v18282_v39  ;;  %11172 = vmatpush1.bf16.msra.mxu0 %v18284_v54 }
0x100a   :  { %11132 = vmatprep.subr.bf16.mxu1 %v18290_v41  ;;  %11173 = vmatprep.subr.bf16.mxu0 %v18292_v24 }
0x100d   :  { %11133 = vmatpush1.bf16.msra.mxu1 %v18294_v59  ;;  %11174 = vmatpush1.bf16.msra.mxu0 %v18296_v12 }
0x100e   :  { %11134 = vmatprep.subr.bf16.mxu1 %v18302_v1  ;;  %11175 = vmatprep.subr.bf16.mxu0 %v18304_v53 }
0x1011   :  { %11135 = vmatpush1.bf16.msra.mxu1 %v18306_v18  ;;  %11176 = vmatpush1.bf16.msra.mxu0 %v18308_v63 }
0x1012   :  { %11136 = vmatprep.subr.bf16.mxu1 %v18314_v33  ;;  %11177 = vmatprep.subr.bf16.mxu0 %v18316_v17 }
0x1015   :  { %11137 = vmatpush1.bf16.msra.mxu1 %v18318_v2  ;;  %11178 = vmatpush1.bf16.msra.mxu0 %v18320_v37 }
0x1016   :  { %11138 = vmatprep.subr.bf16.mxu1 %v18326_v23  ;;  %11179 = vmatprep.subr.bf16.mxu0 %v18328_v30 }
0x1019   :  { %11139 = vmatpush1.bf16.msra.mxu1 %v18330_v11  ;;  %11180 = vmatpush1.bf16.msra.mxu0 %v18332_v42 }
0x101a   :  { %11140 = vmatprep.subr.bf16.mxu1 %v18338_v5  ;;  %11181 = vmatprep.subr.bf16.mxu0 %v18340_v7 }
0x101d   :  { %11141 = vmatpush1.bf16.msra.mxu1 %v18342_v32  ;;  %11182 = vmatpush1.bf16.msra.mxu0 %v18344_v0 }
0x101e   :  { %11142 = vmatprep.subr.bf16.mxu1 %v18350_v51  ;;  %11183 = vmatprep.subr.bf16.mxu0 %v18352_v4 }
0x1021   :  { %11143 = vmatpush1.bf16.msra.mxu1 %v18354_v36  ;;  %11184 = vmatpush1.bf16.msra.mxu0 %v18356_v52 }
0x1022   :  { %11144 = vmatprep.subr.bf16.mxu1 %v18362_v47  ;;  %11185 = vmatprep.subr.bf16.mxu0 %v18364_v57 }
0x1025   :  { %11145 = vmatpush1.bf16.msra.mxu1 %v18366_v61  ;;  %11186 = vmatpush1.bf16.msra.mxu0 %v18368_v38 }
0x1026   :  { %11413 = vmatprep.subr.bf16.mxu1 %v18374_v26  ;;  %11454 = vmatprep.subr.bf16.mxu0 %v18376_v35 }
0x10ba   :  { %v10548_v8 = vpop.f32.mrb[168].mxu1  ;;  %v10589_v34 = vpop.f32.mrb[176].mxu0 }
0x10bb   :  { %v10596_v55 = vadd.f32 %v10548_v8, %v18965_v19  ;;  %v10598_v9 = vadd.f32 %v10589_v34, %v18966_v16  ;;  %v10550_v62 = vpop.f32.mrb[169].mxu1  ;;  %v10591_v60 = vpop.f32.mrb[177].mxu0 }
0x10bc   :  { %v10597_v15 = vadd.f32 %v10550_v62, %v18967_v29  ;;  %v10599_v50 = vadd.f32 %v10591_v60, %v18968_v46  ;;  %v10552_v3 = vpop.f32.mrb[170].mxu1  ;;  %v10593_v20 = vpop.f32.mrb[178].mxu0  ;;  %v18969_v60 = vld [vmem:[#allocation57_spill] sm:$0xff] }
0x10bd   :  { %v13538_v48 = vmul.f32 -1.442695, %v10596_v55  ;;  %v10553_v49 = vpop.f32.mrb[171].mxu1  ;;  %v10594_v22 = vpop.f32.mrb[179].mxu0  ;;  %v18971_v3 = vld [vmem:[#allocation59_spill] sm:$0xff] }
0x10be   :  { %v13539_v27 = vmul.f32 -1.442695, %v10597_v15  ;;  %v13540_v28 = vmul.f32 -1.442695, %v10599_v50  ;;  %v18970_v15 = vld [vmem:[#allocation58_spill] sm:$0xff] }
0x10bf   :  { %15044 = vpow2.f32 %v13538_v48  ;;  %v18972_v48 = vld [vmem:[#allocation83_spill] sm:$0xff] }
0x10c0   :  { %15046 = vpow2.f32 %v13539_v27 }
0x10c1   :  { %15048 = vpow2.f32 %v13540_v28 }
0x10c2   :  { %15050 = vtanh.f32 %v10598_v9 }
0x10c9   :  { %v15045_v13 = vpop.eup %15044 }
0x10ca   :  { %v15047_v6 = vpop.eup %15046  ;;  %v10886_v43 = vadd.f32 1.0, %v15045_v13 }
0x10cb   :  { %v10892_v14 = vadd.f32 1.0, %v15047_v6  ;;  %v15049_v44 = vpop.eup %15048 }
0x10cc   :  { %15052 = vrcp.f32 %v10886_v43  ;;  %v15051_v45 = vpop.eup %15050  ;;  %v10899_v34 = vadd.f32 1.0, %v15049_v44 }
0x10cd   :  { %15054 = vrcp.f32 %v10892_v14 }
0x10ce   :  { %15056 = vrcp.f32 %v10899_v34 }
0x10d6   :  { %v15053_v10 = vpop.eup %15052 }
0x10d7   :  { %v15055_v31 = vpop.eup %15054  ;;  %v10903_v8 = vmul.f32 %v15053_v10, %v15051_v45  ;;  %v18392_v10 = vld [vmem:[#allocation15] ss:$16 sps:$4 sm:$0xff]  }
0x10d8   :  { %v10902_v19 = vmul.f32 %v15055_v31, %v18233_v58  ;;  %v15057_v43 = vpop.eup %15056  ;;  %v18394_v31 = vld [vmem:[#allocation15 + $0x8] ss:$16 sps:$4 sm:$0xff]  }
0x10da   :  { %v18385_v55 = vadd.f32 %v10903_v8, %v10902_v19  ;;  %v10831_v16 = vpop.f32.mrb[172].mxu1  ;;  %v10872_v62 = vpop.f32.mrb[180].mxu0  ;;  %v18396_v19 = vld [vmem:[#allocation15 + $0x24] ss:$16 sps:$4 sm:$0xff]  }
0x10db   :  { %v10879_v29 = vadd.f32 %v10831_v16, %v18969_v60  ;;  %v10881_v9 = vadd.f32 %v10872_v62, %v18970_v15  ;;  %v10833_v46 = vpop.f32.mrb[173].mxu1  ;;  %v10874_v50 = vpop.f32.mrb[181].mxu0  ;;  %v18398_v16 = vld [vmem:[#allocation15 + $0x2c] ss:$16 sps:$4 sm:$0xff]   ;;  %v18402_v15 = vld [vmem:[#allocation15 + $0x20] ss:$16 sps:$4 sm:$0xff]  }
0x10dc   :  { %v10880_v20 = vadd.f32 %v10833_v46, %v18971_v3  ;;  %v10882_v49 = vadd.f32 %v10874_v50, %v18972_v48  ;;  %v10835_v22 = vpop.f32.mrb[174].mxu1  ;;  %v10876_v27 = vpop.f32.mrb[182].mxu0  ;;  %15058 = vtanh.f32 %v18385_v55  ;;  %v18404_v46 = vld [vmem:[#allocation15 + $0x28] ss:$16 sps:$4 sm:$0xff]   ;;  %v18408_v50 = vld [vmem:[#allocation15 + $0x44] ss:$16 sps:$4 sm:$0xff]  }
0x10dd   :  { %v13541_v58 = vmul.f32 -1.442695, %v10879_v29  ;;  %v10836_v28 = vpop.f32.mrb[175].mxu1  ;;  %v10877_v13 = vpop.f32.mrb[183].mxu0  ;;  %v18416_v3 = vld [vmem:[#allocation15 + $0x40] ss:$16 sps:$4 sm:$0xff]  }
0x10de   :  { %v13542_v6 = vmul.f32 -1.442695, %v10880_v20  ;;  %v13543_v44 = vmul.f32 -1.442695, %v10882_v49  ;;  %v18418_v20 = vld [vmem:[#allocation15 + $0x48] ss:$16 sps:$4 sm:$0xff]  }
0x10df   :  { %15060 = vpow2.f32 %v13541_v58  ;;  %v18422_v48 = vld [vmem:[#allocation15 + $0x64] ss:$16 sps:$4 sm:$0xff]   ;;  %v18424_v49 = vld [vmem:[#allocation15 + $0x6c] ss:$16 sps:$4 sm:$0xff]   ;;  %v18428_v27 = vld [vmem:[#allocation15 + $0x60] ss:$16 sps:$4 sm:$0xff]  }
0x10e0   :  { %15062 = vpow2.f32 %v13542_v6  ;;  %v18430_v58 = vld [vmem:[#allocation15 + $0x68] ss:$16 sps:$4 sm:$0xff]   ;;  %v18434_v13 = vld [vmem:[#allocation15 + $0x84] ss:$16 sps:$4 sm:$0xff]   ;;  %v18436_v6 = vld [vmem:[#allocation15 + $0x8c] ss:$16 sps:$4 sm:$0xff]  }
0x10e1   :  { %15064 = vpow2.f32 %v13543_v44 }
0x10e2   :  { %15066 = vtanh.f32 %v10881_v9  ;;  %v18410_v9 = vld [vmem:[#allocation15 + $0x4c] ss:$16 sps:$4 sm:$0xff]  }
0x10e6   :  { %v15059_v14 = vpop.eup %15058 }
0x10e7   :  { %v10906_v45 = vmul.f32 %v15059_v14, %v15057_v43 }
0x10e9   :  { %v15061_v8 = vpop.eup %15060  ;;  %v10937_v34 = vpack.c.bf16 %v10906_v45, %v10906_v45 }
0x10ea   :  { %v15063_v62 = vpop.eup %15062  ;;  %v10910_v60 = vadd.f32 1.0, %v15061_v8 }
0x10eb   :  { %v10916_v29 = vadd.f32 1.0, %v15063_v62  ;;  %11163 = vmatmul.mubr.bf16.vlgmr.msra.gmra.mrb[176].mxu1 %v10937_v34  ;;  %11204 = vmatmul.mubr.bf16.vlgmr.msra.gmra.mrb[184].mxu0 %v10937_v34  ;;  %v15065_v22 = vpop.eup %15064  ;;  %v18441_v34 = vld [vmem:[#allocation15 + $0x80] ss:$16 sps:$4 sm:$0xff]   ;;  %v18443_v62 = vld [vmem:[#allocation15 + $0x88] ss:$16 sps:$4 sm:$0xff]  }
0x10ec   :  { %15068 = vrcp.f32 %v10910_v60  ;;  %11414 = vmatpush1.bf16.msra.mxu1 %v18392_v10  ;;  %11455 = vmatpush1.bf16.msra.mxu0 %v18394_v31  ;;  %v15067_v28 = vpop.eup %15066  ;;  %v10923_v45 = vadd.f32 1.0, %v15065_v22  ;;  %18973 = vst [vmem:[#allocation27_spill] sm:$0xff] %v18443_v62  ;;  %v18447_v60 = vld [vmem:[#allocation15 + $0xa4] ss:$16 sps:$4 sm:$0xff]   ;;  %v18457_v22 = vld [vmem:[#allocation15 + $0xa8] ss:$16 sps:$4 sm:$0xff]  }
0x10ed   :  { %15070 = vrcp.f32 %v10916_v29  ;;  %11415 = vmatprep.subr.bf16.mxu1 %v18396_v19  ;;  %11456 = vmatprep.subr.bf16.mxu0 %v18398_v16  ;;  %18974 = vst [vmem:[#allocation36_spill] sm:$0xff] %v18447_v60  ;;  %v18449_v29 = vld [vmem:[#allocation15 + $0xac] ss:$16 sps:$4 sm:$0xff]   ;;  %18977 = vst [vmem:[#allocation39_spill] sm:$0xff] %v18457_v22 }
0x10ee   :  { %11445 = vmatprep.mubr.bf16.mxu1 %v18669_v56  ;;  %11486 = vmatprep.mubr.bf16.mxu0 %v18669_v56  ;;  %18975 = vst [vmem:[#allocation37_spill] sm:$0xff] %v18449_v29  ;;  %15072 = vrcp.f32 %v10923_v45  ;;  %v18470_v45 = vld [vmem:[#allocation15 + $0xc8] ss:$16 sps:$4 sm:$0xff]  }
0x10f0   :  { %11416 = vmatpush1.bf16.msra.mxu1 %v18402_v15  ;;  %11457 = vmatpush1.bf16.msra.mxu0 %v18404_v46 }
0x10f1   :  { %11417 = vmatprep.subr.bf16.mxu1 %v18408_v50  ;;  %11458 = vmatprep.subr.bf16.mxu0 %v18410_v9 }
0x10f4   :  { %11418 = vmatpush1.bf16.msra.mxu1 %v18416_v3  ;;  %11459 = vmatpush1.bf16.msra.mxu0 %v18418_v20 }
0x10f5   :  { %11419 = vmatprep.subr.bf16.mxu1 %v18422_v48  ;;  %11460 = vmatprep.subr.bf16.mxu0 %v18424_v49 }
0x10f6   :  { %v15069_v43 = vpop.eup %15068 }
0x10f7   :  { %v15071_v14 = vpop.eup %15070  ;;  %v10927_v44 = vmul.f32 %v15069_v43, %v15067_v28  ;;  %v18462_v43 = vld [vmem:[#allocation15 + $0xc4] ss:$16 sps:$4 sm:$0xff]  }
0x10f8   :  { %v10926_v8 = vmul.f32 %v15071_v14, %v18259_v40  ;;  %11420 = vmatpush1.bf16.msra.mxu1 %v18428_v27  ;;  %11461 = vmatpush1.bf16.msra.mxu0 %v18430_v58  ;;  %v18455_v40 = vld [vmem:[#allocation15 + $0xa0] ss:$16 sps:$4 sm:$0xff]   ;;  %18978 = vst [vmem:[#allocation50_spill] sm:$0xff] %v18462_v43  ;;  %v18464_v14 = vld [vmem:[#allocation15 + $0xcc] ss:$16 sps:$4 sm:$0xff]  }
0x10f9   :  { %11421 = vmatprep.subr.bf16.mxu1 %v18434_v13  ;;  %11462 = vmatprep.subr.bf16.mxu0 %v18436_v6  ;;  %18976 = vst [vmem:[#allocation38_spill] sm:$0xff] %v18455_v40  ;;  %18979 = vst [vmem:[#allocation51_spill] sm:$0xff] %v18464_v14 }
0x10fa   :  { %v18451_v28 = vadd.f32 %v10927_v44, %v10926_v8  ;;  %v18468_v44 = vld [vmem:[#allocation15 + $0xc0] ss:$16 sps:$4 sm:$0xff]   ;;  %v18474_v8 = vld [vmem:[#allocation15 + $0xe4] ss:$16 sps:$4 sm:$0xff]  }
0x10fc   :  { %11422 = vmatpush1.bf16.msra.mxu1 %v18441_v34  ;;  %11463 = vmatpush1.bf16.msra.mxu0 %v18443_v62  ;;  %15074 = vtanh.f32 %v18451_v28 }
0x10fd   :  { %11423 = vmatprep.subr.bf16.mxu1 %v18447_v60  ;;  %11464 = vmatprep.subr.bf16.mxu0 %v18449_v29  ;;  %v18476_v60 = vld [vmem:[#allocation15 + $0xec] ss:$16 sps:$4 sm:$0xff]   ;;  %v18480_v29 = vld [vmem:[#allocation15 + $0xe0] ss:$16 sps:$4 sm:$0xff]  }
0x1100   :  { %11424 = vmatpush1.bf16.msra.mxu1 %v18455_v40  ;;  %11465 = vmatpush1.bf16.msra.mxu0 %v18457_v22  ;;  %v18482_v40 = vld [vmem:[#allocation15 + $0xe8] ss:$16 sps:$4 sm:$0xff]   ;;  %v15073_v22 = vpop.eup %15072 }
0x1101   :  { %11425 = vmatprep.subr.bf16.mxu1 %v18462_v43  ;;  %11466 = vmatprep.subr.bf16.mxu0 %v18464_v14 }
0x1104   :  { %11426 = vmatpush1.bf16.msra.mxu1 %v18468_v44  ;;  %11467 = vmatpush1.bf16.msra.mxu0 %v18470_v45 }
0x1105   :  { %11427 = vmatprep.subr.bf16.mxu1 %v18474_v8  ;;  %11468 = vmatprep.subr.bf16.mxu0 %v18476_v60 }
0x1106   :  { %v15075_v43 = vpop.eup %15074 }
0x1107   :  { %v10930_v62 = vmul.f32 %v15075_v43, %v15073_v22  ;;  %v18985_v22 = vld [vmem:[#allocation46_spill] sm:$0xff] }
0x1108   :  { %11428 = vmatpush1.bf16.msra.mxu1 %v18480_v29  ;;  %11469 = vmatpush1.bf16.msra.mxu0 %v18482_v40 }
0x1109   :  { %v11220_v14 = vpack.c.bf16 %v10930_v62, %v10930_v62  ;;  %11746 = vmatprep.subr.bf16.mxu1 %v18278_v21  ;;  %11787 = vmatprep.subr.bf16.mxu0 %v18280_v25 }
0x110b   :  { %11446 = vmatmul.mubr.bf16.vlgmr.msra.gmra.mrb[180].mxu1 %v11220_v14  ;;  %11487 = vmatmul.mubr.bf16.vlgmr.msra.gmra.mrb[188].mxu0 %v11220_v14 }
0x110c   :  { %11747 = vmatpush1.bf16.msra.mxu1 %v18282_v39  ;;  %11788 = vmatpush1.bf16.msra.mxu0 %v18284_v54  ;;  %v18980_v39 = vld [vmem:[#allocation41_spill] sm:$0xff] }
0x110d   :  { %11748 = vmatprep.subr.bf16.mxu1 %v18290_v41  ;;  %11789 = vmatprep.subr.bf16.mxu0 %v18292_v24  ;;  %v18981_v41 = vld [vmem:[#allocation42_spill] sm:$0xff] }
0x110e   :  { %11778 = vmatprep.mubr.bf16.mxu1 %v18669_v56  ;;  %11819 = vmatprep.mubr.bf16.mxu0 %v18669_v56 }
0x1110   :  { %11749 = vmatpush1.bf16.msra.mxu1 %v18294_v59  ;;  %11790 = vmatpush1.bf16.msra.mxu0 %v18296_v12 }
0x1111   :  { %11750 = vmatprep.subr.bf16.mxu1 %v18302_v1  ;;  %11791 = vmatprep.subr.bf16.mxu0 %v18304_v53  ;;  %v18982_v1 = vld [vmem:[#allocation43_spill] sm:$0xff] }
0x1114   :  { %11751 = vmatpush1.bf16.msra.mxu1 %v18306_v18  ;;  %11792 = vmatpush1.bf16.msra.mxu0 %v18308_v63  ;;  %v18983_v18 = vld [vmem:[#allocation60_spill] sm:$0xff] }
0x1115   :  { %11752 = vmatprep.subr.bf16.mxu1 %v18314_v33  ;;  %11793 = vmatprep.subr.bf16.mxu0 %v18316_v17 }
0x1118   :  { %11753 = vmatpush1.bf16.msra.mxu1 %v18318_v2  ;;  %11794 = vmatpush1.bf16.msra.mxu0 %v18320_v37 }
0x1119   :  { %11754 = vmatprep.subr.bf16.mxu1 %v18326_v23  ;;  %11795 = vmatprep.subr.bf16.mxu0 %v18328_v30 }
0x111c   :  { %11755 = vmatpush1.bf16.msra.mxu1 %v18330_v11  ;;  %11796 = vmatpush1.bf16.msra.mxu0 %v18332_v42 }
0x111d   :  { %11756 = vmatprep.subr.bf16.mxu1 %v18338_v5  ;;  %11797 = vmatprep.subr.bf16.mxu0 %v18340_v7 }
0x1120   :  { %11757 = vmatpush1.bf16.msra.mxu1 %v18342_v32  ;;  %11798 = vmatpush1.bf16.msra.mxu0 %v18344_v0 }
0x1121   :  { %11758 = vmatprep.subr.bf16.mxu1 %v18350_v51  ;;  %11799 = vmatprep.subr.bf16.mxu0 %v18352_v4 }
0x1124   :  { %11759 = vmatpush1.bf16.msra.mxu1 %v18354_v36  ;;  %11800 = vmatpush1.bf16.msra.mxu0 %v18356_v52 }
0x1125   :  { %11760 = vmatprep.subr.bf16.mxu1 %v18362_v47  ;;  %11801 = vmatprep.subr.bf16.mxu0 %v18364_v57 }
0x1128   :  { %11761 = vmatpush1.bf16.msra.mxu1 %v18366_v61  ;;  %11802 = vmatpush1.bf16.msra.mxu0 %v18368_v38 }
0x1129   :  { %12029 = vmatprep.subr.bf16.mxu1 %v18374_v26  ;;  %12070 = vmatprep.subr.bf16.mxu0 %v18376_v35  ;;  %v18984_v35 = vld [vmem:[#allocation45_spill] sm:$0xff] }
0x11be   :  { %v11164_v21 = vpop.f32.mrb[176].mxu1  ;;  %v11205_v25 = vpop.f32.mrb[184].mxu0 }
0x11bf   :  { %v11212_v54 = vadd.f32 %v11164_v21, %v18980_v39  ;;  %v11214_v24 = vadd.f32 %v11205_v25, %v18981_v41  ;;  %v11166_v59 = vpop.f32.mrb[177].mxu1  ;;  %v11207_v12 = vpop.f32.mrb[185].mxu0  ;;  %v18986_v25 = vld [vmem:[#allocation47_spill] sm:$0xff] }
0x11c0   :  { %v11213_v53 = vadd.f32 %v11166_v59, %v18982_v1  ;;  %v11215_v63 = vadd.f32 %v11207_v12, %v18983_v18  ;;  %v11168_v33 = vpop.f32.mrb[178].mxu1  ;;  %v11209_v17 = vpop.f32.mrb[186].mxu0 }
0x11c1   :  { %v13608_v2 = vmul.f32 -1.442695, %v11212_v54  ;;  %v11169_v37 = vpop.f32.mrb[179].mxu1  ;;  %v11210_v23 = vpop.f32.mrb[187].mxu0  ;;  %v18987_v54 = vld [vmem:[#allocation56_spill] sm:$0xff] }
0x11c2   :  { %v13609_v30 = vmul.f32 -1.442695, %v11213_v53  ;;  %v13610_v11 = vmul.f32 -1.442695, %v11215_v63 }
0x11c3   :  { %15076 = vpow2.f32 %v13608_v2 }
0x11c4   :  { %15078 = vpow2.f32 %v13609_v30 }
0x11c5   :  { %15080 = vpow2.f32 %v13610_v11 }
0x11c6   :  { %15082 = vtanh.f32 %v11214_v24 }
0x11cd   :  { %v15077_v42 = vpop.eup %15076 }
0x11ce   :  { %v15079_v5 = vpop.eup %15078  ;;  %v11502_v7 = vadd.f32 1.0, %v15077_v42  ;;  %v18995_v42 = vld [vmem:[#allocation81_spill] sm:$0xff] }
0x11cf   :  { %v11508_v32 = vadd.f32 1.0, %v15079_v5  ;;  %v15081_v0 = vpop.eup %15080  ;;  %v14612_v5 = vld [vmem:[#allocation16 + $0x40] sm:$0xff]  }
0x11d0   :  { %15084 = vrcp.f32 %v11502_v7  ;;  %v15083_v51 = vpop.eup %15082  ;;  %v11515_v47 = vadd.f32 1.0, %v15081_v0  ;;  %v14615_v7 = vld [vmem:[#allocation16 + $0x8] sm:$0xff]   ;;  %v14621_v0 = vld [vmem:[#allocation16 + $0x20] sm:$0xff]  }
0x11d1   :  { %15086 = vrcp.f32 %v11508_v32  ;;  %v14619_v32 = vld [vmem:[#allocation16 + $0x18] sm:$0xff]  }
0x11d2   :  { %15088 = vrcp.f32 %v11515_v47  ;;  %v14626_v47 = vld [vmem:[#allocation16 + $0x78] sm:$0xff]  }
0x11da   :  { %v15085_v4 = vpop.eup %15084 }
0x11db   :  { %v15087_v36 = vpop.eup %15086  ;;  %v11519_v52 = vmul.f32 %v15085_v4, %v15083_v51  ;;  %v14622_v51 = vld [vmem:[#allocation16 + $0x68] sm:$0xff]  }
0x11dc   :  { %v11518_v57 = vmul.f32 %v15087_v36, %v18385_v55  ;;  %v15089_v18 = vpop.eup %15088  ;;  %v14623_v4 = vld [vmem:[#allocation16 + $0x28] sm:$0xff]   ;;  %v14624_v36 = vld [vmem:[#allocation16 + $0x70] sm:$0xff]  }
0x11de   :  { %v18529_v61 = vadd.f32 %v11519_v52, %v11518_v57  ;;  %v11447_v38 = vpop.f32.mrb[180].mxu1  ;;  %v11488_v26 = vpop.f32.mrb[188].mxu0  ;;  %v14625_v52 = vld [vmem:[#allocation16 + $0x30] sm:$0xff]   ;;  %v14627_v57 = vld [vmem:[#allocation16 + $0x38] sm:$0xff]  }
0x11df   :  { %v11495_v62 = vadd.f32 %v11447_v38, %v18984_v35  ;;  %v11497_v43 = vadd.f32 %v11488_v26, %v18985_v22  ;;  %v11449_v14 = vpop.f32.mrb[181].mxu1  ;;  %v11490_v21 = vpop.f32.mrb[189].mxu0  ;;  %v18996_v35 = vld [vmem:[#allocation61_spill] sm:$0xff]  ;;  %v18997_v22 = vld [vmem:[#allocation62_spill] sm:$0xff] }
0x11e0   :  { %v11496_v39 = vadd.f32 %v11449_v14, %v18986_v25  ;;  %v11498_v41 = vadd.f32 %v11490_v21, %v18987_v54  ;;  %v11451_v24 = vpop.f32.mrb[182].mxu1  ;;  %v11492_v59 = vpop.f32.mrb[190].mxu0  ;;  %15090 = vtanh.f32 %v18529_v61  ;;  %v18998_v25 = vld [vmem:[#allocation63_spill] sm:$0xff]  ;;  %v18999_v54 = vld [vmem:[#allocation44_spill] sm:$0xff] }
0x11e1   :  { %v13611_v55 = vmul.f32 -1.442695, %v11495_v62  ;;  %v11452_v12 = vpop.f32.mrb[183].mxu1  ;;  %v11493_v1 = vpop.f32.mrb[191].mxu0 }
0x11e2   :  { %v13612_v53 = vmul.f32 -1.442695, %v11496_v39  ;;  %v13613_v33 = vmul.f32 -1.442695, %v11498_v41 }
0x11e3   :  { %15092 = vpow2.f32 %v13611_v55 }
0x11e4   :  { %15094 = vpow2.f32 %v13612_v53 }
0x11e5   :  { %15096 = vpow2.f32 %v13613_v33 }
0x11e6   :  { %15098 = vtanh.f32 %v11497_v43 }
0x11ea   :  { %v15091_v63 = vpop.eup %15090 }
0x11eb   :  { %v11522_v17 = vmul.f32 %v15091_v63, %v15089_v18 }
0x11ed   :  { %v15093_v2 = vpop.eup %15092  ;;  %v11553_v37 = vpack.c.bf16 %v11522_v17, %v11522_v17 }
0x11ee   :  { %v15095_v23 = vpop.eup %15094  ;;  %v11526_v30 = vadd.f32 1.0, %v15093_v2 }
0x11ef   :  { %v11532_v11 = vadd.f32 1.0, %v15095_v23  ;;  %11779 = vmatmul.mubr.bf16.vlgmr.msra.gmra.mrb[184].mxu1 %v11553_v37  ;;  %11820 = vmatmul.mubr.bf16.vlgmr.msra.gmra.mrb[192].mxu0 %v11553_v37 }
0x11f0   :  { %15100 = vrcp.f32 %v11526_v30  ;;  %12030 = vmatpush1.bf16.msra.mxu1 %v18392_v10  ;;  %12071 = vmatpush1.bf16.msra.mxu0 %v18394_v31  ;;  %v15097_v10 = vpop.eup %15096 }
0x11f1   :  { %15102 = vrcp.f32 %v11532_v11  ;;  %12031 = vmatprep.subr.bf16.mxu1 %v18396_v19  ;;  %12072 = vmatprep.subr.bf16.mxu0 %v18398_v16  ;;  %v15099_v31 = vpop.eup %15098 }
0x11f2   :  { %12061 = vmatprep.mubr.bf16.mxu1 %v18669_v56  ;;  %12102 = vmatprep.mubr.bf16.mxu0 %v18669_v56 }
0x11f4   :  { %12032 = vmatpush1.bf16.msra.mxu1 %v18402_v15  ;;  %12073 = vmatpush1.bf16.msra.mxu0 %v18404_v46  ;;  %v11539_v15 = vadd.f32 1.0, %v15097_v10 }
0x11f5   :  { %12033 = vmatprep.subr.bf16.mxu1 %v18408_v50  ;;  %12074 = vmatprep.subr.bf16.mxu0 %v18410_v9  ;;  %v18988_v9 = vld [vmem:[#allocation27_spill] sm:$0xff] }
0x11f6   :  { %15104 = vrcp.f32 %v11539_v15 }
0x11f8   :  { %12034 = vmatpush1.bf16.msra.mxu1 %v18416_v3  ;;  %12075 = vmatpush1.bf16.msra.mxu0 %v18418_v20  ;;  %v18989_v3 = vld [vmem:[#allocation36_spill] sm:$0xff]  ;;  %v18990_v20 = vld [vmem:[#allocation37_spill] sm:$0xff] }
0x11f9   :  { %12035 = vmatprep.subr.bf16.mxu1 %v18422_v48  ;;  %12076 = vmatprep.subr.bf16.mxu0 %v18424_v49  ;;  %v18991_v48 = vld [vmem:[#allocation38_spill] sm:$0xff]  ;;  %v18992_v49 = vld [vmem:[#allocation39_spill] sm:$0xff] }
0x11fa   :  { %v15101_v19 = vpop.eup %15100 }
0x11fb   :  { %v15103_v56 = vpop.eup %15102  ;;  %v11543_v16 = vmul.f32 %v15101_v19, %v15099_v31 }
0x11fc   :  { %v11542_v46 = vmul.f32 %v15103_v56, %v18451_v28  ;;  %12036 = vmatpush1.bf16.msra.mxu1 %v18428_v27  ;;  %12077 = vmatpush1.bf16.msra.mxu0 %v18430_v58  ;;  %v18993_v27 = vld [vmem:[#allocation50_spill] sm:$0xff]  ;;  %v18994_v58 = vld [vmem:[#allocation51_spill] sm:$0xff] }
0x11fd   :  { %12037 = vmatprep.subr.bf16.mxu1 %v18434_v13  ;;  %12078 = vmatprep.subr.bf16.mxu0 %v18436_v6 }
0x11fe   :  { %v11544_v50 = vadd.f32 %v11543_v16, %v11542_v46 }
0x1200   :  { %15106 = vtanh.f32 %v11544_v50  ;;  %12038 = vmatpush1.bf16.msra.mxu1 %v18441_v34  ;;  %12079 = vmatpush1.bf16.msra.mxu0 %v18988_v9  ;;  %v15105_v13 = vpop.eup %15104 }
0x1201   :  { %12039 = vmatprep.subr.bf16.mxu1 %v18989_v3  ;;  %12080 = vmatprep.subr.bf16.mxu0 %v18990_v20 }
0x1204   :  { %12040 = vmatpush1.bf16.msra.mxu1 %v18991_v48  ;;  %12081 = vmatpush1.bf16.msra.mxu0 %v18992_v49 }
0x1205   :  { %12041 = vmatprep.subr.bf16.mxu1 %v18993_v27  ;;  %12082 = vmatprep.subr.bf16.mxu0 %v18994_v58 }
0x1208   :  { %12042 = vmatpush1.bf16.msra.mxu1 %v18468_v44  ;;  %12083 = vmatpush1.bf16.msra.mxu0 %v18470_v45  ;;  %v14613_v44 = vld [vmem:[#allocation16] sm:$0xff]   ;;  %v14614_v45 = vld [vmem:[#allocation16 + $0x48] sm:$0xff]  }
0x1209   :  { %12043 = vmatprep.subr.bf16.mxu1 %v18474_v8  ;;  %12084 = vmatprep.subr.bf16.mxu0 %v18476_v60  ;;  %v14616_v60 = vld [vmem:[#allocation16 + $0x50] sm:$0xff]  }
0x120a   :  { %v15107_v6 = vpop.eup %15106  ;;  %v14617_v8 = vld [vmem:[#allocation16 + $0x10] sm:$0xff]  }
0x120b   :  { %v11546_v34 = vmul.f32 %v15107_v6, %v15105_v13 }
0x120c   :  { %12044 = vmatpush1.bf16.msra.mxu1 %v18480_v29  ;;  %12085 = vmatpush1.bf16.msra.mxu0 %v18482_v40  ;;  %v14618_v29 = vld [vmem:[#allocation16 + $0x58] sm:$0xff]   ;;  %v14620_v40 = vld [vmem:[#allocation16 + $0x60] sm:$0xff]  }
0x120d   :  { %v11836_v28 = vpack.c.bf16 %v11546_v34, %v11546_v34  ;;  %13725 = vmatprep.subr.bf16.mxu1 %v14612_v5 }
0x120f   :  { %12062 = vmatmul.mubr.bf16.vlgmr.msra.gmra.mrb[188].mxu1 %v11836_v28  ;;  %12103 = vmatmul.mubr.bf16.vlgmr.msra.gmra.mrb[196].mxu0 %v11836_v28 }
0x1210   :  { %12336 = vmatprep.mubr.bf16.mxu1 %v18995_v42  ;;  %13726 = vmatpush3.bf16.msra.mxu1 %v14613_v44 }
0x1211   :  { %13727 = vmatprep.subr.bf16.mxu1 %v14614_v45 }
0x1214   :  { %13728 = vmatpush3.bf16.msra.mxu1 %v14615_v7 }
0x1215   :  { %13729 = vmatprep.subr.bf16.mxu1 %v14616_v60 }
0x1218   :  { %13730 = vmatpush3.bf16.msra.mxu1 %v14617_v8 }
0x1219   :  { %13731 = vmatprep.subr.bf16.mxu1 %v14618_v29 }
0x121c   :  { %13732 = vmatpush3.bf16.msra.mxu1 %v14619_v32 }
0x121d   :  { %13733 = vmatprep.subr.bf16.mxu1 %v14620_v40 }
0x1220   :  { %13734 = vmatpush3.bf16.msra.mxu1 %v14621_v0 }
0x1221   :  { %13735 = vmatprep.subr.bf16.mxu1 %v14622_v51 }
0x1224   :  { %13736 = vmatpush3.bf16.msra.mxu1 %v14623_v4 }
0x1225   :  { %13737 = vmatprep.subr.bf16.mxu1 %v14624_v36 }
0x1228   :  { %13738 = vmatpush3.bf16.msra.mxu1 %v14625_v52 }
0x1229   :  { %13739 = vmatprep.subr.bf16.mxu1 %v14626_v47 }
0x122c   :  { %13740 = vmatpush3.bf16.msra.mxu1 %v14627_v57 }
0x12c2   :  { %v11780_v38 = vpop.f32.mrb[184].mxu1  ;;  %v11821_v26 = vpop.f32.mrb[192].mxu0 }
0x12c3   :  { %v11828_v62 = vadd.f32 %v11780_v38, %v18996_v35  ;;  %v11830_v43 = vadd.f32 %v11821_v26, %v18997_v22  ;;  %v11782_v14 = vpop.f32.mrb[185].mxu1  ;;  %v11823_v21 = vpop.f32.mrb[193].mxu0 }
0x12c4   :  { %v11829_v39 = vadd.f32 %v11782_v14, %v18998_v25  ;;  %v11831_v41 = vadd.f32 %v11823_v21, %v18999_v54  ;;  %v11784_v24 = vpop.f32.mrb[186].mxu1  ;;  %v11825_v59 = vpop.f32.mrb[194].mxu0 }
0x12c5   :  { %v13678_v55 = vmul.f32 -1.442695, %v11828_v62  ;;  %v11785_v12 = vpop.f32.mrb[187].mxu1  ;;  %v11826_v1 = vpop.f32.mrb[195].mxu0 }
0x12c6   :  { %v13679_v53 = vmul.f32 -1.442695, %v11829_v39  ;;  %v13680_v18 = vmul.f32 -1.442695, %v11831_v41 }
0x12c7   :  { %15108 = vpow2.f32 %v13678_v55 }
0x12c8   :  { %15110 = vpow2.f32 %v13679_v53 }
0x12c9   :  { %15112 = vpow2.f32 %v13680_v18 }
0x12ca   :  { %15114 = vtanh.f32 %v11830_v43 }
0x12d1   :  { %v15109_v63 = vpop.eup %15108 }
0x12d2   :  { %v15111_v33 = vpop.eup %15110  ;;  %v12118_v17 = vadd.f32 1.0, %v15109_v63 }
0x12d3   :  { %v12124_v2 = vadd.f32 1.0, %v15111_v33  ;;  %v15113_v37 = vpop.eup %15112 }
0x12d4   :  { %15116 = vrcp.f32 %v12118_v17  ;;  %v15115_v23 = vpop.eup %15114  ;;  %v12131_v31 = vadd.f32 1.0, %v15113_v37 }
0x12d5   :  { %15118 = vrcp.f32 %v12124_v2 }
0x12d6   :  { %15120 = vrcp.f32 %v12131_v31 }
0x12de   :  { %v15117_v30 = vpop.eup %15116 }
0x12df   :  { %v15119_v11 = vpop.eup %15118  ;;  %v12135_v10 = vmul.f32 %v15117_v30, %v15115_v23 }
0x12e0   :  { %v12134_v19 = vmul.f32 %v15119_v11, %v18529_v61  ;;  %v15121_v49 = vpop.eup %15120  ;;  %v13684_v61 = vld [vmem:[%s18601_s11] ss:$0 sm:$0xff] }
0x12e2   :  { %v12136_v56 = vadd.f32 %v12135_v10, %v12134_v19  ;;  %v12063_v16 = vpop.f32.mrb[188].mxu1  ;;  %v12104_v15 = vpop.f32.mrb[196].mxu0 }
0x12e3   :  { %v12065_v46 = vpop.f32.mrb[189].mxu1  ;;  %v12106_v50 = vpop.f32.mrb[197].mxu0 }
0x12e4   :  { %15122 = vtanh.f32 %v12136_v56  ;;  %v12067_v9 = vpop.f32.mrb[190].mxu1  ;;  %v12108_v3 = vpop.f32.mrb[198].mxu0 }
0x12e5   :  { %v12068_v20 = vpop.f32.mrb[191].mxu1  ;;  %v12109_v48 = vpop.f32.mrb[199].mxu0 }
0x12ee   :  { %v15123_v27 = vpop.eup %15122 }
0x12ef   :  { %v12138_v58 = vmul.f32 %v15123_v27, %v15121_v49 }
0x12f1   :  { %v12167_v13 = vpack.c.bf16 %v12138_v58, %v12138_v58 }
0x12f3   :  { %12337 = vmatmul.mubr.bf16.vlgmr.msra.gmra.mrb[192].mxu1 %v12167_v13 }
0x13c6   :  { %v13741_v6 = vpop.f32.mrb[192].mxu1 }
0x13c7   :  { %v13742_v34 = vpop.f32.mrb[193].mxu1 }
0x13c8   :  { %v13743_v28 = vadd.f32 %v13742_v34, %v13741_v6  ;;  %v13744_v42 = vpop.f32.mrb[194].mxu1 }
0x13c9   :  { %v13745_v5 = vpop.f32.mrb[195].mxu1 }
0x13ca   :  { %v12339_v44 = vadd.f32 %v13743_v28, %v13684_v61 }
0x13cc   :  { %12344 = vst [vmem:[#allocation18] sm:$0xff] %v12339_v44 }
0x13cd   :  { %15313 = shalt.err (!%p15310_p12)
}
0x13ce   :  { %s15314_s11 = scalar_lea.hbm %s18602_s12, 128 }
0x13cf   :  { %p15315_p13 = scmp.ne.s32.totalorder %s18602_s12, %s15314_s11  ;;  %p15318_p0 = scmp.lt.u32.totalorder %s15314_s11, %s18602_s12 }
0x13d1   :  { %p15320_p1 = pnand %p15318_p0, %p15315_p13 }
0x13d3   :  { %15323 = shalt.err (!%p15320_p1)
}
0x13d4   :  { %12354 = dma.vmem_to_hbm [thread:$0]  %s12352_s3, 128, %s18602_s12, [#allocation6]  }
0x13d5   :  { %15334 = dma.done.wait [#allocation6], 128  }
0x13d6   :  { %15335 = vsyncadd [#allocation6], 4294967168 }
0x13d7   :  { %12358 = vsyncpa [#allocation5], 1 }
0x13d8   :  { %12359 = vsyncpa [#allocation8], 1 }
0x13d9   :  { %12360 = vsyncpa [#allocation11], 1 }
0x13da   :  { %12361 = vsyncpa [#allocation14], 1 }
0x13db   :  { %12362 = vsyncpa [#allocation17], 1 }
0x13dc   :  { %12363 = vsyncpa [#allocation6], 1 }

</bundles_post_ra>
